<compile_context>
chip_gen: v7x
topology: tpu7x:2x2x1
jax: 0.10.0
libtpu: 0.0.40
codegen_flags: <defaults>
</compile_context>

<pallas_src>
import math

import jax
import jax.numpy as jnp
from jax import lax
from jax.experimental import pallas as pl
from jax.experimental.pallas import tpu as pltpu


# ----------------------------- constants -----------------------------------

TM, TN, TK = 256, 512, 512       # matmul tile caps (working set ~3 MiB dbl-buffered)
NORM_TR = 512                    # row tile for norm / pooling kernels
VMEM_LIMIT = 32 * 1024 * 1024    # explicit scoped-VMEM limit (>= default on v5e)

INIT_DIM = 64
PLANES = (64, 128, 256, 512)
LAYERS = (1, 1, 1, 1)            # BLOCK abstract in base class; BasicBlock used


def _round_up(x, m):
    return ((x + m - 1) // m) * m


def _pick_tile(total, cap, mult):
    """Largest tile <= cap that divides `total` and is a multiple of `mult`.
    `total` must itself be a multiple of `mult`."""
    cap = max(mult, min(cap, total))
    t = cap - cap % mult
    while t > mult and total % t != 0:
        t -= mult
    return t


def _cparams(dims):
    return pltpu.CompilerParams(dimension_semantics=dims,
                                vmem_limit_bytes=VMEM_LIMIT)


# ----------------------------- Pallas kernels -------------------------------

def _matmul_kernel(a_ref, w_ref, o_ref, acc_ref):
    """O = A @ W, K-tiled; f32 accumulation in scratch, cast out on last step."""
    @pl.when(pl.program_id(2) == 0)
    def _():
        acc_ref[...] = jnp.zeros_like(acc_ref)

    acc_ref[...] += jnp.dot(a_ref[...], w_ref[...],
                            preferred_element_type=jnp.float32)

    @pl.when(pl.program_id(2) == pl.num_programs(2) - 1)
    def _():
        o_ref[...] = acc_ref[...].astype(o_ref.dtype)


def _matmul_bias_kernel(a_ref, w_ref, b_ref, o_ref, acc_ref):
    """Same as above + fused bias on the last K step."""
    @pl.when(pl.program_id(2) == 0)
    def _():
        acc_ref[...] = jnp.zeros_like(acc_ref)

    acc_ref[...] += jnp.dot(a_ref[...], w_ref[...],
                            preferred_element_type=jnp.float32)

    @pl.when(pl.program_id(2) == pl.num_programs(2) - 1)
    def _():
        o_ref[...] = (acc_ref[...] + b_ref[...]).astype(o_ref.dtype)


def _moments_kernel(x_ref, sum_ref, ssq_ref):
    """Tiled partial reduction: per-group running sum / sum-of-squares (f32)."""
    @pl.when(pl.program_id(1) == 0)
    def _():
        sum_ref[...] = jnp.zeros_like(sum_ref)
        ssq_ref[...] = jnp.zeros_like(ssq_ref)

    x = x_ref[...].astype(jnp.float32)               # (1, tr, C)
    sum_ref[...] += jnp.sum(x, axis=1, keepdims=True)
    ssq_ref[...] += jnp.sum(x * x, axis=1, keepdims=True)


def _make_norm_apply_kernel(act, has_res):
    """normalize (+ residual) (+ ReLU / GELU) — fused elementwise epilogue."""
    def _body(x, mu, var, res):
        y = (x.astype(jnp.float32) - mu) * lax.rsqrt(var + 1e-5)
        if res is not None:
            y = y + res.astype(jnp.float32)
        if act == "relu":
            y = jnp.maximum(y, 0.0)
        elif act == "gelu":                          # exact (erf) GELU
            y = 0.5 * y * (1.0 + lax.erf(y * (1.0 / math.sqrt(2.0))))
        return y

    if has_res:
        def kernel(x_ref, mu_ref, var_ref, res_ref, o_ref):
            o_ref[...] = _body(x_ref[...], mu_ref[...], var_ref[...],
                               res_ref[...]).astype(o_ref.dtype)
    else:
        def kernel(x_ref, mu_ref, var_ref, o_ref):
            o_ref[...] = _body(x_ref[...], mu_ref[...], var_ref[...],
                               None).astype(o_ref.dtype)
    return kernel


def _globalmax_kernel(x_ref, o_ref):
    """Running max over row tiles per instance."""
    @pl.when(pl.program_id(1) == 0)
    def _():
        o_ref[...] = jnp.full_like(o_ref, -jnp.inf)
    o_ref[...] = jnp.maximum(
        o_ref[...],
        jnp.max(x_ref[...].astype(jnp.float32), axis=1, keepdims=True))


# ----------------------------- matmul wrapper --------------------------------

def matmul(a, w, bias=None, out_dtype=jnp.bfloat16):
    """a:[M,K] @ w:[K,Np] (padded bf16 weight) -> [M,Np].  K must already be
    padded to a 128 multiple (done once at weight-prep / im2col time)."""
    M, K = a.shape
    Kp, Np = w.shape
    assert K == Kp, (K, Kp)

    a = a.astype(jnp.bfloat16)
    Mp = _round_up(M, 16)                       # bf16 min sublane tile is 16
    if Mp != M:                                 # only tiny tails ever get padded
        a = jnp.pad(a, ((0, Mp - M), (0, 0)))

    tm = _pick_tile(Mp, TM, 16)
    tn = _pick_tile(Np, TN, 128)
    tk = _pick_tile(Kp, TK, 128)

    # v7x megacore: expose >=2 blocks on the parallel axes when possible.
    if (Mp // tm) * (Np // tn) < 2:
        tn2 = _pick_tile(Np, tn // 2, 128)
        tm2 = _pick_tile(Mp, tm // 2, 16)
        if Np // tn2 >= 2:
            tn = tn2
        elif Mp // tm2 >= 2:
            tm = tm2

    in_specs = [pl.BlockSpec((tm, tk), lambda i, j, k: (i, k)),
                pl.BlockSpec((tk, tn), lambda i, j, k: (k, j))]
    operands = [a, w]
    if bias is not None:
        nb = bias.shape[0]
        b_p = jnp.pad(bias.astype(jnp.float32), (0, Np - nb)).reshape(1, Np)
        in_specs.append(pl.BlockSpec((1, tn), lambda i, j, k: (0, j)))
        operands.append(b_p)
        kernel = _matmul_bias_kernel
    else:
        kernel = _matmul_kernel

    out = pl.pallas_call(
        kernel,
        out_shape=jax.ShapeDtypeStruct((Mp, Np), out_dtype),
        grid=(Mp // tm, Np // tn, Kp // tk),
        in_specs=in_specs,
        out_specs=pl.BlockSpec((tm, tn), lambda i, j, k: (i, j)),
        scratch_shapes=[pltpu.VMEM((tm, tn), jnp.float32)],
        compiler_params=_cparams(("parallel", "parallel", "arbitrary")),
    )(*operands)
    return out[:M]                              # keep padded N columns flowing


# ----------------------------- conv (im2col + matmul) ------------------------

def _im2col_3d(x, ksize, stride, pad, cpad):
    """x:[B,D,H,W,C] bf16 -> patches:[B,Do,Ho,Wo,k^3,C+cpad]  (JAX glue).
    Spatial + channel padding fused into one jnp.pad pass."""
    B, Dd, H, W, C = x.shape
    xp = jnp.pad(x, ((0, 0), (pad, pad), (pad, pad), (pad, pad), (0, cpad)))
    Do = (Dd + 2 * pad - ksize) // stride + 1
    Ho = (H + 2 * pad - ksize) // stride + 1
    Wo = (W + 2 * pad - ksize) // stride + 1
    slabs = []
    for kd in range(ksize):
        for kh in range(ksize):
            for kw in range(ksize):
                slabs.append(xp[:,
                                kd: kd + Do * stride: stride,
                                kh: kh + Ho * stride: stride,
                                kw: kw + Wo * stride: stride, :])
    p = jnp.stack(slabs, axis=-2)                     # [B,Do,Ho,Wo,k^3,Cp]
    return p, (Do, Ho, Wo)


def conv3d(x, w, ksize, stride, pad):
    """MinkowskiConvolution equivalent on a dense grid (no bias).
    `w` is the pre-padded bf16 weight of shape (k^3 * Cp, Np)."""
    B, Dd, H, W, C = x.shape
    k_vol = ksize ** 3
    Kp, Np = w.shape
    Cp = Kp // k_vol
    assert C <= Cp
    # TODO(synk): replace im2col materialization with shifted-window streaming
    #             of the 27 taps through the matmul K grid (pl.ANY + manual DMA).
    patches, (Do, Ho, Wo) = _im2col_3d(x.astype(jnp.bfloat16),
                                       ksize, stride, pad, Cp - C)
    a = patches.reshape(B * Do * Ho * Wo, Kp)
    out = matmul(a, w)                                # bf16, channel-padded
    return out.reshape(B, Do, Ho, Wo, Np)


# ----------------------------- norm wrappers ---------------------------------

def _group_norm(x, act=None, residual=None, shared_stats=False):
    """x:[G,S,C] (C a multiple of 128).  Two tiled Pallas passes:
    (sum, sumsq) reduction + fused normalize(+res)(+act), bf16 output.
    If shared_stats, the G groups share one mean/var (BatchNorm split for
    v7x megacore); otherwise stats are per group (InstanceNorm)."""
    G, S, C = x.shape
    assert C % 128 == 0

    tr = min(NORM_TR, _round_up(S, 16))
    Sp = _round_up(S, tr)
    xf, rf = x, residual
    if Sp != S:                                       # zero rows don't bias sums
        xf = jnp.pad(xf, ((0, 0), (0, Sp - S), (0, 0)))
        if rf is not None:
            rf = jnp.pad(rf, ((0, 0), (0, Sp - S), (0, 0)))
    ns = Sp // tr

    sums, ssqs = pl.pallas_call(
        _moments_kernel,
        out_shape=(jax.ShapeDtypeStruct((G, 1, C), jnp.float32),
                   jax.ShapeDtypeStruct((G, 1, C), jnp.float32)),
        grid=(G, ns),
        in_specs=[pl.BlockSpec((1, tr, C), lambda g, s: (g, s, 0))],
        out_specs=(pl.BlockSpec((1, 1, C), lambda g, s: (g, 0, 0)),
                   pl.BlockSpec((1, 1, C), lambda g, s: (g, 0, 0))),
        compiler_params=_cparams(("parallel", "arbitrary")),
    )(xf)

    # tiny per-channel stats glue (f32); combine group partials if shared.
    sums = sums.reshape(G, C)
    ssqs = ssqs.reshape(G, C)
    if shared_stats:
        sums = jnp.sum(sums, axis=0, keepdims=True)
        ssqs = jnp.sum(ssqs, axis=0, keepdims=True)
        count = G * S
    else:
        count = S
    mean = sums / count
    var = jnp.maximum(ssqs / count - mean * mean, 0.0)
    Gs = 1 if shared_stats else G
    mean = mean.reshape(Gs, 1, C)
    var = var.reshape(Gs, 1, C)
    stat_map = (lambda g, s: (0, 0, 0)) if shared_stats else (lambda g, s: (g, 0, 0))

    kernel = _make_norm_apply_kernel(act, rf is not None)
    in_specs = [pl.BlockSpec((1, tr, C), lambda g, s: (g, s, 0)),
                pl.BlockSpec((1, 1, C), stat_map),
                pl.BlockSpec((1, 1, C), stat_map)]
    operands = [xf, mean, var]
    if rf is not None:
        in_specs.append(pl.BlockSpec((1, tr, C), lambda g, s: (g, s, 0)))
        operands.append(rf)

    out = pl.pallas_call(
        kernel,
        out_shape=jax.ShapeDtypeStruct((G, Sp, C), jnp.bfloat16),
        grid=(G, ns),
        in_specs=in_specs,
        out_specs=pl.BlockSpec((1, tr, C), lambda g, s: (g, s, 0)),
        compiler_params=_cparams(("parallel", "parallel")),
    )(*operands)
    return out[:, :S, :]


def instance_norm_act(x, act):
    """MinkowskiInstanceNorm (+ activation): normalize per batch instance."""
    B, Dd, H, W, C = x.shape
    y = _group_norm(x.reshape(B, Dd * H * W, C), act=act)
    return y.reshape(B, Dd, H, W, C)


def batch_norm(x, residual=None, relu=False):
    """MinkowskiBatchNorm (batch stats, weight=1, bias=0) + residual + ReLU.
    Rows are split into >=2 groups with shared stats so both v7x cores work."""
    B, Dd, H, W, C = x.shape
    N = B * Dd * H * W
    G = next(g for g in (8, 4, 2, 1) if N % g == 0)
    xg = x.reshape(G, N // G, C)
    rg = residual.reshape(G, N // G, C) if residual is not None else None
    y = _group_norm(xg, act="relu" if relu else None, residual=rg,
                    shared_stats=True)
    return y.reshape(B, Dd, H, W, C)


# ----------------------------- pooling --------------------------------------

def maxpool2(x):
    """MinkowskiMaxPooling(kernel=2, stride=2) — fused jnp reshape+max."""
    B, Dd, H, W, C = x.shape
    assert Dd % 2 == 0 and H % 2 == 0 and W % 2 == 0, "maxpool2 needs even dims"
    return x.reshape(B, Dd // 2, 2, H // 2, 2, W // 2, 2, C).max(axis=(2, 4, 6))


def global_max_pool(x, true_c):
    """MinkowskiGlobalMaxPooling: tiled running max over all points / instance."""
    B, Dd, H, W, C = x.shape
    S = Dd * H * W
    xf = x.reshape(B, S, C)
    tr = min(NORM_TR, _round_up(S, 16))
    Sp = _round_up(S, tr)
    if Sp != S:
        xf = jnp.pad(xf, ((0, 0), (0, Sp - S), (0, 0)),
                     constant_values=float(jnp.finfo(x.dtype).min))
    out = pl.pallas_call(
        _globalmax_kernel,
        out_shape=jax.ShapeDtypeStruct((B, 1, C), jnp.float32),
        grid=(B, Sp // tr),
        in_specs=[pl.BlockSpec((1, tr, C), lambda b, s: (b, s, 0))],
        out_specs=pl.BlockSpec((1, 1, C), lambda b, s: (b, 0, 0)),
        compiler_params=_cparams(("parallel", "arbitrary")),
    )(xf)
    return out.reshape(B, C)[:, :true_c]


# ----------------------------- parameters -----------------------------------

def _kaiming_conv(key, k_vol, cin, cout):
    # kaiming_normal_, mode='fan_out', nonlinearity='relu'
    std = math.sqrt(2.0 / (k_vol * cout))
    return std * jax.random.normal(key, (k_vol * cin, cout), jnp.float32)


def prep_conv_weight(w, k_vol, cin):
    """Pad per-tap input channels and output channels to 128 multiples and cast
    to bf16 ONCE at init.  Padded rows/cols are zero, matching the padded
    activation layout that flows through the whole network."""
    cout = w.shape[1]
    Cp = _round_up(cin, 128)
    Np = _round_up(cout, 128)
    w = w.reshape(k_vol, cin, cout)
    w = jnp.pad(w, ((0, 0), (0, Cp - cin), (0, Np - cout)))
    return w.reshape(k_vol * Cp, Np).astype(jnp.bfloat16)


def init_params(key, in_channels, out_channels):
    keys = iter(jax.random.split(key, 32))

    def conv_w(k_vol, cin, cout):
        return prep_conv_weight(_kaiming_conv(next(keys), k_vol, cin, cout),
                                k_vol, cin)

    params = {"conv1": conv_w(27, in_channels, INIT_DIM)}
    inplanes = INIT_DIM
    for li, planes in enumerate(PLANES):
        params[f"layer{li + 1}"] = {
            "conv1": conv_w(27, inplanes, planes),
            "conv2": conv_w(27, planes, planes),
            # stride=2 every layer -> downsample (1x1x1 conv + BN) always present
            "down": conv_w(1, inplanes, planes),
        }
        inplanes = planes
    params["conv5"] = conv_w(27, inplanes, inplanes)

    bound = 1.0 / math.sqrt(inplanes)
    params["final"] = prep_conv_weight(
        jax.random.uniform(next(keys), (inplanes, out_channels), jnp.float32,
                           -bound, bound), 1, inplanes)
    params["final_b"] = jax.random.uniform(
        next(keys), (out_channels,), jnp.float32, -bound, bound)
    return params


# ----------------------------- forward pass ----------------------------------

def basic_block(p, x, stride):
    out = conv3d(x, p["conv1"], ksize=3, stride=stride, pad=1)
    out = batch_norm(out, relu=True)
    out = conv3d(out, p["conv2"], ksize=3, stride=1, pad=1)
    res = conv3d(x, p["down"], ksize=1, stride=stride, pad=0)
    res = batch_norm(res)
    return batch_norm(out, residual=res, relu=True)   # relu(norm2(out) + res)


def forward(params, x, l=None):
    # `l` (text input) is accepted but never used by the reference forward().
    # conv1 block: conv(k3,s2) -> InstanceNorm -> ReLU -> MaxPool(k2,s2)
    x = conv3d(x, params["conv1"], ksize=3, stride=2, pad=1)
    x = instance_norm_act(x, "relu")
    x = maxpool2(x)

    # layer1..layer4 (BasicBlock x1 each, stride=2)
    for li in range(4):
        x = basic_block(params[f"layer{li + 1}"], x, stride=2)

    # conv5: Dropout (identity at inference) -> conv(k3,s3) -> InstanceNorm -> GELU
    x = conv3d(x, params["conv5"], ksize=3, stride=3, pad=1)
    x = instance_norm_act(x, "gelu")

    x = global_max_pool(x, PLANES[-1])                # [B, 512] f32
    out = matmul(x, params["final"], bias=params["final_b"],
                 out_dtype=jnp.float32)
    return out[:, :params["final_b"].shape[0]]        # trim padded out channels


# ----------------------------- main ------------------------------------------

if __name__ == "__main__":
    key = jax.random.PRNGKey(0)
    kx, kl, kp = jax.random.split(key, 3)

    B, in_channels, out_channels, spatial = 2, 4, 8, 16
    x = jax.random.normal(kx, (B, spatial, spatial, spatial, in_channels),
                          jnp.float32)                # dense voxel features
    l = jax.random.randint(kl, (B, 8), 0, 100)        # text tokens (unused)

    params = init_params(kp, in_channels, out_channels)
    out = jax.jit(forward)(params, x, l)
    out = jax.block_until_ready(out)

    assert out.shape == (B, out_channels), out.shape
    assert bool(jnp.all(jnp.isfinite(out)))
    print("KERNEL_OK")
</pallas_src>

<mosaic_0001>
module attributes {stable_mosaic.version = 11 : i64} {
  func.func @_moments_kernel(%arg0: i32, %arg1: i32, %arg2: memref<1x512x128xbf16, #tpu.memory_space<vmem>>, %arg3: memref<1x1x128xf32, #tpu.memory_space<vmem>>, %arg4: memref<1x1x128xf32, #tpu.memory_space<vmem>>) attributes {dimension_semantics = [#tpu.dimension_semantics<parallel>, #tpu.dimension_semantics<arbitrary>], iteration_bounds = array<i64: 2, 1>, scalar_prefetch = 0 : i64, scratch_operands = 0 : i64, tpu.core_type = #tpu.core_type<tc>, window_params = [{transform_indices = @transform_0, window_bounds = array<i64: 1, 512, 128>}, {transform_indices = @transform_1, window_bounds = array<i64: 1, 1, 128>}, {transform_indices = @transform_2, window_bounds = array<i64: 1, 1, 128>}]} {
    %c0_i32 = arith.constant 0 : i32
    %0 = arith.cmpi eq, %arg1, %c0_i32 : i32
    %1 = arith.extui %0 : i1 to i32
    %c0_i32_0 = arith.constant 0 : i32
    %2 = arith.cmpi ne, %1, %c0_i32_0 : i32
    scf.if %2 {
      %cst_16 = arith.constant 0.000000e+00 : f32
      %16 = vector.broadcast %cst_16 : f32 to vector<1x1x128xf32>
      %c0_17 = arith.constant 0 : index
      %c0_18 = arith.constant 0 : index
      %c0_19 = arith.constant 0 : index
      %17 = vector.load %arg3[%c0_17, %c0_18, %c0_19] : memref<1x1x128xf32, #tpu.memory_space<vmem>>, vector<1x1x128xf32>
      tpu.vector_store %arg3[%c0_17, %c0_18, %c0_19], %16 {strides = array<i32>} : memref<1x1x128xf32, #tpu.memory_space<vmem>>, vector<1x1x128xf32>,
      %cst_20 = arith.constant 0.000000e+00 : f32
      %18 = vector.broadcast %cst_20 : f32 to vector<1x1x128xf32>
      %c0_21 = arith.constant 0 : index
      %c0_22 = arith.constant 0 : index
      %c0_23 = arith.constant 0 : index
      %19 = vector.load %arg4[%c0_21, %c0_22, %c0_23] : memref<1x1x128xf32, #tpu.memory_space<vmem>>, vector<1x1x128xf32>
      tpu.vector_store %arg4[%c0_21, %c0_22, %c0_23], %18 {strides = array<i32>} : memref<1x1x128xf32, #tpu.memory_space<vmem>>, vector<1x1x128xf32>,
    } else {
    }
    %c0 = arith.constant 0 : index
    %c0_1 = arith.constant 0 : index
    %c0_2 = arith.constant 0 : index
    %3 = vector.load %arg2[%c0, %c0_1, %c0_2] : memref<1x512x128xbf16, #tpu.memory_space<vmem>>, vector<1x512x128xbf16>
    %4 = arith.extf %3 : vector<1x512x128xbf16> to vector<1x512x128xf32>
    %c0_3 = arith.constant 0 : index
    %c0_4 = arith.constant 0 : index
    %c0_5 = arith.constant 0 : index
    %5 = vector.load %arg3[%c0_3, %c0_4, %c0_5] : memref<1x1x128xf32, #tpu.memory_space<vmem>>, vector<1x1x128xf32>
    %cst = arith.constant dense<0.000000e+00> : vector<1x128xf32>
    %6 = vector.multi_reduction <add>, %4, %cst [1] : vector<1x512x128xf32> to vector<1x128xf32>
    %7 = vector.shape_cast %6 : vector<1x128xf32> to vector<1x1x128xf32>
    %8 = arith.addf %5, %7 : vector<1x1x128xf32>
    %c0_6 = arith.constant 0 : index
    %c0_7 = arith.constant 0 : index
    %c0_8 = arith.constant 0 : index
    %9 = vector.load %arg3[%c0_6, %c0_7, %c0_8] : memref<1x1x128xf32, #tpu.memory_space<vmem>>, vector<1x1x128xf32>
    tpu.vector_store %arg3[%c0_6, %c0_7, %c0_8], %8 {strides = array<i32>} : memref<1x1x128xf32, #tpu.memory_space<vmem>>, vector<1x1x128xf32>,
    %c0_9 = arith.constant 0 : index
    %c0_10 = arith.constant 0 : index
    %c0_11 = arith.constant 0 : index
    %10 = vector.load %arg4[%c0_9, %c0_10, %c0_11] : memref<1x1x128xf32, #tpu.memory_space<vmem>>, vector<1x1x128xf32>
    %11 = arith.mulf %4, %4 : vector<1x512x128xf32>
    %cst_12 = arith.constant dense<0.000000e+00> : vector<1x128xf32>
    %12 = vector.multi_reduction <add>, %11, %cst_12 [1] : vector<1x512x128xf32> to vector<1x128xf32>
    %13 = vector.shape_cast %12 : vector<1x128xf32> to vector<1x1x128xf32>
    %14 = arith.addf %10, %13 : vector<1x1x128xf32>
    %c0_13 = arith.constant 0 : index
    %c0_14 = arith.constant 0 : index
    %c0_15 = arith.constant 0 : index
    %15 = vector.load %arg4[%c0_13, %c0_14, %c0_15] : memref<1x1x128xf32, #tpu.memory_space<vmem>>, vector<1x1x128xf32>
    tpu.vector_store %arg4[%c0_13, %c0_14, %c0_15], %14 {strides = array<i32>} : memref<1x1x128xf32, #tpu.memory_space<vmem>>, vector<1x1x128xf32>,
    return
  }
  func.func @transform_0(%arg0: i32, %arg1: i32) -> (i32, i32, i32) {
    %c0_i32 = arith.constant 0 : i32
    %c0_i32_0 = arith.constant 0 : i32
    return %arg0, %arg1, %c0_i32 : i32, i32, i32
  }
  func.func @transform_1(%arg0: i32, %arg1: i32) -> (i32, i32, i32) {
    %c0_i32 = arith.constant 0 : i32
    %c0_i32_0 = arith.constant 0 : i32
    %c0_i32_1 = arith.constant 0 : i32
    return %arg0, %c0_i32, %c0_i32_0 : i32, i32, i32
  }
  func.func @transform_2(%arg0: i32, %arg1: i32) -> (i32, i32, i32) {
    %c0_i32 = arith.constant 0 : i32
    %c0_i32_0 = arith.constant 0 : i32
    %c0_i32_1 = arith.constant 0 : i32
    return %arg0, %c0_i32, %c0_i32_0 : i32, i32, i32
  }
}

module attributes {stable_mosaic.version = 11 : i64} {
  func.func @_matmul_kernel(%arg0: i32, %arg1: i32, %arg2: i32, %arg3: memref<256x384xbf16, #tpu.memory_space<vmem>>, %arg4: memref<384x128xbf16, #tpu.memory_space<vmem>>, %arg5: memref<256x128xbf16, #tpu.memory_space<vmem>>, %arg6: memref<256x128xf32, #tpu.memory_space<vmem>>) attributes {dimension_semantics = [#tpu.dimension_semantics<parallel>, #tpu.dimension_semantics<parallel>, #tpu.dimension_semantics<arbitrary>], iteration_bounds = array<i64: 4, 1, 9>, scalar_prefetch = 0 : i64, scratch_operands = 1 : i64, tpu.core_type = #tpu.core_type<tc>, window_params = [{transform_indices = @transform_0, window_bounds = array<i64: 256, 384>}, {transform_indices = @transform_1, window_bounds = array<i64: 384, 128>}, {transform_indices = @transform_2, window_bounds = array<i64: 256, 128>}]} {
    %c0_i32 = arith.constant 0 : i32
    %0 = arith.cmpi eq, %arg2, %c0_i32 : i32
    %1 = arith.extui %0 : i1 to i32
    %c0_i32_0 = arith.constant 0 : i32
    %2 = arith.cmpi ne, %1, %c0_i32_0 : i32
    scf.if %2 {
      %cst_9 = arith.constant 0.000000e+00 : f32
      %12 = vector.broadcast %cst_9 : f32 to vector<256x128xf32>
      %c0_10 = arith.constant 0 : index
      %c0_11 = arith.constant 0 : index
      %13 = vector.load %arg6[%c0_10, %c0_11] : memref<256x128xf32, #tpu.memory_space<vmem>>, vector<256x128xf32>
      tpu.vector_store %arg6[%c0_10, %c0_11], %12 {strides = array<i32>} : memref<256x128xf32, #tpu.memory_space<vmem>>, vector<256x128xf32>,
    } else {
    }
    %c0 = arith.constant 0 : index
    %c0_1 = arith.constant 0 : index
    %3 = vector.load %arg6[%c0, %c0_1] : memref<256x128xf32, #tpu.memory_space<vmem>>, vector<256x128xf32>
    %c0_2 = arith.constant 0 : index
    %c0_3 = arith.constant 0 : index
    %4 = vector.load %arg3[%c0_2, %c0_3] : memref<256x384xbf16, #tpu.memory_space<vmem>>, vector<256x384xbf16>
    %c0_4 = arith.constant 0 : index
    %c0_5 = arith.constant 0 : index
    %5 = vector.load %arg4[%c0_4, %c0_5] : memref<384x128xbf16, #tpu.memory_space<vmem>>, vector<384x128xbf16>
    %cst = arith.constant dense<0.000000e+00> : vector<256x128xf32>
    %6 = tpu.matmul %4, %5, %cst {dimension_numbers = #tpu.dot_dimension_numbers<[1], [0], [0], [1], [0, 0, 1, 1], [], []>} : vector<256x384xbf16>, vector<384x128xbf16>, vector<256x128xf32> -> vector<256x128xf32>
    %7 = arith.addf %3, %6 : vector<256x128xf32>
    %c0_6 = arith.constant 0 : index
    %c0_7 = arith.constant 0 : index
    %8 = vector.load %arg6[%c0_6, %c0_7] : memref<256x128xf32, #tpu.memory_space<vmem>>, vector<256x128xf32>
    tpu.vector_store %arg6[%c0_6, %c0_7], %7 {strides = array<i32>} : memref<256x128xf32, #tpu.memory_space<vmem>>, vector<256x128xf32>,
    %c8_i32 = arith.constant 8 : i32
    %9 = arith.cmpi eq, %arg2, %c8_i32 : i32
    %10 = arith.extui %9 : i1 to i32
    %c0_i32_8 = arith.constant 0 : i32
    %11 = arith.cmpi ne, %10, %c0_i32_8 : i32
    scf.if %11 {
      %c0_9 = arith.constant 0 : index
      %c0_10 = arith.constant 0 : index
      %12 = vector.load %arg6[%c0_9, %c0_10] : memref<256x128xf32, #tpu.memory_space<vmem>>, vector<256x128xf32>
      %13 = arith.truncf %12 : vector<256x128xf32> to vector<256x128xbf16>
      %c0_11 = arith.constant 0 : index
      %c0_12 = arith.constant 0 : index
      %14 = vector.load %arg5[%c0_11, %c0_12] : memref<256x128xbf16, #tpu.memory_space<vmem>>, vector<256x128xbf16>
      tpu.vector_store %arg5[%c0_11, %c0_12], %13 {strides = array<i32>} : memref<256x128xbf16, #tpu.memory_space<vmem>>, vector<256x128xbf16>,
    } else {
    }
    return
  }
  func.func @transform_0(%arg0: i32, %arg1: i32, %arg2: i32) -> (i32, i32) {
    %c0_i32 = arith.constant 0 : i32
    return %arg0, %arg2 : i32, i32
  }
  func.func @transform_1(%arg0: i32, %arg1: i32, %arg2: i32) -> (i32, i32) {
    %c0_i32 = arith.constant 0 : i32
    return %arg2, %arg1 : i32, i32
  }
  func.func @transform_2(%arg0: i32, %arg1: i32, %arg2: i32) -> (i32, i32) {
    %c0_i32 = arith.constant 0 : i32
    return %arg0, %arg1 : i32, i32
  }
}

module attributes {stable_mosaic.version = 11 : i64} {
  func.func @kernel(%arg0: i32, %arg1: i32, %arg2: memref<1x512x128xbf16, #tpu.memory_space<vmem>>, %arg3: memref<1x1x128xf32, #tpu.memory_space<vmem>>, %arg4: memref<1x1x128xf32, #tpu.memory_space<vmem>>, %arg5: memref<1x512x128xbf16, #tpu.memory_space<vmem>>) attributes {dimension_semantics = [#tpu.dimension_semantics<parallel>, #tpu.dimension_semantics<parallel>], iteration_bounds = array<i64: 2, 1>, scalar_prefetch = 0 : i64, scratch_operands = 0 : i64, tpu.core_type = #tpu.core_type<tc>, window_params = [{transform_indices = @transform_0, window_bounds = array<i64: 1, 512, 128>}, {transform_indices = @transform_1, window_bounds = array<i64: 1, 1, 128>}, {transform_indices = @transform_2, window_bounds = array<i64: 1, 1, 128>}, {transform_indices = @transform_3, window_bounds = array<i64: 1, 512, 128>}]} {
    %c0 = arith.constant 0 : index
    %c0_0 = arith.constant 0 : index
    %c0_1 = arith.constant 0 : index
    %0 = vector.load %arg2[%c0, %c0_0, %c0_1] : memref<1x512x128xbf16, #tpu.memory_space<vmem>>, vector<1x512x128xbf16>
    %c0_2 = arith.constant 0 : index
    %c0_3 = arith.constant 0 : index
    %c0_4 = arith.constant 0 : index
    %1 = vector.load %arg3[%c0_2, %c0_3, %c0_4] : memref<1x1x128xf32, #tpu.memory_space<vmem>>, vector<1x1x128xf32>
    %c0_5 = arith.constant 0 : index
    %c0_6 = arith.constant 0 : index
    %c0_7 = arith.constant 0 : index
    %2 = vector.load %arg4[%c0_5, %c0_6, %c0_7] : memref<1x1x128xf32, #tpu.memory_space<vmem>>, vector<1x1x128xf32>
    %3 = arith.extf %0 : vector<1x512x128xbf16> to vector<1x512x128xf32>
    %4 = vector.broadcast %1 : vector<1x1x128xf32> to vector<1x512x128xf32>
    %5 = arith.subf %3, %4 : vector<1x512x128xf32>
    %cst = arith.constant 9.99999974E-6 : f32
    %6 = vector.broadcast %cst : f32 to vector<1x1x128xf32>
    %7 = arith.addf %2, %6 : vector<1x1x128xf32>
    %8 = math.rsqrt %7 : vector<1x1x128xf32>
    %9 = vector.broadcast %8 : vector<1x1x128xf32> to vector<1x512x128xf32>
    %10 = arith.mulf %5, %9 : vector<1x512x128xf32>
    %cst_8 = arith.constant 0.000000e+00 : f32
    %11 = vector.broadcast %cst_8 : f32 to vector<1x512x128xf32>
    %12 = arith.maximumf %10, %11 : vector<1x512x128xf32>
    %13 = arith.truncf %12 : vector<1x512x128xf32> to vector<1x512x128xbf16>
    %c0_9 = arith.constant 0 : index
    %c0_10 = arith.constant 0 : index
    %c0_11 = arith.constant 0 : index
    %14 = vector.load %arg5[%c0_9, %c0_10, %c0_11] : memref<1x512x128xbf16, #tpu.memory_space<vmem>>, vector<1x512x128xbf16>
    tpu.vector_store %arg5[%c0_9, %c0_10, %c0_11], %13 {strides = array<i32>} : memref<1x512x128xbf16, #tpu.memory_space<vmem>>, vector<1x512x128xbf16>,
    return
  }
  func.func @transform_0(%arg0: i32, %arg1: i32) -> (i32, i32, i32) {
    %c0_i32 = arith.constant 0 : i32
    %c0_i32_0 = arith.constant 0 : i32
    return %arg0, %arg1, %c0_i32 : i32, i32, i32
  }
  func.func @transform_1(%arg0: i32, %arg1: i32) -> (i32, i32, i32) {
    %c0_i32 = arith.constant 0 : i32
    %c0_i32_0 = arith.constant 0 : i32
    %c0_i32_1 = arith.constant 0 : i32
    return %arg0, %c0_i32, %c0_i32_0 : i32, i32, i32
  }
  func.func @transform_2(%arg0: i32, %arg1: i32) -> (i32, i32, i32) {
    %c0_i32 = arith.constant 0 : i32
    %c0_i32_0 = arith.constant 0 : i32
    %c0_i32_1 = arith.constant 0 : i32
    return %arg0, %c0_i32, %c0_i32_0 : i32, i32, i32
  }
  func.func @transform_3(%arg0: i32, %arg1: i32) -> (i32, i32, i32) {
    %c0_i32 = arith.constant 0 : i32
    %c0_i32_0 = arith.constant 0 : i32
    return %arg0, %arg1, %c0_i32 : i32, i32, i32
  }
}

module attributes {stable_mosaic.version = 11 : i64} {
  func.func @_matmul_kernel(%arg0: i32, %arg1: i32, %arg2: i32, %arg3: memref<16x128xbf16, #tpu.memory_space<vmem>>, %arg4: memref<128x128xbf16, #tpu.memory_space<vmem>>, %arg5: memref<16x128xbf16, #tpu.memory_space<vmem>>, %arg6: memref<16x128xf32, #tpu.memory_space<vmem>>) attributes {dimension_semantics = [#tpu.dimension_semantics<parallel>, #tpu.dimension_semantics<parallel>, #tpu.dimension_semantics<arbitrary>], iteration_bounds = array<i64: 1, 1, 1>, scalar_prefetch = 0 : i64, scratch_operands = 1 : i64, tpu.core_type = #tpu.core_type<tc>, window_params = [{transform_indices = @transform_0, window_bounds = array<i64: 16, 128>}, {transform_indices = @transform_1, window_bounds = array<i64: 128, 128>}, {transform_indices = @transform_2, window_bounds = array<i64: 16, 128>}]} {
    %c0_i32 = arith.constant 0 : i32
    %0 = arith.cmpi eq, %arg2, %c0_i32 : i32
    %1 = arith.extui %0 : i1 to i32
    %c0_i32_0 = arith.constant 0 : i32
    %2 = arith.cmpi ne, %1, %c0_i32_0 : i32
    scf.if %2 {
      %cst_10 = arith.constant 0.000000e+00 : f32
      %12 = vector.broadcast %cst_10 : f32 to vector<16x128xf32>
      %c0_11 = arith.constant 0 : index
      %c0_12 = arith.constant 0 : index
      %13 = vector.load %arg6[%c0_11, %c0_12] : memref<16x128xf32, #tpu.memory_space<vmem>>, vector<16x128xf32>
      tpu.vector_store %arg6[%c0_11, %c0_12], %12 {strides = array<i32>} : memref<16x128xf32, #tpu.memory_space<vmem>>, vector<16x128xf32>,
    } else {
    }
    %c0 = arith.constant 0 : index
    %c0_1 = arith.constant 0 : index
    %3 = vector.load %arg6[%c0, %c0_1] : memref<16x128xf32, #tpu.memory_space<vmem>>, vector<16x128xf32>
    %c0_2 = arith.constant 0 : index
    %c0_3 = arith.constant 0 : index
    %4 = vector.load %arg3[%c0_2, %c0_3] : memref<16x128xbf16, #tpu.memory_space<vmem>>, vector<16x128xbf16>
    %c0_4 = arith.constant 0 : index
    %c0_5 = arith.constant 0 : index
    %5 = vector.load %arg4[%c0_4, %c0_5] : memref<128x128xbf16, #tpu.memory_space<vmem>>, vector<128x128xbf16>
    %cst = arith.constant dense<0.000000e+00> : vector<16x128xf32>
    %6 = tpu.matmul %4, %5, %cst {dimension_numbers = #tpu.dot_dimension_numbers<[1], [0], [0], [1], [0, 0, 1, 1], [], []>} : vector<16x128xbf16>, vector<128x128xbf16>, vector<16x128xf32> -> vector<16x128xf32>
    %7 = arith.addf %3, %6 : vector<16x128xf32>
    %c0_6 = arith.constant 0 : index
    %c0_7 = arith.constant 0 : index
    %8 = vector.load %arg6[%c0_6, %c0_7] : memref<16x128xf32, #tpu.memory_space<vmem>>, vector<16x128xf32>
    tpu.vector_store %arg6[%c0_6, %c0_7], %7 {strides = array<i32>} : memref<16x128xf32, #tpu.memory_space<vmem>>, vector<16x128xf32>,
    %c0_i32_8 = arith.constant 0 : i32
    %9 = arith.cmpi eq, %arg2, %c0_i32_8 : i32
    %10 = arith.extui %9 : i1 to i32
    %c0_i32_9 = arith.constant 0 : i32
    %11 = arith.cmpi ne, %10, %c0_i32_9 : i32
    scf.if %11 {
      %c0_10 = arith.constant 0 : index
      %c0_11 = arith.constant 0 : index
      %12 = vector.load %arg6[%c0_10, %c0_11] : memref<16x128xf32, #tpu.memory_space<vmem>>, vector<16x128xf32>
      %13 = arith.truncf %12 : vector<16x128xf32> to vector<16x128xbf16>
      %c0_12 = arith.constant 0 : index
      %c0_13 = arith.constant 0 : index
      %14 = vector.load %arg5[%c0_12, %c0_13] : memref<16x128xbf16, #tpu.memory_space<vmem>>, vector<16x128xbf16>
      tpu.vector_store %arg5[%c0_12, %c0_13], %13 {strides = array<i32>} : memref<16x128xbf16, #tpu.memory_space<vmem>>, vector<16x128xbf16>,
    } else {
    }
    return
  }
  func.func @transform_0(%arg0: i32, %arg1: i32, %arg2: i32) -> (i32, i32) {
    %c0_i32 = arith.constant 0 : i32
    return %arg0, %arg2 : i32, i32
  }
  func.func @transform_1(%arg0: i32, %arg1: i32, %arg2: i32) -> (i32, i32) {
    %c0_i32 = arith.constant 0 : i32
    return %arg2, %arg1 : i32, i32
  }
  func.func @transform_2(%arg0: i32, %arg1: i32, %arg2: i32) -> (i32, i32) {
    %c0_i32 = arith.constant 0 : i32
    return %arg0, %arg1 : i32, i32
  }
}

module attributes {stable_mosaic.version = 11 : i64} {
  func.func @_moments_kernel(%arg0: i32, %arg1: i32, %arg2: memref<1x16x128xbf16, #tpu.memory_space<vmem>>, %arg3: memref<1x1x128xf32, #tpu.memory_space<vmem>>, %arg4: memref<1x1x128xf32, #tpu.memory_space<vmem>>) attributes {dimension_semantics = [#tpu.dimension_semantics<parallel>, #tpu.dimension_semantics<arbitrary>], iteration_bounds = array<i64: 8, 1>, scalar_prefetch = 0 : i64, scratch_operands = 0 : i64, tpu.core_type = #tpu.core_type<tc>, window_params = [{transform_indices = @transform_0, window_bounds = array<i64: 1, 16, 128>}, {transform_indices = @transform_1, window_bounds = array<i64: 1, 1, 128>}, {transform_indices = @transform_2, window_bounds = array<i64: 1, 1, 128>}]} {
    %c0_i32 = arith.constant 0 : i32
    %0 = arith.cmpi eq, %arg1, %c0_i32 : i32
    %1 = arith.extui %0 : i1 to i32
    %c0_i32_0 = arith.constant 0 : i32
    %2 = arith.cmpi ne, %1, %c0_i32_0 : i32
    scf.if %2 {
      %cst_16 = arith.constant 0.000000e+00 : f32
      %16 = vector.broadcast %cst_16 : f32 to vector<1x1x128xf32>
      %c0_17 = arith.constant 0 : index
      %c0_18 = arith.constant 0 : index
      %c0_19 = arith.constant 0 : index
      %17 = vector.load %arg3[%c0_17, %c0_18, %c0_19] : memref<1x1x128xf32, #tpu.memory_space<vmem>>, vector<1x1x128xf32>
      tpu.vector_store %arg3[%c0_17, %c0_18, %c0_19], %16 {strides = array<i32>} : memref<1x1x128xf32, #tpu.memory_space<vmem>>, vector<1x1x128xf32>,
      %cst_20 = arith.constant 0.000000e+00 : f32
      %18 = vector.broadcast %cst_20 : f32 to vector<1x1x128xf32>
      %c0_21 = arith.constant 0 : index
      %c0_22 = arith.constant 0 : index
      %c0_23 = arith.constant 0 : index
      %19 = vector.load %arg4[%c0_21, %c0_22, %c0_23] : memref<1x1x128xf32, #tpu.memory_space<vmem>>, vector<1x1x128xf32>
      tpu.vector_store %arg4[%c0_21, %c0_22, %c0_23], %18 {strides = array<i32>} : memref<1x1x128xf32, #tpu.memory_space<vmem>>, vector<1x1x128xf32>,
    } else {
    }
    %c0 = arith.constant 0 : index
    %c0_1 = arith.constant 0 : index
    %c0_2 = arith.constant 0 : index
    %3 = vector.load %arg2[%c0, %c0_1, %c0_2] : memref<1x16x128xbf16, #tpu.memory_space<vmem>>, vector<1x16x128xbf16>
    %4 = arith.extf %3 : vector<1x16x128xbf16> to vector<1x16x128xf32>
    %c0_3 = arith.constant 0 : index
    %c0_4 = arith.constant 0 : index
    %c0_5 = arith.constant 0 : index
    %5 = vector.load %arg3[%c0_3, %c0_4, %c0_5] : memref<1x1x128xf32, #tpu.memory_space<vmem>>, vector<1x1x128xf32>
    %cst = arith.constant dense<0.000000e+00> : vector<1x128xf32>
    %6 = vector.multi_reduction <add>, %4, %cst [1] : vector<1x16x128xf32> to vector<1x128xf32>
    %7 = vector.shape_cast %6 : vector<1x128xf32> to vector<1x1x128xf32>
    %8 = arith.addf %5, %7 : vector<1x1x128xf32>
    %c0_6 = arith.constant 0 : index
    %c0_7 = arith.constant 0 : index
    %c0_8 = arith.constant 0 : index
    %9 = vector.load %arg3[%c0_6, %c0_7, %c0_8] : memref<1x1x128xf32, #tpu.memory_space<vmem>>, vector<1x1x128xf32>
    tpu.vector_store %arg3[%c0_6, %c0_7, %c0_8], %8 {strides = array<i32>} : memref<1x1x128xf32, #tpu.memory_space<vmem>>, vector<1x1x128xf32>,
    %c0_9 = arith.constant 0 : index
    %c0_10 = arith.constant 0 : index
    %c0_11 = arith.constant 0 : index
    %10 = vector.load %arg4[%c0_9, %c0_10, %c0_11] : memref<1x1x128xf32, #tpu.memory_space<vmem>>, vector<1x1x128xf32>
    %11 = arith.mulf %4, %4 : vector<1x16x128xf32>
    %cst_12 = arith.constant dense<0.000000e+00> : vector<1x128xf32>
    %12 = vector.multi_reduction <add>, %11, %cst_12 [1] : vector<1x16x128xf32> to vector<1x128xf32>
    %13 = vector.shape_cast %12 : vector<1x128xf32> to vector<1x1x128xf32>
    %14 = arith.addf %10, %13 : vector<1x1x128xf32>
    %c0_13 = arith.constant 0 : index
    %c0_14 = arith.constant 0 : index
    %c0_15 = arith.constant 0 : index
    %15 = vector.load %arg4[%c0_13, %c0_14, %c0_15] : memref<1x1x128xf32, #tpu.memory_space<vmem>>, vector<1x1x128xf32>
    tpu.vector_store %arg4[%c0_13, %c0_14, %c0_15], %14 {strides = array<i32>} : memref<1x1x128xf32, #tpu.memory_space<vmem>>, vector<1x1x128xf32>,
    return
  }
  func.func @transform_0(%arg0: i32, %arg1: i32) -> (i32, i32, i32) {
    %c0_i32 = arith.constant 0 : i32
    %c0_i32_0 = arith.constant 0 : i32
    return %arg0, %arg1, %c0_i32 : i32, i32, i32
  }
  func.func @transform_1(%arg0: i32, %arg1: i32) -> (i32, i32, i32) {
    %c0_i32 = arith.constant 0 : i32
    %c0_i32_0 = arith.constant 0 : i32
    %c0_i32_1 = arith.constant 0 : i32
    return %arg0, %c0_i32, %c0_i32_0 : i32, i32, i32
  }
  func.func @transform_2(%arg0: i32, %arg1: i32) -> (i32, i32, i32) {
    %c0_i32 = arith.constant 0 : i32
    %c0_i32_0 = arith.constant 0 : i32
    %c0_i32_1 = arith.constant 0 : i32
    return %arg0, %c0_i32, %c0_i32_0 : i32, i32, i32
  }
}

module attributes {stable_mosaic.version = 11 : i64} {
  func.func @kernel(%arg0: i32, %arg1: i32, %arg2: memref<1x16x128xbf16, #tpu.memory_space<vmem>>, %arg3: memref<1x1x128xf32, #tpu.memory_space<vmem>>, %arg4: memref<1x1x128xf32, #tpu.memory_space<vmem>>, %arg5: memref<1x16x128xbf16, #tpu.memory_space<vmem>>) attributes {dimension_semantics = [#tpu.dimension_semantics<parallel>, #tpu.dimension_semantics<parallel>], iteration_bounds = array<i64: 8, 1>, scalar_prefetch = 0 : i64, scratch_operands = 0 : i64, tpu.core_type = #tpu.core_type<tc>, window_params = [{transform_indices = @transform_0, window_bounds = array<i64: 1, 16, 128>}, {pipeline_mode = #tpu.pipeline_mode<synchronous>, transform_indices = @transform_1, window_bounds = array<i64: 1, 1, 128>}, {pipeline_mode = #tpu.pipeline_mode<synchronous>, transform_indices = @transform_2, window_bounds = array<i64: 1, 1, 128>}, {transform_indices = @transform_3, window_bounds = array<i64: 1, 16, 128>}]} {
    %c0 = arith.constant 0 : index
    %c0_0 = arith.constant 0 : index
    %c0_1 = arith.constant 0 : index
    %0 = vector.load %arg2[%c0, %c0_0, %c0_1] : memref<1x16x128xbf16, #tpu.memory_space<vmem>>, vector<1x16x128xbf16>
    %c0_2 = arith.constant 0 : index
    %c0_3 = arith.constant 0 : index
    %c0_4 = arith.constant 0 : index
    %1 = vector.load %arg3[%c0_2, %c0_3, %c0_4] : memref<1x1x128xf32, #tpu.memory_space<vmem>>, vector<1x1x128xf32>
    %c0_5 = arith.constant 0 : index
    %c0_6 = arith.constant 0 : index
    %c0_7 = arith.constant 0 : index
    %2 = vector.load %arg4[%c0_5, %c0_6, %c0_7] : memref<1x1x128xf32, #tpu.memory_space<vmem>>, vector<1x1x128xf32>
    %3 = arith.extf %0 : vector<1x16x128xbf16> to vector<1x16x128xf32>
    %4 = vector.broadcast %1 : vector<1x1x128xf32> to vector<1x16x128xf32>
    %5 = arith.subf %3, %4 : vector<1x16x128xf32>
    %cst = arith.constant 9.99999974E-6 : f32
    %6 = vector.broadcast %cst : f32 to vector<1x1x128xf32>
    %7 = arith.addf %2, %6 : vector<1x1x128xf32>
    %8 = math.rsqrt %7 : vector<1x1x128xf32>
    %9 = vector.broadcast %8 : vector<1x1x128xf32> to vector<1x16x128xf32>
    %10 = arith.mulf %5, %9 : vector<1x16x128xf32>
    %11 = arith.truncf %10 : vector<1x16x128xf32> to vector<1x16x128xbf16>
    %c0_8 = arith.constant 0 : index
    %c0_9 = arith.constant 0 : index
    %c0_10 = arith.constant 0 : index
    %12 = vector.load %arg5[%c0_8, %c0_9, %c0_10] : memref<1x16x128xbf16, #tpu.memory_space<vmem>>, vector<1x16x128xbf16>
    tpu.vector_store %arg5[%c0_8, %c0_9, %c0_10], %11 {strides = array<i32>} : memref<1x16x128xbf16, #tpu.memory_space<vmem>>, vector<1x16x128xbf16>,
    return
  }
  func.func @transform_0(%arg0: i32, %arg1: i32) -> (i32, i32, i32) {
    %c0_i32 = arith.constant 0 : i32
    %c0_i32_0 = arith.constant 0 : i32
    return %arg0, %arg1, %c0_i32 : i32, i32, i32
  }
  func.func @transform_1(%arg0: i32, %arg1: i32) -> (i32, i32, i32) {
    %c0_i32 = arith.constant 0 : i32
    %c0_i32_0 = arith.constant 0 : i32
    %c0_i32_1 = arith.constant 0 : i32
    %c0_i32_2 = arith.constant 0 : i32
    return %c0_i32, %c0_i32_0, %c0_i32_1 : i32, i32, i32
  }
  func.func @transform_2(%arg0: i32, %arg1: i32) -> (i32, i32, i32) {
    %c0_i32 = arith.constant 0 : i32
    %c0_i32_0 = arith.constant 0 : i32
    %c0_i32_1 = arith.constant 0 : i32
    %c0_i32_2 = arith.constant 0 : i32
    return %c0_i32, %c0_i32_0, %c0_i32_1 : i32, i32, i32
  }
  func.func @transform_3(%arg0: i32, %arg1: i32) -> (i32, i32, i32) {
    %c0_i32 = arith.constant 0 : i32
    %c0_i32_0 = arith.constant 0 : i32
    return %arg0, %arg1, %c0_i32 : i32, i32, i32
  }
}

module attributes {stable_mosaic.version = 11 : i64} {
  func.func @_matmul_kernel(%arg0: i32, %arg1: i32, %arg2: i32, %arg3: memref<16x384xbf16, #tpu.memory_space<vmem>>, %arg4: memref<384x128xbf16, #tpu.memory_space<vmem>>, %arg5: memref<16x128xbf16, #tpu.memory_space<vmem>>, %arg6: memref<16x128xf32, #tpu.memory_space<vmem>>) attributes {dimension_semantics = [#tpu.dimension_semantics<parallel>, #tpu.dimension_semantics<parallel>, #tpu.dimension_semantics<arbitrary>], iteration_bounds = array<i64: 1, 1, 9>, scalar_prefetch = 0 : i64, scratch_operands = 1 : i64, tpu.core_type = #tpu.core_type<tc>, window_params = [{transform_indices = @transform_0, window_bounds = array<i64: 16, 384>}, {transform_indices = @transform_1, window_bounds = array<i64: 384, 128>}, {transform_indices = @transform_2, window_bounds = array<i64: 16, 128>}]} {
    %c0_i32 = arith.constant 0 : i32
    %0 = arith.cmpi eq, %arg2, %c0_i32 : i32
    %1 = arith.extui %0 : i1 to i32
    %c0_i32_0 = arith.constant 0 : i32
    %2 = arith.cmpi ne, %1, %c0_i32_0 : i32
    scf.if %2 {
      %cst_9 = arith.constant 0.000000e+00 : f32
      %12 = vector.broadcast %cst_9 : f32 to vector<16x128xf32>
      %c0_10 = arith.constant 0 : index
      %c0_11 = arith.constant 0 : index
      %13 = vector.load %arg6[%c0_10, %c0_11] : memref<16x128xf32, #tpu.memory_space<vmem>>, vector<16x128xf32>
      tpu.vector_store %arg6[%c0_10, %c0_11], %12 {strides = array<i32>} : memref<16x128xf32, #tpu.memory_space<vmem>>, vector<16x128xf32>,
    } else {
    }
    %c0 = arith.constant 0 : index
    %c0_1 = arith.constant 0 : index
    %3 = vector.load %arg6[%c0, %c0_1] : memref<16x128xf32, #tpu.memory_space<vmem>>, vector<16x128xf32>
    %c0_2 = arith.constant 0 : index
    %c0_3 = arith.constant 0 : index
    %4 = vector.load %arg3[%c0_2, %c0_3] : memref<16x384xbf16, #tpu.memory_space<vmem>>, vector<16x384xbf16>
    %c0_4 = arith.constant 0 : index
    %c0_5 = arith.constant 0 : index
    %5 = vector.load %arg4[%c0_4, %c0_5] : memref<384x128xbf16, #tpu.memory_space<vmem>>, vector<384x128xbf16>
    %cst = arith.constant dense<0.000000e+00> : vector<16x128xf32>
    %6 = tpu.matmul %4, %5, %cst {dimension_numbers = #tpu.dot_dimension_numbers<[1], [0], [0], [1], [0, 0, 1, 1], [], []>} : vector<16x384xbf16>, vector<384x128xbf16>, vector<16x128xf32> -> vector<16x128xf32>
    %7 = arith.addf %3, %6 : vector<16x128xf32>
    %c0_6 = arith.constant 0 : index
    %c0_7 = arith.constant 0 : index
    %8 = vector.load %arg6[%c0_6, %c0_7] : memref<16x128xf32, #tpu.memory_space<vmem>>, vector<16x128xf32>
    tpu.vector_store %arg6[%c0_6, %c0_7], %7 {strides = array<i32>} : memref<16x128xf32, #tpu.memory_space<vmem>>, vector<16x128xf32>,
    %c8_i32 = arith.constant 8 : i32
    %9 = arith.cmpi eq, %arg2, %c8_i32 : i32
    %10 = arith.extui %9 : i1 to i32
    %c0_i32_8 = arith.constant 0 : i32
    %11 = arith.cmpi ne, %10, %c0_i32_8 : i32
    scf.if %11 {
      %c0_9 = arith.constant 0 : index
      %c0_10 = arith.constant 0 : index
      %12 = vector.load %arg6[%c0_9, %c0_10] : memref<16x128xf32, #tpu.memory_space<vmem>>, vector<16x128xf32>
      %13 = arith.truncf %12 : vector<16x128xf32> to vector<16x128xbf16>
      %c0_11 = arith.constant 0 : index
      %c0_12 = arith.constant 0 : index
      %14 = vector.load %arg5[%c0_11, %c0_12] : memref<16x128xbf16, #tpu.memory_space<vmem>>, vector<16x128xbf16>
      tpu.vector_store %arg5[%c0_11, %c0_12], %13 {strides = array<i32>} : memref<16x128xbf16, #tpu.memory_space<vmem>>, vector<16x128xbf16>,
    } else {
    }
    return
  }
  func.func @transform_0(%arg0: i32, %arg1: i32, %arg2: i32) -> (i32, i32) {
    %c0_i32 = arith.constant 0 : i32
    return %arg0, %arg2 : i32, i32
  }
  func.func @transform_1(%arg0: i32, %arg1: i32, %arg2: i32) -> (i32, i32) {
    %c0_i32 = arith.constant 0 : i32
    return %arg2, %arg1 : i32, i32
  }
  func.func @transform_2(%arg0: i32, %arg1: i32, %arg2: i32) -> (i32, i32) {
    %c0_i32 = arith.constant 0 : i32
    return %arg0, %arg1 : i32, i32
  }
}

module attributes {stable_mosaic.version = 11 : i64} {
  func.func @kernel(%arg0: i32, %arg1: i32, %arg2: memref<1x16x128xbf16, #tpu.memory_space<vmem>>, %arg3: memref<1x1x128xf32, #tpu.memory_space<vmem>>, %arg4: memref<1x1x128xf32, #tpu.memory_space<vmem>>, %arg5: memref<1x16x128xbf16, #tpu.memory_space<vmem>>) attributes {dimension_semantics = [#tpu.dimension_semantics<parallel>, #tpu.dimension_semantics<parallel>], iteration_bounds = array<i64: 8, 1>, scalar_prefetch = 0 : i64, scratch_operands = 0 : i64, tpu.core_type = #tpu.core_type<tc>, window_params = [{transform_indices = @transform_0, window_bounds = array<i64: 1, 16, 128>}, {pipeline_mode = #tpu.pipeline_mode<synchronous>, transform_indices = @transform_1, window_bounds = array<i64: 1, 1, 128>}, {pipeline_mode = #tpu.pipeline_mode<synchronous>, transform_indices = @transform_2, window_bounds = array<i64: 1, 1, 128>}, {transform_indices = @transform_3, window_bounds = array<i64: 1, 16, 128>}]} {
    %c0 = arith.constant 0 : index
    %c0_0 = arith.constant 0 : index
    %c0_1 = arith.constant 0 : index
    %0 = vector.load %arg2[%c0, %c0_0, %c0_1] : memref<1x16x128xbf16, #tpu.memory_space<vmem>>, vector<1x16x128xbf16>
    %c0_2 = arith.constant 0 : index
    %c0_3 = arith.constant 0 : index
    %c0_4 = arith.constant 0 : index
    %1 = vector.load %arg3[%c0_2, %c0_3, %c0_4] : memref<1x1x128xf32, #tpu.memory_space<vmem>>, vector<1x1x128xf32>
    %c0_5 = arith.constant 0 : index
    %c0_6 = arith.constant 0 : index
    %c0_7 = arith.constant 0 : index
    %2 = vector.load %arg4[%c0_5, %c0_6, %c0_7] : memref<1x1x128xf32, #tpu.memory_space<vmem>>, vector<1x1x128xf32>
    %3 = arith.extf %0 : vector<1x16x128xbf16> to vector<1x16x128xf32>
    %4 = vector.broadcast %1 : vector<1x1x128xf32> to vector<1x16x128xf32>
    %5 = arith.subf %3, %4 : vector<1x16x128xf32>
    %cst = arith.constant 9.99999974E-6 : f32
    %6 = vector.broadcast %cst : f32 to vector<1x1x128xf32>
    %7 = arith.addf %2, %6 : vector<1x1x128xf32>
    %8 = math.rsqrt %7 : vector<1x1x128xf32>
    %9 = vector.broadcast %8 : vector<1x1x128xf32> to vector<1x16x128xf32>
    %10 = arith.mulf %5, %9 : vector<1x16x128xf32>
    %cst_8 = arith.constant 0.000000e+00 : f32
    %11 = vector.broadcast %cst_8 : f32 to vector<1x16x128xf32>
    %12 = arith.maximumf %10, %11 : vector<1x16x128xf32>
    %13 = arith.truncf %12 : vector<1x16x128xf32> to vector<1x16x128xbf16>
    %c0_9 = arith.constant 0 : index
    %c0_10 = arith.constant 0 : index
    %c0_11 = arith.constant 0 : index
    %14 = vector.load %arg5[%c0_9, %c0_10, %c0_11] : memref<1x16x128xbf16, #tpu.memory_space<vmem>>, vector<1x16x128xbf16>
    tpu.vector_store %arg5[%c0_9, %c0_10, %c0_11], %13 {strides = array<i32>} : memref<1x16x128xbf16, #tpu.memory_space<vmem>>, vector<1x16x128xbf16>,
    return
  }
  func.func @transform_0(%arg0: i32, %arg1: i32) -> (i32, i32, i32) {
    %c0_i32 = arith.constant 0 : i32
    %c0_i32_0 = arith.constant 0 : i32
    return %arg0, %arg1, %c0_i32 : i32, i32, i32
  }
  func.func @transform_1(%arg0: i32, %arg1: i32) -> (i32, i32, i32) {
    %c0_i32 = arith.constant 0 : i32
    %c0_i32_0 = arith.constant 0 : i32
    %c0_i32_1 = arith.constant 0 : i32
    %c0_i32_2 = arith.constant 0 : i32
    return %c0_i32, %c0_i32_0, %c0_i32_1 : i32, i32, i32
  }
  func.func @transform_2(%arg0: i32, %arg1: i32) -> (i32, i32, i32) {
    %c0_i32 = arith.constant 0 : i32
    %c0_i32_0 = arith.constant 0 : i32
    %c0_i32_1 = arith.constant 0 : i32
    %c0_i32_2 = arith.constant 0 : i32
    return %c0_i32, %c0_i32_0, %c0_i32_1 : i32, i32, i32
  }
  func.func @transform_3(%arg0: i32, %arg1: i32) -> (i32, i32, i32) {
    %c0_i32 = arith.constant 0 : i32
    %c0_i32_0 = arith.constant 0 : i32
    return %arg0, %arg1, %c0_i32 : i32, i32, i32
  }
}

module attributes {stable_mosaic.version = 11 : i64} {
  func.func @kernel(%arg0: i32, %arg1: i32, %arg2: memref<1x16x128xbf16, #tpu.memory_space<vmem>>, %arg3: memref<1x1x128xf32, #tpu.memory_space<vmem>>, %arg4: memref<1x1x128xf32, #tpu.memory_space<vmem>>, %arg5: memref<1x16x128xbf16, #tpu.memory_space<vmem>>, %arg6: memref<1x16x128xbf16, #tpu.memory_space<vmem>>) attributes {dimension_semantics = [#tpu.dimension_semantics<parallel>, #tpu.dimension_semantics<parallel>], iteration_bounds = array<i64: 8, 1>, scalar_prefetch = 0 : i64, scratch_operands = 0 : i64, tpu.core_type = #tpu.core_type<tc>, window_params = [{transform_indices = @transform_0, window_bounds = array<i64: 1, 16, 128>}, {pipeline_mode = #tpu.pipeline_mode<synchronous>, transform_indices = @transform_1, window_bounds = array<i64: 1, 1, 128>}, {pipeline_mode = #tpu.pipeline_mode<synchronous>, transform_indices = @transform_2, window_bounds = array<i64: 1, 1, 128>}, {transform_indices = @transform_3, window_bounds = array<i64: 1, 16, 128>}, {transform_indices = @transform_4, window_bounds = array<i64: 1, 16, 128>}]} {
    %c0 = arith.constant 0 : index
    %c0_0 = arith.constant 0 : index
    %c0_1 = arith.constant 0 : index
    %0 = vector.load %arg2[%c0, %c0_0, %c0_1] : memref<1x16x128xbf16, #tpu.memory_space<vmem>>, vector<1x16x128xbf16>
    %c0_2 = arith.constant 0 : index
    %c0_3 = arith.constant 0 : index
    %c0_4 = arith.constant 0 : index
    %1 = vector.load %arg3[%c0_2, %c0_3, %c0_4] : memref<1x1x128xf32, #tpu.memory_space<vmem>>, vector<1x1x128xf32>
    %c0_5 = arith.constant 0 : index
    %c0_6 = arith.constant 0 : index
    %c0_7 = arith.constant 0 : index
    %2 = vector.load %arg4[%c0_5, %c0_6, %c0_7] : memref<1x1x128xf32, #tpu.memory_space<vmem>>, vector<1x1x128xf32>
    %c0_8 = arith.constant 0 : index
    %c0_9 = arith.constant 0 : index
    %c0_10 = arith.constant 0 : index
    %3 = vector.load %arg5[%c0_8, %c0_9, %c0_10] : memref<1x16x128xbf16, #tpu.memory_space<vmem>>, vector<1x16x128xbf16>
    %4 = arith.extf %0 : vector<1x16x128xbf16> to vector<1x16x128xf32>
    %5 = vector.broadcast %1 : vector<1x1x128xf32> to vector<1x16x128xf32>
    %6 = arith.subf %4, %5 : vector<1x16x128xf32>
    %cst = arith.constant 9.99999974E-6 : f32
    %7 = vector.broadcast %cst : f32 to vector<1x1x128xf32>
    %8 = arith.addf %2, %7 : vector<1x1x128xf32>
    %9 = math.rsqrt %8 : vector<1x1x128xf32>
    %10 = vector.broadcast %9 : vector<1x1x128xf32> to vector<1x16x128xf32>
    %11 = arith.mulf %6, %10 : vector<1x16x128xf32>
    %12 = arith.extf %3 : vector<1x16x128xbf16> to vector<1x16x128xf32>
    %13 = arith.addf %11, %12 : vector<1x16x128xf32>
    %cst_11 = arith.constant 0.000000e+00 : f32
    %14 = vector.broadcast %cst_11 : f32 to vector<1x16x128xf32>
    %15 = arith.maximumf %13, %14 : vector<1x16x128xf32>
    %16 = arith.truncf %15 : vector<1x16x128xf32> to vector<1x16x128xbf16>
    %c0_12 = arith.constant 0 : index
    %c0_13 = arith.constant 0 : index
    %c0_14 = arith.constant 0 : index
    %17 = vector.load %arg6[%c0_12, %c0_13, %c0_14] : memref<1x16x128xbf16, #tpu.memory_space<vmem>>, vector<1x16x128xbf16>
    tpu.vector_store %arg6[%c0_12, %c0_13, %c0_14], %16 {strides = array<i32>} : memref<1x16x128xbf16, #tpu.memory_space<vmem>>, vector<1x16x128xbf16>,
    return
  }
  func.func @transform_0(%arg0: i32, %arg1: i32) -> (i32, i32, i32) {
    %c0_i32 = arith.constant 0 : i32
    %c0_i32_0 = arith.constant 0 : i32
    return %arg0, %arg1, %c0_i32 : i32, i32, i32
  }
  func.func @transform_1(%arg0: i32, %arg1: i32) -> (i32, i32, i32) {
    %c0_i32 = arith.constant 0 : i32
    %c0_i32_0 = arith.constant 0 : i32
    %c0_i32_1 = arith.constant 0 : i32
    %c0_i32_2 = arith.constant 0 : i32
    return %c0_i32, %c0_i32_0, %c0_i32_1 : i32, i32, i32
  }
  func.func @transform_2(%arg0: i32, %arg1: i32) -> (i32, i32, i32) {
    %c0_i32 = arith.constant 0 : i32
    %c0_i32_0 = arith.constant 0 : i32
    %c0_i32_1 = arith.constant 0 : i32
    %c0_i32_2 = arith.constant 0 : i32
    return %c0_i32, %c0_i32_0, %c0_i32_1 : i32, i32, i32
  }
  func.func @transform_3(%arg0: i32, %arg1: i32) -> (i32, i32, i32) {
    %c0_i32 = arith.constant 0 : i32
    %c0_i32_0 = arith.constant 0 : i32
    return %arg0, %arg1, %c0_i32 : i32, i32, i32
  }
  func.func @transform_4(%arg0: i32, %arg1: i32) -> (i32, i32, i32) {
    %c0_i32 = arith.constant 0 : i32
    %c0_i32_0 = arith.constant 0 : i32
    return %arg0, %arg1, %c0_i32 : i32, i32, i32
  }
}

module attributes {stable_mosaic.version = 11 : i64} {
  func.func @_moments_kernel(%arg0: i32, %arg1: i32, %arg2: memref<1x16x128xbf16, #tpu.memory_space<vmem>>, %arg3: memref<1x1x128xf32, #tpu.memory_space<vmem>>, %arg4: memref<1x1x128xf32, #tpu.memory_space<vmem>>) attributes {dimension_semantics = [#tpu.dimension_semantics<parallel>, #tpu.dimension_semantics<arbitrary>], iteration_bounds = array<i64: 2, 1>, scalar_prefetch = 0 : i64, scratch_operands = 0 : i64, tpu.core_type = #tpu.core_type<tc>, window_params = [{transform_indices = @transform_0, window_bounds = array<i64: 1, 16, 128>}, {transform_indices = @transform_1, window_bounds = array<i64: 1, 1, 128>}, {transform_indices = @transform_2, window_bounds = array<i64: 1, 1, 128>}]} {
    %c0_i32 = arith.constant 0 : i32
    %0 = arith.cmpi eq, %arg1, %c0_i32 : i32
    %1 = arith.extui %0 : i1 to i32
    %c0_i32_0 = arith.constant 0 : i32
    %2 = arith.cmpi ne, %1, %c0_i32_0 : i32
    scf.if %2 {
      %cst_16 = arith.constant 0.000000e+00 : f32
      %16 = vector.broadcast %cst_16 : f32 to vector<1x1x128xf32>
      %c0_17 = arith.constant 0 : index
      %c0_18 = arith.constant 0 : index
      %c0_19 = arith.constant 0 : index
      %17 = vector.load %arg3[%c0_17, %c0_18, %c0_19] : memref<1x1x128xf32, #tpu.memory_space<vmem>>, vector<1x1x128xf32>
      tpu.vector_store %arg3[%c0_17, %c0_18, %c0_19], %16 {strides = array<i32>} : memref<1x1x128xf32, #tpu.memory_space<vmem>>, vector<1x1x128xf32>,
      %cst_20 = arith.constant 0.000000e+00 : f32
      %18 = vector.broadcast %cst_20 : f32 to vector<1x1x128xf32>
      %c0_21 = arith.constant 0 : index
      %c0_22 = arith.constant 0 : index
      %c0_23 = arith.constant 0 : index
      %19 = vector.load %arg4[%c0_21, %c0_22, %c0_23] : memref<1x1x128xf32, #tpu.memory_space<vmem>>, vector<1x1x128xf32>
      tpu.vector_store %arg4[%c0_21, %c0_22, %c0_23], %18 {strides = array<i32>} : memref<1x1x128xf32, #tpu.memory_space<vmem>>, vector<1x1x128xf32>,
    } else {
    }
    %c0 = arith.constant 0 : index
    %c0_1 = arith.constant 0 : index
    %c0_2 = arith.constant 0 : index
    %3 = vector.load %arg2[%c0, %c0_1, %c0_2] : memref<1x16x128xbf16, #tpu.memory_space<vmem>>, vector<1x16x128xbf16>
    %4 = arith.extf %3 : vector<1x16x128xbf16> to vector<1x16x128xf32>
    %c0_3 = arith.constant 0 : index
    %c0_4 = arith.constant 0 : index
    %c0_5 = arith.constant 0 : index
    %5 = vector.load %arg3[%c0_3, %c0_4, %c0_5] : memref<1x1x128xf32, #tpu.memory_space<vmem>>, vector<1x1x128xf32>
    %cst = arith.constant dense<0.000000e+00> : vector<1x128xf32>
    %6 = vector.multi_reduction <add>, %4, %cst [1] : vector<1x16x128xf32> to vector<1x128xf32>
    %7 = vector.shape_cast %6 : vector<1x128xf32> to vector<1x1x128xf32>
    %8 = arith.addf %5, %7 : vector<1x1x128xf32>
    %c0_6 = arith.constant 0 : index
    %c0_7 = arith.constant 0 : index
    %c0_8 = arith.constant 0 : index
    %9 = vector.load %arg3[%c0_6, %c0_7, %c0_8] : memref<1x1x128xf32, #tpu.memory_space<vmem>>, vector<1x1x128xf32>
    tpu.vector_store %arg3[%c0_6, %c0_7, %c0_8], %8 {strides = array<i32>} : memref<1x1x128xf32, #tpu.memory_space<vmem>>, vector<1x1x128xf32>,
    %c0_9 = arith.constant 0 : index
    %c0_10 = arith.constant 0 : index
    %c0_11 = arith.constant 0 : index
    %10 = vector.load %arg4[%c0_9, %c0_10, %c0_11] : memref<1x1x128xf32, #tpu.memory_space<vmem>>, vector<1x1x128xf32>
    %11 = arith.mulf %4, %4 : vector<1x16x128xf32>
    %cst_12 = arith.constant dense<0.000000e+00> : vector<1x128xf32>
    %12 = vector.multi_reduction <add>, %11, %cst_12 [1] : vector<1x16x128xf32> to vector<1x128xf32>
    %13 = vector.shape_cast %12 : vector<1x128xf32> to vector<1x1x128xf32>
    %14 = arith.addf %10, %13 : vector<1x1x128xf32>
    %c0_13 = arith.constant 0 : index
    %c0_14 = arith.constant 0 : index
    %c0_15 = arith.constant 0 : index
    %15 = vector.load %arg4[%c0_13, %c0_14, %c0_15] : memref<1x1x128xf32, #tpu.memory_space<vmem>>, vector<1x1x128xf32>
    tpu.vector_store %arg4[%c0_13, %c0_14, %c0_15], %14 {strides = array<i32>} : memref<1x1x128xf32, #tpu.memory_space<vmem>>, vector<1x1x128xf32>,
    return
  }
  func.func @transform_0(%arg0: i32, %arg1: i32) -> (i32, i32, i32) {
    %c0_i32 = arith.constant 0 : i32
    %c0_i32_0 = arith.constant 0 : i32
    return %arg0, %arg1, %c0_i32 : i32, i32, i32
  }
  func.func @transform_1(%arg0: i32, %arg1: i32) -> (i32, i32, i32) {
    %c0_i32 = arith.constant 0 : i32
    %c0_i32_0 = arith.constant 0 : i32
    %c0_i32_1 = arith.constant 0 : i32
    return %arg0, %c0_i32, %c0_i32_0 : i32, i32, i32
  }
  func.func @transform_2(%arg0: i32, %arg1: i32) -> (i32, i32, i32) {
    %c0_i32 = arith.constant 0 : i32
    %c0_i32_0 = arith.constant 0 : i32
    %c0_i32_1 = arith.constant 0 : i32
    return %arg0, %c0_i32, %c0_i32_0 : i32, i32, i32
  }
}

module attributes {stable_mosaic.version = 11 : i64} {
  func.func @kernel(%arg0: i32, %arg1: i32, %arg2: memref<1x16x128xbf16, #tpu.memory_space<vmem>>, %arg3: memref<1x1x128xf32, #tpu.memory_space<vmem>>, %arg4: memref<1x1x128xf32, #tpu.memory_space<vmem>>, %arg5: memref<1x16x128xbf16, #tpu.memory_space<vmem>>) attributes {dimension_semantics = [#tpu.dimension_semantics<parallel>, #tpu.dimension_semantics<parallel>], iteration_bounds = array<i64: 2, 1>, scalar_prefetch = 0 : i64, scratch_operands = 0 : i64, tpu.core_type = #tpu.core_type<tc>, window_params = [{transform_indices = @transform_0, window_bounds = array<i64: 1, 16, 128>}, {pipeline_mode = #tpu.pipeline_mode<synchronous>, transform_indices = @transform_1, window_bounds = array<i64: 1, 1, 128>}, {pipeline_mode = #tpu.pipeline_mode<synchronous>, transform_indices = @transform_2, window_bounds = array<i64: 1, 1, 128>}, {transform_indices = @transform_3, window_bounds = array<i64: 1, 16, 128>}]} {
    %c0 = arith.constant 0 : index
    %c0_0 = arith.constant 0 : index
    %c0_1 = arith.constant 0 : index
    %0 = vector.load %arg2[%c0, %c0_0, %c0_1] : memref<1x16x128xbf16, #tpu.memory_space<vmem>>, vector<1x16x128xbf16>
    %c0_2 = arith.constant 0 : index
    %c0_3 = arith.constant 0 : index
    %c0_4 = arith.constant 0 : index
    %1 = vector.load %arg3[%c0_2, %c0_3, %c0_4] : memref<1x1x128xf32, #tpu.memory_space<vmem>>, vector<1x1x128xf32>
    %c0_5 = arith.constant 0 : index
    %c0_6 = arith.constant 0 : index
    %c0_7 = arith.constant 0 : index
    %2 = vector.load %arg4[%c0_5, %c0_6, %c0_7] : memref<1x1x128xf32, #tpu.memory_space<vmem>>, vector<1x1x128xf32>
    %3 = arith.extf %0 : vector<1x16x128xbf16> to vector<1x16x128xf32>
    %4 = vector.broadcast %1 : vector<1x1x128xf32> to vector<1x16x128xf32>
    %5 = arith.subf %3, %4 : vector<1x16x128xf32>
    %cst = arith.constant 9.99999974E-6 : f32
    %6 = vector.broadcast %cst : f32 to vector<1x1x128xf32>
    %7 = arith.addf %2, %6 : vector<1x1x128xf32>
    %8 = math.rsqrt %7 : vector<1x1x128xf32>
    %9 = vector.broadcast %8 : vector<1x1x128xf32> to vector<1x16x128xf32>
    %10 = arith.mulf %5, %9 : vector<1x16x128xf32>
    %11 = arith.truncf %10 : vector<1x16x128xf32> to vector<1x16x128xbf16>
    %c0_8 = arith.constant 0 : index
    %c0_9 = arith.constant 0 : index
    %c0_10 = arith.constant 0 : index
    %12 = vector.load %arg5[%c0_8, %c0_9, %c0_10] : memref<1x16x128xbf16, #tpu.memory_space<vmem>>, vector<1x16x128xbf16>
    tpu.vector_store %arg5[%c0_8, %c0_9, %c0_10], %11 {strides = array<i32>} : memref<1x16x128xbf16, #tpu.memory_space<vmem>>, vector<1x16x128xbf16>,
    return
  }
  func.func @transform_0(%arg0: i32, %arg1: i32) -> (i32, i32, i32) {
    %c0_i32 = arith.constant 0 : i32
    %c0_i32_0 = arith.constant 0 : i32
    return %arg0, %arg1, %c0_i32 : i32, i32, i32
  }
  func.func @transform_1(%arg0: i32, %arg1: i32) -> (i32, i32, i32) {
    %c0_i32 = arith.constant 0 : i32
    %c0_i32_0 = arith.constant 0 : i32
    %c0_i32_1 = arith.constant 0 : i32
    %c0_i32_2 = arith.constant 0 : i32
    return %c0_i32, %c0_i32_0, %c0_i32_1 : i32, i32, i32
  }
  func.func @transform_2(%arg0: i32, %arg1: i32) -> (i32, i32, i32) {
    %c0_i32 = arith.constant 0 : i32
    %c0_i32_0 = arith.constant 0 : i32
    %c0_i32_1 = arith.constant 0 : i32
    %c0_i32_2 = arith.constant 0 : i32
    return %c0_i32, %c0_i32_0, %c0_i32_1 : i32, i32, i32
  }
  func.func @transform_3(%arg0: i32, %arg1: i32) -> (i32, i32, i32) {
    %c0_i32 = arith.constant 0 : i32
    %c0_i32_0 = arith.constant 0 : i32
    return %arg0, %arg1, %c0_i32 : i32, i32, i32
  }
}

module attributes {stable_mosaic.version = 11 : i64} {
  func.func @kernel(%arg0: i32, %arg1: i32, %arg2: memref<1x16x128xbf16, #tpu.memory_space<vmem>>, %arg3: memref<1x1x128xf32, #tpu.memory_space<vmem>>, %arg4: memref<1x1x128xf32, #tpu.memory_space<vmem>>, %arg5: memref<1x16x128xbf16, #tpu.memory_space<vmem>>, %arg6: memref<1x16x128xbf16, #tpu.memory_space<vmem>>) attributes {dimension_semantics = [#tpu.dimension_semantics<parallel>, #tpu.dimension_semantics<parallel>], iteration_bounds = array<i64: 2, 1>, scalar_prefetch = 0 : i64, scratch_operands = 0 : i64, tpu.core_type = #tpu.core_type<tc>, window_params = [{transform_indices = @transform_0, window_bounds = array<i64: 1, 16, 128>}, {pipeline_mode = #tpu.pipeline_mode<synchronous>, transform_indices = @transform_1, window_bounds = array<i64: 1, 1, 128>}, {pipeline_mode = #tpu.pipeline_mode<synchronous>, transform_indices = @transform_2, window_bounds = array<i64: 1, 1, 128>}, {transform_indices = @transform_3, window_bounds = array<i64: 1, 16, 128>}, {transform_indices = @transform_4, window_bounds = array<i64: 1, 16, 128>}]} {
    %c0 = arith.constant 0 : index
    %c0_0 = arith.constant 0 : index
    %c0_1 = arith.constant 0 : index
    %0 = vector.load %arg2[%c0, %c0_0, %c0_1] : memref<1x16x128xbf16, #tpu.memory_space<vmem>>, vector<1x16x128xbf16>
    %c0_2 = arith.constant 0 : index
    %c0_3 = arith.constant 0 : index
    %c0_4 = arith.constant 0 : index
    %1 = vector.load %arg3[%c0_2, %c0_3, %c0_4] : memref<1x1x128xf32, #tpu.memory_space<vmem>>, vector<1x1x128xf32>
    %c0_5 = arith.constant 0 : index
    %c0_6 = arith.constant 0 : index
    %c0_7 = arith.constant 0 : index
    %2 = vector.load %arg4[%c0_5, %c0_6, %c0_7] : memref<1x1x128xf32, #tpu.memory_space<vmem>>, vector<1x1x128xf32>
    %c0_8 = arith.constant 0 : index
    %c0_9 = arith.constant 0 : index
    %c0_10 = arith.constant 0 : index
    %3 = vector.load %arg5[%c0_8, %c0_9, %c0_10] : memref<1x16x128xbf16, #tpu.memory_space<vmem>>, vector<1x16x128xbf16>
    %4 = arith.extf %0 : vector<1x16x128xbf16> to vector<1x16x128xf32>
    %5 = vector.broadcast %1 : vector<1x1x128xf32> to vector<1x16x128xf32>
    %6 = arith.subf %4, %5 : vector<1x16x128xf32>
    %cst = arith.constant 9.99999974E-6 : f32
    %7 = vector.broadcast %cst : f32 to vector<1x1x128xf32>
    %8 = arith.addf %2, %7 : vector<1x1x128xf32>
    %9 = math.rsqrt %8 : vector<1x1x128xf32>
    %10 = vector.broadcast %9 : vector<1x1x128xf32> to vector<1x16x128xf32>
    %11 = arith.mulf %6, %10 : vector<1x16x128xf32>
    %12 = arith.extf %3 : vector<1x16x128xbf16> to vector<1x16x128xf32>
    %13 = arith.addf %11, %12 : vector<1x16x128xf32>
    %cst_11 = arith.constant 0.000000e+00 : f32
    %14 = vector.broadcast %cst_11 : f32 to vector<1x16x128xf32>
    %15 = arith.maximumf %13, %14 : vector<1x16x128xf32>
    %16 = arith.truncf %15 : vector<1x16x128xf32> to vector<1x16x128xbf16>
    %c0_12 = arith.constant 0 : index
    %c0_13 = arith.constant 0 : index
    %c0_14 = arith.constant 0 : index
    %17 = vector.load %arg6[%c0_12, %c0_13, %c0_14] : memref<1x16x128xbf16, #tpu.memory_space<vmem>>, vector<1x16x128xbf16>
    tpu.vector_store %arg6[%c0_12, %c0_13, %c0_14], %16 {strides = array<i32>} : memref<1x16x128xbf16, #tpu.memory_space<vmem>>, vector<1x16x128xbf16>,
    return
  }
  func.func @transform_0(%arg0: i32, %arg1: i32) -> (i32, i32, i32) {
    %c0_i32 = arith.constant 0 : i32
    %c0_i32_0 = arith.constant 0 : i32
    return %arg0, %arg1, %c0_i32 : i32, i32, i32
  }
  func.func @transform_1(%arg0: i32, %arg1: i32) -> (i32, i32, i32) {
    %c0_i32 = arith.constant 0 : i32
    %c0_i32_0 = arith.constant 0 : i32
    %c0_i32_1 = arith.constant 0 : i32
    %c0_i32_2 = arith.constant 0 : i32
    return %c0_i32, %c0_i32_0, %c0_i32_1 : i32, i32, i32
  }
  func.func @transform_2(%arg0: i32, %arg1: i32) -> (i32, i32, i32) {
    %c0_i32 = arith.constant 0 : i32
    %c0_i32_0 = arith.constant 0 : i32
    %c0_i32_1 = arith.constant 0 : i32
    %c0_i32_2 = arith.constant 0 : i32
    return %c0_i32, %c0_i32_0, %c0_i32_1 : i32, i32, i32
  }
  func.func @transform_3(%arg0: i32, %arg1: i32) -> (i32, i32, i32) {
    %c0_i32 = arith.constant 0 : i32
    %c0_i32_0 = arith.constant 0 : i32
    return %arg0, %arg1, %c0_i32 : i32, i32, i32
  }
  func.func @transform_4(%arg0: i32, %arg1: i32) -> (i32, i32, i32) {
    %c0_i32 = arith.constant 0 : i32
    %c0_i32_0 = arith.constant 0 : i32
    return %arg0, %arg1, %c0_i32 : i32, i32, i32
  }
}

module attributes {stable_mosaic.version = 11 : i64} {
  func.func @kernel(%arg0: i32, %arg1: i32, %arg2: memref<1x16x128xbf16, #tpu.memory_space<vmem>>, %arg3: memref<1x1x128xf32, #tpu.memory_space<vmem>>, %arg4: memref<1x1x128xf32, #tpu.memory_space<vmem>>, %arg5: memref<1x16x128xbf16, #tpu.memory_space<vmem>>) attributes {dimension_semantics = [#tpu.dimension_semantics<parallel>, #tpu.dimension_semantics<parallel>], iteration_bounds = array<i64: 2, 1>, scalar_prefetch = 0 : i64, scratch_operands = 0 : i64, tpu.core_type = #tpu.core_type<tc>, window_params = [{transform_indices = @transform_0, window_bounds = array<i64: 1, 16, 128>}, {pipeline_mode = #tpu.pipeline_mode<synchronous>, transform_indices = @transform_1, window_bounds = array<i64: 1, 1, 128>}, {pipeline_mode = #tpu.pipeline_mode<synchronous>, transform_indices = @transform_2, window_bounds = array<i64: 1, 1, 128>}, {transform_indices = @transform_3, window_bounds = array<i64: 1, 16, 128>}]} {
    %c0 = arith.constant 0 : index
    %c0_0 = arith.constant 0 : index
    %c0_1 = arith.constant 0 : index
    %0 = vector.load %arg2[%c0, %c0_0, %c0_1] : memref<1x16x128xbf16, #tpu.memory_space<vmem>>, vector<1x16x128xbf16>
    %c0_2 = arith.constant 0 : index
    %c0_3 = arith.constant 0 : index
    %c0_4 = arith.constant 0 : index
    %1 = vector.load %arg3[%c0_2, %c0_3, %c0_4] : memref<1x1x128xf32, #tpu.memory_space<vmem>>, vector<1x1x128xf32>
    %c0_5 = arith.constant 0 : index
    %c0_6 = arith.constant 0 : index
    %c0_7 = arith.constant 0 : index
    %2 = vector.load %arg4[%c0_5, %c0_6, %c0_7] : memref<1x1x128xf32, #tpu.memory_space<vmem>>, vector<1x1x128xf32>
    %3 = arith.extf %0 : vector<1x16x128xbf16> to vector<1x16x128xf32>
    %4 = vector.broadcast %1 : vector<1x1x128xf32> to vector<1x16x128xf32>
    %5 = arith.subf %3, %4 : vector<1x16x128xf32>
    %cst = arith.constant 9.99999974E-6 : f32
    %6 = vector.broadcast %cst : f32 to vector<1x1x128xf32>
    %7 = arith.addf %2, %6 : vector<1x1x128xf32>
    %8 = math.rsqrt %7 : vector<1x1x128xf32>
    %9 = vector.broadcast %8 : vector<1x1x128xf32> to vector<1x16x128xf32>
    %10 = arith.mulf %5, %9 : vector<1x16x128xf32>
    %cst_8 = arith.constant 0.000000e+00 : f32
    %11 = vector.broadcast %cst_8 : f32 to vector<1x16x128xf32>
    %12 = arith.maximumf %10, %11 : vector<1x16x128xf32>
    %13 = arith.truncf %12 : vector<1x16x128xf32> to vector<1x16x128xbf16>
    %c0_9 = arith.constant 0 : index
    %c0_10 = arith.constant 0 : index
    %c0_11 = arith.constant 0 : index
    %14 = vector.load %arg5[%c0_9, %c0_10, %c0_11] : memref<1x16x128xbf16, #tpu.memory_space<vmem>>, vector<1x16x128xbf16>
    tpu.vector_store %arg5[%c0_9, %c0_10, %c0_11], %13 {strides = array<i32>} : memref<1x16x128xbf16, #tpu.memory_space<vmem>>, vector<1x16x128xbf16>,
    return
  }
  func.func @transform_0(%arg0: i32, %arg1: i32) -> (i32, i32, i32) {
    %c0_i32 = arith.constant 0 : i32
    %c0_i32_0 = arith.constant 0 : i32
    return %arg0, %arg1, %c0_i32 : i32, i32, i32
  }
  func.func @transform_1(%arg0: i32, %arg1: i32) -> (i32, i32, i32) {
    %c0_i32 = arith.constant 0 : i32
    %c0_i32_0 = arith.constant 0 : i32
    %c0_i32_1 = arith.constant 0 : i32
    %c0_i32_2 = arith.constant 0 : i32
    return %c0_i32, %c0_i32_0, %c0_i32_1 : i32, i32, i32
  }
  func.func @transform_2(%arg0: i32, %arg1: i32) -> (i32, i32, i32) {
    %c0_i32 = arith.constant 0 : i32
    %c0_i32_0 = arith.constant 0 : i32
    %c0_i32_1 = arith.constant 0 : i32
    %c0_i32_2 = arith.constant 0 : i32
    return %c0_i32, %c0_i32_0, %c0_i32_1 : i32, i32, i32
  }
  func.func @transform_3(%arg0: i32, %arg1: i32) -> (i32, i32, i32) {
    %c0_i32 = arith.constant 0 : i32
    %c0_i32_0 = arith.constant 0 : i32
    return %arg0, %arg1, %c0_i32 : i32, i32, i32
  }
}

module attributes {stable_mosaic.version = 11 : i64} {
  func.func @_matmul_kernel(%arg0: i32, %arg1: i32, %arg2: i32, %arg3: memref<16x128xbf16, #tpu.memory_space<vmem>>, %arg4: memref<128x128xbf16, #tpu.memory_space<vmem>>, %arg5: memref<16x128xbf16, #tpu.memory_space<vmem>>, %arg6: memref<16x128xf32, #tpu.memory_space<vmem>>) attributes {dimension_semantics = [#tpu.dimension_semantics<parallel>, #tpu.dimension_semantics<parallel>, #tpu.dimension_semantics<arbitrary>], iteration_bounds = array<i64: 1, 2, 1>, scalar_prefetch = 0 : i64, scratch_operands = 1 : i64, tpu.core_type = #tpu.core_type<tc>, window_params = [{transform_indices = @transform_0, window_bounds = array<i64: 16, 128>}, {transform_indices = @transform_1, window_bounds = array<i64: 128, 128>}, {transform_indices = @transform_2, window_bounds = array<i64: 16, 128>}]} {
    %c0_i32 = arith.constant 0 : i32
    %0 = arith.cmpi eq, %arg2, %c0_i32 : i32
    %1 = arith.extui %0 : i1 to i32
    %c0_i32_0 = arith.constant 0 : i32
    %2 = arith.cmpi ne, %1, %c0_i32_0 : i32
    scf.if %2 {
      %cst_10 = arith.constant 0.000000e+00 : f32
      %12 = vector.broadcast %cst_10 : f32 to vector<16x128xf32>
      %c0_11 = arith.constant 0 : index
      %c0_12 = arith.constant 0 : index
      %13 = vector.load %arg6[%c0_11, %c0_12] : memref<16x128xf32, #tpu.memory_space<vmem>>, vector<16x128xf32>
      tpu.vector_store %arg6[%c0_11, %c0_12], %12 {strides = array<i32>} : memref<16x128xf32, #tpu.memory_space<vmem>>, vector<16x128xf32>,
    } else {
    }
    %c0 = arith.constant 0 : index
    %c0_1 = arith.constant 0 : index
    %3 = vector.load %arg6[%c0, %c0_1] : memref<16x128xf32, #tpu.memory_space<vmem>>, vector<16x128xf32>
    %c0_2 = arith.constant 0 : index
    %c0_3 = arith.constant 0 : index
    %4 = vector.load %arg3[%c0_2, %c0_3] : memref<16x128xbf16, #tpu.memory_space<vmem>>, vector<16x128xbf16>
    %c0_4 = arith.constant 0 : index
    %c0_5 = arith.constant 0 : index
    %5 = vector.load %arg4[%c0_4, %c0_5] : memref<128x128xbf16, #tpu.memory_space<vmem>>, vector<128x128xbf16>
    %cst = arith.constant dense<0.000000e+00> : vector<16x128xf32>
    %6 = tpu.matmul %4, %5, %cst {dimension_numbers = #tpu.dot_dimension_numbers<[1], [0], [0], [1], [0, 0, 1, 1], [], []>} : vector<16x128xbf16>, vector<128x128xbf16>, vector<16x128xf32> -> vector<16x128xf32>
    %7 = arith.addf %3, %6 : vector<16x128xf32>
    %c0_6 = arith.constant 0 : index
    %c0_7 = arith.constant 0 : index
    %8 = vector.load %arg6[%c0_6, %c0_7] : memref<16x128xf32, #tpu.memory_space<vmem>>, vector<16x128xf32>
    tpu.vector_store %arg6[%c0_6, %c0_7], %7 {strides = array<i32>} : memref<16x128xf32, #tpu.memory_space<vmem>>, vector<16x128xf32>,
    %c0_i32_8 = arith.constant 0 : i32
    %9 = arith.cmpi eq, %arg2, %c0_i32_8 : i32
    %10 = arith.extui %9 : i1 to i32
    %c0_i32_9 = arith.constant 0 : i32
    %11 = arith.cmpi ne, %10, %c0_i32_9 : i32
    scf.if %11 {
      %c0_10 = arith.constant 0 : index
      %c0_11 = arith.constant 0 : index
      %12 = vector.load %arg6[%c0_10, %c0_11] : memref<16x128xf32, #tpu.memory_space<vmem>>, vector<16x128xf32>
      %13 = arith.truncf %12 : vector<16x128xf32> to vector<16x128xbf16>
      %c0_12 = arith.constant 0 : index
      %c0_13 = arith.constant 0 : index
      %14 = vector.load %arg5[%c0_12, %c0_13] : memref<16x128xbf16, #tpu.memory_space<vmem>>, vector<16x128xbf16>
      tpu.vector_store %arg5[%c0_12, %c0_13], %13 {strides = array<i32>} : memref<16x128xbf16, #tpu.memory_space<vmem>>, vector<16x128xbf16>,
    } else {
    }
    return
  }
  func.func @transform_0(%arg0: i32, %arg1: i32, %arg2: i32) -> (i32, i32) {
    %c0_i32 = arith.constant 0 : i32
    return %arg0, %arg2 : i32, i32
  }
  func.func @transform_1(%arg0: i32, %arg1: i32, %arg2: i32) -> (i32, i32) {
    %c0_i32 = arith.constant 0 : i32
    return %arg2, %arg1 : i32, i32
  }
  func.func @transform_2(%arg0: i32, %arg1: i32, %arg2: i32) -> (i32, i32) {
    %c0_i32 = arith.constant 0 : i32
    return %arg0, %arg1 : i32, i32
  }
}

module attributes {stable_mosaic.version = 11 : i64} {
  func.func @_moments_kernel(%arg0: i32, %arg1: i32, %arg2: memref<1x16x256xbf16, #tpu.memory_space<vmem>>, %arg3: memref<1x1x256xf32, #tpu.memory_space<vmem>>, %arg4: memref<1x1x256xf32, #tpu.memory_space<vmem>>) attributes {dimension_semantics = [#tpu.dimension_semantics<parallel>, #tpu.dimension_semantics<arbitrary>], iteration_bounds = array<i64: 2, 1>, scalar_prefetch = 0 : i64, scratch_operands = 0 : i64, tpu.core_type = #tpu.core_type<tc>, window_params = [{transform_indices = @transform_0, window_bounds = array<i64: 1, 16, 256>}, {transform_indices = @transform_1, window_bounds = array<i64: 1, 1, 256>}, {transform_indices = @transform_2, window_bounds = array<i64: 1, 1, 256>}]} {
    %c0_i32 = arith.constant 0 : i32
    %0 = arith.cmpi eq, %arg1, %c0_i32 : i32
    %1 = arith.extui %0 : i1 to i32
    %c0_i32_0 = arith.constant 0 : i32
    %2 = arith.cmpi ne, %1, %c0_i32_0 : i32
    scf.if %2 {
      %cst_16 = arith.constant 0.000000e+00 : f32
      %16 = vector.broadcast %cst_16 : f32 to vector<1x1x256xf32>
      %c0_17 = arith.constant 0 : index
      %c0_18 = arith.constant 0 : index
      %c0_19 = arith.constant 0 : index
      %17 = vector.load %arg3[%c0_17, %c0_18, %c0_19] : memref<1x1x256xf32, #tpu.memory_space<vmem>>, vector<1x1x256xf32>
      tpu.vector_store %arg3[%c0_17, %c0_18, %c0_19], %16 {strides = array<i32>} : memref<1x1x256xf32, #tpu.memory_space<vmem>>, vector<1x1x256xf32>,
      %cst_20 = arith.constant 0.000000e+00 : f32
      %18 = vector.broadcast %cst_20 : f32 to vector<1x1x256xf32>
      %c0_21 = arith.constant 0 : index
      %c0_22 = arith.constant 0 : index
      %c0_23 = arith.constant 0 : index
      %19 = vector.load %arg4[%c0_21, %c0_22, %c0_23] : memref<1x1x256xf32, #tpu.memory_space<vmem>>, vector<1x1x256xf32>
      tpu.vector_store %arg4[%c0_21, %c0_22, %c0_23], %18 {strides = array<i32>} : memref<1x1x256xf32, #tpu.memory_space<vmem>>, vector<1x1x256xf32>,
    } else {
    }
    %c0 = arith.constant 0 : index
    %c0_1 = arith.constant 0 : index
    %c0_2 = arith.constant 0 : index
    %3 = vector.load %arg2[%c0, %c0_1, %c0_2] : memref<1x16x256xbf16, #tpu.memory_space<vmem>>, vector<1x16x256xbf16>
    %4 = arith.extf %3 : vector<1x16x256xbf16> to vector<1x16x256xf32>
    %c0_3 = arith.constant 0 : index
    %c0_4 = arith.constant 0 : index
    %c0_5 = arith.constant 0 : index
    %5 = vector.load %arg3[%c0_3, %c0_4, %c0_5] : memref<1x1x256xf32, #tpu.memory_space<vmem>>, vector<1x1x256xf32>
    %cst = arith.constant dense<0.000000e+00> : vector<1x256xf32>
    %6 = vector.multi_reduction <add>, %4, %cst [1] : vector<1x16x256xf32> to vector<1x256xf32>
    %7 = vector.shape_cast %6 : vector<1x256xf32> to vector<1x1x256xf32>
    %8 = arith.addf %5, %7 : vector<1x1x256xf32>
    %c0_6 = arith.constant 0 : index
    %c0_7 = arith.constant 0 : index
    %c0_8 = arith.constant 0 : index
    %9 = vector.load %arg3[%c0_6, %c0_7, %c0_8] : memref<1x1x256xf32, #tpu.memory_space<vmem>>, vector<1x1x256xf32>
    tpu.vector_store %arg3[%c0_6, %c0_7, %c0_8], %8 {strides = array<i32>} : memref<1x1x256xf32, #tpu.memory_space<vmem>>, vector<1x1x256xf32>,
    %c0_9 = arith.constant 0 : index
    %c0_10 = arith.constant 0 : index
    %c0_11 = arith.constant 0 : index
    %10 = vector.load %arg4[%c0_9, %c0_10, %c0_11] : memref<1x1x256xf32, #tpu.memory_space<vmem>>, vector<1x1x256xf32>
    %11 = arith.mulf %4, %4 : vector<1x16x256xf32>
    %cst_12 = arith.constant dense<0.000000e+00> : vector<1x256xf32>
    %12 = vector.multi_reduction <add>, %11, %cst_12 [1] : vector<1x16x256xf32> to vector<1x256xf32>
    %13 = vector.shape_cast %12 : vector<1x256xf32> to vector<1x1x256xf32>
    %14 = arith.addf %10, %13 : vector<1x1x256xf32>
    %c0_13 = arith.constant 0 : index
    %c0_14 = arith.constant 0 : index
    %c0_15 = arith.constant 0 : index
    %15 = vector.load %arg4[%c0_13, %c0_14, %c0_15] : memref<1x1x256xf32, #tpu.memory_space<vmem>>, vector<1x1x256xf32>
    tpu.vector_store %arg4[%c0_13, %c0_14, %c0_15], %14 {strides = array<i32>} : memref<1x1x256xf32, #tpu.memory_space<vmem>>, vector<1x1x256xf32>,
    return
  }
  func.func @transform_0(%arg0: i32, %arg1: i32) -> (i32, i32, i32) {
    %c0_i32 = arith.constant 0 : i32
    %c0_i32_0 = arith.constant 0 : i32
    return %arg0, %arg1, %c0_i32 : i32, i32, i32
  }
  func.func @transform_1(%arg0: i32, %arg1: i32) -> (i32, i32, i32) {
    %c0_i32 = arith.constant 0 : i32
    %c0_i32_0 = arith.constant 0 : i32
    %c0_i32_1 = arith.constant 0 : i32
    return %arg0, %c0_i32, %c0_i32_0 : i32, i32, i32
  }
  func.func @transform_2(%arg0: i32, %arg1: i32) -> (i32, i32, i32) {
    %c0_i32 = arith.constant 0 : i32
    %c0_i32_0 = arith.constant 0 : i32
    %c0_i32_1 = arith.constant 0 : i32
    return %arg0, %c0_i32, %c0_i32_0 : i32, i32, i32
  }
}

module attributes {stable_mosaic.version = 11 : i64} {
  func.func @kernel(%arg0: i32, %arg1: i32, %arg2: memref<1x16x256xbf16, #tpu.memory_space<vmem>>, %arg3: memref<1x1x256xf32, #tpu.memory_space<vmem>>, %arg4: memref<1x1x256xf32, #tpu.memory_space<vmem>>, %arg5: memref<1x16x256xbf16, #tpu.memory_space<vmem>>) attributes {dimension_semantics = [#tpu.dimension_semantics<parallel>, #tpu.dimension_semantics<parallel>], iteration_bounds = array<i64: 2, 1>, scalar_prefetch = 0 : i64, scratch_operands = 0 : i64, tpu.core_type = #tpu.core_type<tc>, window_params = [{transform_indices = @transform_0, window_bounds = array<i64: 1, 16, 256>}, {pipeline_mode = #tpu.pipeline_mode<synchronous>, transform_indices = @transform_1, window_bounds = array<i64: 1, 1, 256>}, {pipeline_mode = #tpu.pipeline_mode<synchronous>, transform_indices = @transform_2, window_bounds = array<i64: 1, 1, 256>}, {transform_indices = @transform_3, window_bounds = array<i64: 1, 16, 256>}]} {
    %c0 = arith.constant 0 : index
    %c0_0 = arith.constant 0 : index
    %c0_1 = arith.constant 0 : index
    %0 = vector.load %arg2[%c0, %c0_0, %c0_1] : memref<1x16x256xbf16, #tpu.memory_space<vmem>>, vector<1x16x256xbf16>
    %c0_2 = arith.constant 0 : index
    %c0_3 = arith.constant 0 : index
    %c0_4 = arith.constant 0 : index
    %1 = vector.load %arg3[%c0_2, %c0_3, %c0_4] : memref<1x1x256xf32, #tpu.memory_space<vmem>>, vector<1x1x256xf32>
    %c0_5 = arith.constant 0 : index
    %c0_6 = arith.constant 0 : index
    %c0_7 = arith.constant 0 : index
    %2 = vector.load %arg4[%c0_5, %c0_6, %c0_7] : memref<1x1x256xf32, #tpu.memory_space<vmem>>, vector<1x1x256xf32>
    %3 = arith.extf %0 : vector<1x16x256xbf16> to vector<1x16x256xf32>
    %4 = vector.broadcast %1 : vector<1x1x256xf32> to vector<1x16x256xf32>
    %5 = arith.subf %3, %4 : vector<1x16x256xf32>
    %cst = arith.constant 9.99999974E-6 : f32
    %6 = vector.broadcast %cst : f32 to vector<1x1x256xf32>
    %7 = arith.addf %2, %6 : vector<1x1x256xf32>
    %8 = math.rsqrt %7 : vector<1x1x256xf32>
    %9 = vector.broadcast %8 : vector<1x1x256xf32> to vector<1x16x256xf32>
    %10 = arith.mulf %5, %9 : vector<1x16x256xf32>
    %11 = arith.truncf %10 : vector<1x16x256xf32> to vector<1x16x256xbf16>
    %c0_8 = arith.constant 0 : index
    %c0_9 = arith.constant 0 : index
    %c0_10 = arith.constant 0 : index
    %12 = vector.load %arg5[%c0_8, %c0_9, %c0_10] : memref<1x16x256xbf16, #tpu.memory_space<vmem>>, vector<1x16x256xbf16>
    tpu.vector_store %arg5[%c0_8, %c0_9, %c0_10], %11 {strides = array<i32>} : memref<1x16x256xbf16, #tpu.memory_space<vmem>>, vector<1x16x256xbf16>,
    return
  }
  func.func @transform_0(%arg0: i32, %arg1: i32) -> (i32, i32, i32) {
    %c0_i32 = arith.constant 0 : i32
    %c0_i32_0 = arith.constant 0 : i32
    return %arg0, %arg1, %c0_i32 : i32, i32, i32
  }
  func.func @transform_1(%arg0: i32, %arg1: i32) -> (i32, i32, i32) {
    %c0_i32 = arith.constant 0 : i32
    %c0_i32_0 = arith.constant 0 : i32
    %c0_i32_1 = arith.constant 0 : i32
    %c0_i32_2 = arith.constant 0 : i32
    return %c0_i32, %c0_i32_0, %c0_i32_1 : i32, i32, i32
  }
  func.func @transform_2(%arg0: i32, %arg1: i32) -> (i32, i32, i32) {
    %c0_i32 = arith.constant 0 : i32
    %c0_i32_0 = arith.constant 0 : i32
    %c0_i32_1 = arith.constant 0 : i32
    %c0_i32_2 = arith.constant 0 : i32
    return %c0_i32, %c0_i32_0, %c0_i32_1 : i32, i32, i32
  }
  func.func @transform_3(%arg0: i32, %arg1: i32) -> (i32, i32, i32) {
    %c0_i32 = arith.constant 0 : i32
    %c0_i32_0 = arith.constant 0 : i32
    return %arg0, %arg1, %c0_i32 : i32, i32, i32
  }
}

module attributes {stable_mosaic.version = 11 : i64} {
  func.func @_matmul_kernel(%arg0: i32, %arg1: i32, %arg2: i32, %arg3: memref<16x384xbf16, #tpu.memory_space<vmem>>, %arg4: memref<384x128xbf16, #tpu.memory_space<vmem>>, %arg5: memref<16x128xbf16, #tpu.memory_space<vmem>>, %arg6: memref<16x128xf32, #tpu.memory_space<vmem>>) attributes {dimension_semantics = [#tpu.dimension_semantics<parallel>, #tpu.dimension_semantics<parallel>, #tpu.dimension_semantics<arbitrary>], iteration_bounds = array<i64: 1, 2, 9>, scalar_prefetch = 0 : i64, scratch_operands = 1 : i64, tpu.core_type = #tpu.core_type<tc>, window_params = [{transform_indices = @transform_0, window_bounds = array<i64: 16, 384>}, {transform_indices = @transform_1, window_bounds = array<i64: 384, 128>}, {transform_indices = @transform_2, window_bounds = array<i64: 16, 128>}]} {
    %c0_i32 = arith.constant 0 : i32
    %0 = arith.cmpi eq, %arg2, %c0_i32 : i32
    %1 = arith.extui %0 : i1 to i32
    %c0_i32_0 = arith.constant 0 : i32
    %2 = arith.cmpi ne, %1, %c0_i32_0 : i32
    scf.if %2 {
      %cst_9 = arith.constant 0.000000e+00 : f32
      %12 = vector.broadcast %cst_9 : f32 to vector<16x128xf32>
      %c0_10 = arith.constant 0 : index
      %c0_11 = arith.constant 0 : index
      %13 = vector.load %arg6[%c0_10, %c0_11] : memref<16x128xf32, #tpu.memory_space<vmem>>, vector<16x128xf32>
      tpu.vector_store %arg6[%c0_10, %c0_11], %12 {strides = array<i32>} : memref<16x128xf32, #tpu.memory_space<vmem>>, vector<16x128xf32>,
    } else {
    }
    %c0 = arith.constant 0 : index
    %c0_1 = arith.constant 0 : index
    %3 = vector.load %arg6[%c0, %c0_1] : memref<16x128xf32, #tpu.memory_space<vmem>>, vector<16x128xf32>
    %c0_2 = arith.constant 0 : index
    %c0_3 = arith.constant 0 : index
    %4 = vector.load %arg3[%c0_2, %c0_3] : memref<16x384xbf16, #tpu.memory_space<vmem>>, vector<16x384xbf16>
    %c0_4 = arith.constant 0 : index
    %c0_5 = arith.constant 0 : index
    %5 = vector.load %arg4[%c0_4, %c0_5] : memref<384x128xbf16, #tpu.memory_space<vmem>>, vector<384x128xbf16>
    %cst = arith.constant dense<0.000000e+00> : vector<16x128xf32>
    %6 = tpu.matmul %4, %5, %cst {dimension_numbers = #tpu.dot_dimension_numbers<[1], [0], [0], [1], [0, 0, 1, 1], [], []>} : vector<16x384xbf16>, vector<384x128xbf16>, vector<16x128xf32> -> vector<16x128xf32>
    %7 = arith.addf %3, %6 : vector<16x128xf32>
    %c0_6 = arith.constant 0 : index
    %c0_7 = arith.constant 0 : index
    %8 = vector.load %arg6[%c0_6, %c0_7] : memref<16x128xf32, #tpu.memory_space<vmem>>, vector<16x128xf32>
    tpu.vector_store %arg6[%c0_6, %c0_7], %7 {strides = array<i32>} : memref<16x128xf32, #tpu.memory_space<vmem>>, vector<16x128xf32>,
    %c8_i32 = arith.constant 8 : i32
    %9 = arith.cmpi eq, %arg2, %c8_i32 : i32
    %10 = arith.extui %9 : i1 to i32
    %c0_i32_8 = arith.constant 0 : i32
    %11 = arith.cmpi ne, %10, %c0_i32_8 : i32
    scf.if %11 {
      %c0_9 = arith.constant 0 : index
      %c0_10 = arith.constant 0 : index
      %12 = vector.load %arg6[%c0_9, %c0_10] : memref<16x128xf32, #tpu.memory_space<vmem>>, vector<16x128xf32>
      %13 = arith.truncf %12 : vector<16x128xf32> to vector<16x128xbf16>
      %c0_11 = arith.constant 0 : index
      %c0_12 = arith.constant 0 : index
      %14 = vector.load %arg5[%c0_11, %c0_12] : memref<16x128xbf16, #tpu.memory_space<vmem>>, vector<16x128xbf16>
      tpu.vector_store %arg5[%c0_11, %c0_12], %13 {strides = array<i32>} : memref<16x128xbf16, #tpu.memory_space<vmem>>, vector<16x128xbf16>,
    } else {
    }
    return
  }
  func.func @transform_0(%arg0: i32, %arg1: i32, %arg2: i32) -> (i32, i32) {
    %c0_i32 = arith.constant 0 : i32
    return %arg0, %arg2 : i32, i32
  }
  func.func @transform_1(%arg0: i32, %arg1: i32, %arg2: i32) -> (i32, i32) {
    %c0_i32 = arith.constant 0 : i32
    return %arg2, %arg1 : i32, i32
  }
  func.func @transform_2(%arg0: i32, %arg1: i32, %arg2: i32) -> (i32, i32) {
    %c0_i32 = arith.constant 0 : i32
    return %arg0, %arg1 : i32, i32
  }
}

module attributes {stable_mosaic.version = 11 : i64} {
  func.func @kernel(%arg0: i32, %arg1: i32, %arg2: memref<1x16x256xbf16, #tpu.memory_space<vmem>>, %arg3: memref<1x1x256xf32, #tpu.memory_space<vmem>>, %arg4: memref<1x1x256xf32, #tpu.memory_space<vmem>>, %arg5: memref<1x16x256xbf16, #tpu.memory_space<vmem>>) attributes {dimension_semantics = [#tpu.dimension_semantics<parallel>, #tpu.dimension_semantics<parallel>], iteration_bounds = array<i64: 2, 1>, scalar_prefetch = 0 : i64, scratch_operands = 0 : i64, tpu.core_type = #tpu.core_type<tc>, window_params = [{transform_indices = @transform_0, window_bounds = array<i64: 1, 16, 256>}, {pipeline_mode = #tpu.pipeline_mode<synchronous>, transform_indices = @transform_1, window_bounds = array<i64: 1, 1, 256>}, {pipeline_mode = #tpu.pipeline_mode<synchronous>, transform_indices = @transform_2, window_bounds = array<i64: 1, 1, 256>}, {transform_indices = @transform_3, window_bounds = array<i64: 1, 16, 256>}]} {
    %c0 = arith.constant 0 : index
    %c0_0 = arith.constant 0 : index
    %c0_1 = arith.constant 0 : index
    %0 = vector.load %arg2[%c0, %c0_0, %c0_1] : memref<1x16x256xbf16, #tpu.memory_space<vmem>>, vector<1x16x256xbf16>
    %c0_2 = arith.constant 0 : index
    %c0_3 = arith.constant 0 : index
    %c0_4 = arith.constant 0 : index
    %1 = vector.load %arg3[%c0_2, %c0_3, %c0_4] : memref<1x1x256xf32, #tpu.memory_space<vmem>>, vector<1x1x256xf32>
    %c0_5 = arith.constant 0 : index
    %c0_6 = arith.constant 0 : index
    %c0_7 = arith.constant 0 : index
    %2 = vector.load %arg4[%c0_5, %c0_6, %c0_7] : memref<1x1x256xf32, #tpu.memory_space<vmem>>, vector<1x1x256xf32>
    %3 = arith.extf %0 : vector<1x16x256xbf16> to vector<1x16x256xf32>
    %4 = vector.broadcast %1 : vector<1x1x256xf32> to vector<1x16x256xf32>
    %5 = arith.subf %3, %4 : vector<1x16x256xf32>
    %cst = arith.constant 9.99999974E-6 : f32
    %6 = vector.broadcast %cst : f32 to vector<1x1x256xf32>
    %7 = arith.addf %2, %6 : vector<1x1x256xf32>
    %8 = math.rsqrt %7 : vector<1x1x256xf32>
    %9 = vector.broadcast %8 : vector<1x1x256xf32> to vector<1x16x256xf32>
    %10 = arith.mulf %5, %9 : vector<1x16x256xf32>
    %cst_8 = arith.constant 0.000000e+00 : f32
    %11 = vector.broadcast %cst_8 : f32 to vector<1x16x256xf32>
    %12 = arith.maximumf %10, %11 : vector<1x16x256xf32>
    %13 = arith.truncf %12 : vector<1x16x256xf32> to vector<1x16x256xbf16>
    %c0_9 = arith.constant 0 : index
    %c0_10 = arith.constant 0 : index
    %c0_11 = arith.constant 0 : index
    %14 = vector.load %arg5[%c0_9, %c0_10, %c0_11] : memref<1x16x256xbf16, #tpu.memory_space<vmem>>, vector<1x16x256xbf16>
    tpu.vector_store %arg5[%c0_9, %c0_10, %c0_11], %13 {strides = array<i32>} : memref<1x16x256xbf16, #tpu.memory_space<vmem>>, vector<1x16x256xbf16>,
    return
  }
  func.func @transform_0(%arg0: i32, %arg1: i32) -> (i32, i32, i32) {
    %c0_i32 = arith.constant 0 : i32
    %c0_i32_0 = arith.constant 0 : i32
    return %arg0, %arg1, %c0_i32 : i32, i32, i32
  }
  func.func @transform_1(%arg0: i32, %arg1: i32) -> (i32, i32, i32) {
    %c0_i32 = arith.constant 0 : i32
    %c0_i32_0 = arith.constant 0 : i32
    %c0_i32_1 = arith.constant 0 : i32
    %c0_i32_2 = arith.constant 0 : i32
    return %c0_i32, %c0_i32_0, %c0_i32_1 : i32, i32, i32
  }
  func.func @transform_2(%arg0: i32, %arg1: i32) -> (i32, i32, i32) {
    %c0_i32 = arith.constant 0 : i32
    %c0_i32_0 = arith.constant 0 : i32
    %c0_i32_1 = arith.constant 0 : i32
    %c0_i32_2 = arith.constant 0 : i32
    return %c0_i32, %c0_i32_0, %c0_i32_1 : i32, i32, i32
  }
  func.func @transform_3(%arg0: i32, %arg1: i32) -> (i32, i32, i32) {
    %c0_i32 = arith.constant 0 : i32
    %c0_i32_0 = arith.constant 0 : i32
    return %arg0, %arg1, %c0_i32 : i32, i32, i32
  }
}

module attributes {stable_mosaic.version = 11 : i64} {
  func.func @_matmul_kernel(%arg0: i32, %arg1: i32, %arg2: i32, %arg3: memref<16x384xbf16, #tpu.memory_space<vmem>>, %arg4: memref<384x128xbf16, #tpu.memory_space<vmem>>, %arg5: memref<16x128xbf16, #tpu.memory_space<vmem>>, %arg6: memref<16x128xf32, #tpu.memory_space<vmem>>) attributes {dimension_semantics = [#tpu.dimension_semantics<parallel>, #tpu.dimension_semantics<parallel>, #tpu.dimension_semantics<arbitrary>], iteration_bounds = array<i64: 1, 2, 18>, scalar_prefetch = 0 : i64, scratch_operands = 1 : i64, tpu.core_type = #tpu.core_type<tc>, window_params = [{transform_indices = @transform_0, window_bounds = array<i64: 16, 384>}, {transform_indices = @transform_1, window_bounds = array<i64: 384, 128>}, {transform_indices = @transform_2, window_bounds = array<i64: 16, 128>}]} {
    %c0_i32 = arith.constant 0 : i32
    %0 = arith.cmpi eq, %arg2, %c0_i32 : i32
    %1 = arith.extui %0 : i1 to i32
    %c0_i32_0 = arith.constant 0 : i32
    %2 = arith.cmpi ne, %1, %c0_i32_0 : i32
    scf.if %2 {
      %cst_9 = arith.constant 0.000000e+00 : f32
      %12 = vector.broadcast %cst_9 : f32 to vector<16x128xf32>
      %c0_10 = arith.constant 0 : index
      %c0_11 = arith.constant 0 : index
      %13 = vector.load %arg6[%c0_10, %c0_11] : memref<16x128xf32, #tpu.memory_space<vmem>>, vector<16x128xf32>
      tpu.vector_store %arg6[%c0_10, %c0_11], %12 {strides = array<i32>} : memref<16x128xf32, #tpu.memory_space<vmem>>, vector<16x128xf32>,
    } else {
    }
    %c0 = arith.constant 0 : index
    %c0_1 = arith.constant 0 : index
    %3 = vector.load %arg6[%c0, %c0_1] : memref<16x128xf32, #tpu.memory_space<vmem>>, vector<16x128xf32>
    %c0_2 = arith.constant 0 : index
    %c0_3 = arith.constant 0 : index
    %4 = vector.load %arg3[%c0_2, %c0_3] : memref<16x384xbf16, #tpu.memory_space<vmem>>, vector<16x384xbf16>
    %c0_4 = arith.constant 0 : index
    %c0_5 = arith.constant 0 : index
    %5 = vector.load %arg4[%c0_4, %c0_5] : memref<384x128xbf16, #tpu.memory_space<vmem>>, vector<384x128xbf16>
    %cst = arith.constant dense<0.000000e+00> : vector<16x128xf32>
    %6 = tpu.matmul %4, %5, %cst {dimension_numbers = #tpu.dot_dimension_numbers<[1], [0], [0], [1], [0, 0, 1, 1], [], []>} : vector<16x384xbf16>, vector<384x128xbf16>, vector<16x128xf32> -> vector<16x128xf32>
    %7 = arith.addf %3, %6 : vector<16x128xf32>
    %c0_6 = arith.constant 0 : index
    %c0_7 = arith.constant 0 : index
    %8 = vector.load %arg6[%c0_6, %c0_7] : memref<16x128xf32, #tpu.memory_space<vmem>>, vector<16x128xf32>
    tpu.vector_store %arg6[%c0_6, %c0_7], %7 {strides = array<i32>} : memref<16x128xf32, #tpu.memory_space<vmem>>, vector<16x128xf32>,
    %c17_i32 = arith.constant 17 : i32
    %9 = arith.cmpi eq, %arg2, %c17_i32 : i32
    %10 = arith.extui %9 : i1 to i32
    %c0_i32_8 = arith.constant 0 : i32
    %11 = arith.cmpi ne, %10, %c0_i32_8 : i32
    scf.if %11 {
      %c0_9 = arith.constant 0 : index
      %c0_10 = arith.constant 0 : index
      %12 = vector.load %arg6[%c0_9, %c0_10] : memref<16x128xf32, #tpu.memory_space<vmem>>, vector<16x128xf32>
      %13 = arith.truncf %12 : vector<16x128xf32> to vector<16x128xbf16>
      %c0_11 = arith.constant 0 : index
      %c0_12 = arith.constant 0 : index
      %14 = vector.load %arg5[%c0_11, %c0_12] : memref<16x128xbf16, #tpu.memory_space<vmem>>, vector<16x128xbf16>
      tpu.vector_store %arg5[%c0_11, %c0_12], %13 {strides = array<i32>} : memref<16x128xbf16, #tpu.memory_space<vmem>>, vector<16x128xbf16>,
    } else {
    }
    return
  }
  func.func @transform_0(%arg0: i32, %arg1: i32, %arg2: i32) -> (i32, i32) {
    %c0_i32 = arith.constant 0 : i32
    return %arg0, %arg2 : i32, i32
  }
  func.func @transform_1(%arg0: i32, %arg1: i32, %arg2: i32) -> (i32, i32) {
    %c0_i32 = arith.constant 0 : i32
    return %arg2, %arg1 : i32, i32
  }
  func.func @transform_2(%arg0: i32, %arg1: i32, %arg2: i32) -> (i32, i32) {
    %c0_i32 = arith.constant 0 : i32
    return %arg0, %arg1 : i32, i32
  }
}

module attributes {stable_mosaic.version = 11 : i64} {
  func.func @kernel(%arg0: i32, %arg1: i32, %arg2: memref<1x16x256xbf16, #tpu.memory_space<vmem>>, %arg3: memref<1x1x256xf32, #tpu.memory_space<vmem>>, %arg4: memref<1x1x256xf32, #tpu.memory_space<vmem>>, %arg5: memref<1x16x256xbf16, #tpu.memory_space<vmem>>, %arg6: memref<1x16x256xbf16, #tpu.memory_space<vmem>>) attributes {dimension_semantics = [#tpu.dimension_semantics<parallel>, #tpu.dimension_semantics<parallel>], iteration_bounds = array<i64: 2, 1>, scalar_prefetch = 0 : i64, scratch_operands = 0 : i64, tpu.core_type = #tpu.core_type<tc>, window_params = [{transform_indices = @transform_0, window_bounds = array<i64: 1, 16, 256>}, {pipeline_mode = #tpu.pipeline_mode<synchronous>, transform_indices = @transform_1, window_bounds = array<i64: 1, 1, 256>}, {pipeline_mode = #tpu.pipeline_mode<synchronous>, transform_indices = @transform_2, window_bounds = array<i64: 1, 1, 256>}, {transform_indices = @transform_3, window_bounds = array<i64: 1, 16, 256>}, {transform_indices = @transform_4, window_bounds = array<i64: 1, 16, 256>}]} {
    %c0 = arith.constant 0 : index
    %c0_0 = arith.constant 0 : index
    %c0_1 = arith.constant 0 : index
    %0 = vector.load %arg2[%c0, %c0_0, %c0_1] : memref<1x16x256xbf16, #tpu.memory_space<vmem>>, vector<1x16x256xbf16>
    %c0_2 = arith.constant 0 : index
    %c0_3 = arith.constant 0 : index
    %c0_4 = arith.constant 0 : index
    %1 = vector.load %arg3[%c0_2, %c0_3, %c0_4] : memref<1x1x256xf32, #tpu.memory_space<vmem>>, vector<1x1x256xf32>
    %c0_5 = arith.constant 0 : index
    %c0_6 = arith.constant 0 : index
    %c0_7 = arith.constant 0 : index
    %2 = vector.load %arg4[%c0_5, %c0_6, %c0_7] : memref<1x1x256xf32, #tpu.memory_space<vmem>>, vector<1x1x256xf32>
    %c0_8 = arith.constant 0 : index
    %c0_9 = arith.constant 0 : index
    %c0_10 = arith.constant 0 : index
    %3 = vector.load %arg5[%c0_8, %c0_9, %c0_10] : memref<1x16x256xbf16, #tpu.memory_space<vmem>>, vector<1x16x256xbf16>
    %4 = arith.extf %0 : vector<1x16x256xbf16> to vector<1x16x256xf32>
    %5 = vector.broadcast %1 : vector<1x1x256xf32> to vector<1x16x256xf32>
    %6 = arith.subf %4, %5 : vector<1x16x256xf32>
    %cst = arith.constant 9.99999974E-6 : f32
    %7 = vector.broadcast %cst : f32 to vector<1x1x256xf32>
    %8 = arith.addf %2, %7 : vector<1x1x256xf32>
    %9 = math.rsqrt %8 : vector<1x1x256xf32>
    %10 = vector.broadcast %9 : vector<1x1x256xf32> to vector<1x16x256xf32>
    %11 = arith.mulf %6, %10 : vector<1x16x256xf32>
    %12 = arith.extf %3 : vector<1x16x256xbf16> to vector<1x16x256xf32>
    %13 = arith.addf %11, %12 : vector<1x16x256xf32>
    %cst_11 = arith.constant 0.000000e+00 : f32
    %14 = vector.broadcast %cst_11 : f32 to vector<1x16x256xf32>
    %15 = arith.maximumf %13, %14 : vector<1x16x256xf32>
    %16 = arith.truncf %15 : vector<1x16x256xf32> to vector<1x16x256xbf16>
    %c0_12 = arith.constant 0 : index
    %c0_13 = arith.constant 0 : index
    %c0_14 = arith.constant 0 : index
    %17 = vector.load %arg6[%c0_12, %c0_13, %c0_14] : memref<1x16x256xbf16, #tpu.memory_space<vmem>>, vector<1x16x256xbf16>
    tpu.vector_store %arg6[%c0_12, %c0_13, %c0_14], %16 {strides = array<i32>} : memref<1x16x256xbf16, #tpu.memory_space<vmem>>, vector<1x16x256xbf16>,
    return
  }
  func.func @transform_0(%arg0: i32, %arg1: i32) -> (i32, i32, i32) {
    %c0_i32 = arith.constant 0 : i32
    %c0_i32_0 = arith.constant 0 : i32
    return %arg0, %arg1, %c0_i32 : i32, i32, i32
  }
  func.func @transform_1(%arg0: i32, %arg1: i32) -> (i32, i32, i32) {
    %c0_i32 = arith.constant 0 : i32
    %c0_i32_0 = arith.constant 0 : i32
    %c0_i32_1 = arith.constant 0 : i32
    %c0_i32_2 = arith.constant 0 : i32
    return %c0_i32, %c0_i32_0, %c0_i32_1 : i32, i32, i32
  }
  func.func @transform_2(%arg0: i32, %arg1: i32) -> (i32, i32, i32) {
    %c0_i32 = arith.constant 0 : i32
    %c0_i32_0 = arith.constant 0 : i32
    %c0_i32_1 = arith.constant 0 : i32
    %c0_i32_2 = arith.constant 0 : i32
    return %c0_i32, %c0_i32_0, %c0_i32_1 : i32, i32, i32
  }
  func.func @transform_3(%arg0: i32, %arg1: i32) -> (i32, i32, i32) {
    %c0_i32 = arith.constant 0 : i32
    %c0_i32_0 = arith.constant 0 : i32
    return %arg0, %arg1, %c0_i32 : i32, i32, i32
  }
  func.func @transform_4(%arg0: i32, %arg1: i32) -> (i32, i32, i32) {
    %c0_i32 = arith.constant 0 : i32
    %c0_i32_0 = arith.constant 0 : i32
    return %arg0, %arg1, %c0_i32 : i32, i32, i32
  }
}

module attributes {stable_mosaic.version = 11 : i64} {
  func.func @_matmul_kernel(%arg0: i32, %arg1: i32, %arg2: i32, %arg3: memref<16x256xbf16, #tpu.memory_space<vmem>>, %arg4: memref<256x256xbf16, #tpu.memory_space<vmem>>, %arg5: memref<16x256xbf16, #tpu.memory_space<vmem>>, %arg6: memref<16x256xf32, #tpu.memory_space<vmem>>) attributes {dimension_semantics = [#tpu.dimension_semantics<parallel>, #tpu.dimension_semantics<parallel>, #tpu.dimension_semantics<arbitrary>], iteration_bounds = array<i64: 1, 2, 1>, scalar_prefetch = 0 : i64, scratch_operands = 1 : i64, tpu.core_type = #tpu.core_type<tc>, window_params = [{transform_indices = @transform_0, window_bounds = array<i64: 16, 256>}, {transform_indices = @transform_1, window_bounds = array<i64: 256, 256>}, {transform_indices = @transform_2, window_bounds = array<i64: 16, 256>}]} {
    %c0_i32 = arith.constant 0 : i32
    %0 = arith.cmpi eq, %arg2, %c0_i32 : i32
    %1 = arith.extui %0 : i1 to i32
    %c0_i32_0 = arith.constant 0 : i32
    %2 = arith.cmpi ne, %1, %c0_i32_0 : i32
    scf.if %2 {
      %cst_10 = arith.constant 0.000000e+00 : f32
      %12 = vector.broadcast %cst_10 : f32 to vector<16x256xf32>
      %c0_11 = arith.constant 0 : index
      %c0_12 = arith.constant 0 : index
      %13 = vector.load %arg6[%c0_11, %c0_12] : memref<16x256xf32, #tpu.memory_space<vmem>>, vector<16x256xf32>
      tpu.vector_store %arg6[%c0_11, %c0_12], %12 {strides = array<i32>} : memref<16x256xf32, #tpu.memory_space<vmem>>, vector<16x256xf32>,
    } else {
    }
    %c0 = arith.constant 0 : index
    %c0_1 = arith.constant 0 : index
    %3 = vector.load %arg6[%c0, %c0_1] : memref<16x256xf32, #tpu.memory_space<vmem>>, vector<16x256xf32>
    %c0_2 = arith.constant 0 : index
    %c0_3 = arith.constant 0 : index
    %4 = vector.load %arg3[%c0_2, %c0_3] : memref<16x256xbf16, #tpu.memory_space<vmem>>, vector<16x256xbf16>
    %c0_4 = arith.constant 0 : index
    %c0_5 = arith.constant 0 : index
    %5 = vector.load %arg4[%c0_4, %c0_5] : memref<256x256xbf16, #tpu.memory_space<vmem>>, vector<256x256xbf16>
    %cst = arith.constant dense<0.000000e+00> : vector<16x256xf32>
    %6 = tpu.matmul %4, %5, %cst {dimension_numbers = #tpu.dot_dimension_numbers<[1], [0], [0], [1], [0, 0, 1, 1], [], []>} : vector<16x256xbf16>, vector<256x256xbf16>, vector<16x256xf32> -> vector<16x256xf32>
    %7 = arith.addf %3, %6 : vector<16x256xf32>
    %c0_6 = arith.constant 0 : index
    %c0_7 = arith.constant 0 : index
    %8 = vector.load %arg6[%c0_6, %c0_7] : memref<16x256xf32, #tpu.memory_space<vmem>>, vector<16x256xf32>
    tpu.vector_store %arg6[%c0_6, %c0_7], %7 {strides = array<i32>} : memref<16x256xf32, #tpu.memory_space<vmem>>, vector<16x256xf32>,
    %c0_i32_8 = arith.constant 0 : i32
    %9 = arith.cmpi eq, %arg2, %c0_i32_8 : i32
    %10 = arith.extui %9 : i1 to i32
    %c0_i32_9 = arith.constant 0 : i32
    %11 = arith.cmpi ne, %10, %c0_i32_9 : i32
    scf.if %11 {
      %c0_10 = arith.constant 0 : index
      %c0_11 = arith.constant 0 : index
      %12 = vector.load %arg6[%c0_10, %c0_11] : memref<16x256xf32, #tpu.memory_space<vmem>>, vector<16x256xf32>
      %13 = arith.truncf %12 : vector<16x256xf32> to vector<16x256xbf16>
      %c0_12 = arith.constant 0 : index
      %c0_13 = arith.constant 0 : index
      %14 = vector.load %arg5[%c0_12, %c0_13] : memref<16x256xbf16, #tpu.memory_space<vmem>>, vector<16x256xbf16>
      tpu.vector_store %arg5[%c0_12, %c0_13], %13 {strides = array<i32>} : memref<16x256xbf16, #tpu.memory_space<vmem>>, vector<16x256xbf16>,
    } else {
    }
    return
  }
  func.func @transform_0(%arg0: i32, %arg1: i32, %arg2: i32) -> (i32, i32) {
    %c0_i32 = arith.constant 0 : i32
    return %arg0, %arg2 : i32, i32
  }
  func.func @transform_1(%arg0: i32, %arg1: i32, %arg2: i32) -> (i32, i32) {
    %c0_i32 = arith.constant 0 : i32
    return %arg2, %arg1 : i32, i32
  }
  func.func @transform_2(%arg0: i32, %arg1: i32, %arg2: i32) -> (i32, i32) {
    %c0_i32 = arith.constant 0 : i32
    return %arg0, %arg1 : i32, i32
  }
}

module attributes {stable_mosaic.version = 11 : i64} {
  func.func @_moments_kernel(%arg0: i32, %arg1: i32, %arg2: memref<1x16x512xbf16, #tpu.memory_space<vmem>>, %arg3: memref<1x1x512xf32, #tpu.memory_space<vmem>>, %arg4: memref<1x1x512xf32, #tpu.memory_space<vmem>>) attributes {dimension_semantics = [#tpu.dimension_semantics<parallel>, #tpu.dimension_semantics<arbitrary>], iteration_bounds = array<i64: 2, 1>, scalar_prefetch = 0 : i64, scratch_operands = 0 : i64, tpu.core_type = #tpu.core_type<tc>, window_params = [{transform_indices = @transform_0, window_bounds = array<i64: 1, 16, 512>}, {transform_indices = @transform_1, window_bounds = array<i64: 1, 1, 512>}, {transform_indices = @transform_2, window_bounds = array<i64: 1, 1, 512>}]} {
    %c0_i32 = arith.constant 0 : i32
    %0 = arith.cmpi eq, %arg1, %c0_i32 : i32
    %1 = arith.extui %0 : i1 to i32
    %c0_i32_0 = arith.constant 0 : i32
    %2 = arith.cmpi ne, %1, %c0_i32_0 : i32
    scf.if %2 {
      %cst_16 = arith.constant 0.000000e+00 : f32
      %16 = vector.broadcast %cst_16 : f32 to vector<1x1x512xf32>
      %c0_17 = arith.constant 0 : index
      %c0_18 = arith.constant 0 : index
      %c0_19 = arith.constant 0 : index
      %17 = vector.load %arg3[%c0_17, %c0_18, %c0_19] : memref<1x1x512xf32, #tpu.memory_space<vmem>>, vector<1x1x512xf32>
      tpu.vector_store %arg3[%c0_17, %c0_18, %c0_19], %16 {strides = array<i32>} : memref<1x1x512xf32, #tpu.memory_space<vmem>>, vector<1x1x512xf32>,
      %cst_20 = arith.constant 0.000000e+00 : f32
      %18 = vector.broadcast %cst_20 : f32 to vector<1x1x512xf32>
      %c0_21 = arith.constant 0 : index
      %c0_22 = arith.constant 0 : index
      %c0_23 = arith.constant 0 : index
      %19 = vector.load %arg4[%c0_21, %c0_22, %c0_23] : memref<1x1x512xf32, #tpu.memory_space<vmem>>, vector<1x1x512xf32>
      tpu.vector_store %arg4[%c0_21, %c0_22, %c0_23], %18 {strides = array<i32>} : memref<1x1x512xf32, #tpu.memory_space<vmem>>, vector<1x1x512xf32>,
    } else {
    }
    %c0 = arith.constant 0 : index
    %c0_1 = arith.constant 0 : index
    %c0_2 = arith.constant 0 : index
    %3 = vector.load %arg2[%c0, %c0_1, %c0_2] : memref<1x16x512xbf16, #tpu.memory_space<vmem>>, vector<1x16x512xbf16>
    %4 = arith.extf %3 : vector<1x16x512xbf16> to vector<1x16x512xf32>
    %c0_3 = arith.constant 0 : index
    %c0_4 = arith.constant 0 : index
    %c0_5 = arith.constant 0 : index
    %5 = vector.load %arg3[%c0_3, %c0_4, %c0_5] : memref<1x1x512xf32, #tpu.memory_space<vmem>>, vector<1x1x512xf32>
    %cst = arith.constant dense<0.000000e+00> : vector<1x512xf32>
    %6 = vector.multi_reduction <add>, %4, %cst [1] : vector<1x16x512xf32> to vector<1x512xf32>
    %7 = vector.shape_cast %6 : vector<1x512xf32> to vector<1x1x512xf32>
    %8 = arith.addf %5, %7 : vector<1x1x512xf32>
    %c0_6 = arith.constant 0 : index
    %c0_7 = arith.constant 0 : index
    %c0_8 = arith.constant 0 : index
    %9 = vector.load %arg3[%c0_6, %c0_7, %c0_8] : memref<1x1x512xf32, #tpu.memory_space<vmem>>, vector<1x1x512xf32>
    tpu.vector_store %arg3[%c0_6, %c0_7, %c0_8], %8 {strides = array<i32>} : memref<1x1x512xf32, #tpu.memory_space<vmem>>, vector<1x1x512xf32>,
    %c0_9 = arith.constant 0 : index
    %c0_10 = arith.constant 0 : index
    %c0_11 = arith.constant 0 : index
    %10 = vector.load %arg4[%c0_9, %c0_10, %c0_11] : memref<1x1x512xf32, #tpu.memory_space<vmem>>, vector<1x1x512xf32>
    %11 = arith.mulf %4, %4 : vector<1x16x512xf32>
    %cst_12 = arith.constant dense<0.000000e+00> : vector<1x512xf32>
    %12 = vector.multi_reduction <add>, %11, %cst_12 [1] : vector<1x16x512xf32> to vector<1x512xf32>
    %13 = vector.shape_cast %12 : vector<1x512xf32> to vector<1x1x512xf32>
    %14 = arith.addf %10, %13 : vector<1x1x512xf32>
    %c0_13 = arith.constant 0 : index
    %c0_14 = arith.constant 0 : index
    %c0_15 = arith.constant 0 : index
    %15 = vector.load %arg4[%c0_13, %c0_14, %c0_15] : memref<1x1x512xf32, #tpu.memory_space<vmem>>, vector<1x1x512xf32>
    tpu.vector_store %arg4[%c0_13, %c0_14, %c0_15], %14 {strides = array<i32>} : memref<1x1x512xf32, #tpu.memory_space<vmem>>, vector<1x1x512xf32>,
    return
  }
  func.func @transform_0(%arg0: i32, %arg1: i32) -> (i32, i32, i32) {
    %c0_i32 = arith.constant 0 : i32
    %c0_i32_0 = arith.constant 0 : i32
    return %arg0, %arg1, %c0_i32 : i32, i32, i32
  }
  func.func @transform_1(%arg0: i32, %arg1: i32) -> (i32, i32, i32) {
    %c0_i32 = arith.constant 0 : i32
    %c0_i32_0 = arith.constant 0 : i32
    %c0_i32_1 = arith.constant 0 : i32
    return %arg0, %c0_i32, %c0_i32_0 : i32, i32, i32
  }
  func.func @transform_2(%arg0: i32, %arg1: i32) -> (i32, i32, i32) {
    %c0_i32 = arith.constant 0 : i32
    %c0_i32_0 = arith.constant 0 : i32
    %c0_i32_1 = arith.constant 0 : i32
    return %arg0, %c0_i32, %c0_i32_0 : i32, i32, i32
  }
}

module attributes {stable_mosaic.version = 11 : i64} {
  func.func @kernel(%arg0: i32, %arg1: i32, %arg2: memref<1x16x512xbf16, #tpu.memory_space<vmem>>, %arg3: memref<1x1x512xf32, #tpu.memory_space<vmem>>, %arg4: memref<1x1x512xf32, #tpu.memory_space<vmem>>, %arg5: memref<1x16x512xbf16, #tpu.memory_space<vmem>>) attributes {dimension_semantics = [#tpu.dimension_semantics<parallel>, #tpu.dimension_semantics<parallel>], iteration_bounds = array<i64: 2, 1>, scalar_prefetch = 0 : i64, scratch_operands = 0 : i64, tpu.core_type = #tpu.core_type<tc>, window_params = [{transform_indices = @transform_0, window_bounds = array<i64: 1, 16, 512>}, {pipeline_mode = #tpu.pipeline_mode<synchronous>, transform_indices = @transform_1, window_bounds = array<i64: 1, 1, 512>}, {pipeline_mode = #tpu.pipeline_mode<synchronous>, transform_indices = @transform_2, window_bounds = array<i64: 1, 1, 512>}, {transform_indices = @transform_3, window_bounds = array<i64: 1, 16, 512>}]} {
    %c0 = arith.constant 0 : index
    %c0_0 = arith.constant 0 : index
    %c0_1 = arith.constant 0 : index
    %0 = vector.load %arg2[%c0, %c0_0, %c0_1] : memref<1x16x512xbf16, #tpu.memory_space<vmem>>, vector<1x16x512xbf16>
    %c0_2 = arith.constant 0 : index
    %c0_3 = arith.constant 0 : index
    %c0_4 = arith.constant 0 : index
    %1 = vector.load %arg3[%c0_2, %c0_3, %c0_4] : memref<1x1x512xf32, #tpu.memory_space<vmem>>, vector<1x1x512xf32>
    %c0_5 = arith.constant 0 : index
    %c0_6 = arith.constant 0 : index
    %c0_7 = arith.constant 0 : index
    %2 = vector.load %arg4[%c0_5, %c0_6, %c0_7] : memref<1x1x512xf32, #tpu.memory_space<vmem>>, vector<1x1x512xf32>
    %3 = arith.extf %0 : vector<1x16x512xbf16> to vector<1x16x512xf32>
    %4 = vector.broadcast %1 : vector<1x1x512xf32> to vector<1x16x512xf32>
    %5 = arith.subf %3, %4 : vector<1x16x512xf32>
    %cst = arith.constant 9.99999974E-6 : f32
    %6 = vector.broadcast %cst : f32 to vector<1x1x512xf32>
    %7 = arith.addf %2, %6 : vector<1x1x512xf32>
    %8 = math.rsqrt %7 : vector<1x1x512xf32>
    %9 = vector.broadcast %8 : vector<1x1x512xf32> to vector<1x16x512xf32>
    %10 = arith.mulf %5, %9 : vector<1x16x512xf32>
    %11 = arith.truncf %10 : vector<1x16x512xf32> to vector<1x16x512xbf16>
    %c0_8 = arith.constant 0 : index
    %c0_9 = arith.constant 0 : index
    %c0_10 = arith.constant 0 : index
    %12 = vector.load %arg5[%c0_8, %c0_9, %c0_10] : memref<1x16x512xbf16, #tpu.memory_space<vmem>>, vector<1x16x512xbf16>
    tpu.vector_store %arg5[%c0_8, %c0_9, %c0_10], %11 {strides = array<i32>} : memref<1x16x512xbf16, #tpu.memory_space<vmem>>, vector<1x16x512xbf16>,
    return
  }
  func.func @transform_0(%arg0: i32, %arg1: i32) -> (i32, i32, i32) {
    %c0_i32 = arith.constant 0 : i32
    %c0_i32_0 = arith.constant 0 : i32
    return %arg0, %arg1, %c0_i32 : i32, i32, i32
  }
  func.func @transform_1(%arg0: i32, %arg1: i32) -> (i32, i32, i32) {
    %c0_i32 = arith.constant 0 : i32
    %c0_i32_0 = arith.constant 0 : i32
    %c0_i32_1 = arith.constant 0 : i32
    %c0_i32_2 = arith.constant 0 : i32
    return %c0_i32, %c0_i32_0, %c0_i32_1 : i32, i32, i32
  }
  func.func @transform_2(%arg0: i32, %arg1: i32) -> (i32, i32, i32) {
    %c0_i32 = arith.constant 0 : i32
    %c0_i32_0 = arith.constant 0 : i32
    %c0_i32_1 = arith.constant 0 : i32
    %c0_i32_2 = arith.constant 0 : i32
    return %c0_i32, %c0_i32_0, %c0_i32_1 : i32, i32, i32
  }
  func.func @transform_3(%arg0: i32, %arg1: i32) -> (i32, i32, i32) {
    %c0_i32 = arith.constant 0 : i32
    %c0_i32_0 = arith.constant 0 : i32
    return %arg0, %arg1, %c0_i32 : i32, i32, i32
  }
}

module attributes {stable_mosaic.version = 11 : i64} {
  func.func @_matmul_kernel(%arg0: i32, %arg1: i32, %arg2: i32, %arg3: memref<16x384xbf16, #tpu.memory_space<vmem>>, %arg4: memref<384x256xbf16, #tpu.memory_space<vmem>>, %arg5: memref<16x256xbf16, #tpu.memory_space<vmem>>, %arg6: memref<16x256xf32, #tpu.memory_space<vmem>>) attributes {dimension_semantics = [#tpu.dimension_semantics<parallel>, #tpu.dimension_semantics<parallel>, #tpu.dimension_semantics<arbitrary>], iteration_bounds = array<i64: 1, 2, 18>, scalar_prefetch = 0 : i64, scratch_operands = 1 : i64, tpu.core_type = #tpu.core_type<tc>, window_params = [{transform_indices = @transform_0, window_bounds = array<i64: 16, 384>}, {transform_indices = @transform_1, window_bounds = array<i64: 384, 256>}, {transform_indices = @transform_2, window_bounds = array<i64: 16, 256>}]} {
    %c0_i32 = arith.constant 0 : i32
    %0 = arith.cmpi eq, %arg2, %c0_i32 : i32
    %1 = arith.extui %0 : i1 to i32
    %c0_i32_0 = arith.constant 0 : i32
    %2 = arith.cmpi ne, %1, %c0_i32_0 : i32
    scf.if %2 {
      %cst_9 = arith.constant 0.000000e+00 : f32
      %12 = vector.broadcast %cst_9 : f32 to vector<16x256xf32>
      %c0_10 = arith.constant 0 : index
      %c0_11 = arith.constant 0 : index
      %13 = vector.load %arg6[%c0_10, %c0_11] : memref<16x256xf32, #tpu.memory_space<vmem>>, vector<16x256xf32>
      tpu.vector_store %arg6[%c0_10, %c0_11], %12 {strides = array<i32>} : memref<16x256xf32, #tpu.memory_space<vmem>>, vector<16x256xf32>,
    } else {
    }
    %c0 = arith.constant 0 : index
    %c0_1 = arith.constant 0 : index
    %3 = vector.load %arg6[%c0, %c0_1] : memref<16x256xf32, #tpu.memory_space<vmem>>, vector<16x256xf32>
    %c0_2 = arith.constant 0 : index
    %c0_3 = arith.constant 0 : index
    %4 = vector.load %arg3[%c0_2, %c0_3] : memref<16x384xbf16, #tpu.memory_space<vmem>>, vector<16x384xbf16>
    %c0_4 = arith.constant 0 : index
    %c0_5 = arith.constant 0 : index
    %5 = vector.load %arg4[%c0_4, %c0_5] : memref<384x256xbf16, #tpu.memory_space<vmem>>, vector<384x256xbf16>
    %cst = arith.constant dense<0.000000e+00> : vector<16x256xf32>
    %6 = tpu.matmul %4, %5, %cst {dimension_numbers = #tpu.dot_dimension_numbers<[1], [0], [0], [1], [0, 0, 1, 1], [], []>} : vector<16x384xbf16>, vector<384x256xbf16>, vector<16x256xf32> -> vector<16x256xf32>
    %7 = arith.addf %3, %6 : vector<16x256xf32>
    %c0_6 = arith.constant 0 : index
    %c0_7 = arith.constant 0 : index
    %8 = vector.load %arg6[%c0_6, %c0_7] : memref<16x256xf32, #tpu.memory_space<vmem>>, vector<16x256xf32>
    tpu.vector_store %arg6[%c0_6, %c0_7], %7 {strides = array<i32>} : memref<16x256xf32, #tpu.memory_space<vmem>>, vector<16x256xf32>,
    %c17_i32 = arith.constant 17 : i32
    %9 = arith.cmpi eq, %arg2, %c17_i32 : i32
    %10 = arith.extui %9 : i1 to i32
    %c0_i32_8 = arith.constant 0 : i32
    %11 = arith.cmpi ne, %10, %c0_i32_8 : i32
    scf.if %11 {
      %c0_9 = arith.constant 0 : index
      %c0_10 = arith.constant 0 : index
      %12 = vector.load %arg6[%c0_9, %c0_10] : memref<16x256xf32, #tpu.memory_space<vmem>>, vector<16x256xf32>
      %13 = arith.truncf %12 : vector<16x256xf32> to vector<16x256xbf16>
      %c0_11 = arith.constant 0 : index
      %c0_12 = arith.constant 0 : index
      %14 = vector.load %arg5[%c0_11, %c0_12] : memref<16x256xbf16, #tpu.memory_space<vmem>>, vector<16x256xbf16>
      tpu.vector_store %arg5[%c0_11, %c0_12], %13 {strides = array<i32>} : memref<16x256xbf16, #tpu.memory_space<vmem>>, vector<16x256xbf16>,
    } else {
    }
    return
  }
  func.func @transform_0(%arg0: i32, %arg1: i32, %arg2: i32) -> (i32, i32) {
    %c0_i32 = arith.constant 0 : i32
    return %arg0, %arg2 : i32, i32
  }
  func.func @transform_1(%arg0: i32, %arg1: i32, %arg2: i32) -> (i32, i32) {
    %c0_i32 = arith.constant 0 : i32
    return %arg2, %arg1 : i32, i32
  }
  func.func @transform_2(%arg0: i32, %arg1: i32, %arg2: i32) -> (i32, i32) {
    %c0_i32 = arith.constant 0 : i32
    return %arg0, %arg1 : i32, i32
  }
}

module attributes {stable_mosaic.version = 11 : i64} {
  func.func @kernel(%arg0: i32, %arg1: i32, %arg2: memref<1x16x512xbf16, #tpu.memory_space<vmem>>, %arg3: memref<1x1x512xf32, #tpu.memory_space<vmem>>, %arg4: memref<1x1x512xf32, #tpu.memory_space<vmem>>, %arg5: memref<1x16x512xbf16, #tpu.memory_space<vmem>>) attributes {dimension_semantics = [#tpu.dimension_semantics<parallel>, #tpu.dimension_semantics<parallel>], iteration_bounds = array<i64: 2, 1>, scalar_prefetch = 0 : i64, scratch_operands = 0 : i64, tpu.core_type = #tpu.core_type<tc>, window_params = [{transform_indices = @transform_0, window_bounds = array<i64: 1, 16, 512>}, {pipeline_mode = #tpu.pipeline_mode<synchronous>, transform_indices = @transform_1, window_bounds = array<i64: 1, 1, 512>}, {pipeline_mode = #tpu.pipeline_mode<synchronous>, transform_indices = @transform_2, window_bounds = array<i64: 1, 1, 512>}, {transform_indices = @transform_3, window_bounds = array<i64: 1, 16, 512>}]} {
    %c0 = arith.constant 0 : index
    %c0_0 = arith.constant 0 : index
    %c0_1 = arith.constant 0 : index
    %0 = vector.load %arg2[%c0, %c0_0, %c0_1] : memref<1x16x512xbf16, #tpu.memory_space<vmem>>, vector<1x16x512xbf16>
    %c0_2 = arith.constant 0 : index
    %c0_3 = arith.constant 0 : index
    %c0_4 = arith.constant 0 : index
    %1 = vector.load %arg3[%c0_2, %c0_3, %c0_4] : memref<1x1x512xf32, #tpu.memory_space<vmem>>, vector<1x1x512xf32>
    %c0_5 = arith.constant 0 : index
    %c0_6 = arith.constant 0 : index
    %c0_7 = arith.constant 0 : index
    %2 = vector.load %arg4[%c0_5, %c0_6, %c0_7] : memref<1x1x512xf32, #tpu.memory_space<vmem>>, vector<1x1x512xf32>
    %3 = arith.extf %0 : vector<1x16x512xbf16> to vector<1x16x512xf32>
    %4 = vector.broadcast %1 : vector<1x1x512xf32> to vector<1x16x512xf32>
    %5 = arith.subf %3, %4 : vector<1x16x512xf32>
    %cst = arith.constant 9.99999974E-6 : f32
    %6 = vector.broadcast %cst : f32 to vector<1x1x512xf32>
    %7 = arith.addf %2, %6 : vector<1x1x512xf32>
    %8 = math.rsqrt %7 : vector<1x1x512xf32>
    %9 = vector.broadcast %8 : vector<1x1x512xf32> to vector<1x16x512xf32>
    %10 = arith.mulf %5, %9 : vector<1x16x512xf32>
    %cst_8 = arith.constant 0.000000e+00 : f32
    %11 = vector.broadcast %cst_8 : f32 to vector<1x16x512xf32>
    %12 = arith.maximumf %10, %11 : vector<1x16x512xf32>
    %13 = arith.truncf %12 : vector<1x16x512xf32> to vector<1x16x512xbf16>
    %c0_9 = arith.constant 0 : index
    %c0_10 = arith.constant 0 : index
    %c0_11 = arith.constant 0 : index
    %14 = vector.load %arg5[%c0_9, %c0_10, %c0_11] : memref<1x16x512xbf16, #tpu.memory_space<vmem>>, vector<1x16x512xbf16>
    tpu.vector_store %arg5[%c0_9, %c0_10, %c0_11], %13 {strides = array<i32>} : memref<1x16x512xbf16, #tpu.memory_space<vmem>>, vector<1x16x512xbf16>,
    return
  }
  func.func @transform_0(%arg0: i32, %arg1: i32) -> (i32, i32, i32) {
    %c0_i32 = arith.constant 0 : i32
    %c0_i32_0 = arith.constant 0 : i32
    return %arg0, %arg1, %c0_i32 : i32, i32, i32
  }
  func.func @transform_1(%arg0: i32, %arg1: i32) -> (i32, i32, i32) {
    %c0_i32 = arith.constant 0 : i32
    %c0_i32_0 = arith.constant 0 : i32
    %c0_i32_1 = arith.constant 0 : i32
    %c0_i32_2 = arith.constant 0 : i32
    return %c0_i32, %c0_i32_0, %c0_i32_1 : i32, i32, i32
  }
  func.func @transform_2(%arg0: i32, %arg1: i32) -> (i32, i32, i32) {
    %c0_i32 = arith.constant 0 : i32
    %c0_i32_0 = arith.constant 0 : i32
    %c0_i32_1 = arith.constant 0 : i32
    %c0_i32_2 = arith.constant 0 : i32
    return %c0_i32, %c0_i32_0, %c0_i32_1 : i32, i32, i32
  }
  func.func @transform_3(%arg0: i32, %arg1: i32) -> (i32, i32, i32) {
    %c0_i32 = arith.constant 0 : i32
    %c0_i32_0 = arith.constant 0 : i32
    return %arg0, %arg1, %c0_i32 : i32, i32, i32
  }
}

module attributes {stable_mosaic.version = 11 : i64} {
  func.func @_matmul_kernel(%arg0: i32, %arg1: i32, %arg2: i32, %arg3: memref<16x512xbf16, #tpu.memory_space<vmem>>, %arg4: memref<512x256xbf16, #tpu.memory_space<vmem>>, %arg5: memref<16x256xbf16, #tpu.memory_space<vmem>>, %arg6: memref<16x256xf32, #tpu.memory_space<vmem>>) attributes {dimension_semantics = [#tpu.dimension_semantics<parallel>, #tpu.dimension_semantics<parallel>, #tpu.dimension_semantics<arbitrary>], iteration_bounds = array<i64: 1, 2, 27>, scalar_prefetch = 0 : i64, scratch_operands = 1 : i64, tpu.core_type = #tpu.core_type<tc>, window_params = [{transform_indices = @transform_0, window_bounds = array<i64: 16, 512>}, {transform_indices = @transform_1, window_bounds = array<i64: 512, 256>}, {transform_indices = @transform_2, window_bounds = array<i64: 16, 256>}]} {
    %c0_i32 = arith.constant 0 : i32
    %0 = arith.cmpi eq, %arg2, %c0_i32 : i32
    %1 = arith.extui %0 : i1 to i32
    %c0_i32_0 = arith.constant 0 : i32
    %2 = arith.cmpi ne, %1, %c0_i32_0 : i32
    scf.if %2 {
      %cst_9 = arith.constant 0.000000e+00 : f32
      %12 = vector.broadcast %cst_9 : f32 to vector<16x256xf32>
      %c0_10 = arith.constant 0 : index
      %c0_11 = arith.constant 0 : index
      %13 = vector.load %arg6[%c0_10, %c0_11] : memref<16x256xf32, #tpu.memory_space<vmem>>, vector<16x256xf32>
      tpu.vector_store %arg6[%c0_10, %c0_11], %12 {strides = array<i32>} : memref<16x256xf32, #tpu.memory_space<vmem>>, vector<16x256xf32>,
    } else {
    }
    %c0 = arith.constant 0 : index
    %c0_1 = arith.constant 0 : index
    %3 = vector.load %arg6[%c0, %c0_1] : memref<16x256xf32, #tpu.memory_space<vmem>>, vector<16x256xf32>
    %c0_2 = arith.constant 0 : index
    %c0_3 = arith.constant 0 : index
    %4 = vector.load %arg3[%c0_2, %c0_3] : memref<16x512xbf16, #tpu.memory_space<vmem>>, vector<16x512xbf16>
    %c0_4 = arith.constant 0 : index
    %c0_5 = arith.constant 0 : index
    %5 = vector.load %arg4[%c0_4, %c0_5] : memref<512x256xbf16, #tpu.memory_space<vmem>>, vector<512x256xbf16>
    %cst = arith.constant dense<0.000000e+00> : vector<16x256xf32>
    %6 = tpu.matmul %4, %5, %cst {dimension_numbers = #tpu.dot_dimension_numbers<[1], [0], [0], [1], [0, 0, 1, 1], [], []>} : vector<16x512xbf16>, vector<512x256xbf16>, vector<16x256xf32> -> vector<16x256xf32>
    %7 = arith.addf %3, %6 : vector<16x256xf32>
    %c0_6 = arith.constant 0 : index
    %c0_7 = arith.constant 0 : index
    %8 = vector.load %arg6[%c0_6, %c0_7] : memref<16x256xf32, #tpu.memory_space<vmem>>, vector<16x256xf32>
    tpu.vector_store %arg6[%c0_6, %c0_7], %7 {strides = array<i32>} : memref<16x256xf32, #tpu.memory_space<vmem>>, vector<16x256xf32>,
    %c26_i32 = arith.constant 26 : i32
    %9 = arith.cmpi eq, %arg2, %c26_i32 : i32
    %10 = arith.extui %9 : i1 to i32
    %c0_i32_8 = arith.constant 0 : i32
    %11 = arith.cmpi ne, %10, %c0_i32_8 : i32
    scf.if %11 {
      %c0_9 = arith.constant 0 : index
      %c0_10 = arith.constant 0 : index
      %12 = vector.load %arg6[%c0_9, %c0_10] : memref<16x256xf32, #tpu.memory_space<vmem>>, vector<16x256xf32>
      %13 = arith.truncf %12 : vector<16x256xf32> to vector<16x256xbf16>
      %c0_11 = arith.constant 0 : index
      %c0_12 = arith.constant 0 : index
      %14 = vector.load %arg5[%c0_11, %c0_12] : memref<16x256xbf16, #tpu.memory_space<vmem>>, vector<16x256xbf16>
      tpu.vector_store %arg5[%c0_11, %c0_12], %13 {strides = array<i32>} : memref<16x256xbf16, #tpu.memory_space<vmem>>, vector<16x256xbf16>,
    } else {
    }
    return
  }
  func.func @transform_0(%arg0: i32, %arg1: i32, %arg2: i32) -> (i32, i32) {
    %c0_i32 = arith.constant 0 : i32
    return %arg0, %arg2 : i32, i32
  }
  func.func @transform_1(%arg0: i32, %arg1: i32, %arg2: i32) -> (i32, i32) {
    %c0_i32 = arith.constant 0 : i32
    return %arg2, %arg1 : i32, i32
  }
  func.func @transform_2(%arg0: i32, %arg1: i32, %arg2: i32) -> (i32, i32) {
    %c0_i32 = arith.constant 0 : i32
    return %arg0, %arg1 : i32, i32
  }
}

module attributes {stable_mosaic.version = 11 : i64} {
  func.func @kernel(%arg0: i32, %arg1: i32, %arg2: memref<1x16x512xbf16, #tpu.memory_space<vmem>>, %arg3: memref<1x1x512xf32, #tpu.memory_space<vmem>>, %arg4: memref<1x1x512xf32, #tpu.memory_space<vmem>>, %arg5: memref<1x16x512xbf16, #tpu.memory_space<vmem>>, %arg6: memref<1x16x512xbf16, #tpu.memory_space<vmem>>) attributes {dimension_semantics = [#tpu.dimension_semantics<parallel>, #tpu.dimension_semantics<parallel>], iteration_bounds = array<i64: 2, 1>, scalar_prefetch = 0 : i64, scratch_operands = 0 : i64, tpu.core_type = #tpu.core_type<tc>, window_params = [{transform_indices = @transform_0, window_bounds = array<i64: 1, 16, 512>}, {pipeline_mode = #tpu.pipeline_mode<synchronous>, transform_indices = @transform_1, window_bounds = array<i64: 1, 1, 512>}, {pipeline_mode = #tpu.pipeline_mode<synchronous>, transform_indices = @transform_2, window_bounds = array<i64: 1, 1, 512>}, {transform_indices = @transform_3, window_bounds = array<i64: 1, 16, 512>}, {transform_indices = @transform_4, window_bounds = array<i64: 1, 16, 512>}]} {
    %c0 = arith.constant 0 : index
    %c0_0 = arith.constant 0 : index
    %c0_1 = arith.constant 0 : index
    %0 = vector.load %arg2[%c0, %c0_0, %c0_1] : memref<1x16x512xbf16, #tpu.memory_space<vmem>>, vector<1x16x512xbf16>
    %c0_2 = arith.constant 0 : index
    %c0_3 = arith.constant 0 : index
    %c0_4 = arith.constant 0 : index
    %1 = vector.load %arg3[%c0_2, %c0_3, %c0_4] : memref<1x1x512xf32, #tpu.memory_space<vmem>>, vector<1x1x512xf32>
    %c0_5 = arith.constant 0 : index
    %c0_6 = arith.constant 0 : index
    %c0_7 = arith.constant 0 : index
    %2 = vector.load %arg4[%c0_5, %c0_6, %c0_7] : memref<1x1x512xf32, #tpu.memory_space<vmem>>, vector<1x1x512xf32>
    %c0_8 = arith.constant 0 : index
    %c0_9 = arith.constant 0 : index
    %c0_10 = arith.constant 0 : index
    %3 = vector.load %arg5[%c0_8, %c0_9, %c0_10] : memref<1x16x512xbf16, #tpu.memory_space<vmem>>, vector<1x16x512xbf16>
    %4 = arith.extf %0 : vector<1x16x512xbf16> to vector<1x16x512xf32>
    %5 = vector.broadcast %1 : vector<1x1x512xf32> to vector<1x16x512xf32>
    %6 = arith.subf %4, %5 : vector<1x16x512xf32>
    %cst = arith.constant 9.99999974E-6 : f32
    %7 = vector.broadcast %cst : f32 to vector<1x1x512xf32>
    %8 = arith.addf %2, %7 : vector<1x1x512xf32>
    %9 = math.rsqrt %8 : vector<1x1x512xf32>
    %10 = vector.broadcast %9 : vector<1x1x512xf32> to vector<1x16x512xf32>
    %11 = arith.mulf %6, %10 : vector<1x16x512xf32>
    %12 = arith.extf %3 : vector<1x16x512xbf16> to vector<1x16x512xf32>
    %13 = arith.addf %11, %12 : vector<1x16x512xf32>
    %cst_11 = arith.constant 0.000000e+00 : f32
    %14 = vector.broadcast %cst_11 : f32 to vector<1x16x512xf32>
    %15 = arith.maximumf %13, %14 : vector<1x16x512xf32>
    %16 = arith.truncf %15 : vector<1x16x512xf32> to vector<1x16x512xbf16>
    %c0_12 = arith.constant 0 : index
    %c0_13 = arith.constant 0 : index
    %c0_14 = arith.constant 0 : index
    %17 = vector.load %arg6[%c0_12, %c0_13, %c0_14] : memref<1x16x512xbf16, #tpu.memory_space<vmem>>, vector<1x16x512xbf16>
    tpu.vector_store %arg6[%c0_12, %c0_13, %c0_14], %16 {strides = array<i32>} : memref<1x16x512xbf16, #tpu.memory_space<vmem>>, vector<1x16x512xbf16>,
    return
  }
  func.func @transform_0(%arg0: i32, %arg1: i32) -> (i32, i32, i32) {
    %c0_i32 = arith.constant 0 : i32
    %c0_i32_0 = arith.constant 0 : i32
    return %arg0, %arg1, %c0_i32 : i32, i32, i32
  }
  func.func @transform_1(%arg0: i32, %arg1: i32) -> (i32, i32, i32) {
    %c0_i32 = arith.constant 0 : i32
    %c0_i32_0 = arith.constant 0 : i32
    %c0_i32_1 = arith.constant 0 : i32
    %c0_i32_2 = arith.constant 0 : i32
    return %c0_i32, %c0_i32_0, %c0_i32_1 : i32, i32, i32
  }
  func.func @transform_2(%arg0: i32, %arg1: i32) -> (i32, i32, i32) {
    %c0_i32 = arith.constant 0 : i32
    %c0_i32_0 = arith.constant 0 : i32
    %c0_i32_1 = arith.constant 0 : i32
    %c0_i32_2 = arith.constant 0 : i32
    return %c0_i32, %c0_i32_0, %c0_i32_1 : i32, i32, i32
  }
  func.func @transform_3(%arg0: i32, %arg1: i32) -> (i32, i32, i32) {
    %c0_i32 = arith.constant 0 : i32
    %c0_i32_0 = arith.constant 0 : i32
    return %arg0, %arg1, %c0_i32 : i32, i32, i32
  }
  func.func @transform_4(%arg0: i32, %arg1: i32) -> (i32, i32, i32) {
    %c0_i32 = arith.constant 0 : i32
    %c0_i32_0 = arith.constant 0 : i32
    return %arg0, %arg1, %c0_i32 : i32, i32, i32
  }
}

module attributes {stable_mosaic.version = 11 : i64} {
  func.func @kernel(%arg0: i32, %arg1: i32, %arg2: memref<1x16x512xbf16, #tpu.memory_space<vmem>>, %arg3: memref<1x1x512xf32, #tpu.memory_space<vmem>>, %arg4: memref<1x1x512xf32, #tpu.memory_space<vmem>>, %arg5: memref<1x16x512xbf16, #tpu.memory_space<vmem>>) attributes {dimension_semantics = [#tpu.dimension_semantics<parallel>, #tpu.dimension_semantics<parallel>], iteration_bounds = array<i64: 2, 1>, scalar_prefetch = 0 : i64, scratch_operands = 0 : i64, tpu.core_type = #tpu.core_type<tc>, window_params = [{transform_indices = @transform_0, window_bounds = array<i64: 1, 16, 512>}, {transform_indices = @transform_1, window_bounds = array<i64: 1, 1, 512>}, {transform_indices = @transform_2, window_bounds = array<i64: 1, 1, 512>}, {transform_indices = @transform_3, window_bounds = array<i64: 1, 16, 512>}]} {
    %c0 = arith.constant 0 : index
    %c0_0 = arith.constant 0 : index
    %c0_1 = arith.constant 0 : index
    %0 = vector.load %arg2[%c0, %c0_0, %c0_1] : memref<1x16x512xbf16, #tpu.memory_space<vmem>>, vector<1x16x512xbf16>
    %c0_2 = arith.constant 0 : index
    %c0_3 = arith.constant 0 : index
    %c0_4 = arith.constant 0 : index
    %1 = vector.load %arg3[%c0_2, %c0_3, %c0_4] : memref<1x1x512xf32, #tpu.memory_space<vmem>>, vector<1x1x512xf32>
    %c0_5 = arith.constant 0 : index
    %c0_6 = arith.constant 0 : index
    %c0_7 = arith.constant 0 : index
    %2 = vector.load %arg4[%c0_5, %c0_6, %c0_7] : memref<1x1x512xf32, #tpu.memory_space<vmem>>, vector<1x1x512xf32>
    %3 = arith.extf %0 : vector<1x16x512xbf16> to vector<1x16x512xf32>
    %4 = vector.broadcast %1 : vector<1x1x512xf32> to vector<1x16x512xf32>
    %5 = arith.subf %3, %4 : vector<1x16x512xf32>
    %cst = arith.constant 9.99999974E-6 : f32
    %6 = vector.broadcast %cst : f32 to vector<1x1x512xf32>
    %7 = arith.addf %2, %6 : vector<1x1x512xf32>
    %8 = math.rsqrt %7 : vector<1x1x512xf32>
    %9 = vector.broadcast %8 : vector<1x1x512xf32> to vector<1x16x512xf32>
    %10 = arith.mulf %5, %9 : vector<1x16x512xf32>
    %cst_8 = arith.constant 5.000000e-01 : f32
    %11 = vector.broadcast %cst_8 : f32 to vector<1x16x512xf32>
    %12 = arith.mulf %11, %10 : vector<1x16x512xf32>
    %cst_9 = arith.constant 0.707106769 : f32
    %13 = vector.broadcast %cst_9 : f32 to vector<1x16x512xf32>
    %14 = arith.mulf %10, %13 : vector<1x16x512xf32>
    %15 = math.erf %14 : vector<1x16x512xf32>
    %cst_10 = arith.constant 1.000000e+00 : f32
    %16 = vector.broadcast %cst_10 : f32 to vector<1x16x512xf32>
    %17 = arith.addf %16, %15 : vector<1x16x512xf32>
    %18 = arith.mulf %12, %17 : vector<1x16x512xf32>
    %19 = arith.truncf %18 : vector<1x16x512xf32> to vector<1x16x512xbf16>
    %c0_11 = arith.constant 0 : index
    %c0_12 = arith.constant 0 : index
    %c0_13 = arith.constant 0 : index
    %20 = vector.load %arg5[%c0_11, %c0_12, %c0_13] : memref<1x16x512xbf16, #tpu.memory_space<vmem>>, vector<1x16x512xbf16>
    tpu.vector_store %arg5[%c0_11, %c0_12, %c0_13], %19 {strides = array<i32>} : memref<1x16x512xbf16, #tpu.memory_space<vmem>>, vector<1x16x512xbf16>,
    return
  }
  func.func @transform_0(%arg0: i32, %arg1: i32) -> (i32, i32, i32) {
    %c0_i32 = arith.constant 0 : i32
    %c0_i32_0 = arith.constant 0 : i32
    return %arg0, %arg1, %c0_i32 : i32, i32, i32
  }
  func.func @transform_1(%arg0: i32, %arg1: i32) -> (i32, i32, i32) {
    %c0_i32 = arith.constant 0 : i32
    %c0_i32_0 = arith.constant 0 : i32
    %c0_i32_1 = arith.constant 0 : i32
    return %arg0, %c0_i32, %c0_i32_0 : i32, i32, i32
  }
  func.func @transform_2(%arg0: i32, %arg1: i32) -> (i32, i32, i32) {
    %c0_i32 = arith.constant 0 : i32
    %c0_i32_0 = arith.constant 0 : i32
    %c0_i32_1 = arith.constant 0 : i32
    return %arg0, %c0_i32, %c0_i32_0 : i32, i32, i32
  }
  func.func @transform_3(%arg0: i32, %arg1: i32) -> (i32, i32, i32) {
    %c0_i32 = arith.constant 0 : i32
    %c0_i32_0 = arith.constant 0 : i32
    return %arg0, %arg1, %c0_i32 : i32, i32, i32
  }
}

module attributes {stable_mosaic.version = 11 : i64} {
  func.func @_globalmax_kernel(%arg0: i32, %arg1: i32, %arg2: memref<1x16x512xbf16, #tpu.memory_space<vmem>>, %arg3: memref<1x1x512xf32, #tpu.memory_space<vmem>>) attributes {dimension_semantics = [#tpu.dimension_semantics<parallel>, #tpu.dimension_semantics<arbitrary>], iteration_bounds = array<i64: 2, 1>, scalar_prefetch = 0 : i64, scratch_operands = 0 : i64, tpu.core_type = #tpu.core_type<tc>, window_params = [{transform_indices = @transform_0, window_bounds = array<i64: 1, 16, 512>}, {transform_indices = @transform_1, window_bounds = array<i64: 1, 1, 512>}]} {
    %c0_i32 = arith.constant 0 : i32
    %0 = arith.cmpi eq, %arg1, %c0_i32 : i32
    %1 = arith.extui %0 : i1 to i32
    %c0_i32_0 = arith.constant 0 : i32
    %2 = arith.cmpi ne, %1, %c0_i32_0 : i32
    scf.if %2 {
      %cst_9 = arith.constant 0xFF800000 : f32
      %10 = vector.broadcast %cst_9 : f32 to vector<1x1x512xf32>
      %c0_10 = arith.constant 0 : index
      %c0_11 = arith.constant 0 : index
      %c0_12 = arith.constant 0 : index
      %11 = vector.load %arg3[%c0_10, %c0_11, %c0_12] : memref<1x1x512xf32, #tpu.memory_space<vmem>>, vector<1x1x512xf32>
      tpu.vector_store %arg3[%c0_10, %c0_11, %c0_12], %10 {strides = array<i32>} : memref<1x1x512xf32, #tpu.memory_space<vmem>>, vector<1x1x512xf32>,
    } else {
    }
    %c0 = arith.constant 0 : index
    %c0_1 = arith.constant 0 : index
    %c0_2 = arith.constant 0 : index
    %3 = vector.load %arg3[%c0, %c0_1, %c0_2] : memref<1x1x512xf32, #tpu.memory_space<vmem>>, vector<1x1x512xf32>
    %c0_3 = arith.constant 0 : index
    %c0_4 = arith.constant 0 : index
    %c0_5 = arith.constant 0 : index
    %4 = vector.load %arg2[%c0_3, %c0_4, %c0_5] : memref<1x16x512xbf16, #tpu.memory_space<vmem>>, vector<1x16x512xbf16>
    %5 = arith.extf %4 : vector<1x16x512xbf16> to vector<1x16x512xf32>
    %cst = arith.constant dense<0xFF800000> : vector<1x512xf32>
    %6 = vector.multi_reduction <maximumf>, %5, %cst [1] : vector<1x16x512xf32> to vector<1x512xf32>
    %7 = vector.shape_cast %6 : vector<1x512xf32> to vector<1x1x512xf32>
    %8 = arith.maximumf %3, %7 : vector<1x1x512xf32>
    %c0_6 = arith.constant 0 : index
    %c0_7 = arith.constant 0 : index
    %c0_8 = arith.constant 0 : index
    %9 = vector.load %arg3[%c0_6, %c0_7, %c0_8] : memref<1x1x512xf32, #tpu.memory_space<vmem>>, vector<1x1x512xf32>
    tpu.vector_store %arg3[%c0_6, %c0_7, %c0_8], %8 {strides = array<i32>} : memref<1x1x512xf32, #tpu.memory_space<vmem>>, vector<1x1x512xf32>,
    return
  }
  func.func @transform_0(%arg0: i32, %arg1: i32) -> (i32, i32, i32) {
    %c0_i32 = arith.constant 0 : i32
    %c0_i32_0 = arith.constant 0 : i32
    return %arg0, %arg1, %c0_i32 : i32, i32, i32
  }
  func.func @transform_1(%arg0: i32, %arg1: i32) -> (i32, i32, i32) {
    %c0_i32 = arith.constant 0 : i32
    %c0_i32_0 = arith.constant 0 : i32
    %c0_i32_1 = arith.constant 0 : i32
    return %arg0, %c0_i32, %c0_i32_0 : i32, i32, i32
  }
}

module attributes {stable_mosaic.version = 11 : i64} {
  func.func @_matmul_bias_kernel(%arg0: i32, %arg1: i32, %arg2: i32, %arg3: memref<16x512xbf16, #tpu.memory_space<vmem>>, %arg4: memref<512x128xbf16, #tpu.memory_space<vmem>>, %arg5: memref<1x128xf32, #tpu.memory_space<vmem>>, %arg6: memref<16x128xf32, #tpu.memory_space<vmem>>, %arg7: memref<16x128xf32, #tpu.memory_space<vmem>>) attributes {dimension_semantics = [#tpu.dimension_semantics<parallel>, #tpu.dimension_semantics<parallel>, #tpu.dimension_semantics<arbitrary>], iteration_bounds = array<i64: 1, 1, 1>, scalar_prefetch = 0 : i64, scratch_operands = 1 : i64, tpu.core_type = #tpu.core_type<tc>, window_params = [{transform_indices = @transform_0, window_bounds = array<i64: 16, 512>}, {transform_indices = @transform_1, window_bounds = array<i64: 512, 128>}, {transform_indices = @transform_2, window_bounds = array<i64: 1, 128>}, {transform_indices = @transform_3, window_bounds = array<i64: 16, 128>}]} {
    %c0_i32 = arith.constant 0 : i32
    %0 = arith.cmpi eq, %arg2, %c0_i32 : i32
    %1 = arith.extui %0 : i1 to i32
    %c0_i32_0 = arith.constant 0 : i32
    %2 = arith.cmpi ne, %1, %c0_i32_0 : i32
    scf.if %2 {
      %cst_10 = arith.constant 0.000000e+00 : f32
      %12 = vector.broadcast %cst_10 : f32 to vector<16x128xf32>
      %c0_11 = arith.constant 0 : index
      %c0_12 = arith.constant 0 : index
      %13 = vector.load %arg7[%c0_11, %c0_12] : memref<16x128xf32, #tpu.memory_space<vmem>>, vector<16x128xf32>
      tpu.vector_store %arg7[%c0_11, %c0_12], %12 {strides = array<i32>} : memref<16x128xf32, #tpu.memory_space<vmem>>, vector<16x128xf32>,
    } else {
    }
    %c0 = arith.constant 0 : index
    %c0_1 = arith.constant 0 : index
    %3 = vector.load %arg7[%c0, %c0_1] : memref<16x128xf32, #tpu.memory_space<vmem>>, vector<16x128xf32>
    %c0_2 = arith.constant 0 : index
    %c0_3 = arith.constant 0 : index
    %4 = vector.load %arg3[%c0_2, %c0_3] : memref<16x512xbf16, #tpu.memory_space<vmem>>, vector<16x512xbf16>
    %c0_4 = arith.constant 0 : index
    %c0_5 = arith.constant 0 : index
    %5 = vector.load %arg4[%c0_4, %c0_5] : memref<512x128xbf16, #tpu.memory_space<vmem>>, vector<512x128xbf16>
    %cst = arith.constant dense<0.000000e+00> : vector<16x128xf32>
    %6 = tpu.matmul %4, %5, %cst {dimension_numbers = #tpu.dot_dimension_numbers<[1], [0], [0], [1], [0, 0, 1, 1], [], []>} : vector<16x512xbf16>, vector<512x128xbf16>, vector<16x128xf32> -> vector<16x128xf32>
    %7 = arith.addf %3, %6 : vector<16x128xf32>
    %c0_6 = arith.constant 0 : index
    %c0_7 = arith.constant 0 : index
    %8 = vector.load %arg7[%c0_6, %c0_7] : memref<16x128xf32, #tpu.memory_space<vmem>>, vector<16x128xf32>
    tpu.vector_store %arg7[%c0_6, %c0_7], %7 {strides = array<i32>} : memref<16x128xf32, #tpu.memory_space<vmem>>, vector<16x128xf32>,
    %c0_i32_8 = arith.constant 0 : i32
    %9 = arith.cmpi eq, %arg2, %c0_i32_8 : i32
    %10 = arith.extui %9 : i1 to i32
    %c0_i32_9 = arith.constant 0 : i32
    %11 = arith.cmpi ne, %10, %c0_i32_9 : i32
    scf.if %11 {
      %c0_10 = arith.constant 0 : index
      %c0_11 = arith.constant 0 : index
      %12 = vector.load %arg7[%c0_10, %c0_11] : memref<16x128xf32, #tpu.memory_space<vmem>>, vector<16x128xf32>
      %c0_12 = arith.constant 0 : index
      %c0_13 = arith.constant 0 : index
      %13 = vector.load %arg5[%c0_12, %c0_13] : memref<1x128xf32, #tpu.memory_space<vmem>>, vector<1x128xf32>
      %14 = vector.broadcast %13 : vector<1x128xf32> to vector<16x128xf32>
      %15 = arith.addf %12, %14 : vector<16x128xf32>
      %c0_14 = arith.constant 0 : index
      %c0_15 = arith.constant 0 : index
      %16 = vector.load %arg6[%c0_14, %c0_15] : memref<16x128xf32, #tpu.memory_space<vmem>>, vector<16x128xf32>
      tpu.vector_store %arg6[%c0_14, %c0_15], %15 {strides = array<i32>} : memref<16x128xf32, #tpu.memory_space<vmem>>, vector<16x128xf32>,
    } else {
    }
    return
  }
  func.func @transform_0(%arg0: i32, %arg1: i32, %arg2: i32) -> (i32, i32) {
    %c0_i32 = arith.constant 0 : i32
    return %arg0, %arg2 : i32, i32
  }
  func.func @transform_1(%arg0: i32, %arg1: i32, %arg2: i32) -> (i32, i32) {
    %c0_i32 = arith.constant 0 : i32
    return %arg2, %arg1 : i32, i32
  }
  func.func @transform_2(%arg0: i32, %arg1: i32, %arg2: i32) -> (i32, i32) {
    %c0_i32 = arith.constant 0 : i32
    %c0_i32_0 = arith.constant 0 : i32
    return %c0_i32, %arg1 : i32, i32
  }
  func.func @transform_3(%arg0: i32, %arg1: i32, %arg2: i32) -> (i32, i32) {
    %c0_i32 = arith.constant 0 : i32
    return %arg0, %arg1 : i32, i32
  }
}

</mosaic_0001>

<bundles_post_ra>
// kernel: forward.45
= control target key start
LH: loop header
LB: loop body
LE: loop exit
PB: predicated region body
PF: predicated region fallthrough
CT: control target
= control target key end

     0   :  { %s839_s9 = smov 0   ;;  %s841_s10 = smov 0   ;;  %s919_s0 = inlined_call_operand.vmem [shape: bf16[2,512,128], index: 0, kind: input, shape index: {}]   ;;  %s920_s1 = inlined_call_operand.vmem [shape: f32[2,1,128], index: 1, kind: output, shape index: {0}]   ;;  %s921_s2 = inlined_call_operand.vmem [shape: f32[2,1,128], index: 2, kind: output, shape index: {1}]  }
   0x1   :  { %s843_s11 = smov 0  }
   0x2 LB: > { %s25_s12 = sadd.s32 1, %s817_s10  ;;  %p609_p0 = scmp.ge.s32.totalorder %s821_s11, 1  ;;  %s821_s11 = sphi %s843_s11, %s13_s11   ;;  %s817_s10 = sphi %s841_s10, %s923_s10   ;;  %s813_s9 = sphi %s839_s9, %s922_s9  }
   0x3   : > { %p27_p1 = scmp.ge.s32.totalorder %s25_s12, 2  ;;  %p134_p2 = scmp.lt.s32.totalorder %s821_s11, 3 }
   0x5   : > { %s925_s12 = smov (%p27_p1, %s25_s12), 0  ;;  %p135_p3 = pnand %p609_p0, %p134_p2 }
   0x6   : > { %p162_p4 = scmp.lt.s32.totalorder (!%p135_p3), %s813_s9, 1  ;;  %v823_v0 = vmov (!%p135_p3), 0.0  }
   0x7   : > { %138 = sbr.rel (%p135_p3) target bundleno = 165 (0xa5), region = 24 }
   0xe   : > { %s927_s9 = smov (!%p162_p4, %s813_s9), 1 }
   0xf   : > { %s860_s15 = scalar_lea.vmem %s920_s1, %s927_s9  ;;  %s865_s18 = scalar_lea.vmem %s921_s2, %s927_s9 }
  0x10   : > { %181 = vst [vmem:[%s860_s15] sm:$0x1] %v823_v0  ;;  %182 = vst [vmem:[%s865_s18] sm:$0x1] %v823_v0  ;;  %s614_s19 = sshll.u32 %s927_s9, 8 }
  0x11   : > { %s872_s22 = scalar_lea.vmem %s919_s0, %s614_s19 }
  0x12   : > { %v616_v1 = vld [vmem:[%s872_s22] sm:$0xff]   ;;  %v743_v2 = vld [vmem:[%s872_s22 + $0x8] sm:$0xff]   ;;  %v744_v7 = vld [vmem:[%s872_s22 + $0x10] sm:$0xff]  }
  0x13   : > { %v617_v3 = vunpack.c.l.bf16 %v616_v1  ;;  %v618_v4 = vunpack.c.h.bf16 %v616_v1  ;;  %v621_v5 = vunpack.c.l.bf16 %v743_v2  ;;  %v622_v8 = vunpack.c.h.bf16 %v743_v2  ;;  %v745_v12 = vld [vmem:[%s872_s22 + $0x18] sm:$0xff]   ;;  %v746_v17 = vld [vmem:[%s872_s22 + $0x20] sm:$0xff]   ;;  %v747_v22 = vld [vmem:[%s872_s22 + $0x28] sm:$0xff]  }
  0x14   : > { %v625_v10 = vunpack.c.l.bf16 %v744_v7  ;;  %v626_v13 = vunpack.c.h.bf16 %v744_v7  ;;  %v629_v15 = vunpack.c.l.bf16 %v745_v12  ;;  %v630_v18 = vunpack.c.h.bf16 %v745_v12  ;;  %v748_v30 = vld [vmem:[%s872_s22 + $0x30] sm:$0xff]   ;;  %v749_v39 = vld [vmem:[%s872_s22 + $0x38] sm:$0xff]   ;;  %v750_v48 = vld [vmem:[%s872_s22 + $0x40] sm:$0xff]  }
  0x15   : > { %v312_v6 = vadd.f32 %v618_v4, %v617_v3  ;;  %v633_v20 = vunpack.c.l.bf16 %v746_v17  ;;  %v634_v23 = vunpack.c.h.bf16 %v746_v17  ;;  %v384_v25 = vmul.f32 %v617_v3, %v617_v3  ;;  %v751_v57 = vld [vmem:[%s872_s22 + $0x48] sm:$0xff]   ;;  %v752_v2 = vld [vmem:[%s872_s22 + $0x50] sm:$0xff]  }
  0x16   : > { %v385_v26 = vmul.f32 %v618_v4, %v618_v4  ;;  %v637_v27 = vunpack.c.l.bf16 %v747_v22  ;;  %v386_v29 = vmul.f32 %v621_v5, %v621_v5  ;;  %v638_v31 = vunpack.c.h.bf16 %v747_v22 }
  0x17   : > { %v313_v9 = vadd.f32 %v621_v5, %v312_v6  ;;  %v387_v33 = vmul.f32 %v622_v8, %v622_v8  ;;  %v641_v35 = vunpack.c.l.bf16 %v748_v30  ;;  %v388_v37 = vmul.f32 %v625_v10, %v625_v10 }
  0x18   : > { %v448_v34 = vadd.f32 %v385_v26, %v384_v25  ;;  %v642_v40 = vunpack.c.h.bf16 %v748_v30  ;;  %v389_v42 = vmul.f32 %v626_v13, %v626_v13  ;;  %v645_v44 = vunpack.c.l.bf16 %v749_v39 }
  0x19   : > { %v314_v11 = vadd.f32 %v622_v8, %v313_v9  ;;  %v390_v46 = vmul.f32 %v629_v15, %v629_v15  ;;  %v646_v49 = vunpack.c.h.bf16 %v749_v39  ;;  %v391_v51 = vmul.f32 %v630_v18, %v630_v18 }
  0x1a   : > { %v449_v38 = vadd.f32 %v448_v34, %v386_v29  ;;  %v649_v53 = vunpack.c.l.bf16 %v750_v48  ;;  %v392_v55 = vmul.f32 %v633_v20, %v633_v20  ;;  %v650_v58 = vunpack.c.h.bf16 %v750_v48  ;;  %v755_v29 = vld [vmem:[%s872_s22 + $0x68] sm:$0xff]  }
  0x1b   : > { %v315_v14 = vadd.f32 %v625_v10, %v314_v11  ;;  %v393_v60 = vmul.f32 %v634_v23, %v634_v23  ;;  %v653_v62 = vunpack.c.l.bf16 %v751_v57  ;;  %v394_v0 = vmul.f32 %v637_v27, %v637_v27  ;;  %v753_v11 = vld [vmem:[%s872_s22 + $0x58] sm:$0xff]  }
  0x1c   : > { %v450_v43 = vadd.f32 %v449_v38, %v387_v33  ;;  %v654_v3 = vunpack.c.h.bf16 %v751_v57  ;;  %v395_v5 = vmul.f32 %v638_v31, %v638_v31  ;;  %v657_v7 = vunpack.c.l.bf16 %v752_v2  ;;  %v756_v38 = vld [vmem:[%s872_s22 + $0x70] sm:$0xff]  }
  0x1d   : > { %v316_v16 = vadd.f32 %v626_v13, %v315_v14  ;;  %v396_v9 = vmul.f32 %v641_v35, %v641_v35  ;;  %v658_v12 = vunpack.c.h.bf16 %v752_v2  ;;  %v397_v14 = vmul.f32 %v642_v40, %v642_v40 }
  0x1e   : > { %v451_v47 = vadd.f32 %v450_v43, %v388_v37  ;;  %v669_v34 = vunpack.c.l.bf16 %v755_v29  ;;  %v670_v39 = vunpack.c.h.bf16 %v755_v29  ;;  %v673_v43 = vunpack.c.l.bf16 %v756_v38 }
  0x1f   : > { %v317_v19 = vadd.f32 %v629_v15, %v316_v16  ;;  %v661_v16 = vunpack.c.l.bf16 %v753_v11  ;;  %v674_v48 = vunpack.c.h.bf16 %v756_v38 }
  0x20   : > { %v452_v52 = vadd.f32 %v451_v47, %v389_v42  ;;  %v757_v47 = vld [vmem:[%s872_s22 + $0x78] sm:$0xff]  }
  0x21   : > { %v318_v21 = vadd.f32 %v630_v18, %v317_v19  ;;  %v398_v18 = vmul.f32 %v645_v44, %v645_v44  ;;  %v678_v57 = vunpack.c.h.bf16 %v757_v47 }
  0x22   : > { %v453_v56 = vadd.f32 %v452_v52, %v390_v46  ;;  %v677_v52 = vunpack.c.l.bf16 %v757_v47 }
  0x23   : > { %v319_v24 = vadd.f32 %v633_v20, %v318_v21  ;;  %v754_v20 = vld [vmem:[%s872_s22 + $0x60] sm:$0xff]   ;;  %v662_v21 = vunpack.c.h.bf16 %v753_v11 }
  0x24   : > { %v454_v61 = vadd.f32 %v453_v56, %v391_v51  ;;  %v665_v25 = vunpack.c.l.bf16 %v754_v20  ;;  %v666_v30 = vunpack.c.h.bf16 %v754_v20  ;;  %v758_v56 = vld [vmem:[%s872_s22 + $0x80] sm:$0xff]  }
  0x25   : > { %v320_v28 = vadd.f32 %v634_v23, %v319_v24  ;;  %v399_v23 = vmul.f32 %v646_v49, %v646_v49  ;;  %v682_v2 = vunpack.c.h.bf16 %v758_v56 }
  0x26   : > { %v455_v1 = vadd.f32 %v454_v61, %v392_v55  ;;  %v681_v61 = vunpack.c.l.bf16 %v758_v56 }
  0x27   : > { %v321_v32 = vadd.f32 %v637_v27, %v320_v28  ;;  %v400_v27 = vmul.f32 %v649_v53, %v649_v53 }
  0x28   : > { %v456_v6 = vadd.f32 %v455_v1, %v393_v60  ;;  %v759_v1 = vld [vmem:[%s872_s22 + $0x88] sm:$0xff]  }
  0x29   : > { %v322_v36 = vadd.f32 %v638_v31, %v321_v32  ;;  %v401_v32 = vmul.f32 %v650_v58, %v650_v58  ;;  %v686_v11 = vunpack.c.h.bf16 %v759_v1 }
  0x2a   : > { %v457_v10 = vadd.f32 %v456_v6, %v394_v0  ;;  %v685_v6 = vunpack.c.l.bf16 %v759_v1 }
  0x2b   : > { %v323_v41 = vadd.f32 %v641_v35, %v322_v36  ;;  %v402_v36 = vmul.f32 %v653_v62, %v653_v62 }
  0x2c   : > { %v458_v15 = vadd.f32 %v457_v10, %v395_v5  ;;  %v760_v10 = vld [vmem:[%s872_s22 + $0x90] sm:$0xff]  }
  0x2d   : > { %v324_v45 = vadd.f32 %v642_v40, %v323_v41  ;;  %v403_v41 = vmul.f32 %v654_v3, %v654_v3  ;;  %v690_v20 = vunpack.c.h.bf16 %v760_v10 }
  0x2e   : > { %v459_v19 = vadd.f32 %v458_v15, %v396_v9  ;;  %v689_v15 = vunpack.c.l.bf16 %v760_v10 }
  0x2f   : > { %v325_v50 = vadd.f32 %v645_v44, %v324_v45  ;;  %v404_v45 = vmul.f32 %v657_v7, %v657_v7 }
  0x30   : > { %v460_v24 = vadd.f32 %v459_v19, %v397_v14  ;;  %v761_v19 = vld [vmem:[%s872_s22 + $0x98] sm:$0xff]  }
  0x31   : > { %v326_v54 = vadd.f32 %v646_v49, %v325_v50  ;;  %v405_v50 = vmul.f32 %v658_v12, %v658_v12  ;;  %v694_v29 = vunpack.c.h.bf16 %v761_v19 }
  0x32   : > { %v461_v28 = vadd.f32 %v460_v24, %v398_v18  ;;  %v693_v24 = vunpack.c.l.bf16 %v761_v19 }
  0x33   : > { %v327_v59 = vadd.f32 %v649_v53, %v326_v54  ;;  %v406_v54 = vmul.f32 %v661_v16, %v661_v16 }
  0x34   : > { %v462_v33 = vadd.f32 %v461_v28, %v399_v23  ;;  %v762_v28 = vld [vmem:[%s872_s22 + $0xa0] sm:$0xff]  }
  0x35   : > { %v328_v63 = vadd.f32 %v650_v58, %v327_v59  ;;  %v407_v59 = vmul.f32 %v662_v21, %v662_v21  ;;  %v698_v38 = vunpack.c.h.bf16 %v762_v28 }
  0x36   : > { %v463_v37 = vadd.f32 %v462_v33, %v400_v27  ;;  %v697_v33 = vunpack.c.l.bf16 %v762_v28 }
  0x37   : > { %v329_v4 = vadd.f32 %v653_v62, %v328_v63  ;;  %v408_v63 = vmul.f32 %v665_v25, %v665_v25 }
  0x38   : > { %v464_v42 = vadd.f32 %v463_v37, %v401_v32  ;;  %v763_v37 = vld [vmem:[%s872_s22 + $0xa8] sm:$0xff]  }
  0x39   : > { %v330_v8 = vadd.f32 %v654_v3, %v329_v4  ;;  %v409_v4 = vmul.f32 %v666_v30, %v666_v30  ;;  %v702_v47 = vunpack.c.h.bf16 %v763_v37 }
  0x3a   : > { %v465_v46 = vadd.f32 %v464_v42, %v402_v36  ;;  %v701_v42 = vunpack.c.l.bf16 %v763_v37 }
  0x3b   : > { %v331_v13 = vadd.f32 %v657_v7, %v330_v8  ;;  %v410_v8 = vmul.f32 %v669_v34, %v669_v34 }
  0x3c   : > { %v466_v51 = vadd.f32 %v465_v46, %v403_v41  ;;  %v764_v46 = vld [vmem:[%s872_s22 + $0xb0] sm:$0xff]  }
  0x3d   : > { %v332_v17 = vadd.f32 %v658_v12, %v331_v13  ;;  %v411_v13 = vmul.f32 %v670_v39, %v670_v39  ;;  %v706_v56 = vunpack.c.h.bf16 %v764_v46 }
  0x3e   : > { %v467_v55 = vadd.f32 %v466_v51, %v404_v45  ;;  %v705_v51 = vunpack.c.l.bf16 %v764_v46 }
  0x3f   : > { %v333_v22 = vadd.f32 %v661_v16, %v332_v17  ;;  %v412_v17 = vmul.f32 %v673_v43, %v673_v43 }
  0x40   : > { %v468_v60 = vadd.f32 %v467_v55, %v405_v50  ;;  %v765_v55 = vld [vmem:[%s872_s22 + $0xb8] sm:$0xff]  }
  0x41   : > { %v334_v26 = vadd.f32 %v662_v21, %v333_v22  ;;  %v413_v22 = vmul.f32 %v674_v48, %v674_v48  ;;  %v710_v1 = vunpack.c.h.bf16 %v765_v55 }
  0x42   : > { %v469_v0 = vadd.f32 %v468_v60, %v406_v54  ;;  %v709_v60 = vunpack.c.l.bf16 %v765_v55 }
  0x43   : > { %v335_v31 = vadd.f32 %v665_v25, %v334_v26  ;;  %v414_v26 = vmul.f32 %v677_v52, %v677_v52 }
  0x44   : > { %v470_v5 = vadd.f32 %v469_v0, %v407_v59  ;;  %v766_v0 = vld [vmem:[%s872_s22 + $0xc0] sm:$0xff]  }
  0x45   : > { %v336_v35 = vadd.f32 %v666_v30, %v335_v31  ;;  %v415_v31 = vmul.f32 %v678_v57, %v678_v57  ;;  %v714_v10 = vunpack.c.h.bf16 %v766_v0 }
  0x46   : > { %v471_v9 = vadd.f32 %v470_v5, %v408_v63  ;;  %v713_v5 = vunpack.c.l.bf16 %v766_v0 }
  0x47   : > { %v337_v40 = vadd.f32 %v669_v34, %v336_v35  ;;  %v416_v35 = vmul.f32 %v681_v61, %v681_v61 }
  0x48   : > { %v472_v14 = vadd.f32 %v471_v9, %v409_v4  ;;  %v767_v9 = vld [vmem:[%s872_s22 + $0xc8] sm:$0xff]  }
  0x49   : > { %v338_v44 = vadd.f32 %v670_v39, %v337_v40  ;;  %v417_v40 = vmul.f32 %v682_v2, %v682_v2  ;;  %v718_v19 = vunpack.c.h.bf16 %v767_v9 }
  0x4a   : > { %v473_v18 = vadd.f32 %v472_v14, %v410_v8  ;;  %v717_v14 = vunpack.c.l.bf16 %v767_v9 }
  0x4b   : > { %v339_v49 = vadd.f32 %v673_v43, %v338_v44  ;;  %v418_v44 = vmul.f32 %v685_v6, %v685_v6 }
  0x4c   : > { %v474_v23 = vadd.f32 %v473_v18, %v411_v13  ;;  %v768_v18 = vld [vmem:[%s872_s22 + $0xd0] sm:$0xff]  }
  0x4d   : > { %v340_v53 = vadd.f32 %v674_v48, %v339_v49  ;;  %v419_v49 = vmul.f32 %v686_v11, %v686_v11  ;;  %v722_v28 = vunpack.c.h.bf16 %v768_v18 }
  0x4e   : > { %v475_v27 = vadd.f32 %v474_v23, %v412_v17  ;;  %v721_v23 = vunpack.c.l.bf16 %v768_v18 }
  0x4f   : > { %v341_v58 = vadd.f32 %v677_v52, %v340_v53  ;;  %v420_v53 = vmul.f32 %v689_v15, %v689_v15 }
  0x50   : > { %v476_v32 = vadd.f32 %v475_v27, %v413_v22  ;;  %v769_v27 = vld [vmem:[%s872_s22 + $0xd8] sm:$0xff]  }
  0x51   : > { %v342_v62 = vadd.f32 %v678_v57, %v341_v58  ;;  %v421_v58 = vmul.f32 %v690_v20, %v690_v20  ;;  %v726_v37 = vunpack.c.h.bf16 %v769_v27 }
  0x52   : > { %v477_v36 = vadd.f32 %v476_v32, %v414_v26  ;;  %v725_v32 = vunpack.c.l.bf16 %v769_v27 }
  0x53   : > { %v343_v3 = vadd.f32 %v681_v61, %v342_v62  ;;  %v422_v62 = vmul.f32 %v693_v24, %v693_v24 }
  0x54   : > { %v478_v41 = vadd.f32 %v477_v36, %v415_v31  ;;  %v770_v36 = vld [vmem:[%s872_s22 + $0xe0] sm:$0xff]  }
  0x55   : > { %v344_v7 = vadd.f32 %v682_v2, %v343_v3  ;;  %v423_v3 = vmul.f32 %v694_v29, %v694_v29  ;;  %v730_v46 = vunpack.c.h.bf16 %v770_v36 }
  0x56   : > { %v479_v45 = vadd.f32 %v478_v41, %v416_v35  ;;  %v729_v41 = vunpack.c.l.bf16 %v770_v36 }
  0x57   : > { %v345_v12 = vadd.f32 %v685_v6, %v344_v7  ;;  %v424_v7 = vmul.f32 %v697_v33, %v697_v33 }
  0x58   : > { %v480_v50 = vadd.f32 %v479_v45, %v417_v40  ;;  %v771_v45 = vld [vmem:[%s872_s22 + $0xe8] sm:$0xff]  }
  0x59   : > { %v346_v16 = vadd.f32 %v686_v11, %v345_v12  ;;  %v425_v12 = vmul.f32 %v698_v38, %v698_v38  ;;  %v734_v55 = vunpack.c.h.bf16 %v771_v45 }
  0x5a   : > { %v481_v54 = vadd.f32 %v480_v50, %v418_v44  ;;  %v733_v50 = vunpack.c.l.bf16 %v771_v45 }
  0x5b   : > { %v347_v21 = vadd.f32 %v689_v15, %v346_v16  ;;  %v426_v16 = vmul.f32 %v701_v42, %v701_v42 }
  0x5c   : > { %v482_v59 = vadd.f32 %v481_v54, %v419_v49  ;;  %v772_v54 = vld [vmem:[%s872_s22 + $0xf0] sm:$0xff]  }
  0x5d   : > { %v348_v25 = vadd.f32 %v690_v20, %v347_v21  ;;  %v427_v21 = vmul.f32 %v702_v47, %v702_v47  ;;  %v738_v0 = vunpack.c.h.bf16 %v772_v54 }
  0x5e   : > { %v483_v63 = vadd.f32 %v482_v59, %v420_v53  ;;  %v737_v59 = vunpack.c.l.bf16 %v772_v54 }
  0x5f   : > { %v349_v30 = vadd.f32 %v693_v24, %v348_v25  ;;  %v428_v25 = vmul.f32 %v705_v51, %v705_v51 }
  0x60   : > { %v484_v4 = vadd.f32 %v483_v63, %v421_v58  ;;  %v773_v63 = vld [vmem:[%s872_s22 + $0xf8] sm:$0xff]  }
  0x61   : > { %v350_v34 = vadd.f32 %v694_v29, %v349_v30  ;;  %v429_v30 = vmul.f32 %v706_v56, %v706_v56 }
  0x62   : > { %v485_v8 = vadd.f32 %v484_v4, %v422_v62  ;;  %v741_v4 = vunpack.c.l.bf16 %v773_v63 }
  0x63   : > { %v351_v39 = vadd.f32 %v697_v33, %v350_v34  ;;  %v430_v34 = vmul.f32 %v709_v60, %v709_v60 }
  0x64   : > { %v486_v13 = vadd.f32 %v485_v8, %v423_v3  ;;  %v742_v8 = vunpack.c.h.bf16 %v773_v63 }
  0x65   : > { %v352_v43 = vadd.f32 %v698_v38, %v351_v39  ;;  %v431_v39 = vmul.f32 %v710_v1, %v710_v1 }
  0x66   : > { %v487_v17 = vadd.f32 %v486_v13, %v424_v7  ;;  %v440_v13 = vmul.f32 %v729_v41, %v729_v41 }
  0x67   : > { %v353_v48 = vadd.f32 %v701_v42, %v352_v43  ;;  %v432_v43 = vmul.f32 %v713_v5, %v713_v5 }
  0x68   : > { %v488_v22 = vadd.f32 %v487_v17, %v425_v12 }
  0x69   : > { %v354_v52 = vadd.f32 %v702_v47, %v353_v48  ;;  %v433_v48 = vmul.f32 %v714_v10, %v714_v10 }
  0x6a   : > { %v489_v26 = vadd.f32 %v488_v22, %v426_v16  ;;  %v441_v16 = vmul.f32 %v730_v46, %v730_v46  ;;  %v443_v22 = vmul.f32 %v734_v55, %v734_v55 }
  0x6b   : > { %v355_v57 = vadd.f32 %v705_v51, %v354_v52  ;;  %v434_v52 = vmul.f32 %v717_v14, %v717_v14 }
  0x6c   : > { %v490_v31 = vadd.f32 %v489_v26, %v427_v21 }
  0x6d   : > { %v356_v61 = vadd.f32 %v706_v56, %v355_v57  ;;  %v435_v57 = vmul.f32 %v718_v19, %v718_v19 }
  0x6e   : > { %v491_v35 = vadd.f32 %v490_v31, %v428_v25  ;;  %v444_v25 = vmul.f32 %v737_v59, %v737_v59 }
  0x6f   : > { %v357_v2 = vadd.f32 %v709_v60, %v356_v61  ;;  %v436_v61 = vmul.f32 %v721_v23, %v721_v23 }
  0x70   : > { %v492_v40 = vadd.f32 %v491_v35, %v429_v30  ;;  %v311_v30 = vld [vmem:[%s860_s15] sm:$0x1]  ;;  %v447_v35 = vmul.f32 %v742_v8, %v742_v8 }
  0x71   : > { %v358_v6 = vadd.f32 %v710_v1, %v357_v2  ;;  %v437_v2 = vmul.f32 %v722_v28, %v722_v28 }
  0x72   : > { %v493_v44 = vadd.f32 %v492_v40, %v430_v34 }
  0x73   : > { %v359_v11 = vadd.f32 %v713_v5, %v358_v6  ;;  %v438_v6 = vmul.f32 %v725_v32, %v725_v32 }
  0x74   : > { %v494_v49 = vadd.f32 %v493_v44, %v431_v39  ;;  %v383_v44 = vld [vmem:[%s865_s18] sm:$0x1] }
  0x75   : > { %v360_v15 = vadd.f32 %v714_v10, %v359_v11  ;;  %v439_v10 = vmul.f32 %v726_v37, %v726_v37 }
  0x76   : > { %v495_v53 = vadd.f32 %v494_v49, %v432_v43 }
  0x77   : > { %v361_v20 = vadd.f32 %v717_v14, %v360_v15 }
  0x78   : > { %v496_v58 = vadd.f32 %v495_v53, %v433_v48 }
  0x79   : > { %v362_v24 = vadd.f32 %v718_v19, %v361_v20  ;;  %v442_v19 = vmul.f32 %v733_v50, %v733_v50 }
  0x7a   : > { %v497_v62 = vadd.f32 %v496_v58, %v434_v52 }
  0x7b   : > { %v363_v29 = vadd.f32 %v721_v23, %v362_v24 }
  0x7c   : > { %v498_v3 = vadd.f32 %v497_v62, %v435_v57 }
  0x7d   : > { %v364_v33 = vadd.f32 %v722_v28, %v363_v29  ;;  %v445_v28 = vmul.f32 %v738_v0, %v738_v0 }
  0x7e   : > { %v499_v7 = vadd.f32 %v498_v3, %v436_v61 }
  0x7f   : > { %v365_v38 = vadd.f32 %v725_v32, %v364_v33  ;;  %v446_v32 = vmul.f32 %v741_v4, %v741_v4 }
  0x80   : > { %v500_v11 = vadd.f32 %v499_v7, %v437_v2 }
  0x81   : > { %v366_v42 = vadd.f32 %v726_v37, %v365_v38 }
  0x82   : > { %v501_v14 = vadd.f32 %v500_v11, %v438_v6 }
  0x83   : > { %v367_v47 = vadd.f32 %v729_v41, %v366_v42 }
  0x84   : > { %v502_v17 = vadd.f32 %v501_v14, %v439_v10 }
  0x85   : > { %v368_v51 = vadd.f32 %v730_v46, %v367_v47 }
  0x86   : > { %v503_v20 = vadd.f32 %v502_v17, %v440_v13 }
  0x87   : > { %v369_v56 = vadd.f32 %v733_v50, %v368_v51 }
  0x88   : > { %v504_v23 = vadd.f32 %v503_v20, %v441_v16 }
  0x89   : > { %v370_v60 = vadd.f32 %v734_v55, %v369_v56 }
  0x8a   : > { %v505_v26 = vadd.f32 %v504_v23, %v442_v19 }
  0x8b   : > { %v371_v1 = vadd.f32 %v737_v59, %v370_v60 }
  0x8c   : > { %v506_v29 = vadd.f32 %v505_v26, %v443_v22 }
  0x8d   : > { %v372_v5 = vadd.f32 %v738_v0, %v371_v1 }
  0x8e   : > { %v507_v33 = vadd.f32 %v506_v29, %v444_v25 }
  0x8f   : > { %v373_v9 = vadd.f32 %v741_v4, %v372_v5 }
  0x90   : > { %v508_v36 = vadd.f32 %v507_v33, %v445_v28 }
  0x91   : > { %v374_v12 = vadd.f32 %v742_v8, %v373_v9 }
  0x92   : > { %v509_v37 = vadd.f32 %v508_v36, %v446_v32 }
  0x93   : > { %v375_v15 = vrot.slane %v374_v12, 4 }
  0x94   : > { %v510_v38 = vadd.f32 %v509_v37, %v447_v35 }
  0x95   : > { %v376_v18 = vadd.f32 %v375_v15, %v374_v12 }
  0x96   : > { %v511_v39 = vrot.slane %v510_v38, 4 }
  0x97   : > { %v377_v21 = vrot.slane %v376_v18, 2 }
  0x98   : > { %v512_v40 = vadd.f32 %v511_v39, %v510_v38 }
  0x99   : > { %v378_v24 = vadd.f32 %v377_v21, %v376_v18 }
  0x9a   : > { %v513_v41 = vrot.slane %v512_v40, 2 }
  0x9b   : > { %v379_v27 = vrot.slane %v378_v24, 1 }
  0x9c   : > { %v514_v42 = vadd.f32 %v513_v41, %v512_v40 }
  0x9d   : > { %v380_v31 = vadd.f32 %v379_v27, %v378_v24 }
  0x9e   : > { %v515_v43 = vrot.slane %v514_v42, 1 }
  0x9f   : > { %v381_v34 = vadd.f32 %v380_v31, %v311_v30 }
  0xa0   : > { %v516_v45 = vadd.f32 %v515_v43, %v514_v42 }
  0xa1   : > { %382 = vst [vmem:[%s860_s15] sm:$0x1] %v381_v34 }
  0xa2   : > { %v517_v46 = vadd.f32 %v516_v45, %v383_v44 }
  0xa4   : > { %518 = vst [vmem:[%s865_s18] sm:$0x1] %v517_v46 }
  0xa5 PF: > { %s13_s11 = sadd.s32 1, %s821_s11   ;;  %s922_s9 = smov %s817_s10 }
  0xa6   : > { %p10_p5 = scmp.ge.s32.totalorder %s13_s11, 4   ;;  %s923_s10 = smov %s925_s12 }
  0xa8   :  { %12 = sbr.rel (!%p10_p5) target bundleno = 2 (0x2), region = 70 }

// kernel: forward.44
= control target key start
LH: loop header
LB: loop body
LE: loop exit
PB: predicated region body
PF: predicated region fallthrough
CT: control target
= control target key end

     0   :  { %s2369_s9 = smov 0   ;;  %s2371_s10 = smov 0   ;;  %s2719_s0 = inlined_call_operand.vmem [shape: bf16[1024,3456], index: 0, kind: input, shape index: {}]   ;;  %s2720_s1 = inlined_call_operand.vmem [shape: bf16[3456,128], index: 1, kind: input, shape index: {}]   ;;  %s2721_s2 = inlined_call_operand.vmem [shape: bf16[1024,128], index: 2, kind: output, shape index: {}]  }
   0x1   :  { %s2373_s11 = smov 0   ;;  %s2375_s12 = smov 0  }
   0x2   :  { %s2377_s13 = smov 0   ;;  %s2379_s14 = smov 0  }
   0x3   :  { %s2381_s15 = smov 0  }
   0x4 LB: > { %s24_s16 = sadd.s32 1, %s2343_s13  ;;  %s31_s17 = sadd.s32 1, %s2347_s14  ;;  %s2351_s15 = sphi %s2381_s15, %s12_s15   ;;  %s2347_s14 = sphi %s2379_s14, %s2727_s14   ;;  %s2343_s13 = sphi %s2377_s13, %s2726_s13   ;;  %s2339_s12 = sphi %s2375_s12, %s2725_s12   ;;  %s2335_s11 = sphi %s2373_s11, %s2724_s11   ;;  %s2331_s10 = sphi %s2371_s10, %s2723_s10   ;;  %s2327_s9 = sphi %s2369_s9, %s2722_s9  }
   0x5   : > { %p25_p0 = scmp.ge.s32.totalorder %s24_s16, 9  ;;  %p47_p1 = scmp.ne.s32.totalorder %s2331_s10, %s2327_s9 }
   0x6   : > { %p48_p2 = scmp.eq.s32.totalorder %s2351_s15, 0  ;;  %s40_s21 = sadd.s32 1, %s2331_s10 }
   0x7   : > { %s2729_s16 = smov (%p25_p0, %s24_s16), 0  ;;  %s2731_s17 = smov (!%p25_p0, %s31_s17), %s2347_s14 }
   0x8   : > { %p49_p3 = por %p48_p2, %p47_p1  ;;  %p33_p4 = scmp.ge.s32.totalorder %s2731_s17, 4 }
   0x9   : > { %s36_s18 = ssub.s32 %s2343_s13, %s2729_s16  ;;  %p1642_p6 = scmp.ge.s32.totalorder %s2351_s15, 36 }
   0xa   : > { %s2733_s17 = smov (%p33_p4, %s2731_s17), 0 }
   0xb   : > { %s35_s19 = ssub.s32 %s2347_s14, %s2733_s17  ;;  %129 = sbr.rel (%p1642_p6) target bundleno = 64 (0x40), region = 16 }
   0xc   : > { %s37_s20 = sor.u32 %s36_s18, %s35_s19 }
   0xd   : > { %p38_p5 = scmp.eq.s32.totalorder %s37_s20, 0 }
   0xf   : > { %s2420_s22 = scalar_select %p38_p5, %s2331_s10, %s40_s21  }
  0x12   : > { %132 = sbr.rel (!%p49_p3) target bundleno = 64 (0x40), region = 20  ;;  %s134_s23 = sand.u32 (%p49_p3), 1, %s2331_s10  }
  0x13   : > { %s138_s24 = smul.u32 (%p49_p3), 3, %s2343_s13 }
  0x14   : > { %s2149_s25 = smul.u32 (%p49_p3), 384, %s134_s23 }
  0x15   : > { %s2150_s26 = smul.u32 (%p49_p3), 864, %s2347_s14 }
  0x16   : > { %s2434_s4 = scalar_lea.vmem (%p49_p3), [#allocation3], %s2149_s25 }
  0x17   : > { %s140_s27 = sadd.s32 (%p49_p3), %s2150_s26, %s138_s24 }
  0x18   : > { %s1645_s28 = sshll.u32 (%p49_p3), %s140_s27, 2 }
  0x19   : > { %s2429_s3 = scalar_lea.vmem %s2719_s0, %s1645_s28 }
  0x1a   : > { %v157_v0 = vld [vmem:[%s2429_s3] sm:$0xff]  ;;  %v159_v1 = vld [vmem:[%s2429_s3 + $0x6c] sm:$0xff]  ;;  %v161_v2 = vld [vmem:[%s2429_s3 + $0xd8] sm:$0xff] }
  0x1b   : > { %158 = vst [vmem:[%s2434_s4] sm:$0xff] %v157_v0  ;;  %160 = vst [vmem:[%s2434_s4 + $0xc] sm:$0xff] %v159_v1  ;;  %v163_v3 = vld [vmem:[%s2429_s3 + $0x144] sm:$0xff]  ;;  %v165_v4 = vld [vmem:[%s2429_s3 + $0x1b0] sm:$0xff] }
  0x1c   : > { %162 = vst [vmem:[%s2434_s4 + $0x18] sm:$0xff] %v161_v2  ;;  %v167_v5 = vld [vmem:[%s2429_s3 + $0x21c] sm:$0xff]  ;;  %164 = vst [vmem:[%s2434_s4 + $0x24] sm:$0xff] %v163_v3  ;;  %v169_v6 = vld [vmem:[%s2429_s3 + $0x288] sm:$0xff] }
  0x1d   : > { %166 = vst [vmem:[%s2434_s4 + $0x30] sm:$0xff] %v165_v4  ;;  %168 = vst [vmem:[%s2434_s4 + $0x3c] sm:$0xff] %v167_v5  ;;  %v171_v7 = vld [vmem:[%s2429_s3 + $0x2f4] sm:$0xff]  ;;  %v173_v8 = vld [vmem:[%s2429_s3 + $0x360] sm:$0xff] }
  0x1e   : > { %170 = vst [vmem:[%s2434_s4 + $0x48] sm:$0xff] %v169_v6  ;;  %172 = vst [vmem:[%s2434_s4 + $0x54] sm:$0xff] %v171_v7  ;;  %v175_v9 = vld [vmem:[%s2429_s3 + $0x3cc] sm:$0xff]  ;;  %v177_v10 = vld [vmem:[%s2429_s3 + $0x438] sm:$0xff] }
  0x1f   : > { %174 = vst [vmem:[%s2434_s4 + $0x60] sm:$0xff] %v173_v8  ;;  %v179_v11 = vld [vmem:[%s2429_s3 + $0x4a4] sm:$0xff]  ;;  %176 = vst [vmem:[%s2434_s4 + $0x6c] sm:$0xff] %v175_v9  ;;  %v181_v12 = vld [vmem:[%s2429_s3 + $0x510] sm:$0xff] }
  0x20   : > { %178 = vst [vmem:[%s2434_s4 + $0x78] sm:$0xff] %v177_v10  ;;  %180 = vst [vmem:[%s2434_s4 + $0x84] sm:$0xff] %v179_v11  ;;  %v183_v13 = vld [vmem:[%s2429_s3 + $0x57c] sm:$0xff]  ;;  %v185_v14 = vld [vmem:[%s2429_s3 + $0x5e8] sm:$0xff] }
  0x21   : > { %182 = vst [vmem:[%s2434_s4 + $0x90] sm:$0xff] %v181_v12  ;;  %184 = vst [vmem:[%s2434_s4 + $0x9c] sm:$0xff] %v183_v13  ;;  %v187_v15 = vld [vmem:[%s2429_s3 + $0x654] sm:$0xff]  ;;  %v189_v16 = vld [vmem:[%s2429_s3 + $0x6c0] sm:$0xff] }
  0x22   : > { %186 = vst [vmem:[%s2434_s4 + $0xa8] sm:$0xff] %v185_v14  ;;  %v191_v17 = vld [vmem:[%s2429_s3 + $0x72c] sm:$0xff]  ;;  %188 = vst [vmem:[%s2434_s4 + $0xb4] sm:$0xff] %v187_v15  ;;  %v193_v18 = vld [vmem:[%s2429_s3 + $0x798] sm:$0xff] }
  0x23   : > { %190 = vst [vmem:[%s2434_s4 + $0xc0] sm:$0xff] %v189_v16  ;;  %192 = vst [vmem:[%s2434_s4 + $0xcc] sm:$0xff] %v191_v17  ;;  %v195_v19 = vld [vmem:[%s2429_s3 + $0x804] sm:$0xff]  ;;  %v197_v20 = vld [vmem:[%s2429_s3 + $0x870] sm:$0xff] }
  0x24   : > { %194 = vst [vmem:[%s2434_s4 + $0xd8] sm:$0xff] %v193_v18  ;;  %196 = vst [vmem:[%s2434_s4 + $0xe4] sm:$0xff] %v195_v19  ;;  %v199_v21 = vld [vmem:[%s2429_s3 + $0x8dc] sm:$0xff]  ;;  %v201_v22 = vld [vmem:[%s2429_s3 + $0x948] sm:$0xff] }
  0x25   : > { %198 = vst [vmem:[%s2434_s4 + $0xf0] sm:$0xff] %v197_v20  ;;  %v203_v23 = vld [vmem:[%s2429_s3 + $0x9b4] sm:$0xff]  ;;  %200 = vst [vmem:[%s2434_s4 + $0xfc] sm:$0xff] %v199_v21  ;;  %v205_v24 = vld [vmem:[%s2429_s3 + $0xa20] sm:$0xff] }
  0x26   : > { %202 = vst [vmem:[%s2434_s4 + $0x108] sm:$0xff] %v201_v22  ;;  %204 = vst [vmem:[%s2434_s4 + $0x114] sm:$0xff] %v203_v23  ;;  %v207_v25 = vld [vmem:[%s2429_s3 + $0xa8c] sm:$0xff]  ;;  %v209_v26 = vld [vmem:[%s2429_s3 + $0xaf8] sm:$0xff] }
  0x27   : > { %206 = vst [vmem:[%s2434_s4 + $0x120] sm:$0xff] %v205_v24  ;;  %208 = vst [vmem:[%s2434_s4 + $0x12c] sm:$0xff] %v207_v25  ;;  %v211_v27 = vld [vmem:[%s2429_s3 + $0xb64] sm:$0xff]  ;;  %v213_v28 = vld [vmem:[%s2429_s3 + $0xbd0] sm:$0xff] }
  0x28   : > { %210 = vst [vmem:[%s2434_s4 + $0x138] sm:$0xff] %v209_v26  ;;  %v215_v29 = vld [vmem:[%s2429_s3 + $0xc3c] sm:$0xff]  ;;  %212 = vst [vmem:[%s2434_s4 + $0x144] sm:$0xff] %v211_v27  ;;  %v217_v30 = vld [vmem:[%s2429_s3 + $0xca8] sm:$0xff] }
  0x29   : > { %214 = vst [vmem:[%s2434_s4 + $0x150] sm:$0xff] %v213_v28  ;;  %216 = vst [vmem:[%s2434_s4 + $0x15c] sm:$0xff] %v215_v29  ;;  %v219_v31 = vld [vmem:[%s2429_s3 + $0xd14] sm:$0xff]  ;;  %v1646_v32 = vld [vmem:[%s2429_s3 + $0x8] sm:$0xf] }
  0x2a   : > { %218 = vst [vmem:[%s2434_s4 + $0x168] sm:$0xff] %v217_v30  ;;  %220 = vst [vmem:[%s2434_s4 + $0x174] sm:$0xff] %v219_v31  ;;  %v1648_v33 = vld [vmem:[%s2429_s3 + $0x74] sm:$0xf]  ;;  %v1650_v34 = vld [vmem:[%s2429_s3 + $0xe0] sm:$0xf] }
  0x2b   : > { %1647 = vst [vmem:[%s2434_s4 + $0x8] sm:$0xf] %v1646_v32  ;;  %v1652_v35 = vld [vmem:[%s2429_s3 + $0x14c] sm:$0xf]  ;;  %1649 = vst [vmem:[%s2434_s4 + $0x14] sm:$0xf] %v1648_v33 }
  0x2c   : > { %1651 = vst [vmem:[%s2434_s4 + $0x20] sm:$0xf] %v1650_v34  ;;  %1653 = vst [vmem:[%s2434_s4 + $0x2c] sm:$0xf] %v1652_v35  ;;  %v1654_v36 = vld [vmem:[%s2429_s3 + $0x1b8] sm:$0xf] }
  0x2d   : > { %v1656_v37 = vld [vmem:[%s2429_s3 + $0x224] sm:$0xf]  ;;  %v1658_v38 = vld [vmem:[%s2429_s3 + $0x290] sm:$0xf]  ;;  %1655 = vst [vmem:[%s2434_s4 + $0x38] sm:$0xf] %v1654_v36 }
  0x2e   : > { %1657 = vst [vmem:[%s2434_s4 + $0x44] sm:$0xf] %v1656_v37  ;;  %1659 = vst [vmem:[%s2434_s4 + $0x50] sm:$0xf] %v1658_v38  ;;  %v1660_v39 = vld [vmem:[%s2429_s3 + $0x2fc] sm:$0xf] }
  0x2f   : > { %v1662_v40 = vld [vmem:[%s2429_s3 + $0x368] sm:$0xf]  ;;  %v1664_v41 = vld [vmem:[%s2429_s3 + $0x3d4] sm:$0xf]  ;;  %1661 = vst [vmem:[%s2434_s4 + $0x5c] sm:$0xf] %v1660_v39 }
  0x30   : > { %1663 = vst [vmem:[%s2434_s4 + $0x68] sm:$0xf] %v1662_v40  ;;  %1665 = vst [vmem:[%s2434_s4 + $0x74] sm:$0xf] %v1664_v41  ;;  %v1666_v42 = vld [vmem:[%s2429_s3 + $0x440] sm:$0xf] }
  0x31   : > { %v1668_v43 = vld [vmem:[%s2429_s3 + $0x4ac] sm:$0xf]  ;;  %v1670_v44 = vld [vmem:[%s2429_s3 + $0x518] sm:$0xf]  ;;  %1667 = vst [vmem:[%s2434_s4 + $0x80] sm:$0xf] %v1666_v42 }
  0x32   : > { %1669 = vst [vmem:[%s2434_s4 + $0x8c] sm:$0xf] %v1668_v43  ;;  %1671 = vst [vmem:[%s2434_s4 + $0x98] sm:$0xf] %v1670_v44  ;;  %v1672_v45 = vld [vmem:[%s2429_s3 + $0x584] sm:$0xf] }
  0x33   : > { %v1674_v46 = vld [vmem:[%s2429_s3 + $0x5f0] sm:$0xf]  ;;  %v1676_v47 = vld [vmem:[%s2429_s3 + $0x65c] sm:$0xf]  ;;  %1673 = vst [vmem:[%s2434_s4 + $0xa4] sm:$0xf] %v1672_v45 }
  0x34   : > { %1675 = vst [vmem:[%s2434_s4 + $0xb0] sm:$0xf] %v1674_v46  ;;  %1677 = vst [vmem:[%s2434_s4 + $0xbc] sm:$0xf] %v1676_v47  ;;  %v1678_v48 = vld [vmem:[%s2429_s3 + $0x6c8] sm:$0xf] }
  0x35   : > { %v1680_v49 = vld [vmem:[%s2429_s3 + $0x734] sm:$0xf]  ;;  %v1682_v50 = vld [vmem:[%s2429_s3 + $0x7a0] sm:$0xf]  ;;  %1679 = vst [vmem:[%s2434_s4 + $0xc8] sm:$0xf] %v1678_v48 }
  0x36   : > { %1681 = vst [vmem:[%s2434_s4 + $0xd4] sm:$0xf] %v1680_v49  ;;  %1683 = vst [vmem:[%s2434_s4 + $0xe0] sm:$0xf] %v1682_v50  ;;  %v1684_v51 = vld [vmem:[%s2429_s3 + $0x80c] sm:$0xf] }
  0x37   : > { %v1686_v52 = vld [vmem:[%s2429_s3 + $0x878] sm:$0xf]  ;;  %v1688_v53 = vld [vmem:[%s2429_s3 + $0x8e4] sm:$0xf]  ;;  %1685 = vst [vmem:[%s2434_s4 + $0xec] sm:$0xf] %v1684_v51 }
  0x38   : > { %1687 = vst [vmem:[%s2434_s4 + $0xf8] sm:$0xf] %v1686_v52  ;;  %1689 = vst [vmem:[%s2434_s4 + $0x104] sm:$0xf] %v1688_v53  ;;  %v1690_v54 = vld [vmem:[%s2429_s3 + $0x950] sm:$0xf] }
  0x39   : > { %v1692_v55 = vld [vmem:[%s2429_s3 + $0x9bc] sm:$0xf]  ;;  %v1694_v56 = vld [vmem:[%s2429_s3 + $0xa28] sm:$0xf]  ;;  %1691 = vst [vmem:[%s2434_s4 + $0x110] sm:$0xf] %v1690_v54 }
  0x3a   : > { %1693 = vst [vmem:[%s2434_s4 + $0x11c] sm:$0xf] %v1692_v55  ;;  %1695 = vst [vmem:[%s2434_s4 + $0x128] sm:$0xf] %v1694_v56  ;;  %v1696_v57 = vld [vmem:[%s2429_s3 + $0xa94] sm:$0xf] }
  0x3b   : > { %v1698_v58 = vld [vmem:[%s2429_s3 + $0xb00] sm:$0xf]  ;;  %v1700_v59 = vld [vmem:[%s2429_s3 + $0xb6c] sm:$0xf]  ;;  %1697 = vst [vmem:[%s2434_s4 + $0x134] sm:$0xf] %v1696_v57 }
  0x3c   : > { %1699 = vst [vmem:[%s2434_s4 + $0x140] sm:$0xf] %v1698_v58  ;;  %1701 = vst [vmem:[%s2434_s4 + $0x14c] sm:$0xf] %v1700_v59  ;;  %v1702_v60 = vld [vmem:[%s2429_s3 + $0xbd8] sm:$0xf] }
  0x3d   : > { %v1704_v61 = vld [vmem:[%s2429_s3 + $0xc44] sm:$0xf]  ;;  %v1706_v62 = vld [vmem:[%s2429_s3 + $0xcb0] sm:$0xf]  ;;  %1703 = vst [vmem:[%s2434_s4 + $0x158] sm:$0xf] %v1702_v60 }
  0x3e   : > { %1705 = vst [vmem:[%s2434_s4 + $0x164] sm:$0xf] %v1704_v61  ;;  %1707 = vst [vmem:[%s2434_s4 + $0x170] sm:$0xf] %v1706_v62  ;;  %v1708_v63 = vld [vmem:[%s2429_s3 + $0xd1c] sm:$0xf] }
  0x3f   : > { %1709 = vst [vmem:[%s2434_s4 + $0x17c] sm:$0xf] %v1708_v63 }
  0x40 PF: > { %p1710_p7 = scmp.ge.s32.totalorder %s2351_s15, 1  ;;  %p308_p8 = scmp.lt.s32.totalorder %s2351_s15, 37 }
  0x42   : > { %p309_p9 = pnand %p1710_p7, %p308_p8 }
  0x43   : > { %s315_s5 = sand.u32 (!%p309_p9), 1, %s2327_s9   ;;  %s349_s6 = smul.u32 (!%p309_p9), 48, %s2335_s11 }
  0x44   : > { %312 = sbr.rel (%p309_p9) target bundleno = 446 (0x1be), region = 50  ;;  %s1712_s8 = sshll.u32 (!%p309_p9), %s2339_s12, 5 }
  0x45   : > { %s2151_s7 = smul.u32 (!%p309_p9), 384, %s315_s5  ;;  %p350_p10 = scmp.lt.s32.totalorder (!%p309_p9), %s349_s6, 431 }
  0x46   : > { %p359_p11 = scmp.lt.s32.totalorder (!%p309_p9), %s1712_s8, 127  ;;  %p1714_p12 = scmp.ne.s32.totalorder (!%p309_p9), %s2335_s11, 0 }
  0x47   : > { %s2576_s9 = scalar_lea.vmem (!%p309_p9), [#allocation3], %s2151_s7 }
  0x4b   : > { %s2735_s6 = smov (!%p350_p10, %s349_s6), 431  ;;  %s2737_s8 = smov (!%p359_p11, %s1712_s8), 127 }
  0x4c   : > { %s1711_s18 = sshll.u32 %s2735_s6, 2  ;;  %s1713_s23 = sshll.u32 %s2737_s8, 2  ;;  %v2353_v0 = vmov (!%p1714_p12), 0.0  }
  0x4d   : > { %s2569_s21 = scalar_lea.vmem %s2720_s1, %s1711_s18  ;;  %s2574_s26 = scalar_lea.vmem %s2721_s2, %s1713_s23  ;;  %372 = vst [vmem:[#allocation2] sm:$0xff] (!%p1714_p12), %v2353_v0  ;;  %373 = vst [vmem:[#allocation2 + $0x8] sm:$0xff] (!%p1714_p12), %v2353_v0 }
  0x4e   : > { %371 = sbr.rel (%p1714_p12) target bundleno = 93 (0x5d), region = 58  ;;  %374 = vst [vmem:[#allocation2 + $0x10] sm:$0xff] (!%p1714_p12), %v2353_v0  ;;  %375 = vst [vmem:[#allocation2 + $0x18] sm:$0xff] (!%p1714_p12), %v2353_v0 }
  0x4f   : > { %376 = vst [vmem:[#allocation2 + $0x20] sm:$0xff] (!%p1714_p12), %v2353_v0  ;;  %377 = vst [vmem:[#allocation2 + $0x28] sm:$0xff] (!%p1714_p12), %v2353_v0 }
  0x50   : > { %378 = vst [vmem:[#allocation2 + $0x30] sm:$0xff] (!%p1714_p12), %v2353_v0  ;;  %379 = vst [vmem:[#allocation2 + $0x38] sm:$0xff] (!%p1714_p12), %v2353_v0 }
  0x51   : > { %380 = vst [vmem:[#allocation2 + $0x40] sm:$0xff] (!%p1714_p12), %v2353_v0  ;;  %381 = vst [vmem:[#allocation2 + $0x48] sm:$0xff] (!%p1714_p12), %v2353_v0 }
  0x52   : > { %382 = vst [vmem:[#allocation2 + $0x50] sm:$0xff] (!%p1714_p12), %v2353_v0  ;;  %383 = vst [vmem:[#allocation2 + $0x58] sm:$0xff] (!%p1714_p12), %v2353_v0 }
  0x53   : > { %384 = vst [vmem:[#allocation2 + $0x60] sm:$0xff] (!%p1714_p12), %v2353_v0  ;;  %385 = vst [vmem:[#allocation2 + $0x68] sm:$0xff] (!%p1714_p12), %v2353_v0 }
  0x54   : > { %386 = vst [vmem:[#allocation2 + $0x70] sm:$0xff] (!%p1714_p12), %v2353_v0  ;;  %387 = vst [vmem:[#allocation2 + $0x78] sm:$0xff] (!%p1714_p12), %v2353_v0 }
  0x55   : > { %388 = vst [vmem:[#allocation2 + $0x80] sm:$0xff] %v2353_v0  ;;  %389 = vst [vmem:[#allocation2 + $0x88] sm:$0xff] %v2353_v0 }
  0x56   : > { %390 = vst [vmem:[#allocation2 + $0x90] sm:$0xff] %v2353_v0  ;;  %391 = vst [vmem:[#allocation2 + $0x98] sm:$0xff] %v2353_v0 }
  0x57   : > { %392 = vst [vmem:[#allocation2 + $0xa0] sm:$0xff] %v2353_v0  ;;  %393 = vst [vmem:[#allocation2 + $0xa8] sm:$0xff] %v2353_v0 }
  0x58   : > { %394 = vst [vmem:[#allocation2 + $0xb0] sm:$0xff] %v2353_v0  ;;  %395 = vst [vmem:[#allocation2 + $0xb8] sm:$0xff] %v2353_v0 }
  0x59   : > { %396 = vst [vmem:[#allocation2 + $0xc0] sm:$0xff] %v2353_v0  ;;  %397 = vst [vmem:[#allocation2 + $0xc8] sm:$0xff] %v2353_v0 }
  0x5a   : > { %398 = vst [vmem:[#allocation2 + $0xd0] sm:$0xff] %v2353_v0  ;;  %399 = vst [vmem:[#allocation2 + $0xd8] sm:$0xff] %v2353_v0 }
  0x5b   : > { %400 = vst [vmem:[#allocation2 + $0xe0] sm:$0xff] %v2353_v0  ;;  %401 = vst [vmem:[#allocation2 + $0xe8] sm:$0xff] %v2353_v0 }
  0x5c   : > { %402 = vst [vmem:[#allocation2 + $0xf0] sm:$0xff] %v2353_v0  ;;  %403 = vst [vmem:[#allocation2 + $0xf8] sm:$0xff] %v2353_v0 }
  0x5d PF: > { %v2209_v1 = vld [vmem:[%s2569_s21 + $0x40] sm:$0xff]   ;;  %v2211_v3 = vld [vmem:[%s2569_s21 + $0x48] sm:$0xff]   ;;  %v2213_v5 = vld [vmem:[%s2569_s21 + $0x50] sm:$0xff]   ;;  %p1787_p13 = scmp.ne.s32.totalorder %s2335_s11, 8 }
  0x5e   : > { %v2210_v2 = vld [vmem:[%s2569_s21] sm:$0xff]   ;;  %1949 = vmatprep.subr.bf16.mxu0 %v2209_v1  ;;  %2133 = vmatprep.subr.bf16.mxu1 %v2209_v1  ;;  %v2212_v4 = vld [vmem:[%s2569_s21 + $0x8] sm:$0xff]   ;;  %v2214_v6 = vld [vmem:[%s2569_s21 + $0x10] sm:$0xff]  }
  0x5f   : > { %1950 = vmatpush3.bf16.msra.mxu0 %v2210_v2  ;;  %2141 = vmatpush3.bf16.msra.mxu1 %v2210_v2  ;;  %v2215_v7 = vld [vmem:[%s2569_s21 + $0x58] sm:$0xff]   ;;  %v2217_v9 = vld [vmem:[%s2569_s21 + $0x60] sm:$0xff]   ;;  %v2219_v11 = vld [vmem:[%s2569_s21 + $0x68] sm:$0xff]  }
  0x60   : > { %1951 = vmatprep.subr.bf16.mxu0 %v2211_v3  ;;  %2134 = vmatprep.subr.bf16.mxu1 %v2211_v3  ;;  %v2216_v8 = vld [vmem:[%s2569_s21 + $0x18] sm:$0xff]   ;;  %v2218_v10 = vld [vmem:[%s2569_s21 + $0x20] sm:$0xff]   ;;  %v2220_v14 = vld [vmem:[%s2569_s21 + $0x28] sm:$0xff]  }
  0x61   : > { %v2227_v12 = vld [vmem:[%s2576_s9 + $0x4] ss:$12 sps:$4 sm:$0xff]   ;;  %v2223_v17 = vld [vmem:[%s2569_s21 + $0x78] sm:$0xff]   ;;  %v2225_v20 = vld [vmem:[%s2576_s9] ss:$12 sps:$4 sm:$0xff]  }
  0x62   : > { %v2230_v13 = vld [vmem:[%s2576_s9 + $0x124] ss:$12 sps:$4 sm:$0xff]   ;;  %980 = vmatprep.mubr.bf16.mxu0 %v2227_v12  ;;  %v2224_v18 = vld [vmem:[%s2569_s21 + $0x38] sm:$0xff]   ;;  %v2228_v21 = vld [vmem:[%s2576_s9 + $0x120] ss:$12 sps:$4 sm:$0xff]  }
  0x63   : > { %1952 = vmatpush3.bf16.msra.mxu0 %v2212_v4  ;;  %2142 = vmatpush3.bf16.msra.mxu1 %v2212_v4  ;;  %v2221_v15 = vld [vmem:[%s2569_s21 + $0x70] sm:$0xff]   ;;  %v2231_v19 = vld [vmem:[%s2569_s21 + $0x80] sm:$0xff]   ;;  %v2233_v22 = vld [vmem:[%s2576_s9 + $0x1c] ss:$12 sps:$4 sm:$0xff]  }
  0x64   : > { %1953 = vmatprep.subr.bf16.mxu0 %v2213_v5  ;;  %2135 = vmatprep.subr.bf16.mxu1 %v2213_v5  ;;  %v2222_v16 = vld [vmem:[%s2569_s21 + $0x30] sm:$0xff]   ;;  %v2232_v23 = vld [vmem:[%s2569_s21 + $0x88] sm:$0xff]   ;;  %v2237_v25 = vld [vmem:[%s2576_s9 + $0x18] ss:$12 sps:$4 sm:$0xff]  }
  0x65   : > { %1076 = vmatprep.mubr.bf16.mxu1 %v2230_v13  ;;  %v2235_v24 = vld [vmem:[%s2576_s9 + $0x13c] ss:$12 sps:$4 sm:$0xff]   ;;  %v2239_v26 = vld [vmem:[%s2569_s21 + $0x90] sm:$0xff]   ;;  %v2238_v27 = vld [vmem:[%s2576_s9 + $0x138] ss:$12 sps:$4 sm:$0xff]  }
  0x66   : > { %v2240_v28 = vld [vmem:[%s2569_s21 + $0x98] sm:$0xff]   ;;  %v2241_v29 = vld [vmem:[%s2576_s9 + $0x34] ss:$12 sps:$4 sm:$0xff]   ;;  %v2248_v34 = vld [vmem:[%s2569_s21 + $0xa8] sm:$0xff]  }
  0x67   : > { %1954 = vmatpush3.bf16.msra.mxu0 %v2214_v6  ;;  %2143 = vmatpush3.bf16.msra.mxu1 %v2214_v6  ;;  %v2243_v30 = vld [vmem:[%s2576_s9 + $0x154] ss:$12 sps:$4 sm:$0xff]   ;;  %v2245_v32 = vld [vmem:[%s2576_s9 + $0x30] ss:$12 sps:$4 sm:$0xff]   ;;  %v2249_v35 = vld [vmem:[%s2576_s9 + $0x4c] ss:$12 sps:$4 sm:$0xff]  }
  0x68   : > { %1955 = vmatprep.subr.bf16.mxu0 %v2215_v7  ;;  %2136 = vmatprep.subr.bf16.mxu1 %v2215_v7  ;;  %v2247_v31 = vld [vmem:[%s2569_s21 + $0xa0] sm:$0xff]   ;;  %v2246_v33 = vld [vmem:[%s2576_s9 + $0x150] ss:$12 sps:$4 sm:$0xff]   ;;  %v2251_v36 = vld [vmem:[%s2576_s9 + $0x16c] ss:$12 sps:$4 sm:$0xff]  }
  0x69   : > { %v2255_v37 = vld [vmem:[%s2569_s21 + $0xb0] sm:$0xff]   ;;  %v2256_v41 = vld [vmem:[%s2569_s21 + $0xb8] sm:$0xff]   ;;  %v2260_v43 = vld [vmem:[%s2576_s9 + $0x60] ss:$12 sps:$4 sm:$0xff]  }
  0x6a   : > { %v2253_v38 = vld [vmem:[%s2576_s9 + $0x48] ss:$12 sps:$4 sm:$0xff]   ;;  %v2257_v40 = vld [vmem:[%s2576_s9 + $0x64] ss:$12 sps:$4 sm:$0xff]   ;;  %v2261_v44 = vld [vmem:[%s2576_s9 + $0x20] ss:$12 sps:$4 sm:$0xff]  }
  0x6b   : > { %1956 = vmatpush3.bf16.msra.mxu0 %v2216_v8  ;;  %2144 = vmatpush3.bf16.msra.mxu1 %v2216_v8  ;;  %v2254_v39 = vld [vmem:[%s2576_s9 + $0x168] ss:$12 sps:$4 sm:$0xff]   ;;  %v2264_v46 = vld [vmem:[%s2576_s9 + $0x38] ss:$12 sps:$4 sm:$0xff]   ;;  %v2266_v48 = vld [vmem:[%s2576_s9 + $0x50] ss:$12 sps:$4 sm:$0xff]  }
  0x6c   : > { %1957 = vmatprep.subr.bf16.mxu0 %v2217_v9  ;;  %2137 = vmatprep.subr.bf16.mxu1 %v2217_v9  ;;  %v2259_v42 = vld [vmem:[%s2576_s9 + $0x8] ss:$12 sps:$4 sm:$0xff]   ;;  %v2265_v47 = vld [vmem:[%s2576_s9 + $0x78] ss:$12 sps:$4 sm:$0xff]   ;;  %v2270_v51 = vld [vmem:[%s2576_s9 + $0x90] ss:$12 sps:$4 sm:$0xff]  }
  0x6d   : > { %v2262_v45 = vld [vmem:[%s2576_s9 + $0x7c] ss:$12 sps:$4 sm:$0xff]   ;;  %v2267_v49 = vld [vmem:[%s2576_s9 + $0x94] ss:$12 sps:$4 sm:$0xff]   ;;  %v2272_v53 = vld [vmem:[%s2576_s9 + $0xac] ss:$12 sps:$4 sm:$0xff]  }
  0x6e   : > { %v2269_v50 = vld [vmem:[%s2576_s9 + $0x68] ss:$12 sps:$4 sm:$0xff]   ;;  %v2271_v52 = vld [vmem:[%s2576_s9 + $0x80] ss:$12 sps:$4 sm:$0xff]   ;;  %v2274_v54 = vld [vmem:[%s2576_s9 + $0x98] ss:$12 sps:$4 sm:$0xff]  }
  0x6f   : > { %1958 = vmatpush3.bf16.msra.mxu0 %v2218_v10  ;;  %2145 = vmatpush3.bf16.msra.mxu1 %v2218_v10  ;;  %v2275_v55 = vld [vmem:[%s2576_s9 + $0xa8] ss:$12 sps:$4 sm:$0xff]   ;;  %v2276_v56 = vld [vmem:[%s2576_s9 + $0xb0] ss:$12 sps:$4 sm:$0xff]   ;;  %v2280_v59 = vld [vmem:[%s2576_s9 + $0xc0] ss:$12 sps:$4 sm:$0xff]  }
  0x70   : > { %1959 = vmatprep.subr.bf16.mxu0 %v2219_v11  ;;  %2138 = vmatprep.subr.bf16.mxu1 %v2219_v11  ;;  %v2277_v57 = vld [vmem:[%s2576_s9 + $0xc4] ss:$12 sps:$4 sm:$0xff]   ;;  %v2279_v58 = vld [vmem:[%s2576_s9 + $0xc8] ss:$12 sps:$4 sm:$0xff]   ;;  %v2281_v60 = vld [vmem:[%s2576_s9 + $0xe0] ss:$12 sps:$4 sm:$0xff]  }
  0x71   : > { %v2282_v61 = vld [vmem:[%s2576_s9 + $0xdc] ss:$12 sps:$4 sm:$0xff]   ;;  %v2284_v62 = vld [vmem:[%s2576_s9 + $0xf8] ss:$12 sps:$4 sm:$0xff]   ;;  %v2287_v1 = vld [vmem:[%s2576_s9 + $0xf4] ss:$12 sps:$4 sm:$0xff]  }
  0x72   : > { %v2285_v63 = vld [vmem:[%s2576_s9 + $0xd8] ss:$12 sps:$4 sm:$0xff]   ;;  %v2286_v0 = vld [vmem:[%s2576_s9 + $0x110] ss:$12 sps:$4 sm:$0xff]   ;;  %v2289_v2 = vld [vmem:[%s2576_s9 + $0x128] ss:$12 sps:$4 sm:$0xff]  }
  0x73   : > { %1960 = vmatpush3.bf16.msra.mxu0 %v2220_v14  ;;  %2146 = vmatpush3.bf16.msra.mxu1 %v2220_v14  ;;  %v2290_v3 = vld [vmem:[%s2576_s9 + $0xf0] ss:$12 sps:$4 sm:$0xff]   ;;  %v2291_v4 = vld [vmem:[%s2576_s9 + $0x140] ss:$12 sps:$4 sm:$0xff]   ;;  %v2294_v6 = vld [vmem:[%s2576_s9 + $0x158] ss:$12 sps:$4 sm:$0xff]  }
  0x74   : > { %1961 = vmatprep.subr.bf16.mxu0 %v2221_v15  ;;  %2139 = vmatprep.subr.bf16.mxu1 %v2221_v15  ;;  %v2292_v5 = vld [vmem:[%s2576_s9 + $0x10c] ss:$12 sps:$4 sm:$0xff]   ;;  %v2295_v7 = vld [vmem:[%s2576_s9 + $0x108] ss:$12 sps:$4 sm:$0xff]   ;;  %v2296_v8 = vld [vmem:[%s2576_s9 + $0x170] ss:$12 sps:$4 sm:$0xff]  }
  0x77   : > { %1962 = vmatpush3.bf16.msra.mxu0 %v2222_v16  ;;  %2147 = vmatpush3.bf16.msra.mxu1 %v2222_v16 }
  0x78   : > { %1963 = vmatprep.subr.bf16.mxu0 %v2223_v17  ;;  %2140 = vmatprep.subr.bf16.mxu1 %v2223_v17 }
  0x7b   : > { %1964 = vmatpush3.bf16.msra.mxu0 %v2224_v18  ;;  %2148 = vmatpush3.bf16.msra.mxu1 %v2224_v18 }
  0x7c   : > { %2085 = vmatprep.subr.bf16.mxu1 %v2231_v19 }
  0x7e   : > { %981 = vmatmul.mubr.bf16.vlgmr.msra.gmra.mrb[0].mxu0 %v2225_v20  ;;  %1077 = vmatmul.mubr.bf16.vlgmr.msra.gmra.mrb[0].mxu1 %v2228_v21 }
  0x7f   : > { %2086 = vmatpush3.bf16.msra.mxu1 %v2231_v19  ;;  %988 = vmatprep.mubr.bf16.mxu0 %v2233_v22 }
  0x80   : > { %2087 = vmatprep.subr.bf16.mxu1 %v2232_v23  ;;  %1084 = vmatprep.mubr.bf16.mxu1 %v2235_v24 }
  0x83   : > { %2088 = vmatpush3.bf16.msra.mxu1 %v2232_v23 }
  0x84   : > { %2089 = vmatprep.subr.bf16.mxu1 %v2239_v26 }
  0x86   : > { %989 = vmatmul.mubr.bf16.gmra.mrb[4].mxu0 %v2237_v25  ;;  %1085 = vmatmul.mubr.bf16.gmra.mrb[4].mxu1 %v2238_v27 }
  0x87   : > { %2090 = vmatpush3.bf16.msra.mxu1 %v2239_v26  ;;  %996 = vmatprep.mubr.bf16.mxu0 %v2241_v29 }
  0x88   : > { %2091 = vmatprep.subr.bf16.mxu1 %v2240_v28  ;;  %1092 = vmatprep.mubr.bf16.mxu1 %v2243_v30 }
  0x8b   : > { %2092 = vmatpush3.bf16.msra.mxu1 %v2240_v28 }
  0x8c   : > { %2093 = vmatprep.subr.bf16.mxu1 %v2247_v31 }
  0x8e   : > { %997 = vmatmul.mubr.bf16.gmra.mrb[8].mxu0 %v2245_v32  ;;  %1093 = vmatmul.mubr.bf16.gmra.mrb[8].mxu1 %v2246_v33 }
  0x8f   : > { %2094 = vmatpush3.bf16.msra.mxu1 %v2247_v31  ;;  %1004 = vmatprep.mubr.bf16.mxu0 %v2249_v35 }
  0x90   : > { %2095 = vmatprep.subr.bf16.mxu1 %v2248_v34  ;;  %1100 = vmatprep.mubr.bf16.mxu1 %v2251_v36 }
  0x93   : > { %2096 = vmatpush3.bf16.msra.mxu1 %v2248_v34 }
  0x94   : > { %2097 = vmatprep.subr.bf16.mxu1 %v2255_v37 }
  0x96   : > { %1005 = vmatmul.mubr.bf16.gmra.mrb[12].mxu0 %v2253_v38  ;;  %1101 = vmatmul.mubr.bf16.gmra.mrb[12].mxu1 %v2254_v39 }
  0x97   : > { %2098 = vmatpush3.bf16.msra.mxu1 %v2255_v37  ;;  %1012 = vmatprep.mubr.bf16.mxu0 %v2257_v40 }
  0x98   : > { %2099 = vmatprep.subr.bf16.mxu1 %v2256_v41  ;;  %2101 = vmatprep.mubr.bf16.mxu1 %v2259_v42 }
  0x9b   : > { %2100 = vmatpush3.bf16.msra.mxu1 %v2256_v41 }
  0x9e   : > { %1013 = vmatmul.mubr.bf16.gmra.mrb[16].mxu0 %v2260_v43  ;;  %2102 = vmatmul.mubr.bf16.vlgmr.msra.gmra.mrb[16].mxu1 %v2261_v44 }
  0x9f   : > { %1020 = vmatprep.mubr.bf16.mxu0 %v2262_v45  ;;  %2105 = vmatprep.mubr.bf16.mxu1 %v2264_v46 }
  0xa6   : > { %1021 = vmatmul.mubr.bf16.gmra.mrb[20].mxu0 %v2265_v47  ;;  %2106 = vmatmul.mubr.bf16.gmra.mrb[20].mxu1 %v2266_v48 }
  0xa7   : > { %1028 = vmatprep.mubr.bf16.mxu0 %v2267_v49  ;;  %2109 = vmatprep.mubr.bf16.mxu1 %v2269_v50 }
  0xae   : > { %1029 = vmatmul.mubr.bf16.gmra.mrb[24].mxu0 %v2270_v51  ;;  %2110 = vmatmul.mubr.bf16.gmra.mrb[24].mxu1 %v2271_v52 }
  0xaf   : > { %1036 = vmatprep.mubr.bf16.mxu0 %v2272_v53  ;;  %2113 = vmatprep.mubr.bf16.mxu1 %v2274_v54 }
  0xb6   : > { %1037 = vmatmul.mubr.bf16.gmra.mrb[28].mxu0 %v2275_v55  ;;  %2114 = vmatmul.mubr.bf16.gmra.mrb[28].mxu1 %v2276_v56 }
  0xb7   : > { %1044 = vmatprep.mubr.bf16.mxu0 %v2277_v57  ;;  %2117 = vmatprep.mubr.bf16.mxu1 %v2279_v58  ;;  %v406_v58 = vld [vmem:[#allocation2 + $0x10] sm:$0xff] }
  0xbe   : > { %1045 = vmatmul.mubr.bf16.gmra.mrb[32].mxu0 %v2280_v59  ;;  %2118 = vmatmul.mubr.bf16.gmra.mrb[32].mxu1 %v2281_v60 }
  0xbf   : > { %1052 = vmatprep.mubr.bf16.mxu0 %v2282_v61  ;;  %2121 = vmatprep.mubr.bf16.mxu1 %v2284_v62  ;;  %v404_v62 = vld [vmem:[#allocation2] sm:$0xff] }
  0xc6   : > { %1053 = vmatmul.mubr.bf16.gmra.mrb[36].mxu0 %v2285_v63  ;;  %2122 = vmatmul.mubr.bf16.gmra.mrb[36].mxu1 %v2286_v0 }
  0xc7   : > { %1060 = vmatprep.mubr.bf16.mxu0 %v2287_v1  ;;  %2125 = vmatprep.mubr.bf16.mxu1 %v2289_v2 }
  0xce   : > { %1061 = vmatmul.mubr.bf16.gmra.mrb[40].mxu0 %v2290_v3  ;;  %2126 = vmatmul.mubr.bf16.gmra.mrb[40].mxu1 %v2291_v4  ;;  %v407_v3 = vld [vmem:[#allocation2 + $0x18] sm:$0xff] }
  0xcf   : > { %1068 = vmatprep.mubr.bf16.mxu0 %v2292_v5  ;;  %2129 = vmatprep.mubr.bf16.mxu1 %v2294_v6 }
  0xd6   : > { %1069 = vmatmul.mubr.bf16.gmra.mrb[44].mxu0 %v2295_v7  ;;  %2130 = vmatmul.mubr.bf16.gmra.mrb[44].mxu1 %v2296_v8  ;;  %v405_v8 = vld [vmem:[#allocation2 + $0x8] sm:$0xff] }
 0x151   : > { %v1965_v9 = vpop.f32.mrb[0].mxu0  ;;  %v2037_v10 = vpop.f32.mrb[0].mxu1 }
 0x152   : > { %v1966_v11 = vpop.f32.mrb[1].mxu0  ;;  %v2038_v12 = vpop.f32.mrb[1].mxu1 }
 0x153   : > { %v1967_v13 = vadd.f32 %v1966_v11, %v1965_v9  ;;  %v2651_v14 = vadd.f32 %v2038_v12, %v2037_v10  ;;  %v1968_v15 = vpop.f32.mrb[2].mxu0  ;;  %v2040_v16 = vpop.f32.mrb[2].mxu1 }
 0x154   : > { %v1969_v17 = vpop.f32.mrb[3].mxu0  ;;  %v2041_v18 = vpop.f32.mrb[3].mxu1 }
 0x155   : > { %v1970_v19 = vadd.f32 %v1969_v17, %v1968_v15  ;;  %v2653_v20 = vadd.f32 %v2041_v18, %v2040_v16  ;;  %v410_v18 = vld [vmem:[#allocation2 + $0x30] sm:$0xff] }
 0x159   : > { %v1971_v21 = vpop.f32.mrb[4].mxu0  ;;  %v2043_v22 = vpop.f32.mrb[4].mxu1 }
 0x15a   : > { %v1972_v23 = vpop.f32.mrb[5].mxu0  ;;  %v2044_v24 = vpop.f32.mrb[5].mxu1 }
 0x15b   : > { %v1973_v25 = vadd.f32 %v1972_v23, %v1971_v21  ;;  %v2655_v26 = vadd.f32 %v2044_v24, %v2043_v22  ;;  %v1974_v27 = vpop.f32.mrb[6].mxu0  ;;  %v2046_v28 = vpop.f32.mrb[6].mxu1  ;;  %v408_v23 = vld [vmem:[#allocation2 + $0x20] sm:$0xff] }
 0x15c   : > { %v1975_v29 = vpop.f32.mrb[7].mxu0  ;;  %v2047_v30 = vpop.f32.mrb[7].mxu1 }
 0x15d   : > { %v1976_v31 = vadd.f32 %v1975_v29, %v1974_v27  ;;  %v2657_v32 = vadd.f32 %v2047_v30, %v2046_v28  ;;  %v411_v29 = vld [vmem:[#allocation2 + $0x38] sm:$0xff] }
 0x161   : > { %v1977_v33 = vpop.f32.mrb[8].mxu0  ;;  %v2049_v34 = vpop.f32.mrb[8].mxu1 }
 0x162   : > { %v1978_v35 = vpop.f32.mrb[9].mxu0  ;;  %v2050_v36 = vpop.f32.mrb[9].mxu1 }
 0x163   : > { %v1979_v37 = vadd.f32 %v1978_v35, %v1977_v33  ;;  %v2659_v38 = vadd.f32 %v2050_v36, %v2049_v34  ;;  %v1980_v39 = vpop.f32.mrb[10].mxu0  ;;  %v2052_v40 = vpop.f32.mrb[10].mxu1  ;;  %v409_v34 = vld [vmem:[#allocation2 + $0x28] sm:$0xff] }
 0x164   : > { %v1981_v41 = vpop.f32.mrb[11].mxu0  ;;  %v2053_v42 = vpop.f32.mrb[11].mxu1 }
 0x165   : > { %v1982_v43 = vadd.f32 %v1981_v41, %v1980_v39  ;;  %v2661_v44 = vadd.f32 %v2053_v42, %v2052_v40 }
 0x169   : > { %v1983_v45 = vpop.f32.mrb[12].mxu0  ;;  %v2055_v46 = vpop.f32.mrb[12].mxu1 }
 0x16a   : > { %v1984_v47 = vpop.f32.mrb[13].mxu0  ;;  %v2056_v48 = vpop.f32.mrb[13].mxu1 }
 0x16b   : > { %v1985_v49 = vadd.f32 %v1984_v47, %v1983_v45  ;;  %v2663_v50 = vadd.f32 %v2056_v48, %v2055_v46  ;;  %v1986_v51 = vpop.f32.mrb[14].mxu0  ;;  %v2058_v52 = vpop.f32.mrb[14].mxu1  ;;  %v414_v46 = vld [vmem:[#allocation2 + $0x50] sm:$0xff] }
 0x16c   : > { %v1987_v53 = vpop.f32.mrb[15].mxu0  ;;  %v2059_v54 = vpop.f32.mrb[15].mxu1 }
 0x16d   : > { %v1988_v55 = vadd.f32 %v1987_v53, %v1986_v51  ;;  %v2665_v56 = vadd.f32 %v2059_v54, %v2058_v52 }
 0x171   : > { %v1989_v57 = vpop.f32.mrb[16].mxu0  ;;  %v2103_v59 = vpop.f32.mrb[16].mxu1 }
 0x172   : > { %v1152_v60 = vadd.f32 %v2103_v59, %v1973_v25  ;;  %v1990_v61 = vpop.f32.mrb[17].mxu0  ;;  %v1143_v63 = vpop.f32.mrb[17].mxu1 }
 0x173   : > { %v1991_v0 = vadd.f32 %v1990_v61, %v1989_v57  ;;  %v1144_v1 = vadd.f32 %v1967_v13, %v1143_v63  ;;  %v1992_v2 = vpop.f32.mrb[18].mxu0  ;;  %v2104_v4 = vpop.f32.mrb[18].mxu1 }
 0x174   : > { %v1272_v5 = vadd.f32 %v1152_v60, %v406_v58  ;;  %v1155_v6 = vadd.f32 %v2104_v4, %v1976_v31  ;;  %v1993_v7 = vpop.f32.mrb[19].mxu0  ;;  %v1146_v9 = vpop.f32.mrb[19].mxu1  ;;  %v413_v60 = vld [vmem:[#allocation2 + $0x48] sm:$0xff] }
 0x175   : > { %v1270_v10 = vadd.f32 %v1144_v1, %v404_v62  ;;  %v1994_v11 = vadd.f32 %v1993_v7, %v1992_v2  ;;  %v1147_v12 = vadd.f32 %v1970_v19, %v1146_v9 }
 0x176   : > { %1304 = vst [vmem:[#allocation2 + $0x10] sm:$0xff] %v1272_v5  ;;  %v1273_v15 = vadd.f32 %v1155_v6, %v407_v3  ;;  %v416_v6 = vld [vmem:[#allocation2 + $0x60] sm:$0xff] }
 0x177   : > { %1302 = vst [vmem:[#allocation2] sm:$0xff] %v1270_v10  ;;  %v1271_v16 = vadd.f32 %v1147_v12, %v405_v8 }
 0x178   : > { %1305 = vst [vmem:[#allocation2 + $0x18] sm:$0xff] %v1273_v15  ;;  %v418_v15 = vld [vmem:[#allocation2 + $0x70] sm:$0xff] }
 0x179   : > { %1303 = vst [vmem:[#allocation2 + $0x8] sm:$0xff] %v1271_v16  ;;  %v1995_v17 = vpop.f32.mrb[20].mxu0  ;;  %v2107_v13 = vpop.f32.mrb[20].mxu1 }
 0x17a   : > { %v1168_v21 = vadd.f32 %v2107_v13, %v1985_v49  ;;  %v1996_v22 = vpop.f32.mrb[21].mxu0  ;;  %v1159_v24 = vpop.f32.mrb[21].mxu1  ;;  %v412_v49 = vld [vmem:[#allocation2 + $0x40] sm:$0xff] }
 0x17b   : > { %v1997_v25 = vadd.f32 %v1996_v22, %v1995_v17  ;;  %v1160_v27 = vadd.f32 %v1979_v37, %v1159_v24  ;;  %v1998_v28 = vpop.f32.mrb[22].mxu0  ;;  %v2108_v30 = vpop.f32.mrb[22].mxu1  ;;  %v417_v17 = vld [vmem:[#allocation2 + $0x68] sm:$0xff] }
 0x17c   : > { %v1276_v31 = vadd.f32 %v1168_v21, %v410_v18  ;;  %v1171_v19 = vadd.f32 %v2108_v30, %v1988_v55  ;;  %v1999_v33 = vpop.f32.mrb[23].mxu0  ;;  %v1162_v35 = vpop.f32.mrb[23].mxu1  ;;  %v415_v55 = vld [vmem:[#allocation2 + $0x58] sm:$0xff] }
 0x17d   : > { %v1274_v36 = vadd.f32 %v1160_v27, %v408_v23  ;;  %v2000_v39 = vadd.f32 %v1999_v33, %v1998_v28  ;;  %v1163_v40 = vadd.f32 %v1982_v43, %v1162_v35  ;;  %v419_v23 = vld [vmem:[#allocation2 + $0x78] sm:$0xff] }
 0x17e   : > { %1308 = vst [vmem:[#allocation2 + $0x30] sm:$0xff] %v1276_v31  ;;  %v1277_v41 = vadd.f32 %v1171_v19, %v411_v29 }
 0x17f   : > { %1306 = vst [vmem:[#allocation2 + $0x20] sm:$0xff] %v1274_v36  ;;  %v1275_v42 = vadd.f32 %v1163_v40, %v409_v34  ;;  %v420_v36 = vld [vmem:[#allocation2 + $0x80] sm:$0xff] }
 0x180   : > { %1309 = vst [vmem:[#allocation2 + $0x38] sm:$0xff] %v1277_v41 }
 0x181   : > { %1307 = vst [vmem:[#allocation2 + $0x28] sm:$0xff] %v1275_v42  ;;  %v2001_v45 = vpop.f32.mrb[24].mxu0  ;;  %v2111_v37 = vpop.f32.mrb[24].mxu1 }
 0x182   : > { %v1184_v47 = vadd.f32 %v2111_v37, %v1997_v25  ;;  %v2002_v48 = vpop.f32.mrb[25].mxu0  ;;  %v1175_v51 = vpop.f32.mrb[25].mxu1 }
 0x183   : > { %v2003_v52 = vadd.f32 %v2002_v48, %v2001_v45  ;;  %v1176_v53 = vadd.f32 %v1991_v0, %v1175_v51  ;;  %v2004_v54 = vpop.f32.mrb[26].mxu0  ;;  %v2112_v57 = vpop.f32.mrb[26].mxu1  ;;  %v421_v45 = vld [vmem:[#allocation2 + $0x88] sm:$0xff] }
 0x184   : > { %v1280_v58 = vadd.f32 %v1184_v47, %v414_v46  ;;  %v1187_v43 = vadd.f32 %v2112_v57, %v2000_v39  ;;  %v2005_v59 = vpop.f32.mrb[27].mxu0  ;;  %v1178_v61 = vpop.f32.mrb[27].mxu1  ;;  %v422_v57 = vld [vmem:[#allocation2 + $0x90] sm:$0xff] }
 0x185   : > { %v1278_v62 = vadd.f32 %v1176_v53, %v412_v49  ;;  %v2006_v63 = vadd.f32 %v2005_v59, %v2004_v54  ;;  %v1179_v1 = vadd.f32 %v1994_v11, %v1178_v61  ;;  %v423_v61 = vld [vmem:[#allocation2 + $0x98] sm:$0xff] }
 0x186   : > { %1312 = vst [vmem:[#allocation2 + $0x50] sm:$0xff] %v1280_v58  ;;  %v1281_v2 = vadd.f32 %v1187_v43, %v415_v55 }
 0x187   : > { %1310 = vst [vmem:[#allocation2 + $0x40] sm:$0xff] %v1278_v62  ;;  %v1279_v3 = vadd.f32 %v1179_v1, %v413_v60 }
 0x188   : > { %1313 = vst [vmem:[#allocation2 + $0x58] sm:$0xff] %v1281_v2 }
 0x189   : > { %1311 = vst [vmem:[#allocation2 + $0x48] sm:$0xff] %v1279_v3  ;;  %v2007_v4 = vpop.f32.mrb[28].mxu0  ;;  %v2115_v5 = vpop.f32.mrb[28].mxu1  ;;  %v430_v3 = vld [vmem:[#allocation2 + $0xd0] sm:$0xff] }
 0x18a   : > { %v2008_v0 = vpop.f32.mrb[29].mxu0  ;;  %v1191_v7 = vpop.f32.mrb[29].mxu1 }
 0x18b   : > { %v2009_v8 = vadd.f32 %v2008_v0, %v2007_v4  ;;  %v1192_v9 = vadd.f32 %v2003_v52, %v1191_v7  ;;  %v2010_v10 = vpop.f32.mrb[30].mxu0  ;;  %v2116_v12 = vpop.f32.mrb[30].mxu1 }
 0x18c   : > { %v2011_v16 = vpop.f32.mrb[31].mxu0  ;;  %v1194_v18 = vpop.f32.mrb[31].mxu1 }
 0x18d   : > { %v1200_v11 = vadd.f32 %v2115_v5, %v2009_v8  ;;  %v1282_v13 = vadd.f32 %v1192_v9, %v416_v6  ;;  %v2012_v21 = vadd.f32 %v2011_v16, %v2010_v10  ;;  %v1195_v22 = vadd.f32 %v2006_v63, %v1194_v18  ;;  %v428_v6 = vld [vmem:[#allocation2 + $0xc0] sm:$0xff] }
 0x18f   : > { %v1284_v24 = vadd.f32 %v1200_v11, %v418_v15  ;;  %1314 = vst [vmem:[#allocation2 + $0x60] sm:$0xff] %v1282_v13  ;;  %v1203_v25 = vadd.f32 %v2116_v12, %v2012_v21  ;;  %v1283_v27 = vadd.f32 %v1195_v22, %v417_v17  ;;  %v431_v12 = vld [vmem:[#allocation2 + $0xd8] sm:$0xff]  ;;  %v424_v17 = vld [vmem:[#allocation2 + $0xa0] sm:$0xff]  ;;  %v429_v13 = vld [vmem:[#allocation2 + $0xc8] sm:$0xff] }
 0x191   : > { %1316 = vst [vmem:[#allocation2 + $0x70] sm:$0xff] %v1284_v24  ;;  %v1285_v28 = vadd.f32 %v1203_v25, %v419_v23  ;;  %1315 = vst [vmem:[#allocation2 + $0x68] sm:$0xff] %v1283_v27  ;;  %v2013_v29 = vpop.f32.mrb[32].mxu0  ;;  %v2119_v30 = vpop.f32.mrb[32].mxu1  ;;  %v425_v27 = vld [vmem:[#allocation2 + $0xa8] sm:$0xff] }
 0x192   : > { %v2014_v31 = vpop.f32.mrb[33].mxu0  ;;  %v1207_v19 = vpop.f32.mrb[33].mxu1 }
 0x193   : > { %1317 = vst [vmem:[#allocation2 + $0x78] sm:$0xff] %v1285_v28  ;;  %v2015_v33 = vadd.f32 %v2014_v31, %v2013_v29  ;;  %v2016_v34 = vpop.f32.mrb[34].mxu0  ;;  %v2120_v35 = vpop.f32.mrb[34].mxu1  ;;  %v434_v31 = vld [vmem:[#allocation2 + $0xf0] sm:$0xff] }
 0x194   : > { %v2017_v39 = vpop.f32.mrb[35].mxu0  ;;  %v1210_v40 = vpop.f32.mrb[35].mxu1 }
 0x195   : > { %v1208_v41 = vadd.f32 %v2015_v33, %v1207_v19  ;;  %v2018_v42 = vadd.f32 %v2017_v39, %v2016_v34 }
 0x197   : > { %v1286_v46 = vadd.f32 %v1208_v41, %v420_v36  ;;  %v1211_v37 = vadd.f32 %v2018_v42, %v1210_v40  ;;  %v435_v41 = vld [vmem:[#allocation2 + $0xf8] sm:$0xff] }
 0x199   : > { %1318 = vst [vmem:[#allocation2 + $0x80] sm:$0xff] %v1286_v46  ;;  %v1287_v47 = vadd.f32 %v1211_v37, %v421_v45  ;;  %v2019_v48 = vpop.f32.mrb[36].mxu0  ;;  %v2667_v49 = vpop.f32.mrb[36].mxu1  ;;  %v426_v46 = vld [vmem:[#allocation2 + $0xb0] sm:$0xff] }
 0x19a   : > { %v2020_v51 = vpop.f32.mrb[37].mxu0  ;;  %v1223_v52 = vpop.f32.mrb[37].mxu1 }
 0x19b   : > { %1319 = vst [vmem:[#allocation2 + $0x88] sm:$0xff] %v1287_v47  ;;  %v2021_v53 = vadd.f32 %v2020_v51, %v2019_v48  ;;  %v2022_v54 = vpop.f32.mrb[38].mxu0  ;;  %v2669_v55 = vpop.f32.mrb[38].mxu1  ;;  %v433_v48 = vld [vmem:[#allocation2 + $0xe8] sm:$0xff] }
 0x19c   : > { %v2023_v58 = vpop.f32.mrb[39].mxu0  ;;  %v1226_v43 = vpop.f32.mrb[39].mxu1 }
 0x19d   : > { %v1216_v59 = vadd.f32 %v2119_v30, %v2021_v53  ;;  %v2024_v60 = vadd.f32 %v2023_v58, %v2022_v54  ;;  %v427_v58 = vld [vmem:[#allocation2 + $0xb8] sm:$0xff] }
 0x19f   : > { %v1288_v62 = vadd.f32 %v1216_v59, %v422_v57  ;;  %v1219_v63 = vadd.f32 %v2120_v35, %v2024_v60  ;;  %v432_v35 = vld [vmem:[#allocation2 + $0xe0] sm:$0xff]  ;;  %v1339_v60 = vld [vmem:[#allocation2 + $0x8] sm:$0xff] (!%p1787_p13) }
 0x1a1   : > { %1320 = vst [vmem:[#allocation2 + $0x90] sm:$0xff] %v1288_v62  ;;  %v1289_v1 = vadd.f32 %v1219_v63, %v423_v61  ;;  %v2025_v2 = vpop.f32.mrb[40].mxu0  ;;  %v2127_v4 = vpop.f32.mrb[40].mxu1  ;;  %v1341_v62 = vld [vmem:[#allocation2 + $0x18] sm:$0xff] (!%p1787_p13)  ;;  %v1342_v63 = vld [vmem:[#allocation2 + $0x20] sm:$0xff] (!%p1787_p13) }
 0x1a2   : > { %v1248_v5 = vadd.f32 %v2127_v4, %v2655_v26  ;;  %v2026_v0 = vpop.f32.mrb[41].mxu0  ;;  %v1239_v7 = vpop.f32.mrb[41].mxu1  ;;  %v1345_v4 = vld [vmem:[#allocation2 + $0x38] sm:$0xff] (!%p1787_p13) }
 0x1a3   : > { %1321 = vst [vmem:[#allocation2 + $0x98] sm:$0xff] %v1289_v1  ;;  %v2027_v8 = vadd.f32 %v2026_v0, %v2025_v2  ;;  %v1240_v9 = vadd.f32 %v2651_v14, %v1239_v7  ;;  %v2028_v10 = vpop.f32.mrb[42].mxu0  ;;  %v2128_v15 = vpop.f32.mrb[42].mxu1  ;;  %v1343_v1 = vld [vmem:[#allocation2 + $0x28] sm:$0xff] (!%p1787_p13)  ;;  %v1348_v7 = vld [vmem:[#allocation2 + $0x50] sm:$0xff] (!%p1787_p13) }
 0x1a4   : > { %v1296_v16 = vadd.f32 %v1248_v5, %v430_v3  ;;  %v1251_v18 = vadd.f32 %v2128_v15, %v2657_v32  ;;  %v2029_v11 = vpop.f32.mrb[43].mxu0  ;;  %v1242_v21 = vpop.f32.mrb[43].mxu1  ;;  %v1867_v2 = vpack.c.bf16 (!%p1787_p13), %v1343_v1, %v1342_v63  ;;  %v1344_v3 = vld [vmem:[#allocation2 + $0x30] sm:$0xff] (!%p1787_p13)  ;;  %v1346_v5 = vld [vmem:[#allocation2 + $0x40] sm:$0xff] (!%p1787_p13)  ;;  %v1351_v15 = vld [vmem:[#allocation2 + $0x68] sm:$0xff] (!%p1787_p13) }
 0x1a5   : > { %v1224_v22 = vadd.f32 %v2027_v8, %v1223_v52  ;;  %v1294_v23 = vadd.f32 %v1240_v9, %v428_v6  ;;  %v2030_v26 = vadd.f32 %v2029_v11, %v2028_v10  ;;  %v1243_v24 = vadd.f32 %v2653_v20, %v1242_v21  ;;  %v1347_v6 = vld [vmem:[#allocation2 + $0x48] sm:$0xff] (!%p1787_p13)  ;;  %v1349_v8 = vld [vmem:[#allocation2 + $0x58] sm:$0xff] (!%p1787_p13)  ;;  %v1354_v11 = vld [vmem:[#allocation2 + $0x80] sm:$0xff] (!%p1787_p13) }
 0x1a6   : > { %1328 = vst [vmem:[#allocation2 + $0xd0] sm:$0xff] %v1296_v16  ;;  %v1297_v25 = vadd.f32 %v1251_v18, %v431_v12  ;;  %v1872_v0 = vpack.c.bf16 (!%p1787_p13), %v1345_v4, %v1344_v3  ;;  %1935 = vst [vmem:[%s2574_s26 + $0x10] sm:$0xff] (!%p1787_p13), %v1867_v2   ;;  %v1877_v9 = vpack.c.bf16 (!%p1787_p13), %v1347_v6, %v1346_v5  ;;  %v1350_v12 = vld [vmem:[#allocation2 + $0x60] sm:$0xff] (!%p1787_p13)  ;;  %v1352_v16 = vld [vmem:[#allocation2 + $0x70] sm:$0xff] (!%p1787_p13) }
 0x1a7   : > { %v1290_v28 = vadd.f32 %v1224_v22, %v424_v17  ;;  %1326 = vst [vmem:[#allocation2 + $0xc0] sm:$0xff] %v1294_v23  ;;  %v1227_v14 = vadd.f32 %v2030_v26, %v1226_v43  ;;  %v1295_v29 = vadd.f32 %v1243_v24, %v429_v13  ;;  %v1882_v10 = vpack.c.bf16 (!%p1787_p13), %v1349_v8, %v1348_v7  ;;  %v1353_v18 = vld [vmem:[#allocation2 + $0x78] sm:$0xff] (!%p1787_p13)  ;;  %v1355_v13 = vld [vmem:[#allocation2 + $0x88] sm:$0xff] (!%p1787_p13) }
 0x1a8   : > { %1329 = vst [vmem:[#allocation2 + $0xd8] sm:$0xff] %v1297_v25  ;;  %1936 = vst [vmem:[%s2574_s26 + $0x18] sm:$0xff] (!%p1787_p13), %v1872_v0   ;;  %v1887_v17 = vpack.c.bf16 (!%p1787_p13), %v1351_v15, %v1350_v12  ;;  %v1892_v21 = vpack.c.bf16 (!%p1787_p13), %v1353_v18, %v1352_v16  ;;  %v1897_v22 = vpack.c.bf16 (!%p1787_p13), %v1355_v13, %v1354_v11  ;;  %v1356_v23 = vld [vmem:[#allocation2 + $0x90] sm:$0xff] (!%p1787_p13) }
 0x1a9   : > { %1322 = vst [vmem:[#allocation2 + $0xa0] sm:$0xff] %v1290_v28  ;;  %v1291_v30 = vadd.f32 %v1227_v14, %v425_v27  ;;  %1327 = vst [vmem:[#allocation2 + $0xc8] sm:$0xff] %v1295_v29  ;;  %v2031_v32 = vpop.f32.mrb[44].mxu0  ;;  %v2131_v19 = vpop.f32.mrb[44].mxu1 }
 0x1aa   : > { %v1264_v33 = vadd.f32 %v2131_v19, %v2663_v50  ;;  %v2032_v34 = vpop.f32.mrb[45].mxu0  ;;  %v1255_v36 = vpop.f32.mrb[45].mxu1  ;;  %1937 = vst [vmem:[%s2574_s26 + $0x20] sm:$0xff] (!%p1787_p13), %v1877_v9   ;;  %1938 = vst [vmem:[%s2574_s26 + $0x28] sm:$0xff] (!%p1787_p13), %v1882_v10   ;;  %v1357_v26 = vld [vmem:[#allocation2 + $0x98] sm:$0xff] (!%p1787_p13) }
 0x1ab   : > { %1323 = vst [vmem:[#allocation2 + $0xa8] sm:$0xff] %v1291_v30  ;;  %v2033_v20 = vadd.f32 %v2032_v34, %v2031_v32  ;;  %v1256_v39 = vadd.f32 %v2659_v38, %v1255_v36  ;;  %v2034_v40 = vpop.f32.mrb[46].mxu0  ;;  %v2132_v42 = vpop.f32.mrb[46].mxu1  ;;  %1939 = vst [vmem:[%s2574_s26 + $0x30] sm:$0xff] (!%p1787_p13), %v1887_v17   ;;  %v1902_v25 = vpack.c.bf16 (!%p1787_p13), %v1357_v26, %v1356_v23 }
 0x1ac   : > { %v1300_v45 = vadd.f32 %v1264_v33, %v434_v31  ;;  %v1267_v37 = vadd.f32 %v2132_v42, %v2665_v56  ;;  %v2035_v47 = vpop.f32.mrb[47].mxu0  ;;  %v1258_v51 = vpop.f32.mrb[47].mxu1  ;;  %1940 = vst [vmem:[%s2574_s26 + $0x38] sm:$0xff] (!%p1787_p13), %v1892_v21   ;;  %1941 = vst [vmem:[%s2574_s26 + $0x40] sm:$0xff] (!%p1787_p13), %v1897_v22  }
 0x1ad   : > { %v1232_v52 = vadd.f32 %v2667_v49, %v2033_v20  ;;  %v1298_v50 = vadd.f32 %v1256_v39, %v432_v35  ;;  %v2036_v53 = vadd.f32 %v2035_v47, %v2034_v40  ;;  %v1259_v54 = vadd.f32 %v2661_v44, %v1258_v51  ;;  %1337 = sbr.rel (%p1787_p13) target bundleno = 446 (0x1be), region = 62  ;;  %v1338_v49 = vld [vmem:[#allocation2] sm:$0xff] (!%p1787_p13)  ;;  %v1340_v44 = vld [vmem:[#allocation2 + $0x10] sm:$0xff] (!%p1787_p13)  ;;  %1942 = vst [vmem:[%s2574_s26 + $0x48] sm:$0xff] (!%p1787_p13), %v1902_v25  }
 0x1ae   : > { %1332 = vst [vmem:[#allocation2 + $0xf0] sm:$0xff] %v1300_v45  ;;  %v1301_v57 = vadd.f32 %v1267_v37, %v435_v41  ;;  %v1857_v61 = vpack.c.bf16 (!%p1787_p13), %v1339_v60, %v1338_v49  ;;  %v1362_v32 = vld [vmem:[#allocation2 + $0xc0] sm:$0xff] (!%p1787_p13)  ;;  %v1364_v19 = vld [vmem:[#allocation2 + $0xd0] sm:$0xff] (!%p1787_p13) }
 0x1af   : > { %v1292_v38 = vadd.f32 %v1232_v52, %v426_v46  ;;  %1330 = vst [vmem:[#allocation2 + $0xe0] sm:$0xff] %v1298_v50  ;;  %v1235_v43 = vadd.f32 %v2669_v55, %v2036_v53  ;;  %v1299_v59 = vadd.f32 %v1259_v54, %v433_v48  ;;  %v1862_v55 = vpack.c.bf16 (!%p1787_p13), %v1341_v62, %v1340_v44  ;;  %v1365_v34 = vld [vmem:[#allocation2 + $0xd8] sm:$0xff] (!%p1787_p13) }
 0x1b0   : > { %1333 = vst [vmem:[#allocation2 + $0xf8] sm:$0xff] %v1301_v57  ;;  %1858 = vst [vmem:[%s2574_s26] sm:$0xff] (!%p1787_p13), %v1857_v61   ;;  %v1358_v24 = vld [vmem:[#allocation2 + $0xa0] sm:$0xff] (!%p1787_p13)  ;;  %v1363_v31 = vld [vmem:[#allocation2 + $0xc8] sm:$0xff] (!%p1787_p13)  ;;  %v1922_v20 = vpack.c.bf16 (!%p1787_p13), %v1365_v34, %v1364_v19 }
 0x1b1   : > { %1324 = vst [vmem:[#allocation2 + $0xb0] sm:$0xff] %v1292_v38  ;;  %v1293_v56 = vadd.f32 %v1235_v43, %v427_v58  ;;  %1331 = vst [vmem:[#allocation2 + $0xe8] sm:$0xff] %v1299_v59  ;;  %v1917_v33 = vpack.c.bf16 (!%p1787_p13), %v1363_v31, %v1362_v32 }
 0x1b2   : > { %1934 = vst [vmem:[%s2574_s26 + $0x8] sm:$0xff] (!%p1787_p13), %v1862_v55   ;;  %v1359_v27 = vld [vmem:[#allocation2 + $0xa8] sm:$0xff] (!%p1787_p13)  ;;  %1946 = vst [vmem:[%s2574_s26 + $0x68] sm:$0xff] (!%p1787_p13), %v1922_v20  }
 0x1b3   : > { %1325 = vst [vmem:[#allocation2 + $0xb8] sm:$0xff] %v1293_v56  ;;  %v1907_v29 = vpack.c.bf16 (!%p1787_p13), %v1359_v27, %v1358_v24  ;;  %1945 = vst [vmem:[%s2574_s26 + $0x60] sm:$0xff] (!%p1787_p13), %v1917_v33  }
 0x1b5   : > { %1943 = vst [vmem:[%s2574_s26 + $0x50] sm:$0xff] %v1907_v29   ;;  %v1368_v40 = vld [vmem:[#allocation2 + $0xf0] sm:$0xff] }
 0x1b6   : > { %v1366_v35 = vld [vmem:[#allocation2 + $0xe0] sm:$0xff] }
 0x1b7   : > { %v1369_v41 = vld [vmem:[#allocation2 + $0xf8] sm:$0xff] }
 0x1b8   : > { %v1360_v28 = vld [vmem:[#allocation2 + $0xb0] sm:$0xff]  ;;  %v1367_v36 = vld [vmem:[#allocation2 + $0xe8] sm:$0xff]  ;;  %v1932_v42 = vpack.c.bf16 %v1369_v41, %v1368_v40 }
 0x1b9   : > { %v1927_v39 = vpack.c.bf16 %v1367_v36, %v1366_v35 }
 0x1ba   : > { %v1361_v14 = vld [vmem:[#allocation2 + $0xb8] sm:$0xff]  ;;  %1948 = vst [vmem:[%s2574_s26 + $0x78] sm:$0xff] %v1932_v42  }
 0x1bb   : > { %v1912_v30 = vpack.c.bf16 %v1361_v14, %v1360_v28  ;;  %1947 = vst [vmem:[%s2574_s26 + $0x70] sm:$0xff] %v1927_v39  }
 0x1bd   : > { %1944 = vst [vmem:[%s2574_s26 + $0x58] sm:$0xff] %v1912_v30  }
 0x1be PF: > { %s12_s15 = sadd.s32 1, %s2351_s15   ;;  %s2722_s9 = smov %s2331_s10 }
 0x1bf   : > { %p9_p0 = scmp.ge.s32.totalorder %s12_s15, 38   ;;  %s2723_s10 = smov %s2420_s22 }
 0x1c0   : > { %s2724_s11 = smov %s2343_s13  ;;  %s2725_s12 = smov %s2347_s14 }
 0x1c1   : > { %s2726_s13 = smov %s2729_s16  ;;  %s2727_s14 = smov %s2733_s17 }
 0x1c2   :  { %11 = sbr.rel (!%p9_p0) target bundleno = 4 (0x4), region = 106 }

// kernel: forward.46
= control target key start
LH: loop header
LB: loop body
LE: loop exit
PB: predicated region body
PF: predicated region fallthrough
CT: control target
= control target key end

     0   :  { %s1561_s12 = smov 0   ;;  %s1563_s13 = smov 0   ;;  %s1873_s0 = inlined_call_operand.vmem [shape: bf16[2,512,128], index: 0, kind: input, shape index: {}]   ;;  %s1874_s1 = inlined_call_operand.vmem [shape: f32[2,1,128], index: 1, kind: input, shape index: {}]   ;;  %s1875_s2 = inlined_call_operand.vmem [shape: f32[2,1,128], index: 2, kind: input, shape index: {}]   ;;  %s1876_s3 = inlined_call_operand.vmem [shape: bf16[2,512,128], index: 3, kind: output, shape index: {}]  }
   0x1   :  { %s1565_s14 = smov 0  }
   0x2 LB: > { %s25_s15 = sadd.s32 1, %s1535_s13  ;;  %p1003_p0 = scmp.ge.s32.totalorder %s1539_s14, 1  ;;  %s1539_s14 = sphi %s1565_s14, %s13_s14   ;;  %s1535_s13 = sphi %s1563_s13, %s1878_s13   ;;  %s1531_s12 = sphi %s1561_s12, %s1877_s12  }
   0x3   : > { %p27_p1 = scmp.ge.s32.totalorder %s25_s15, 2  ;;  %p174_p2 = scmp.lt.s32.totalorder %s1539_s14, 3 }
   0x5   : > { %s1880_s15 = smov (%p27_p1, %s25_s15), 0  ;;  %p175_p3 = pnand %p1003_p0, %p174_p2 }
   0x6   : > { %p213_p4 = scmp.lt.s32.totalorder (!%p175_p3), %s1531_s12, 1  ;;  %v441_v0 = vlaneseq (!%p175_p3) }
   0x7   : > { %178 = sbr.rel (%p175_p3) target bundleno = 98 (0x62), region = 32 }
   0x8   : > { %v1581_v1 = vshrl.u32 (!%p175_p3), %v441_v0, 7 }
   0xa   : > { %v443_v5 = vsub.s32 (!%p175_p3), 0, %v1581_v1 }
   0xe   : > { %s1882_s12 = smov (!%p213_p4, %s1531_s12), 1 }
   0xf   : > { %s1075_s16 = sshll.u32 %s1882_s12, 8  ;;  %s224_s19 = scalar_lea.vmem %s1874_s1, %s1882_s12 }
  0x10   : > { %s1593_s22 = scalar_lea.vmem %s1873_s0, %s1075_s16  ;;  %s227_s25 = scalar_lea.vmem %s1875_s2, %s1882_s12  ;;  %v1599_v2 = vld [vmem:[%s224_s19] ss:$0 sm:$0xff] }
  0x11   : > { %v1142_v3 = vld [vmem:[%s1593_s22] sm:$0xff]   ;;  %v1429_v6 = vld [vmem:[%s1593_s22 + $0x8] sm:$0xff]   ;;  %v1430_v11 = vld [vmem:[%s1593_s22 + $0x10] sm:$0xff]   ;;  %s1699_s28 = scalar_lea.vmem %s1876_s3, %s1075_s16 }
  0x12   : > { %v303_v4 = vld [vmem:[%s227_s25] sm:$0x1]  ;;  %v1143_v7 = vunpack.c.l.bf16 %v1142_v3  ;;  %v1144_v8 = vunpack.c.h.bf16 %v1142_v3  ;;  %v1147_v10 = vunpack.c.l.bf16 %v1429_v6  ;;  %v1431_v12 = vld [vmem:[%s1593_s22 + $0x18] sm:$0xff]   ;;  %v1148_v13 = vunpack.c.h.bf16 %v1429_v6  ;;  %v1433_v18 = vld [vmem:[%s1593_s22 + $0x28] sm:$0xff]  }
  0x13   : > { %v438_v9 = vadd.f32 1e-05, %v303_v4  ;;  %v1151_v14 = vunpack.c.l.bf16 %v1430_v11  ;;  %v1152_v15 = vunpack.c.h.bf16 %v1430_v11  ;;  %v1155_v16 = vunpack.c.l.bf16 %v1431_v12  ;;  %v1432_v17 = vld [vmem:[%s1593_s22 + $0x20] sm:$0xff]   ;;  %v1434_v22 = vld [vmem:[%s1593_s22 + $0x30] sm:$0xff]   ;;  %v1435_v27 = vld [vmem:[%s1593_s22 + $0x38] sm:$0xff]  }
  0x14   : > { %v374_v19 = vsub.f32 %v1143_v7, %v1599_v2  ;;  %v375_v20 = vsub.f32 %v1144_v8, %v1599_v2  ;;  %v376_v21 = vsub.f32 %v1147_v10, %v1599_v2  ;;  %v377_v23 = vsub.f32 %v1148_v13, %v1599_v2  ;;  %v1436_v36 = vld [vmem:[%s1593_s22 + $0x40] sm:$0xff]   ;;  %v1437_v37 = vld [vmem:[%s1593_s22 + $0x48] sm:$0xff]   ;;  %v1438_v42 = vld [vmem:[%s1593_s22 + $0x50] sm:$0xff]  }
  0x15   : > { %1515 = vrsqrt.f32 %v438_v9  ;;  %v378_v24 = vsub.f32 %v1151_v14, %v1599_v2  ;;  %v379_v25 = vsub.f32 %v1152_v15, %v1599_v2  ;;  %v1156_v26 = vunpack.c.h.bf16 %v1431_v12  ;;  %v1439_v47 = vld [vmem:[%s1593_s22 + $0x58] sm:$0xff]   ;;  %v1440_v56 = vld [vmem:[%s1593_s22 + $0x60] sm:$0xff]   ;;  %v1642_v57 = vld [vmem:[%s1593_s22 + $0x68] sm:$0xff]  }
  0x16   : > { %v380_v28 = vsub.f32 %v1155_v16, %v1599_v2  ;;  %v1159_v29 = vunpack.c.l.bf16 %v1432_v17  ;;  %v1160_v30 = vunpack.c.h.bf16 %v1432_v17  ;;  %v1163_v31 = vunpack.c.l.bf16 %v1433_v18  ;;  %v1652_v62 = vld [vmem:[%s1593_s22 + $0x70] sm:$0xff]  }
  0x17   : > { %v381_v32 = vsub.f32 %v1156_v26, %v1599_v2  ;;  %v1164_v33 = vunpack.c.h.bf16 %v1433_v18  ;;  %v1167_v34 = vunpack.c.l.bf16 %v1434_v22  ;;  %v1168_v35 = vunpack.c.h.bf16 %v1434_v22 }
  0x18   : > { %v382_v38 = vsub.f32 %v1159_v29, %v1599_v2  ;;  %v383_v39 = vsub.f32 %v1160_v30, %v1599_v2  ;;  %v1623_v40 = vsub.f32 %v1163_v31, %v1599_v2  ;;  %v1171_v41 = vunpack.c.l.bf16 %v1435_v27 }
  0x19   : > { %v385_v43 = vsub.f32 %v1164_v33, %v1599_v2  ;;  %v1628_v44 = vsub.f32 %v1167_v34, %v1599_v2  ;;  %v1631_v45 = vsub.f32 %v1168_v35, %v1599_v2  ;;  %v1172_v46 = vunpack.c.h.bf16 %v1435_v27 }
  0x1a   : > { %v1635_v48 = vsub.f32 %v1171_v41, %v1599_v2  ;;  %v1175_v49 = vunpack.c.l.bf16 %v1436_v36  ;;  %v1176_v50 = vunpack.c.h.bf16 %v1436_v36  ;;  %v1179_v51 = vunpack.c.l.bf16 %v1437_v37 }
  0x1b   : > { %v1638_v52 = vsub.f32 %v1172_v46, %v1599_v2  ;;  %v1180_v53 = vunpack.c.h.bf16 %v1437_v37  ;;  %v1183_v54 = vunpack.c.l.bf16 %v1438_v42  ;;  %v1184_v55 = vunpack.c.h.bf16 %v1438_v42 }
  0x1c   : > { %v390_v58 = vsub.f32 %v1175_v49, %v1599_v2  ;;  %v1646_v59 = vsub.f32 %v1176_v50, %v1599_v2  ;;  %v1649_v60 = vsub.f32 %v1179_v51, %v1599_v2  ;;  %v1187_v61 = vunpack.c.l.bf16 %v1439_v47 }
  0x1d   : > { %v1655_v63 = vsub.f32 %v1180_v53, %v1599_v2  ;;  %v1658_v0 = vsub.f32 %v1183_v54, %v1599_v2  ;;  %v1661_v3 = vsub.f32 %v1184_v55, %v1599_v2  ;;  %v1188_v4 = vunpack.c.h.bf16 %v1439_v47 }
  0x1e   : > { %v1664_v7 = vsub.f32 %v1187_v61, %v1599_v2  ;;  %v1191_v8 = vunpack.c.l.bf16 %v1440_v56  ;;  %v1192_v9 = vunpack.c.h.bf16 %v1440_v56  ;;  %v1195_v10 = vunpack.c.l.bf16 %v1642_v57 }
  0x1f   : > { %v1516_v6 = vpop.eup %1515  ;;  %v1672_v12 = vsub.f32 %v1188_v4, %v1599_v2  ;;  %v1196_v13 = vunpack.c.h.bf16 %v1642_v57  ;;  %v1199_v14 = vunpack.c.l.bf16 %v1652_v62  ;;  %v1200_v1 = vunpack.c.h.bf16 %v1652_v62 }
  0x20   : > { %v1669_v11 = vrot.slane %v1516_v6, %v443_v5  ;;  %v1677_v15 = vsub.f32 %v1191_v8, %v1599_v2  ;;  %v1680_v16 = vsub.f32 %v1192_v9, %v1599_v2  ;;  %v1683_v17 = vsub.f32 %v1195_v10, %v1599_v2 }
  0x22   : > { %v446_v5 = vmul.f32 %v1669_v11, %v374_v19  ;;  %v447_v18 = vmul.f32 %v1669_v11, %v375_v20  ;;  %v448_v22 = vmul.f32 %v1669_v11, %v376_v21  ;;  %v449_v26 = vmul.f32 %v1669_v11, %v377_v23 }
  0x23   : > { %v450_v27 = vmul.f32 %v1669_v11, %v378_v24  ;;  %v451_v29 = vmul.f32 %v1669_v11, %v379_v25  ;;  %v452_v30 = vmul.f32 %v1669_v11, %v380_v28  ;;  %v453_v31 = vmul.f32 %v1669_v11, %v381_v32 }
  0x24   : > { %v510_v33 = vmax.f32 %v446_v5, 0.0  ;;  %v511_v34 = vmax.f32 %v447_v18, 0.0  ;;  %v512_v35 = vmax.f32 %v448_v22, 0.0  ;;  %v513_v36 = vmax.f32 %v449_v26, 0.0 }
  0x25   : > { %v514_v19 = vmax.f32 %v450_v27, 0.0  ;;  %v515_v20 = vmax.f32 %v451_v29, 0.0  ;;  %v516_v21 = vmax.f32 %v452_v30, 0.0  ;;  %v517_v23 = vmax.f32 %v453_v31, 0.0 }
  0x26   : > { %v1272_v24 = vpack.c.bf16 %v511_v34, %v510_v33  ;;  %v1277_v25 = vpack.c.bf16 %v513_v36, %v512_v35  ;;  %v454_v28 = vmul.f32 %v1669_v11, %v382_v38  ;;  %v455_v32 = vmul.f32 %v1669_v11, %v383_v39  ;;  %v1444_v35 = vld [vmem:[%s1593_s22 + $0x80] sm:$0xff]  }
  0x27   : > { %v1282_v37 = vpack.c.bf16 %v515_v20, %v514_v19  ;;  %v1287_v41 = vpack.c.bf16 %v517_v23, %v516_v21  ;;  %v456_v42 = vmul.f32 %v1669_v11, %v1623_v40  ;;  %v457_v46 = vmul.f32 %v1669_v11, %v385_v43 }
  0x28   : > { %1273 = vst [vmem:[%s1699_s28] sm:$0xff] %v1272_v24   ;;  %1460 = vst [vmem:[%s1699_s28 + $0x8] sm:$0xff] %v1277_v25   ;;  %v518_v47 = vmax.f32 %v454_v28, 0.0  ;;  %v519_v49 = vmax.f32 %v455_v32, 0.0  ;;  %v458_v50 = vmul.f32 %v1669_v11, %v1628_v44  ;;  %v459_v38 = vmul.f32 %v1669_v11, %v1631_v45 }
  0x29   : > { %1461 = vst [vmem:[%s1699_s28 + $0x10] sm:$0xff] %v1282_v37   ;;  %1462 = vst [vmem:[%s1699_s28 + $0x18] sm:$0xff] %v1287_v41   ;;  %v520_v39 = vmax.f32 %v456_v42, 0.0  ;;  %v521_v51 = vmax.f32 %v457_v46, 0.0  ;;  %v460_v40 = vmul.f32 %v1669_v11, %v1635_v48  ;;  %v461_v43 = vmul.f32 %v1669_v11, %v1638_v52 }
  0x2a   : > { %v1292_v53 = vpack.c.bf16 %v519_v49, %v518_v47  ;;  %v522_v54 = vmax.f32 %v458_v50, 0.0  ;;  %v523_v55 = vmax.f32 %v459_v38, 0.0  ;;  %v462_v44 = vmul.f32 %v1669_v11, %v390_v58  ;;  %v1446_v49 = vld [vmem:[%s1593_s22 + $0x90] sm:$0xff]  }
  0x2b   : > { %v1297_v56 = vpack.c.bf16 %v521_v51, %v520_v39  ;;  %v524_v61 = vmax.f32 %v460_v40, 0.0  ;;  %v525_v45 = vmax.f32 %v461_v43, 0.0  ;;  %v463_v4 = vmul.f32 %v1669_v11, %v1646_v59 }
  0x2c   : > { %1463 = vst [vmem:[%s1699_s28 + $0x20] sm:$0xff] %v1292_v53   ;;  %v1302_v6 = vpack.c.bf16 %v523_v55, %v522_v54  ;;  %v526_v8 = vmax.f32 %v462_v44, 0.0  ;;  %v464_v48 = vmul.f32 %v1669_v11, %v1649_v60  ;;  %v465_v52 = vmul.f32 %v1669_v11, %v1655_v63  ;;  %v1447_v55 = vld [vmem:[%s1593_s22 + $0x98] sm:$0xff]  }
  0x2d   : > { %1464 = vst [vmem:[%s1699_s28 + $0x28] sm:$0xff] %v1297_v56   ;;  %v1307_v9 = vpack.c.bf16 %v525_v45, %v524_v61  ;;  %v527_v10 = vmax.f32 %v463_v4, 0.0  ;;  %v466_v58 = vmul.f32 %v1669_v11, %v1658_v0  ;;  %v467_v59 = vmul.f32 %v1669_v11, %v1661_v3 }
  0x2e   : > { %1465 = vst [vmem:[%s1699_s28 + $0x30] sm:$0xff] %v1302_v6   ;;  %v528_v5 = vmax.f32 %v464_v48, 0.0  ;;  %v529_v18 = vmax.f32 %v465_v52, 0.0  ;;  %v468_v60 = vmul.f32 %v1669_v11, %v1664_v7  ;;  %v469_v63 = vmul.f32 %v1669_v11, %v1672_v12  ;;  %v1443_v7 = vld [vmem:[%s1593_s22 + $0x78] sm:$0xff]   ;;  %v1448_v52 = vld [vmem:[%s1593_s22 + $0xa0] sm:$0xff]  }
  0x2f   : > { %1466 = vst [vmem:[%s1699_s28 + $0x38] sm:$0xff] %v1307_v9   ;;  %v1312_v22 = vpack.c.bf16 %v527_v10, %v526_v8  ;;  %v530_v26 = vmax.f32 %v466_v58, 0.0  ;;  %v531_v0 = vmax.f32 %v467_v59, 0.0  ;;  %v470_v27 = vmul.f32 %v1669_v11, %v1677_v15 }
  0x30   : > { %v1317_v3 = vpack.c.bf16 %v529_v18, %v528_v5  ;;  %v532_v29 = vmax.f32 %v468_v60, 0.0  ;;  %v533_v30 = vmax.f32 %v469_v63, 0.0  ;;  %v471_v31 = vmul.f32 %v1669_v11, %v1680_v16 }
  0x31   : > { %1467 = vst [vmem:[%s1699_s28 + $0x40] sm:$0xff] %v1312_v22   ;;  %v1322_v12 = vpack.c.bf16 %v531_v0, %v530_v26  ;;  %v534_v33 = vmax.f32 %v470_v27, 0.0  ;;  %v401_v34 = vsub.f32 %v1196_v13, %v1599_v2  ;;  %v472_v15 = vmul.f32 %v1669_v11, %v1683_v17  ;;  %v1445_v17 = vld [vmem:[%s1593_s22 + $0x88] sm:$0xff]  }
  0x32   : > { %1468 = vst [vmem:[%s1699_s28 + $0x48] sm:$0xff] %v1317_v3   ;;  %v1327_v36 = vpack.c.bf16 %v533_v30, %v532_v29  ;;  %v535_v19 = vmax.f32 %v471_v31, 0.0  ;;  %v402_v16 = vsub.f32 %v1199_v14, %v1599_v2  ;;  %v403_v20 = vsub.f32 %v1200_v1, %v1599_v2  ;;  %v1449_v22 = vld [vmem:[%s1593_s22 + $0xa8] sm:$0xff]  }
  0x33   : > { %1469 = vst [vmem:[%s1699_s28 + $0x50] sm:$0xff] %v1322_v12   ;;  %v473_v57 = vmul.f32 %v1669_v11, %v401_v34  ;;  %v536_v13 = vmax.f32 %v472_v15, 0.0  ;;  %v1203_v21 = vunpack.c.l.bf16 %v1443_v7  ;;  %v1204_v23 = vunpack.c.h.bf16 %v1443_v7 }
  0x34   : > { %1470 = vst [vmem:[%s1699_s28 + $0x58] sm:$0xff] %v1327_v36   ;;  %v1332_v24 = vpack.c.bf16 %v535_v19, %v534_v33  ;;  %v474_v25 = vmul.f32 %v1669_v11, %v402_v16  ;;  %v475_v28 = vmul.f32 %v1669_v11, %v403_v20  ;;  %v1207_v14 = vunpack.c.l.bf16 %v1444_v35 }
  0x35   : > { %v537_v32 = vmax.f32 %v473_v57, 0.0  ;;  %v404_v62 = vsub.f32 %v1203_v21, %v1599_v2  ;;  %v405_v1 = vsub.f32 %v1204_v23, %v1599_v2  ;;  %v1208_v37 = vunpack.c.h.bf16 %v1444_v35  ;;  %v1450_v35 = vld [vmem:[%s1593_s22 + $0xb0] sm:$0xff]  }
  0x36   : > { %1471 = vst [vmem:[%s1699_s28 + $0x60] sm:$0xff] %v1332_v24   ;;  %v538_v41 = vmax.f32 %v474_v25, 0.0  ;;  %v539_v42 = vmax.f32 %v475_v28, 0.0  ;;  %v406_v46 = vsub.f32 %v1207_v14, %v1599_v2  ;;  %v1211_v47 = vunpack.c.l.bf16 %v1445_v17 }
  0x37   : > { %v1337_v50 = vpack.c.bf16 %v537_v32, %v536_v13  ;;  %v476_v38 = vmul.f32 %v1669_v11, %v404_v62  ;;  %v477_v39 = vmul.f32 %v1669_v11, %v405_v1  ;;  %v407_v51 = vsub.f32 %v1208_v37, %v1599_v2 }
  0x38   : > { %v1342_v40 = vpack.c.bf16 %v539_v42, %v538_v41  ;;  %v478_v43 = vmul.f32 %v1669_v11, %v406_v46  ;;  %v1212_v53 = vunpack.c.h.bf16 %v1445_v17  ;;  %v408_v54 = vsub.f32 %v1211_v47, %v1599_v2  ;;  %v1451_v17 = vld [vmem:[%s1593_s22 + $0xb8] sm:$0xff]   ;;  %v1452_v41 = vld [vmem:[%s1593_s22 + $0xc0] sm:$0xff]  }
  0x39   : > { %1472 = vst [vmem:[%s1699_s28 + $0x68] sm:$0xff] %v1337_v50   ;;  %v540_v44 = vmax.f32 %v476_v38, 0.0  ;;  %v541_v56 = vmax.f32 %v477_v39, 0.0  ;;  %v479_v61 = vmul.f32 %v1669_v11, %v407_v51  ;;  %v1215_v45 = vunpack.c.l.bf16 %v1446_v49 }
  0x3a   : > { %1473 = vst [vmem:[%s1699_s28 + $0x70] sm:$0xff] %v1342_v40   ;;  %v542_v4 = vmax.f32 %v478_v43, 0.0  ;;  %v409_v6 = vsub.f32 %v1212_v53, %v1599_v2  ;;  %v480_v8 = vmul.f32 %v1669_v11, %v408_v54  ;;  %v1216_v48 = vunpack.c.h.bf16 %v1446_v49  ;;  %v1453_v40 = vld [vmem:[%s1593_s22 + $0xc8] sm:$0xff]  }
  0x3b   : > { %v1347_v9 = vpack.c.bf16 %v541_v56, %v540_v44  ;;  %v543_v10 = vmax.f32 %v479_v61, 0.0  ;;  %v410_v58 = vsub.f32 %v1215_v45, %v1599_v2  ;;  %v1219_v59 = vunpack.c.l.bf16 %v1447_v55 }
  0x3c   : > { %v481_v5 = vmul.f32 %v1669_v11, %v409_v6  ;;  %v544_v18 = vmax.f32 %v480_v8, 0.0  ;;  %v411_v60 = vsub.f32 %v1216_v48, %v1599_v2  ;;  %v1220_v63 = vunpack.c.h.bf16 %v1447_v55 }
  0x3d   : > { %1474 = vst [vmem:[%s1699_s28 + $0x78] sm:$0xff] %v1347_v9   ;;  %v1352_v26 = vpack.c.bf16 %v543_v10, %v542_v4  ;;  %v482_v0 = vmul.f32 %v1669_v11, %v410_v58  ;;  %v412_v27 = vsub.f32 %v1219_v59, %v1599_v2  ;;  %v1223_v3 = vunpack.c.l.bf16 %v1448_v52 }
  0x3e   : > { %v545_v29 = vmax.f32 %v481_v5, 0.0  ;;  %v483_v30 = vmul.f32 %v1669_v11, %v411_v60  ;;  %v413_v31 = vsub.f32 %v1220_v63, %v1599_v2  ;;  %v1224_v7 = vunpack.c.h.bf16 %v1448_v52  ;;  %v1454_v52 = vld [vmem:[%s1593_s22 + $0xd0] sm:$0xff]  }
  0x3f   : > { %1475 = vst [vmem:[%s1699_s28 + $0x80] sm:$0xff] %v1352_v26   ;;  %v546_v12 = vmax.f32 %v482_v0, 0.0  ;;  %v484_v33 = vmul.f32 %v1669_v11, %v412_v27  ;;  %v414_v34 = vsub.f32 %v1223_v3, %v1599_v2  ;;  %v1227_v15 = vunpack.c.l.bf16 %v1449_v22 }
  0x40   : > { %v1357_v36 = vpack.c.bf16 %v545_v29, %v544_v18  ;;  %v547_v19 = vmax.f32 %v483_v30, 0.0  ;;  %v485_v16 = vmul.f32 %v1669_v11, %v413_v31  ;;  %v415_v20 = vsub.f32 %v1224_v7, %v1599_v2 }
  0x41   : > { %v548_v57 = vmax.f32 %v484_v33, 0.0  ;;  %v486_v13 = vmul.f32 %v1669_v11, %v414_v34  ;;  %v1228_v21 = vunpack.c.h.bf16 %v1449_v22  ;;  %v416_v23 = vsub.f32 %v1227_v15, %v1599_v2  ;;  %v1455_v22 = vld [vmem:[%s1593_s22 + $0xd8] sm:$0xff]  }
  0x42   : > { %1476 = vst [vmem:[%s1699_s28 + $0x88] sm:$0xff] %v1357_v36   ;;  %v1362_v24 = vpack.c.bf16 %v547_v19, %v546_v12  ;;  %v549_v25 = vmax.f32 %v485_v16, 0.0  ;;  %v487_v28 = vmul.f32 %v1669_v11, %v415_v20  ;;  %v1231_v14 = vunpack.c.l.bf16 %v1450_v35  ;;  %v1456_v12 = vld [vmem:[%s1593_s22 + $0xe0] sm:$0xff]  }
  0x43   : > { %v550_v32 = vmax.f32 %v486_v13, 0.0  ;;  %v417_v62 = vsub.f32 %v1228_v21, %v1599_v2  ;;  %v488_v1 = vmul.f32 %v1669_v11, %v416_v23  ;;  %v1232_v37 = vunpack.c.h.bf16 %v1450_v35 }
  0x44   : > { %1477 = vst [vmem:[%s1699_s28 + $0x90] sm:$0xff] %v1362_v24   ;;  %v1367_v42 = vpack.c.bf16 %v549_v25, %v548_v57  ;;  %v551_v46 = vmax.f32 %v487_v28, 0.0  ;;  %v418_v47 = vsub.f32 %v1231_v14, %v1599_v2  ;;  %v1235_v49 = vunpack.c.l.bf16 %v1451_v17  ;;  %v1457_v57 = vld [vmem:[%s1593_s22 + $0xe8] sm:$0xff]  }
  0x45   : > { %v489_v50 = vmul.f32 %v1669_v11, %v417_v62  ;;  %v552_v38 = vmax.f32 %v488_v1, 0.0  ;;  %v419_v39 = vsub.f32 %v1232_v37, %v1599_v2  ;;  %v1236_v51 = vunpack.c.h.bf16 %v1451_v17 }
  0x46   : > { %1478 = vst [vmem:[%s1699_s28 + $0x98] sm:$0xff] %v1367_v42   ;;  %v1372_v43 = vpack.c.bf16 %v551_v46, %v550_v32  ;;  %v490_v53 = vmul.f32 %v1669_v11, %v418_v47  ;;  %v420_v54 = vsub.f32 %v1235_v49, %v1599_v2  ;;  %v1239_v55 = vunpack.c.l.bf16 %v1452_v41 }
  0x47   : > { %v553_v44 = vmax.f32 %v489_v50, 0.0  ;;  %v491_v56 = vmul.f32 %v1669_v11, %v419_v39  ;;  %v421_v61 = vsub.f32 %v1236_v51, %v1599_v2  ;;  %v1240_v45 = vunpack.c.h.bf16 %v1452_v41  ;;  %v1458_v41 = vld [vmem:[%s1593_s22 + $0xf0] sm:$0xff]  }
  0x48   : > { %1479 = vst [vmem:[%s1699_s28 + $0xa0] sm:$0xff] %v1372_v43   ;;  %v554_v4 = vmax.f32 %v490_v53, 0.0  ;;  %v492_v6 = vmul.f32 %v1669_v11, %v420_v54  ;;  %v422_v8 = vsub.f32 %v1239_v55, %v1599_v2  ;;  %v1243_v48 = vunpack.c.l.bf16 %v1453_v40 }
  0x49   : > { %v1377_v9 = vpack.c.bf16 %v553_v44, %v552_v38  ;;  %v555_v10 = vmax.f32 %v491_v56, 0.0  ;;  %v493_v58 = vmul.f32 %v1669_v11, %v421_v61  ;;  %v423_v59 = vsub.f32 %v1240_v45, %v1599_v2 }
  0x4a   : > { %v556_v5 = vmax.f32 %v492_v6, 0.0  ;;  %v494_v18 = vmul.f32 %v1669_v11, %v422_v8  ;;  %v1244_v60 = vunpack.c.h.bf16 %v1453_v40  ;;  %v424_v63 = vsub.f32 %v1243_v48, %v1599_v2  ;;  %v1459_v40 = vld [vmem:[%s1593_s22 + $0xf8] sm:$0xff]  }
  0x4b   : > { %1480 = vst [vmem:[%s1699_s28 + $0xa8] sm:$0xff] %v1377_v9   ;;  %v1382_v26 = vpack.c.bf16 %v555_v10, %v554_v4  ;;  %v557_v0 = vmax.f32 %v493_v58, 0.0  ;;  %v495_v27 = vmul.f32 %v1669_v11, %v423_v59  ;;  %v1247_v3 = vunpack.c.l.bf16 %v1454_v52 }
  0x4c   : > { %v558_v29 = vmax.f32 %v494_v18, 0.0  ;;  %v425_v30 = vsub.f32 %v1244_v60, %v1599_v2  ;;  %v496_v31 = vmul.f32 %v1669_v11, %v424_v63  ;;  %v1248_v7 = vunpack.c.h.bf16 %v1454_v52 }
  0x4d   : > { %1481 = vst [vmem:[%s1699_s28 + $0xb0] sm:$0xff] %v1382_v26   ;;  %v1387_v33 = vpack.c.bf16 %v557_v0, %v556_v5  ;;  %v559_v34 = vmax.f32 %v495_v27, 0.0  ;;  %v426_v15 = vsub.f32 %v1247_v3, %v1599_v2  ;;  %v1251_v35 = vunpack.c.l.bf16 %v1455_v22 }
  0x4e   : > { %v497_v36 = vmul.f32 %v1669_v11, %v425_v30  ;;  %v560_v19 = vmax.f32 %v496_v31, 0.0  ;;  %v427_v16 = vsub.f32 %v1248_v7, %v1599_v2  ;;  %v1252_v20 = vunpack.c.h.bf16 %v1455_v22 }
  0x4f   : > { %1482 = vst [vmem:[%s1699_s28 + $0xb8] sm:$0xff] %v1387_v33   ;;  %v1392_v13 = vpack.c.bf16 %v559_v34, %v558_v29  ;;  %v498_v21 = vmul.f32 %v1669_v11, %v426_v15  ;;  %v428_v23 = vsub.f32 %v1251_v35, %v1599_v2  ;;  %v1255_v17 = vunpack.c.l.bf16 %v1456_v12 }
  0x50   : > { %v561_v24 = vmax.f32 %v497_v36, 0.0  ;;  %v499_v25 = vmul.f32 %v1669_v11, %v427_v16  ;;  %v429_v28 = vsub.f32 %v1252_v20, %v1599_v2  ;;  %v1256_v14 = vunpack.c.h.bf16 %v1456_v12 }
  0x51   : > { %1483 = vst [vmem:[%s1699_s28 + $0xc0] sm:$0xff] %v1392_v13   ;;  %v562_v32 = vmax.f32 %v498_v21, 0.0  ;;  %v500_v62 = vmul.f32 %v1669_v11, %v428_v23  ;;  %v430_v1 = vsub.f32 %v1255_v17, %v1599_v2  ;;  %v1259_v37 = vunpack.c.l.bf16 %v1457_v57 }
  0x52   : > { %v1397_v42 = vpack.c.bf16 %v561_v24, %v560_v19  ;;  %v563_v46 = vmax.f32 %v499_v25, 0.0  ;;  %v501_v47 = vmul.f32 %v1669_v11, %v429_v28  ;;  %v431_v49 = vsub.f32 %v1256_v14, %v1599_v2 }
  0x53   : > { %v564_v50 = vmax.f32 %v500_v62, 0.0  ;;  %v502_v38 = vmul.f32 %v1669_v11, %v430_v1  ;;  %v1260_v39 = vunpack.c.h.bf16 %v1457_v57  ;;  %v432_v51 = vsub.f32 %v1259_v37, %v1599_v2 }
  0x54   : > { %1484 = vst [vmem:[%s1699_s28 + $0xc8] sm:$0xff] %v1397_v42   ;;  %v1402_v43 = vpack.c.bf16 %v563_v46, %v562_v32  ;;  %v565_v53 = vmax.f32 %v501_v47, 0.0  ;;  %v503_v54 = vmul.f32 %v1669_v11, %v431_v49  ;;  %v1263_v55 = vunpack.c.l.bf16 %v1458_v41 }
  0x55   : > { %v566_v44 = vmax.f32 %v502_v38, 0.0  ;;  %v433_v56 = vsub.f32 %v1260_v39, %v1599_v2  ;;  %v504_v61 = vmul.f32 %v1669_v11, %v432_v51  ;;  %v1264_v45 = vunpack.c.h.bf16 %v1458_v41 }
  0x56   : > { %1485 = vst [vmem:[%s1699_s28 + $0xd0] sm:$0xff] %v1402_v43   ;;  %v1407_v4 = vpack.c.bf16 %v565_v53, %v564_v50  ;;  %v567_v6 = vmax.f32 %v503_v54, 0.0  ;;  %v434_v8 = vsub.f32 %v1263_v55, %v1599_v2  ;;  %v1267_v48 = vunpack.c.l.bf16 %v1459_v40 }
  0x57   : > { %v505_v52 = vmul.f32 %v1669_v11, %v433_v56  ;;  %v568_v9 = vmax.f32 %v504_v61, 0.0  ;;  %v435_v10 = vsub.f32 %v1264_v45, %v1599_v2  ;;  %v1268_v58 = vunpack.c.h.bf16 %v1459_v40 }
  0x58   : > { %1486 = vst [vmem:[%s1699_s28 + $0xd8] sm:$0xff] %v1407_v4   ;;  %v1412_v59 = vpack.c.bf16 %v567_v6, %v566_v44  ;;  %v506_v5 = vmul.f32 %v1669_v11, %v434_v8  ;;  %v436_v18 = vsub.f32 %v1267_v48, %v1599_v2 }
  0x59   : > { %v569_v60 = vmax.f32 %v505_v52, 0.0  ;;  %v507_v63 = vmul.f32 %v1669_v11, %v435_v10  ;;  %v437_v22 = vsub.f32 %v1268_v58, %v1599_v2 }
  0x5a   : > { %1487 = vst [vmem:[%s1699_s28 + $0xe0] sm:$0xff] %v1412_v59   ;;  %v570_v26 = vmax.f32 %v506_v5, 0.0  ;;  %v508_v0 = vmul.f32 %v1669_v11, %v436_v18 }
  0x5b   : > { %v1417_v27 = vpack.c.bf16 %v569_v60, %v568_v9  ;;  %v571_v3 = vmax.f32 %v507_v63, 0.0  ;;  %v509_v29 = vmul.f32 %v1669_v11, %v437_v22 }
  0x5c   : > { %v572_v30 = vmax.f32 %v508_v0, 0.0 }
  0x5d   : > { %1488 = vst [vmem:[%s1699_s28 + $0xe8] sm:$0xff] %v1417_v27   ;;  %v1422_v31 = vpack.c.bf16 %v571_v3, %v570_v26  ;;  %v573_v7 = vmax.f32 %v509_v29, 0.0 }
  0x5f   : > { %1489 = vst [vmem:[%s1699_s28 + $0xf0] sm:$0xff] %v1422_v31   ;;  %v1427_v12 = vpack.c.bf16 %v573_v7, %v572_v30 }
  0x61   : > { %1490 = vst [vmem:[%s1699_s28 + $0xf8] sm:$0xff] %v1427_v12  }
  0x62 PF: > { %s13_s14 = sadd.s32 1, %s1539_s14   ;;  %s1877_s12 = smov %s1535_s13 }
  0x63   : > { %p10_p5 = scmp.ge.s32.totalorder %s13_s14, 4   ;;  %s1878_s13 = smov %s1880_s15 }
  0x65   :  { %12 = sbr.rel (!%p10_p5) target bundleno = 2 (0x2), region = 68 }

// kernel: forward.51
= control target key start
LH: loop header
LB: loop body
LE: loop exit
PB: predicated region body
PF: predicated region fallthrough
CT: control target
= control target key end

     0   :  { %v214_v0 = vmov 0.0   ;;  %vm215_vm0 = vmmov 0   ;;  %s261_s1 = inlined_call_operand.vmem [shape: bf16[128,128], index: 1, kind: input, shape index: {}]   ;;  %s262_s0 = inlined_call_operand.vmem [shape: bf16[16,128], index: 0, kind: input, shape index: {}]   ;;  %s263_s2 = inlined_call_operand.vmem [shape: bf16[16,128], index: 2, kind: output, shape index: {}]  }
   0x1   :  { %183 = vmatprep.subr.bf16.mxu0 %v214_v0  ;;  %v205_v1 = vld [vmem:[%s261_s1] sm:$0xff]   ;;  %199 = vmatprep.mubr.msk.bf16.mxu0 %vm215_vm0, %v214_v0  ;;  %v206_v2 = vld [vmem:[%s261_s1 + $0x8] sm:$0xff]   ;;  %v207_v3 = vld [vmem:[%s261_s1 + $0x10] sm:$0xff]  }
   0x2   :  { %184 = vmatpush3.bf16.msra.mxu0 %v205_v1  ;;  %v208_v4 = vld [vmem:[%s261_s1 + $0x18] sm:$0xff]   ;;  %v209_v5 = vld [vmem:[%s261_s1 + $0x20] sm:$0xff]   ;;  %v210_v6 = vld [vmem:[%s261_s1 + $0x28] sm:$0xff]  }
   0x3   :  { %185 = vmatprep.subr.bf16.mxu0 %v214_v0  ;;  %v211_v7 = vld [vmem:[%s261_s1 + $0x30] sm:$0xff]   ;;  %v212_v8 = vld [vmem:[%s261_s1 + $0x38] sm:$0xff]   ;;  %v213_v9 = vld [vmem:[%s262_s0] sm:$0xff]  }
   0x6   :  { %186 = vmatpush3.bf16.msra.mxu0 %v206_v2 }
   0x7   :  { %187 = vmatprep.subr.bf16.mxu0 %v214_v0 }
   0xa   :  { %188 = vmatpush3.bf16.msra.mxu0 %v207_v3 }
   0xb   :  { %189 = vmatprep.subr.bf16.mxu0 %v214_v0 }
   0xe   :  { %190 = vmatpush3.bf16.msra.mxu0 %v208_v4 }
   0xf   :  { %191 = vmatprep.subr.bf16.mxu0 %v214_v0 }
  0x12   :  { %192 = vmatpush3.bf16.msra.mxu0 %v209_v5 }
  0x13   :  { %193 = vmatprep.subr.bf16.mxu0 %v214_v0 }
  0x16   :  { %194 = vmatpush3.bf16.msra.mxu0 %v210_v6 }
  0x17   :  { %195 = vmatprep.subr.bf16.mxu0 %v214_v0 }
  0x1a   :  { %196 = vmatpush3.bf16.msra.mxu0 %v211_v7 }
  0x1b   :  { %197 = vmatprep.subr.bf16.mxu0 %v214_v0 }
  0x1e   :  { %198 = vmatpush3.bf16.msra.mxu0 %v212_v8 }
  0x21   :  { %200 = vmatmul.mubr.bf16.vlgmr.msra.gmra.mrb[0].mxu0 %v213_v9 }
  0xf4   :  { %v126_v10 = vpop.f32.mrb[0].mxu0 }
  0xf5   :  { %v201_v11 = vpop.f32.mrb[1].mxu0 }
  0xf6   :  { %v129_v12 = vpop.f32.mrb[2].mxu0 }
  0xf7   :  { %v172_v13 = vpack.c.bf16 %v129_v12, %v126_v10  ;;  %v202_v14 = vpop.f32.mrb[3].mxu0 }
  0xf9   :  { %173 = vst [vmem:[%s263_s2] sm:$0xff] %v172_v13  }

// kernel: forward.52
= control target key start
LH: loop header
LB: loop body
LE: loop exit
PB: predicated region body
PF: predicated region fallthrough
CT: control target
= control target key end

     0   :  { %s374_s9 = smov 0   ;;  %s376_s10 = smov 0   ;;  %s410_s0 = inlined_call_operand.vmem [shape: bf16[8,16,128], index: 0, kind: input, shape index: {}]   ;;  %s411_s1 = inlined_call_operand.vmem [shape: f32[8,1,128], index: 1, kind: output, shape index: {0}]   ;;  %s412_s2 = inlined_call_operand.vmem [shape: f32[8,1,128], index: 2, kind: output, shape index: {1}]  }
   0x1   :  { %s378_s11 = smov 0  }
   0x2 LB: > { %s25_s12 = sadd.s32 1, %s352_s10  ;;  %p299_p0 = scmp.ge.s32.totalorder %s356_s11, 1  ;;  %s356_s11 = sphi %s378_s11, %s13_s11   ;;  %s352_s10 = sphi %s376_s10, %s414_s10   ;;  %s348_s9 = sphi %s374_s9, %s413_s9  }
   0x3   : > { %p27_p1 = scmp.ge.s32.totalorder %s25_s12, 8  ;;  %p134_p2 = scmp.lt.s32.totalorder %s356_s11, 9 }
   0x5   : > { %s416_s12 = smov (%p27_p1, %s25_s12), 0  ;;  %p135_p3 = pnand %p299_p0, %p134_p2 }
   0x6   : > { %p162_p4 = scmp.lt.s32.totalorder (!%p135_p3), %s348_s9, 7  ;;  %v358_v0 = vmov (!%p135_p3), 0.0  }
   0x7   : > { %138 = sbr.rel (%p135_p3) target bundleno = 39 (0x27), region = 24 }
   0xe   : > { %s418_s9 = smov (!%p162_p4, %s348_s9), 7 }
   0xf   : > { %s304_s13 = sshll.u32 %s418_s9, 3  ;;  %s173_s16 = scalar_lea.vmem %s411_s1, %s418_s9 }
  0x10   : > { %s169_s19 = scalar_lea.vmem %s410_s0, %s304_s13  ;;  %181 = vst [vmem:[%s173_s16] sm:$0x1] %v358_v0  ;;  %s176_s22 = scalar_lea.vmem %s412_s2, %s418_s9 }
  0x11   : > { %v306_v1 = vld [vmem:[%s169_s19] sm:$0xff]   ;;  %182 = vst [vmem:[%s176_s22] sm:$0x1] %v358_v0 }
  0x12   : > { %v307_v2 = vunpack.c.l.bf16 %v306_v1  ;;  %v308_v3 = vunpack.c.h.bf16 %v306_v1 }
  0x14   : > { %v198_v4 = vmul.f32 %v307_v2, %v307_v2  ;;  %v199_v5 = vmul.f32 %v308_v3, %v308_v3  ;;  %v188_v6 = vadd.f32 %v308_v3, %v307_v2 }
  0x16   : > { %v189_v7 = vrot.slane %v188_v6, 4  ;;  %v200_v8 = vadd.f32 %v199_v5, %v198_v4 }
  0x17   : > { %v187_v17 = vld [vmem:[%s173_s16] sm:$0x1] }
  0x18   : > { %v190_v9 = vadd.f32 %v189_v7, %v188_v6  ;;  %v201_v10 = vrot.slane %v200_v8, 4  ;;  %v197_v20 = vld [vmem:[%s176_s22] sm:$0x1] }
  0x1a   : > { %v191_v11 = vrot.slane %v190_v9, 2  ;;  %v202_v12 = vadd.f32 %v201_v10, %v200_v8 }
  0x1c   : > { %v192_v13 = vadd.f32 %v191_v11, %v190_v9  ;;  %v203_v14 = vrot.slane %v202_v12, 2 }
  0x1e   : > { %v193_v15 = vrot.slane %v192_v13, 1  ;;  %v204_v16 = vadd.f32 %v203_v14, %v202_v12 }
  0x20   : > { %v194_v18 = vadd.f32 %v193_v15, %v192_v13  ;;  %v205_v19 = vrot.slane %v204_v16, 1 }
  0x22   : > { %v195_v21 = vadd.f32 %v194_v18, %v187_v17  ;;  %v206_v22 = vadd.f32 %v205_v19, %v204_v16 }
  0x24   : > { %196 = vst [vmem:[%s173_s16] sm:$0x1] %v195_v21  ;;  %v207_v23 = vadd.f32 %v206_v22, %v197_v20 }
  0x26   : > { %208 = vst [vmem:[%s176_s22] sm:$0x1] %v207_v23 }
  0x27 PF: > { %s13_s11 = sadd.s32 1, %s356_s11   ;;  %s413_s9 = smov %s352_s10 }
  0x28   : > { %p10_p5 = scmp.ge.s32.totalorder %s13_s11, 10   ;;  %s414_s10 = smov %s416_s12 }
  0x2a   :  { %12 = sbr.rel (!%p10_p5) target bundleno = 2 (0x2), region = 70 }

// kernel: forward.53
= control target key start
LH: loop header
LB: loop body
LE: loop exit
PB: predicated region body
PF: predicated region fallthrough
CT: control target
= control target key end

     0   :  { %s428_s12 = smov 0   ;;  %s430_s13 = smov 0   ;;  %s467_s0 = inlined_call_operand.vmem [shape: bf16[8,16,128], index: 0, kind: input, shape index: {}]   ;;  %s468_s1 = inlined_call_operand.vmem [shape: f32[1,1,128], index: 1, kind: input, shape index: {}]   ;;  %s469_s2 = inlined_call_operand.vmem [shape: f32[1,1,128], index: 2, kind: input, shape index: {}]   ;;  %s470_s3 = inlined_call_operand.vmem [shape: bf16[8,16,128], index: 3, kind: output, shape index: {}]  }
   0x1   :  { %s432_s14 = smov 0  }
   0x2 LB: > { %s25_s15 = sadd.s32 1, %s402_s13  ;;  %p335_p0 = scmp.ge.s32.totalorder %s406_s14, 1  ;;  %s406_s14 = sphi %s432_s14, %s13_s14   ;;  %s402_s13 = sphi %s430_s13, %s472_s13   ;;  %s398_s12 = sphi %s428_s12, %s471_s12  }
   0x3   : > { %p27_p1 = scmp.ge.s32.totalorder %s25_s15, 8  ;;  %p158_p2 = scmp.lt.s32.totalorder %s406_s14, 9 }
   0x5   : > { %s474_s15 = smov (%p27_p1, %s25_s15), 0  ;;  %p159_p3 = pnand %p335_p0, %p158_p2 }
   0x6   : > { %p191_p4 = scmp.lt.s32.totalorder (!%p159_p3), %s398_s12, 7  ;;  %v213_v0 = vld [vmem:[%s469_s2] sm:$0x1] (!%p159_p3)  ;;  %v227_v2 = vlaneseq (!%p159_p3) }
   0x7   : > { %162 = sbr.rel (%p159_p3) target bundleno = 27 (0x1b), region = 32  ;;  %v224_v1 = vadd.f32 (!%p159_p3), 1e-05, %v213_v0  ;;  %v340_v7 = vld [vmem:[%s468_s1] ss:$0 sm:$0xff] (!%p159_p3) }
   0x8   : > { %v228_v4 = vshrl.u32 (!%p159_p3), %v227_v2, 7 }
   0x9   : > { %382 = vrsqrt.f32 (!%p159_p3), %v224_v1 }
   0xa   : > { %v229_v8 = vsub.s32 (!%p159_p3), 0, %v228_v4 }
   0xe   : > { %s476_s12 = smov (!%p191_p4, %s398_s12), 7 }
   0xf   : > { %s345_s18 = sshll.u32 %s476_s12, 3 }
  0x10   : > { %s198_s21 = scalar_lea.vmem %s467_s0, %s345_s18  ;;  %s208_s26 = scalar_lea.vmem %s470_s3, %s345_s18 }
  0x11   : > { %v350_v3 = vld [vmem:[%s198_s21] sm:$0xff]  }
  0x12   : > { %v351_v5 = vunpack.c.l.bf16 %v350_v3  ;;  %v352_v6 = vunpack.c.h.bf16 %v350_v3 }
  0x13   : > { %v383_v11 = vpop.eup %382 }
  0x14   : > { %v222_v9 = vsub.f32 %v351_v5, %v340_v7  ;;  %v223_v10 = vsub.f32 %v352_v6, %v340_v7  ;;  %v230_v12 = vrot.slane %v383_v11, %v229_v8 }
  0x16   : > { %v232_v13 = vmul.f32 %v230_v12, %v222_v9  ;;  %v233_v14 = vmul.f32 %v230_v12, %v223_v10 }
  0x18   : > { %v356_v15 = vpack.c.bf16 %v233_v14, %v232_v13 }
  0x1a   : > { %357 = vst [vmem:[%s208_s26] sm:$0xff] %v356_v15  }
  0x1b PF: > { %s13_s14 = sadd.s32 1, %s406_s14   ;;  %s471_s12 = smov %s402_s13 }
  0x1c   : > { %p10_p5 = scmp.ge.s32.totalorder %s13_s14, 10   ;;  %s472_s13 = smov %s474_s15 }
  0x1e   :  { %12 = sbr.rel (!%p10_p5) target bundleno = 2 (0x2), region = 62 }

// kernel: forward.49
= control target key start
LH: loop header
LB: loop body
LE: loop exit
PB: predicated region body
PF: predicated region fallthrough
CT: control target
= control target key end

     0   :  { %s430_s12 = smov 0   ;;  %s432_s13 = smov 0   ;;  %s469_s0 = inlined_call_operand.vmem [shape: bf16[8,16,128], index: 0, kind: input, shape index: {}]   ;;  %s470_s1 = inlined_call_operand.vmem [shape: f32[1,1,128], index: 1, kind: input, shape index: {}]   ;;  %s471_s2 = inlined_call_operand.vmem [shape: f32[1,1,128], index: 2, kind: input, shape index: {}]   ;;  %s472_s3 = inlined_call_operand.vmem [shape: bf16[8,16,128], index: 3, kind: output, shape index: {}]  }
   0x1   :  { %s434_s14 = smov 0  }
   0x2 LB: > { %s25_s15 = sadd.s32 1, %s404_s13  ;;  %p337_p0 = scmp.ge.s32.totalorder %s408_s14, 1  ;;  %s408_s14 = sphi %s434_s14, %s13_s14   ;;  %s404_s13 = sphi %s432_s13, %s474_s13   ;;  %s400_s12 = sphi %s430_s12, %s473_s12  }
   0x3   : > { %p27_p1 = scmp.ge.s32.totalorder %s25_s15, 8  ;;  %p158_p2 = scmp.lt.s32.totalorder %s408_s14, 9 }
   0x5   : > { %s476_s15 = smov (%p27_p1, %s25_s15), 0  ;;  %p159_p3 = pnand %p337_p0, %p158_p2 }
   0x6   : > { %p191_p4 = scmp.lt.s32.totalorder (!%p159_p3), %s400_s12, 7  ;;  %v213_v0 = vld [vmem:[%s471_s2] sm:$0x1] (!%p159_p3)  ;;  %v227_v2 = vlaneseq (!%p159_p3) }
   0x7   : > { %162 = sbr.rel (%p159_p3) target bundleno = 29 (0x1d), region = 32  ;;  %v224_v1 = vadd.f32 (!%p159_p3), 1e-05, %v213_v0  ;;  %v342_v7 = vld [vmem:[%s470_s1] ss:$0 sm:$0xff] (!%p159_p3) }
   0x8   : > { %v228_v4 = vshrl.u32 (!%p159_p3), %v227_v2, 7 }
   0x9   : > { %384 = vrsqrt.f32 (!%p159_p3), %v224_v1 }
   0xa   : > { %v229_v8 = vsub.s32 (!%p159_p3), 0, %v228_v4 }
   0xe   : > { %s478_s12 = smov (!%p191_p4, %s400_s12), 7 }
   0xf   : > { %s347_s18 = sshll.u32 %s478_s12, 3 }
  0x10   : > { %s198_s21 = scalar_lea.vmem %s469_s0, %s347_s18  ;;  %s208_s26 = scalar_lea.vmem %s472_s3, %s347_s18 }
  0x11   : > { %v352_v3 = vld [vmem:[%s198_s21] sm:$0xff]  }
  0x12   : > { %v353_v5 = vunpack.c.l.bf16 %v352_v3  ;;  %v354_v6 = vunpack.c.h.bf16 %v352_v3 }
  0x13   : > { %v385_v11 = vpop.eup %384 }
  0x14   : > { %v222_v9 = vsub.f32 %v353_v5, %v342_v7  ;;  %v223_v10 = vsub.f32 %v354_v6, %v342_v7  ;;  %v230_v12 = vrot.slane %v385_v11, %v229_v8 }
  0x16   : > { %v232_v13 = vmul.f32 %v230_v12, %v222_v9  ;;  %v233_v14 = vmul.f32 %v230_v12, %v223_v10 }
  0x18   : > { %v234_v15 = vmax.f32 %v232_v13, 0.0  ;;  %v235_v16 = vmax.f32 %v233_v14, 0.0 }
  0x1a   : > { %v358_v17 = vpack.c.bf16 %v235_v16, %v234_v15 }
  0x1c   : > { %359 = vst [vmem:[%s208_s26] sm:$0xff] %v358_v17  }
  0x1d PF: > { %s13_s14 = sadd.s32 1, %s408_s14   ;;  %s473_s12 = smov %s404_s13 }
  0x1e   : > { %p10_p5 = scmp.ge.s32.totalorder %s13_s14, 10   ;;  %s474_s13 = smov %s476_s15 }
  0x20   :  { %12 = sbr.rel (!%p10_p5) target bundleno = 2 (0x2), region = 62 }

// kernel: forward.47
= control target key start
LH: loop header
LB: loop body
LE: loop exit
PB: predicated region body
PF: predicated region fallthrough
CT: control target
= control target key end

     0   :  { %s908_s9 = smov 0   ;;  %s910_s10 = smov 0   ;;  %s1009_s0 = inlined_call_operand.vmem [shape: bf16[16,3456], index: 0, kind: input, shape index: {}]   ;;  %s1010_s1 = inlined_call_operand.vmem [shape: bf16[3456,128], index: 1, kind: input, shape index: {}]   ;;  %s1011_s2 = inlined_call_operand.vmem [shape: bf16[16,128], index: 2, kind: output, shape index: {}]  }
   0x1   :  { %s912_s11 = smov 0   ;;  %s914_s12 = smov 0  }
   0x2   :  { %s916_s13 = smov 0  }
   0x3 LB: > { %s24_s14 = sadd.s32 1, %s884_s12  ;;  %p47_p1 = scmp.ne.s32.totalorder %s876_s10, %s872_s9  ;;  %s888_s13 = sphi %s916_s13, %s12_s13   ;;  %s884_s12 = sphi %s914_s12, %s1015_s12   ;;  %s880_s11 = sphi %s912_s11, %s1014_s11   ;;  %s876_s10 = sphi %s910_s10, %s1013_s10   ;;  %s872_s9 = sphi %s908_s9, %s1012_s9  }
   0x4   : > { %p25_p0 = scmp.ge.s32.totalorder %s24_s14, 9  ;;  %p48_p2 = scmp.eq.s32.totalorder %s888_s13, 0 }
   0x5   : > { %s40_s16 = sadd.s32 1, %s876_s10  ;;  %p675_p5 = scmp.ge.s32.totalorder %s888_s13, 9 }
   0x6   : > { %s1017_s14 = smov (%p25_p0, %s24_s14), 0  ;;  %p49_p3 = por %p48_p2, %p47_p1 }
   0x7   : > { %s36_s15 = ssub.s32 %s884_s12, %s1017_s14  ;;  %129 = sbr.rel (%p675_p5) target bundleno = 21 (0x15), region = 16 }
   0x8   : > { %p38_p4 = scmp.eq.s32.totalorder %s36_s15, 0 }
   0xa   : > { %s943_s17 = scalar_select %p38_p4, %s876_s10, %s40_s16  }
   0xe   : > { %132 = sbr.rel (!%p49_p3) target bundleno = 21 (0x15), region = 20  ;;  %s134_s18 = sand.u32 (%p49_p3), 1, %s876_s10  }
   0xf   : > { %s718_s19 = smul.u32 (%p49_p3), 12, %s884_s12 }
  0x10   : > { %s777_s20 = smul.u32 (%p49_p3), 24, %s134_s18 }
  0x11   : > { %s142_s23 = scalar_lea.vmem (%p49_p3), %s1009_s0, %s718_s19 }
  0x12   : > { %v157_v0 = vld [vmem:[%s142_s23] sm:$0xff] (%p49_p3)  ;;  %v159_v1 = vld [vmem:[%s142_s23 + $0x6c] sm:$0xff] (%p49_p3)  ;;  %v677_v2 = vld [vmem:[%s142_s23 + $0x8] sm:$0xf] (%p49_p3)  ;;  %s136_s24 = scalar_lea.vmem (%p49_p3), [#allocation3], %s777_s20 }
  0x13   : > { %158 = vst [vmem:[%s136_s24] sm:$0xff] (%p49_p3), %v157_v0  ;;  %160 = vst [vmem:[%s136_s24 + $0xc] sm:$0xff] (%p49_p3), %v159_v1  ;;  %v679_v3 = vld [vmem:[%s142_s23 + $0x74] sm:$0xf] (%p49_p3) }
  0x14   : > { %678 = vst [vmem:[%s136_s24 + $0x8] sm:$0xf] (%p49_p3), %v677_v2  ;;  %680 = vst [vmem:[%s136_s24 + $0x14] sm:$0xf] (%p49_p3), %v679_v3 }
  0x15 PF: > { %p681_p6 = scmp.ge.s32.totalorder %s888_s13, 1  ;;  %p188_p7 = scmp.lt.s32.totalorder %s888_s13, 10 }
  0x17   : > { %p189_p8 = pnand %p681_p6, %p188_p7 }
  0x18   : > { %s195_s25 = sand.u32 (!%p189_p8), 1, %s872_s9   ;;  %s229_s26 = smul.u32 (!%p189_p8), 48, %s880_s11 }
  0x19   : > { %192 = sbr.rel (%p189_p8) target bundleno = 304 (0x130), region = 50  ;;  %p683_p10 = scmp.ne.s32.totalorder (!%p189_p8), %s880_s11, 0 }
  0x1a   : > { %s778_s27 = smul.u32 (!%p189_p8), 24, %s195_s25  ;;  %p230_p9 = scmp.lt.s32.totalorder (!%p189_p8), %s229_s26, 431 }
  0x1c   : > { %s960_s4 = scalar_lea.vmem (!%p189_p8), [#allocation3], %s778_s27 }
  0x20   : > { %s1019_s26 = smov (!%p230_p9, %s229_s26), 431  ;;  %251 = sbr.rel (%p683_p10) target bundleno = 39 (0x27), region = 58 }
  0x21   : > { %s682_s28 = sshll.u32 %s1019_s26, 2  ;;  %v890_v4 = vmov (!%p683_p10), 0.0  }
  0x22   : > { %s958_s3 = scalar_lea.vmem %s1010_s1, %s682_s28  ;;  %252 = vst [vmem:[#allocation2] sm:$0xff] (!%p683_p10), %v890_v4  ;;  %253 = vst [vmem:[#allocation2 + $0x8] sm:$0xff] (!%p683_p10), %v890_v4 }
  0x27 PF: > { %v822_v5 = vld [vmem:[%s958_s3 + $0x40] sm:$0xff]   ;;  %v891_v6 = vmov 0.0   ;;  %vm892_vm0 = vmmov 0   ;;  %v825_v9 = vld [vmem:[%s958_s3 + $0x48] sm:$0xff]   ;;  %v828_v12 = vld [vmem:[%s958_s3 + $0x50] sm:$0xff]   ;;  %p711_p11 = scmp.ne.s32.totalorder %s880_s11, 8 }
  0x28   : > { %757 = vmatprep.subr.bf16.mxu1 %v891_v6  ;;  %v823_v7 = vld [vmem:[%s958_s3] sm:$0xff]   ;;  %726 = vmatprep.subr.bf16.mxu0 %v822_v5  ;;  %v826_v10 = vld [vmem:[%s958_s3 + $0x8] sm:$0xff]   ;;  %v829_v13 = vld [vmem:[%s958_s3 + $0x10] sm:$0xff]  }
  0x29   : > { %v824_v8 = vld [vmem:[%s958_s3 + $0x80] sm:$0xff]   ;;  %773 = vmatprep.mubr.msk.bf16.mxu1 %vm892_vm0, %v891_v6  ;;  %727 = vmatpush3.bf16.msra.mxu0 %v823_v7  ;;  %v827_v11 = vld [vmem:[%s958_s3 + $0x88] sm:$0xff]   ;;  %v830_v14 = vld [vmem:[%s958_s3 + $0x90] sm:$0xff]  }
  0x2a   : > { %758 = vmatpush3.bf16.msra.mxu1 %v824_v8  ;;  %728 = vmatprep.subr.bf16.mxu0 %v825_v9  ;;  %v831_v15 = vld [vmem:[%s958_s3 + $0x58] sm:$0xff]   ;;  %v834_v18 = vld [vmem:[%s958_s3 + $0x60] sm:$0xff]   ;;  %v837_v21 = vld [vmem:[%s958_s3 + $0x68] sm:$0xff]  }
  0x2b   : > { %759 = vmatprep.subr.bf16.mxu1 %v891_v6  ;;  %v832_v16 = vld [vmem:[%s958_s3 + $0x18] sm:$0xff]   ;;  %v835_v19 = vld [vmem:[%s958_s3 + $0x20] sm:$0xff]   ;;  %v838_v22 = vld [vmem:[%s958_s3 + $0x28] sm:$0xff]  }
  0x2c   : > { %v833_v17 = vld [vmem:[%s958_s3 + $0x98] sm:$0xff]   ;;  %v836_v20 = vld [vmem:[%s958_s3 + $0xa0] sm:$0xff]   ;;  %v839_v23 = vld [vmem:[%s958_s3 + $0xa8] sm:$0xff]  }
  0x2d   : > { %729 = vmatpush3.bf16.msra.mxu0 %v826_v10  ;;  %v840_v24 = vld [vmem:[%s958_s3 + $0x70] sm:$0xff]   ;;  %v843_v27 = vld [vmem:[%s958_s3 + $0x78] sm:$0xff]   ;;  %v254_v39 = vld [vmem:[#allocation2] sm:$0xff] }
  0x2e   : > { %760 = vmatpush3.bf16.msra.mxu1 %v827_v11  ;;  %730 = vmatprep.subr.bf16.mxu0 %v828_v12  ;;  %v841_v25 = vld [vmem:[%s958_s3 + $0x30] sm:$0xff]   ;;  %v844_v29 = vld [vmem:[%s958_s3 + $0x38] sm:$0xff]   ;;  %v255_v45 = vld [vmem:[#allocation2 + $0x8] sm:$0xff] }
  0x2f   : > { %761 = vmatprep.subr.bf16.mxu1 %v891_v6  ;;  %v842_v26 = vld [vmem:[%s958_s3 + $0xb0] sm:$0xff]   ;;  %v845_v30 = vld [vmem:[%s958_s3 + $0xb8] sm:$0xff]  }
  0x30   : > { %v848_v28 = vld [vmem:[%s960_s4 + $0x4] ss:$12 sps:$4 sm:$0xff]   ;;  %v846_v31 = vld [vmem:[%s960_s4] ss:$12 sps:$4 sm:$0xff]   ;;  %v849_v32 = vld [vmem:[%s960_s4 + $0x8] ss:$12 sps:$4 sm:$0xff]  }
  0x31   : > { %731 = vmatpush3.bf16.msra.mxu0 %v829_v13  ;;  %500 = vmatprep.mubr.bf16.mxu0 %v848_v28 }
  0x32   : > { %762 = vmatpush3.bf16.msra.mxu1 %v830_v14  ;;  %732 = vmatprep.subr.bf16.mxu0 %v831_v15 }
  0x33   : > { %763 = vmatprep.subr.bf16.mxu1 %v891_v6 }
  0x35   : > { %733 = vmatpush3.bf16.msra.mxu0 %v832_v16 }
  0x36   : > { %764 = vmatpush3.bf16.msra.mxu1 %v833_v17  ;;  %734 = vmatprep.subr.bf16.mxu0 %v834_v18 }
  0x37   : > { %765 = vmatprep.subr.bf16.mxu1 %v891_v6 }
  0x39   : > { %735 = vmatpush3.bf16.msra.mxu0 %v835_v19 }
  0x3a   : > { %766 = vmatpush3.bf16.msra.mxu1 %v836_v20  ;;  %736 = vmatprep.subr.bf16.mxu0 %v837_v21 }
  0x3b   : > { %767 = vmatprep.subr.bf16.mxu1 %v891_v6 }
  0x3d   : > { %737 = vmatpush3.bf16.msra.mxu0 %v838_v22 }
  0x3e   : > { %768 = vmatpush3.bf16.msra.mxu1 %v839_v23  ;;  %738 = vmatprep.subr.bf16.mxu0 %v840_v24 }
  0x3f   : > { %769 = vmatprep.subr.bf16.mxu1 %v891_v6 }
  0x41   : > { %739 = vmatpush3.bf16.msra.mxu0 %v841_v25 }
  0x42   : > { %770 = vmatpush3.bf16.msra.mxu1 %v842_v26  ;;  %740 = vmatprep.subr.bf16.mxu0 %v843_v27 }
  0x43   : > { %771 = vmatprep.subr.bf16.mxu1 %v891_v6 }
  0x45   : > { %741 = vmatpush3.bf16.msra.mxu0 %v844_v29 }
  0x46   : > { %772 = vmatpush3.bf16.msra.mxu1 %v845_v30 }
  0x48   : > { %501 = vmatmul.mubr.bf16.vlgmr.msra.gmra.mrb[0].mxu0 %v846_v31 }
  0x49   : > { %774 = vmatmul.mubr.bf16.vlgmr.msra.gmra.mrb[0].mxu1 %v849_v32 }
 0x11b   : > { %v742_v33 = vpop.f32.mrb[0].mxu0 }
 0x11c   : > { %v543_v34 = vpop.f32.mrb[0].mxu1  ;;  %v743_v35 = vpop.f32.mrb[1].mxu0 }
 0x11d   : > { %v744_v36 = vadd.f32 %v743_v35, %v742_v33  ;;  %v775_v37 = vpop.f32.mrb[1].mxu1  ;;  %v745_v38 = vpop.f32.mrb[2].mxu0 }
 0x11e   : > { %v546_v40 = vpop.f32.mrb[2].mxu1  ;;  %v746_v41 = vpop.f32.mrb[3].mxu0 }
 0x11f   : > { %v544_v42 = vadd.f32 %v744_v36, %v543_v34  ;;  %v747_v43 = vadd.f32 %v746_v41, %v745_v38  ;;  %v776_v44 = vpop.f32.mrb[3].mxu1  ;;  %557 = sbr.rel (%p711_p11) target bundleno = 304 (0x130), region = 62 }
 0x121   : > { %v550_v46 = vadd.f32 %v544_v42, %v254_v39  ;;  %v547_v47 = vadd.f32 %v747_v43, %v546_v40 }
 0x123   : > { %552 = vst [vmem:[#allocation2] sm:$0xff] %v550_v46  ;;  %v551_v48 = vadd.f32 %v547_v47, %v255_v45 }
 0x125   : > { %553 = vst [vmem:[#allocation2 + $0x8] sm:$0xff] %v551_v48 }
 0x12a   : > { %v558_v49 = vld [vmem:[#allocation2] sm:$0xff] }
 0x12c   : > { %v559_v50 = vld [vmem:[#allocation2 + $0x8] sm:$0xff] }
 0x12d   : > { %v724_v51 = vpack.c.bf16 %v559_v50, %v558_v49 }
 0x12f   : > { %725 = vst [vmem:[%s1011_s2] sm:$0xff] %v724_v51  }
 0x130 PF: > { %s12_s13 = sadd.s32 1, %s888_s13   ;;  %s1012_s9 = smov %s876_s10 }
 0x131   : > { %p9_p12 = scmp.ge.s32.totalorder %s12_s13, 11   ;;  %s1013_s10 = smov %s943_s17 }
 0x132   : > { %s1014_s11 = smov %s884_s12  ;;  %s1015_s12 = smov %s1017_s14 }
 0x133   :  { %11 = sbr.rel (!%p9_p12) target bundleno = 3 (0x3), region = 106 }

// kernel: forward.55
= control target key start
LH: loop header
LB: loop body
LE: loop exit
PB: predicated region body
PF: predicated region fallthrough
CT: control target
= control target key end

     0   :  { %s529_s15 = smov 0   ;;  %s531_s16 = smov 0   ;;  %s571_s0 = inlined_call_operand.vmem [shape: bf16[8,16,128], index: 0, kind: input, shape index: {}]   ;;  %s572_s1 = inlined_call_operand.vmem [shape: f32[1,1,128], index: 1, kind: input, shape index: {}]   ;;  %s573_s2 = inlined_call_operand.vmem [shape: f32[1,1,128], index: 2, kind: input, shape index: {}]   ;;  %s574_s3 = inlined_call_operand.vmem [shape: bf16[8,16,128], index: 3, kind: input, shape index: {}]   ;;  %s575_s4 = inlined_call_operand.vmem [shape: bf16[8,16,128], index: 4, kind: output, shape index: {}]  }
   0x1   :  { %s533_s17 = smov 0  }
   0x2 LB: > { %s26_s18 = sadd.s32 1, %s498_s16  ;;  %p424_p0 = scmp.ge.s32.totalorder %s502_s17, 1  ;;  %s502_s17 = sphi %s533_s17, %s14_s17   ;;  %s498_s16 = sphi %s531_s16, %s577_s16   ;;  %s494_s15 = sphi %s529_s15, %s576_s15  }
   0x3   : > { %p28_p1 = scmp.ge.s32.totalorder %s26_s18, 8  ;;  %p200_p2 = scmp.lt.s32.totalorder %s502_s17, 9 }
   0x5   : > { %s579_s18 = smov (%p28_p1, %s26_s18), 0  ;;  %p201_p3 = pnand %p424_p0, %p200_p2 }
   0x6   : > { %p244_p4 = scmp.lt.s32.totalorder (!%p201_p3), %s494_s15, 7  ;;  %v276_v0 = vld [vmem:[%s573_s2] sm:$0x1] (!%p201_p3)  ;;  %v292_v2 = vlaneseq (!%p201_p3) }
   0x7   : > { %204 = sbr.rel (%p201_p3) target bundleno = 31 (0x1f), region = 36  ;;  %v289_v1 = vadd.f32 (!%p201_p3), 1e-05, %v276_v0  ;;  %v431_v7 = vld [vmem:[%s572_s1] ss:$0 sm:$0xff] (!%p201_p3) }
   0x8   : > { %v293_v4 = vshrl.u32 (!%p201_p3), %v292_v2, 7 }
   0x9   : > { %478 = vrsqrt.f32 (!%p201_p3), %v289_v1 }
   0xa   : > { %v294_v8 = vsub.s32 (!%p201_p3), 0, %v293_v4 }
   0xe   : > { %s581_s15 = smov (!%p244_p4, %s494_s15), 7 }
   0xf   : > { %s436_s21 = sshll.u32 %s581_s15, 3 }
  0x10   : > { %s251_s24 = scalar_lea.vmem %s571_s0, %s436_s21  ;;  %s261_s27 = scalar_lea.vmem %s574_s3, %s436_s21 }
  0x11   : > { %v442_v3 = vld [vmem:[%s251_s24] sm:$0xff]   ;;  %s271_s6 = scalar_lea.vmem %s575_s4, %s436_s21 }
  0x12   : > { %v443_v5 = vunpack.c.l.bf16 %v442_v3  ;;  %v444_v6 = vunpack.c.h.bf16 %v442_v3  ;;  %v446_v9 = vld [vmem:[%s261_s27] sm:$0xff]  }
  0x13   : > { %v479_v12 = vpop.eup %478  ;;  %v447_v13 = vunpack.c.l.bf16 %v446_v9  ;;  %v448_v14 = vunpack.c.h.bf16 %v446_v9 }
  0x14   : > { %v287_v10 = vsub.f32 %v443_v5, %v431_v7  ;;  %v288_v11 = vsub.f32 %v444_v6, %v431_v7  ;;  %v295_v15 = vrot.slane %v479_v12, %v294_v8 }
  0x16   : > { %v297_v16 = vmul.f32 %v295_v15, %v287_v10  ;;  %v298_v17 = vmul.f32 %v295_v15, %v288_v11 }
  0x18   : > { %v301_v18 = vadd.f32 %v447_v13, %v297_v16  ;;  %v302_v19 = vadd.f32 %v448_v14, %v298_v17 }
  0x1a   : > { %v303_v20 = vmax.f32 %v301_v18, 0.0  ;;  %v304_v21 = vmax.f32 %v302_v19, 0.0 }
  0x1c   : > { %v452_v22 = vpack.c.bf16 %v304_v21, %v303_v20 }
  0x1e   : > { %453 = vst [vmem:[%s271_s6] sm:$0xff] %v452_v22  }
  0x1f PF: > { %s14_s17 = sadd.s32 1, %s502_s17   ;;  %s576_s15 = smov %s498_s16 }
  0x20   : > { %p11_p5 = scmp.ge.s32.totalorder %s14_s17, 10   ;;  %s577_s16 = smov %s579_s18 }
  0x22   :  { %13 = sbr.rel (!%p11_p5) target bundleno = 2 (0x2), region = 69 }

// kernel: forward.61
= control target key start
LH: loop header
LB: loop body
LE: loop exit
PB: predicated region body
PF: predicated region fallthrough
CT: control target
= control target key end

     0   :  { %s374_s9 = smov 0   ;;  %s376_s10 = smov 0   ;;  %s410_s0 = inlined_call_operand.vmem [shape: bf16[2,16,128], index: 0, kind: input, shape index: {}]   ;;  %s411_s1 = inlined_call_operand.vmem [shape: f32[2,1,128], index: 1, kind: output, shape index: {0}]   ;;  %s412_s2 = inlined_call_operand.vmem [shape: f32[2,1,128], index: 2, kind: output, shape index: {1}]  }
   0x1   :  { %s378_s11 = smov 0  }
   0x2 LB: > { %s25_s12 = sadd.s32 1, %s352_s10  ;;  %p299_p0 = scmp.ge.s32.totalorder %s356_s11, 1  ;;  %s356_s11 = sphi %s378_s11, %s13_s11   ;;  %s352_s10 = sphi %s376_s10, %s414_s10   ;;  %s348_s9 = sphi %s374_s9, %s413_s9  }
   0x3   : > { %p27_p1 = scmp.ge.s32.totalorder %s25_s12, 2  ;;  %p134_p2 = scmp.lt.s32.totalorder %s356_s11, 3 }
   0x5   : > { %s416_s12 = smov (%p27_p1, %s25_s12), 0  ;;  %p135_p3 = pnand %p299_p0, %p134_p2 }
   0x6   : > { %p162_p4 = scmp.lt.s32.totalorder (!%p135_p3), %s348_s9, 1  ;;  %v358_v0 = vmov (!%p135_p3), 0.0  }
   0x7   : > { %138 = sbr.rel (%p135_p3) target bundleno = 39 (0x27), region = 24 }
   0xe   : > { %s418_s9 = smov (!%p162_p4, %s348_s9), 1 }
   0xf   : > { %s304_s13 = sshll.u32 %s418_s9, 3  ;;  %s173_s16 = scalar_lea.vmem %s411_s1, %s418_s9 }
  0x10   : > { %s169_s19 = scalar_lea.vmem %s410_s0, %s304_s13  ;;  %181 = vst [vmem:[%s173_s16] sm:$0x1] %v358_v0  ;;  %s176_s22 = scalar_lea.vmem %s412_s2, %s418_s9 }
  0x11   : > { %v306_v1 = vld [vmem:[%s169_s19] sm:$0xff]   ;;  %182 = vst [vmem:[%s176_s22] sm:$0x1] %v358_v0 }
  0x12   : > { %v307_v2 = vunpack.c.l.bf16 %v306_v1  ;;  %v308_v3 = vunpack.c.h.bf16 %v306_v1 }
  0x14   : > { %v198_v4 = vmul.f32 %v307_v2, %v307_v2  ;;  %v199_v5 = vmul.f32 %v308_v3, %v308_v3  ;;  %v188_v6 = vadd.f32 %v308_v3, %v307_v2 }
  0x16   : > { %v189_v7 = vrot.slane %v188_v6, 4  ;;  %v200_v8 = vadd.f32 %v199_v5, %v198_v4 }
  0x17   : > { %v187_v17 = vld [vmem:[%s173_s16] sm:$0x1] }
  0x18   : > { %v190_v9 = vadd.f32 %v189_v7, %v188_v6  ;;  %v201_v10 = vrot.slane %v200_v8, 4  ;;  %v197_v20 = vld [vmem:[%s176_s22] sm:$0x1] }
  0x1a   : > { %v191_v11 = vrot.slane %v190_v9, 2  ;;  %v202_v12 = vadd.f32 %v201_v10, %v200_v8 }
  0x1c   : > { %v192_v13 = vadd.f32 %v191_v11, %v190_v9  ;;  %v203_v14 = vrot.slane %v202_v12, 2 }
  0x1e   : > { %v193_v15 = vrot.slane %v192_v13, 1  ;;  %v204_v16 = vadd.f32 %v203_v14, %v202_v12 }
  0x20   : > { %v194_v18 = vadd.f32 %v193_v15, %v192_v13  ;;  %v205_v19 = vrot.slane %v204_v16, 1 }
  0x22   : > { %v195_v21 = vadd.f32 %v194_v18, %v187_v17  ;;  %v206_v22 = vadd.f32 %v205_v19, %v204_v16 }
  0x24   : > { %196 = vst [vmem:[%s173_s16] sm:$0x1] %v195_v21  ;;  %v207_v23 = vadd.f32 %v206_v22, %v197_v20 }
  0x26   : > { %208 = vst [vmem:[%s176_s22] sm:$0x1] %v207_v23 }
  0x27 PF: > { %s13_s11 = sadd.s32 1, %s356_s11   ;;  %s413_s9 = smov %s352_s10 }
  0x28   : > { %p10_p5 = scmp.ge.s32.totalorder %s13_s11, 4   ;;  %s414_s10 = smov %s416_s12 }
  0x2a   :  { %12 = sbr.rel (!%p10_p5) target bundleno = 2 (0x2), region = 70 }

// kernel: forward.62
= control target key start
LH: loop header
LB: loop body
LE: loop exit
PB: predicated region body
PF: predicated region fallthrough
CT: control target
= control target key end

     0   :  { %s428_s12 = smov 0   ;;  %s430_s13 = smov 0   ;;  %s467_s0 = inlined_call_operand.vmem [shape: bf16[2,16,128], index: 0, kind: input, shape index: {}]   ;;  %s468_s1 = inlined_call_operand.vmem [shape: f32[1,1,128], index: 1, kind: input, shape index: {}]   ;;  %s469_s2 = inlined_call_operand.vmem [shape: f32[1,1,128], index: 2, kind: input, shape index: {}]   ;;  %s470_s3 = inlined_call_operand.vmem [shape: bf16[2,16,128], index: 3, kind: output, shape index: {}]  }
   0x1   :  { %s432_s14 = smov 0  }
   0x2 LB: > { %s25_s15 = sadd.s32 1, %s402_s13  ;;  %p335_p0 = scmp.ge.s32.totalorder %s406_s14, 1  ;;  %s406_s14 = sphi %s432_s14, %s13_s14   ;;  %s402_s13 = sphi %s430_s13, %s472_s13   ;;  %s398_s12 = sphi %s428_s12, %s471_s12  }
   0x3   : > { %p27_p1 = scmp.ge.s32.totalorder %s25_s15, 2  ;;  %p158_p2 = scmp.lt.s32.totalorder %s406_s14, 3 }
   0x5   : > { %s474_s15 = smov (%p27_p1, %s25_s15), 0  ;;  %p159_p3 = pnand %p335_p0, %p158_p2 }
   0x6   : > { %p191_p4 = scmp.lt.s32.totalorder (!%p159_p3), %s398_s12, 1  ;;  %v213_v0 = vld [vmem:[%s469_s2] sm:$0x1] (!%p159_p3)  ;;  %v227_v2 = vlaneseq (!%p159_p3) }
   0x7   : > { %162 = sbr.rel (%p159_p3) target bundleno = 27 (0x1b), region = 32  ;;  %v224_v1 = vadd.f32 (!%p159_p3), 1e-05, %v213_v0  ;;  %v340_v7 = vld [vmem:[%s468_s1] ss:$0 sm:$0xff] (!%p159_p3) }
   0x8   : > { %v228_v4 = vshrl.u32 (!%p159_p3), %v227_v2, 7 }
   0x9   : > { %382 = vrsqrt.f32 (!%p159_p3), %v224_v1 }
   0xa   : > { %v229_v8 = vsub.s32 (!%p159_p3), 0, %v228_v4 }
   0xe   : > { %s476_s12 = smov (!%p191_p4, %s398_s12), 1 }
   0xf   : > { %s345_s18 = sshll.u32 %s476_s12, 3 }
  0x10   : > { %s198_s21 = scalar_lea.vmem %s467_s0, %s345_s18  ;;  %s208_s26 = scalar_lea.vmem %s470_s3, %s345_s18 }
  0x11   : > { %v350_v3 = vld [vmem:[%s198_s21] sm:$0xff]  }
  0x12   : > { %v351_v5 = vunpack.c.l.bf16 %v350_v3  ;;  %v352_v6 = vunpack.c.h.bf16 %v350_v3 }
  0x13   : > { %v383_v11 = vpop.eup %382 }
  0x14   : > { %v222_v9 = vsub.f32 %v351_v5, %v340_v7  ;;  %v223_v10 = vsub.f32 %v352_v6, %v340_v7  ;;  %v230_v12 = vrot.slane %v383_v11, %v229_v8 }
  0x16   : > { %v232_v13 = vmul.f32 %v230_v12, %v222_v9  ;;  %v233_v14 = vmul.f32 %v230_v12, %v223_v10 }
  0x18   : > { %v356_v15 = vpack.c.bf16 %v233_v14, %v232_v13 }
  0x1a   : > { %357 = vst [vmem:[%s208_s26] sm:$0xff] %v356_v15  }
  0x1b PF: > { %s13_s14 = sadd.s32 1, %s406_s14   ;;  %s471_s12 = smov %s402_s13 }
  0x1c   : > { %p10_p5 = scmp.ge.s32.totalorder %s13_s14, 4   ;;  %s472_s13 = smov %s474_s15 }
  0x1e   :  { %12 = sbr.rel (!%p10_p5) target bundleno = 2 (0x2), region = 62 }

// kernel: forward.64
= control target key start
LH: loop header
LB: loop body
LE: loop exit
PB: predicated region body
PF: predicated region fallthrough
CT: control target
= control target key end

     0   :  { %s529_s15 = smov 0   ;;  %s531_s16 = smov 0   ;;  %s571_s0 = inlined_call_operand.vmem [shape: bf16[2,16,128], index: 0, kind: input, shape index: {}]   ;;  %s572_s1 = inlined_call_operand.vmem [shape: f32[1,1,128], index: 1, kind: input, shape index: {}]   ;;  %s573_s2 = inlined_call_operand.vmem [shape: f32[1,1,128], index: 2, kind: input, shape index: {}]   ;;  %s574_s3 = inlined_call_operand.vmem [shape: bf16[2,16,128], index: 3, kind: input, shape index: {}]   ;;  %s575_s4 = inlined_call_operand.vmem [shape: bf16[2,16,128], index: 4, kind: output, shape index: {}]  }
   0x1   :  { %s533_s17 = smov 0  }
   0x2 LB: > { %s26_s18 = sadd.s32 1, %s498_s16  ;;  %p424_p0 = scmp.ge.s32.totalorder %s502_s17, 1  ;;  %s502_s17 = sphi %s533_s17, %s14_s17   ;;  %s498_s16 = sphi %s531_s16, %s577_s16   ;;  %s494_s15 = sphi %s529_s15, %s576_s15  }
   0x3   : > { %p28_p1 = scmp.ge.s32.totalorder %s26_s18, 2  ;;  %p200_p2 = scmp.lt.s32.totalorder %s502_s17, 3 }
   0x5   : > { %s579_s18 = smov (%p28_p1, %s26_s18), 0  ;;  %p201_p3 = pnand %p424_p0, %p200_p2 }
   0x6   : > { %p244_p4 = scmp.lt.s32.totalorder (!%p201_p3), %s494_s15, 1  ;;  %v276_v0 = vld [vmem:[%s573_s2] sm:$0x1] (!%p201_p3)  ;;  %v292_v2 = vlaneseq (!%p201_p3) }
   0x7   : > { %204 = sbr.rel (%p201_p3) target bundleno = 31 (0x1f), region = 36  ;;  %v289_v1 = vadd.f32 (!%p201_p3), 1e-05, %v276_v0  ;;  %v431_v7 = vld [vmem:[%s572_s1] ss:$0 sm:$0xff] (!%p201_p3) }
   0x8   : > { %v293_v4 = vshrl.u32 (!%p201_p3), %v292_v2, 7 }
   0x9   : > { %478 = vrsqrt.f32 (!%p201_p3), %v289_v1 }
   0xa   : > { %v294_v8 = vsub.s32 (!%p201_p3), 0, %v293_v4 }
   0xe   : > { %s581_s15 = smov (!%p244_p4, %s494_s15), 1 }
   0xf   : > { %s436_s21 = sshll.u32 %s581_s15, 3 }
  0x10   : > { %s251_s24 = scalar_lea.vmem %s571_s0, %s436_s21  ;;  %s261_s27 = scalar_lea.vmem %s574_s3, %s436_s21 }
  0x11   : > { %v442_v3 = vld [vmem:[%s251_s24] sm:$0xff]   ;;  %s271_s6 = scalar_lea.vmem %s575_s4, %s436_s21 }
  0x12   : > { %v443_v5 = vunpack.c.l.bf16 %v442_v3  ;;  %v444_v6 = vunpack.c.h.bf16 %v442_v3  ;;  %v446_v9 = vld [vmem:[%s261_s27] sm:$0xff]  }
  0x13   : > { %v479_v12 = vpop.eup %478  ;;  %v447_v13 = vunpack.c.l.bf16 %v446_v9  ;;  %v448_v14 = vunpack.c.h.bf16 %v446_v9 }
  0x14   : > { %v287_v10 = vsub.f32 %v443_v5, %v431_v7  ;;  %v288_v11 = vsub.f32 %v444_v6, %v431_v7  ;;  %v295_v15 = vrot.slane %v479_v12, %v294_v8 }
  0x16   : > { %v297_v16 = vmul.f32 %v295_v15, %v287_v10  ;;  %v298_v17 = vmul.f32 %v295_v15, %v288_v11 }
  0x18   : > { %v301_v18 = vadd.f32 %v447_v13, %v297_v16  ;;  %v302_v19 = vadd.f32 %v448_v14, %v298_v17 }
  0x1a   : > { %v303_v20 = vmax.f32 %v301_v18, 0.0  ;;  %v304_v21 = vmax.f32 %v302_v19, 0.0 }
  0x1c   : > { %v452_v22 = vpack.c.bf16 %v304_v21, %v303_v20 }
  0x1e   : > { %453 = vst [vmem:[%s271_s6] sm:$0xff] %v452_v22  }
  0x1f PF: > { %s14_s17 = sadd.s32 1, %s502_s17   ;;  %s576_s15 = smov %s498_s16 }
  0x20   : > { %p11_p5 = scmp.ge.s32.totalorder %s14_s17, 4   ;;  %s577_s16 = smov %s579_s18 }
  0x22   :  { %13 = sbr.rel (!%p11_p5) target bundleno = 2 (0x2), region = 69 }

// kernel: forward.58
= control target key start
LH: loop header
LB: loop body
LE: loop exit
PB: predicated region body
PF: predicated region fallthrough
CT: control target
= control target key end

     0   :  { %s430_s12 = smov 0   ;;  %s432_s13 = smov 0   ;;  %s469_s0 = inlined_call_operand.vmem [shape: bf16[2,16,128], index: 0, kind: input, shape index: {}]   ;;  %s470_s1 = inlined_call_operand.vmem [shape: f32[1,1,128], index: 1, kind: input, shape index: {}]   ;;  %s471_s2 = inlined_call_operand.vmem [shape: f32[1,1,128], index: 2, kind: input, shape index: {}]   ;;  %s472_s3 = inlined_call_operand.vmem [shape: bf16[2,16,128], index: 3, kind: output, shape index: {}]  }
   0x1   :  { %s434_s14 = smov 0  }
   0x2 LB: > { %s25_s15 = sadd.s32 1, %s404_s13  ;;  %p337_p0 = scmp.ge.s32.totalorder %s408_s14, 1  ;;  %s408_s14 = sphi %s434_s14, %s13_s14   ;;  %s404_s13 = sphi %s432_s13, %s474_s13   ;;  %s400_s12 = sphi %s430_s12, %s473_s12  }
   0x3   : > { %p27_p1 = scmp.ge.s32.totalorder %s25_s15, 2  ;;  %p158_p2 = scmp.lt.s32.totalorder %s408_s14, 3 }
   0x5   : > { %s476_s15 = smov (%p27_p1, %s25_s15), 0  ;;  %p159_p3 = pnand %p337_p0, %p158_p2 }
   0x6   : > { %p191_p4 = scmp.lt.s32.totalorder (!%p159_p3), %s400_s12, 1  ;;  %v213_v0 = vld [vmem:[%s471_s2] sm:$0x1] (!%p159_p3)  ;;  %v227_v2 = vlaneseq (!%p159_p3) }
   0x7   : > { %162 = sbr.rel (%p159_p3) target bundleno = 29 (0x1d), region = 32  ;;  %v224_v1 = vadd.f32 (!%p159_p3), 1e-05, %v213_v0  ;;  %v342_v7 = vld [vmem:[%s470_s1] ss:$0 sm:$0xff] (!%p159_p3) }
   0x8   : > { %v228_v4 = vshrl.u32 (!%p159_p3), %v227_v2, 7 }
   0x9   : > { %384 = vrsqrt.f32 (!%p159_p3), %v224_v1 }
   0xa   : > { %v229_v8 = vsub.s32 (!%p159_p3), 0, %v228_v4 }
   0xe   : > { %s478_s12 = smov (!%p191_p4, %s400_s12), 1 }
   0xf   : > { %s347_s18 = sshll.u32 %s478_s12, 3 }
  0x10   : > { %s198_s21 = scalar_lea.vmem %s469_s0, %s347_s18  ;;  %s208_s26 = scalar_lea.vmem %s472_s3, %s347_s18 }
  0x11   : > { %v352_v3 = vld [vmem:[%s198_s21] sm:$0xff]  }
  0x12   : > { %v353_v5 = vunpack.c.l.bf16 %v352_v3  ;;  %v354_v6 = vunpack.c.h.bf16 %v352_v3 }
  0x13   : > { %v385_v11 = vpop.eup %384 }
  0x14   : > { %v222_v9 = vsub.f32 %v353_v5, %v342_v7  ;;  %v223_v10 = vsub.f32 %v354_v6, %v342_v7  ;;  %v230_v12 = vrot.slane %v385_v11, %v229_v8 }
  0x16   : > { %v232_v13 = vmul.f32 %v230_v12, %v222_v9  ;;  %v233_v14 = vmul.f32 %v230_v12, %v223_v10 }
  0x18   : > { %v234_v15 = vmax.f32 %v232_v13, 0.0  ;;  %v235_v16 = vmax.f32 %v233_v14, 0.0 }
  0x1a   : > { %v358_v17 = vpack.c.bf16 %v235_v16, %v234_v15 }
  0x1c   : > { %359 = vst [vmem:[%s208_s26] sm:$0xff] %v358_v17  }
  0x1d PF: > { %s13_s14 = sadd.s32 1, %s408_s14   ;;  %s473_s12 = smov %s404_s13 }
  0x1e   : > { %p10_p5 = scmp.ge.s32.totalorder %s13_s14, 4   ;;  %s474_s13 = smov %s476_s15 }
  0x20   :  { %12 = sbr.rel (!%p10_p5) target bundleno = 2 (0x2), region = 62 }

// kernel: forward.69
= control target key start
LH: loop header
LB: loop body
LE: loop exit
PB: predicated region body
PF: predicated region fallthrough
CT: control target
= control target key end

     0   :  { %s755_s9 = smov 0   ;;  %s757_s10 = smov 0   ;;  %s852_s0 = inlined_call_operand.vmem [shape: bf16[16,128], index: 0, kind: input, shape index: {}]   ;;  %s853_s1 = inlined_call_operand.vmem [shape: bf16[128,256], index: 1, kind: input, shape index: {}]   ;;  %s854_s2 = inlined_call_operand.vmem [shape: bf16[16,256], index: 2, kind: output, shape index: {}]  }
   0x1   :  { %s759_s11 = smov 0   ;;  %s761_s12 = smov 0  }
   0x2   :  { %s763_s13 = smov 0  }
   0x3 LB: > { %s27_s14 = sadd.s32 1, %s732_s12  ;;  %s586_s15 = sadd.s32 4294967295, %s736_s13   ;;  %s736_s13 = sphi %s763_s13, %s12_s13   ;;  %s732_s12 = sphi %s761_s12, %s859_s12   ;;  %s728_s11 = sphi %s759_s11, %s858_s11   ;;  %s724_s10 = sphi %s757_s10, %s857_s10   ;;  %s720_s9 = sphi %s755_s9, %s856_s9  }
   0x4   : > { %p29_p0 = scmp.ge.s32.totalorder %s27_s14, 2  ;;  %p75_p1 = scmp.ne.s32.totalorder %s724_s10, %s720_s9 }
   0x5   : > { %p76_p2 = scmp.eq.s32.totalorder %s736_s13, 0  ;;  %p107_p4 = scmp.eq.s32.totalorder %s586_s15, 1 }
   0x6   : > { %s861_s14 = smov (%p29_p0, %s27_s14), 0  ;;  %s68_s17 = sadd.s32 1, %s724_s10 }
   0x7   : > { %p77_p3 = por %p76_p2, %p75_p1  ;;  %s64_s16 = ssub.s32 %s732_s12, %s861_s14 }
   0x8   : > { %p66_p5 = scmp.eq.s32.totalorder %s64_s16, 0  ;;  %p790_p6 = por %p107_p4, %p75_p1 }
   0x9   : > { %p590_p7 = scmp.ge.s32.totalorder %s736_s13, 2 }
   0xa   : > { %s795_s19 = scalar_select %p66_p5, %s724_s10, %s68_s17  }
   0xb   : > { %141 = sbr.rel (%p590_p7) target bundleno = 32 (0x20), region = 20 }
  0x12   : > { %144 = sbr.rel (!%p77_p3) target bundleno = 32 (0x20), region = 24  ;;  %s146_s20 = sand.u32 (%p77_p3), 1, %s724_s10  }
  0x13   : > { %s592_s21 = sshll.u32 (%p77_p3), %s732_s12, 2  ;;  %s591_s22 = sshll.u32 (%p77_p3), %s146_s20, 6 }
  0x14   : > { %s803_s25 = scalar_lea.vmem (%p77_p3), %s853_s1, %s592_s21  ;;  %s148_s26 = scalar_lea.vmem (%p77_p3), [#allocation3], %s591_s22 }
  0x15   : > { %v169_v0 = vld [vmem:[%s803_s25] sm:$0xf] (%p77_p3)  ;;  %v171_v1 = vld [vmem:[%s803_s25 + $0x8] sm:$0xf] (%p77_p3)  ;;  %v173_v2 = vld [vmem:[%s803_s25 + $0x10] sm:$0xf] (%p77_p3) }
  0x16   : > { %170 = vst [vmem:[%s148_s26] sm:$0xf] (%p77_p3), %v169_v0  ;;  %172 = vst [vmem:[%s148_s26 + $0x4] sm:$0xf] (%p77_p3), %v171_v1  ;;  %v175_v3 = vld [vmem:[%s803_s25 + $0x18] sm:$0xf] (%p77_p3) }
  0x17   : > { %v177_v4 = vld [vmem:[%s803_s25 + $0x20] sm:$0xf] (%p77_p3)  ;;  %174 = vst [vmem:[%s148_s26 + $0x8] sm:$0xf] (%p77_p3), %v173_v2  ;;  %176 = vst [vmem:[%s148_s26 + $0xc] sm:$0xf] (%p77_p3), %v175_v3 }
  0x18   : > { %178 = vst [vmem:[%s148_s26 + $0x10] sm:$0xf] (%p77_p3), %v177_v4  ;;  %v179_v5 = vld [vmem:[%s803_s25 + $0x28] sm:$0xf] (%p77_p3)  ;;  %v181_v6 = vld [vmem:[%s803_s25 + $0x30] sm:$0xf] (%p77_p3) }
  0x19   : > { %v183_v7 = vld [vmem:[%s803_s25 + $0x38] sm:$0xf]  ;;  %180 = vst [vmem:[%s148_s26 + $0x14] sm:$0xf] %v179_v5  ;;  %182 = vst [vmem:[%s148_s26 + $0x18] sm:$0xf] %v181_v6 }
  0x1a   : > { %184 = vst [vmem:[%s148_s26 + $0x1c] sm:$0xf] %v183_v7  ;;  %v185_v8 = vld [vmem:[%s803_s25 + $0x40] sm:$0xf]  ;;  %v187_v9 = vld [vmem:[%s803_s25 + $0x48] sm:$0xf] }
  0x1b   : > { %v189_v10 = vld [vmem:[%s803_s25 + $0x50] sm:$0xf]  ;;  %186 = vst [vmem:[%s148_s26 + $0x20] sm:$0xf] %v185_v8  ;;  %188 = vst [vmem:[%s148_s26 + $0x24] sm:$0xf] %v187_v9 }
  0x1c   : > { %190 = vst [vmem:[%s148_s26 + $0x28] sm:$0xf] %v189_v10  ;;  %v191_v11 = vld [vmem:[%s803_s25 + $0x58] sm:$0xf]  ;;  %v193_v12 = vld [vmem:[%s803_s25 + $0x60] sm:$0xf] }
  0x1d   : > { %v195_v13 = vld [vmem:[%s803_s25 + $0x68] sm:$0xf]  ;;  %192 = vst [vmem:[%s148_s26 + $0x2c] sm:$0xf] %v191_v11  ;;  %194 = vst [vmem:[%s148_s26 + $0x30] sm:$0xf] %v193_v12 }
  0x1e   : > { %196 = vst [vmem:[%s148_s26 + $0x34] sm:$0xf] %v195_v13  ;;  %v197_v14 = vld [vmem:[%s803_s25 + $0x70] sm:$0xf]  ;;  %v199_v15 = vld [vmem:[%s803_s25 + $0x78] sm:$0xf] }
  0x1f   : > { %198 = vst [vmem:[%s148_s26 + $0x38] sm:$0xf] %v197_v14  ;;  %200 = vst [vmem:[%s148_s26 + $0x3c] sm:$0xf] %v199_v15 }
  0x20 PF: > { %p593_p8 = scmp.ge.s32.totalorder %s736_s13, 1  ;;  %p254_p9 = scmp.lt.s32.totalorder %s736_s13, 3 }
  0x22   : > { %p255_p10 = pnand %p593_p8, %p254_p9 }
  0x23   : > { %s261_s27 = sand.u32 (!%p255_p10), 1, %s720_s9   ;;  %v738_v16 = vmov (!%p255_p10), 0.0   ;;  %vm739_vm0 = vmmov (!%p255_p10), 0   ;;  %v697_v25 = vld [vmem:[%s852_s0] sm:$0xff] (!%p255_p10)  }
  0x24   : > { %258 = sbr.rel (%p255_p10) target bundleno = 295 (0x127), region = 65  ;;  %627 = vmatprep.subr.bf16.mxu0 (!%p255_p10), %v738_v16  ;;  %s594_s28 = sshll.u32 (!%p255_p10), %s261_s27, 6  ;;  %643 = vmatprep.mubr.msk.bf16.mxu0 (!%p255_p10), %vm739_vm0, %v738_v16 }
  0x25   : > { %s263_s29 = scalar_lea.vmem (!%p255_p10), [#allocation3], %s594_s28  ;;  %s595_s4 = sshll.u32 (!%p255_p10), %s261_s27, 3 }
  0x26   : > { %v689_v17 = vld [vmem:[%s263_s29] sm:$0xff] (!%p255_p10)   ;;  %v690_v18 = vld [vmem:[%s263_s29 + $0x8] sm:$0xff] (!%p255_p10)   ;;  %v691_v19 = vld [vmem:[%s263_s29 + $0x10] sm:$0xff] (!%p255_p10)   ;;  %s288_s5 = scalar_lea.vmem (!%p255_p10), [#allocation4], %s595_s4 }
  0x27   : > { %628 = vmatpush3.bf16.msra.mxu0 (!%p255_p10), %v689_v17  ;;  %v692_v20 = vld [vmem:[%s263_s29 + $0x18] sm:$0xff] (!%p255_p10)   ;;  %v693_v21 = vld [vmem:[%s263_s29 + $0x20] sm:$0xff] (!%p255_p10)   ;;  %v694_v22 = vld [vmem:[%s263_s29 + $0x28] sm:$0xff] (!%p255_p10)  }
  0x28   : > { %629 = vmatprep.subr.bf16.mxu0 (!%p255_p10), %v738_v16  ;;  %v695_v23 = vld [vmem:[%s263_s29 + $0x30] sm:$0xff] (!%p255_p10)   ;;  %v696_v24 = vld [vmem:[%s263_s29 + $0x38] sm:$0xff] (!%p255_p10)  }
  0x2b   : > { %630 = vmatpush3.bf16.msra.mxu0 %v690_v18  ;;  %s608_s6 = sshll.u32 (%p790_p6), %s728_s11, 2 }
  0x2c   : > { %631 = vmatprep.subr.bf16.mxu0 %v738_v16  ;;  %s452_s15 = scalar_lea.vmem (%p790_p6), %s854_s2, %s608_s6 }
  0x2f   : > { %632 = vmatpush3.bf16.msra.mxu0 %v691_v19 }
  0x30   : > { %633 = vmatprep.subr.bf16.mxu0 %v738_v16 }
  0x33   : > { %634 = vmatpush3.bf16.msra.mxu0 %v692_v20 }
  0x34   : > { %635 = vmatprep.subr.bf16.mxu0 %v738_v16 }
  0x37   : > { %636 = vmatpush3.bf16.msra.mxu0 %v693_v21 }
  0x38   : > { %637 = vmatprep.subr.bf16.mxu0 %v738_v16 }
  0x3b   : > { %638 = vmatpush3.bf16.msra.mxu0 %v694_v22 }
  0x3c   : > { %639 = vmatprep.subr.bf16.mxu0 %v738_v16 }
  0x3f   : > { %640 = vmatpush3.bf16.msra.mxu0 %v695_v23 }
  0x40   : > { %641 = vmatprep.subr.bf16.mxu0 %v738_v16 }
  0x43   : > { %642 = vmatpush3.bf16.msra.mxu0 %v696_v24 }
  0x46   : > { %644 = vmatmul.mubr.bf16.vlgmr.msra.gmra.mrb[0].mxu0 %v697_v25 }
 0x118   : > { %447 = sbr.rel (!%p790_p6) target bundleno = 295 (0x127), region = 81 }
 0x119   : > { %v415_v26 = vpop.f32.mrb[0].mxu0 }
 0x11a   : > { %v645_v27 = vpop.f32.mrb[1].mxu0 }
 0x11b   : > { %v418_v28 = vpop.f32.mrb[2].mxu0 }
 0x11c   : > { %v616_v29 = vpack.c.bf16 %v418_v28, %v415_v26  ;;  %v646_v30 = vpop.f32.mrb[3].mxu0 }
 0x11e   : > { %617 = vst [vmem:[%s288_s5] sm:$0xff] %v616_v29  }
 0x125   : > { %v468_v31 = vld [vmem:[%s288_s5] sm:$0xf]  ;;  %v470_v32 = vld [vmem:[%s288_s5 + $0x4] sm:$0xf] }
 0x126   : > { %469 = vst [vmem:[%s452_s15] sm:$0xf] %v468_v31  ;;  %471 = vst [vmem:[%s452_s15 + $0x8] sm:$0xf] %v470_v32 }
 0x127 PF: > { %s12_s13 = sadd.s32 1, %s736_s13   ;;  %s856_s9 = smov %s724_s10 }
 0x128   : > { %p9_p11 = scmp.ge.s32.totalorder %s12_s13, 4   ;;  %s857_s10 = smov %s795_s19 }
 0x129   : > { %s858_s11 = smov %s732_s12  ;;  %s859_s12 = smov %s861_s14 }
 0x12a   :  { %11 = sbr.rel (!%p9_p11) target bundleno = 3 (0x3), region = 156 }

// kernel: forward.70
= control target key start
LH: loop header
LB: loop body
LE: loop exit
PB: predicated region body
PF: predicated region fallthrough
CT: control target
= control target key end

     0   :  { %s458_s9 = smov 0   ;;  %s460_s10 = smov 0   ;;  %s516_s0 = inlined_call_operand.vmem [shape: bf16[2,16,256], index: 0, kind: input, shape index: {}]   ;;  %s517_s1 = inlined_call_operand.vmem [shape: f32[2,1,256], index: 1, kind: output, shape index: {0}]   ;;  %s518_s2 = inlined_call_operand.vmem [shape: f32[2,1,256], index: 2, kind: output, shape index: {1}]  }
   0x1   :  { %s462_s11 = smov 0  }
   0x2 LB: > { %s25_s12 = sadd.s32 1, %s435_s10  ;;  %p383_p0 = scmp.ge.s32.totalorder %s439_s11, 1  ;;  %s439_s11 = sphi %s462_s11, %s13_s11   ;;  %s435_s10 = sphi %s460_s10, %s522_s10   ;;  %s431_s9 = sphi %s458_s9, %s521_s9  }
   0x3   : > { %p27_p1 = scmp.ge.s32.totalorder %s25_s12, 2  ;;  %p135_p2 = scmp.lt.s32.totalorder %s439_s11, 3 }
   0x5   : > { %s524_s12 = smov (%p27_p1, %s25_s12), 0  ;;  %p136_p3 = pnand %p383_p0, %p135_p2 }
   0x6   : > { %p166_p4 = scmp.lt.s32.totalorder (!%p136_p3), %s431_s9, 1  ;;  %v188_v0 = vlaneseq (!%p136_p3)  ;;  %v441_v2 = vmov (!%p136_p3), 0.0   ;;  %v442_v21 = vmov (!%p136_p3), 1966171168  }
   0x7   : > { %139 = sbr.rel (%p136_p3) target bundleno = 46 (0x2e), region = 24  ;;  %v219_v22 = vunpack.c.l.s4 (!%p136_p3), %v442_v21 }
   0x8   : > { %vm476_vm0 = vcmp.lt.s32.totalorder (!%p136_p3), %v188_v0, 256  ;;  %v222_v32 = vshrl.u32 (!%p136_p3), %v188_v0, 7 }
   0x9   : > { %v220_v31 = vunpack.c.0.s8 (!%p136_p3), %v219_v22 }
   0xb   : > { %v223_v41 = vsub.s32 (!%p136_p3), %v220_v31, %v222_v32 }
   0xe   : > { %s526_s9 = smov (!%p166_p4, %s431_s9), 1 }
   0xf   : > { %s390_s13 = sshll.u32 %s526_s9, 4  ;;  %s386_s14 = sshll.u32 %s526_s9, 1 }
  0x10   : > { %s174_s17 = scalar_lea.vmem %s516_s0, %s390_s13  ;;  %s486_s20 = scalar_lea.vmem %s517_s1, %s386_s14 }
  0x11   : > { %192 = vst.msk [vmem:[%s486_s20] sm:$0x3] %vm476_vm0, %v441_v2  ;;  %v194_v3 = vld [vmem:[%s174_s17] sm:$0xff]  ;;  %v195_v4 = vld [vmem:[%s174_s17 + $0x8] sm:$0xff]  ;;  %s494_s23 = scalar_lea.vmem %s518_s2, %s386_s14 }
  0x12   : > { %v196_v5 = vunpack.c.l.bf16 %v194_v3  ;;  %v197_v6 = vunpack.c.h.bf16 %v194_v3  ;;  %v198_v7 = vunpack.c.l.bf16 %v195_v4  ;;  %v199_v8 = vunpack.c.h.bf16 %v195_v4  ;;  %193 = vst.msk [vmem:[%s494_s23] sm:$0x3] %vm476_vm0, %v441_v2 }
  0x14   : > { %v201_v9 = vadd.f32 %v198_v7, %v196_v5  ;;  %v208_v10 = vadd.f32 %v199_v8, %v197_v6  ;;  %v240_v11 = vmul.f32 %v196_v5, %v196_v5  ;;  %v241_v12 = vmul.f32 %v197_v6, %v197_v6 }
  0x15   : > { %v242_v13 = vmul.f32 %v198_v7, %v198_v7  ;;  %v243_v14 = vmul.f32 %v199_v8, %v199_v8 }
  0x16   : > { %v202_v15 = vrot.slane %v201_v9, 4  ;;  %v209_v16 = vrot.slane %v208_v10, 4 }
  0x17   : > { %v244_v17 = vadd.f32 %v242_v13, %v240_v11  ;;  %v251_v18 = vadd.f32 %v243_v14, %v241_v12 }
  0x18   : > { %v203_v19 = vadd.f32 %v202_v15, %v201_v9  ;;  %v210_v20 = vadd.f32 %v209_v16, %v208_v10  ;;  %v200_v48 = vld [vmem:[%s486_s20] sm:$0x3] }
  0x19   : > { %v245_v23 = vrot.slane %v244_v17, 4  ;;  %v252_v24 = vrot.slane %v251_v18, 4  ;;  %v239_v53 = vld [vmem:[%s494_s23] sm:$0x3] }
  0x1a   : > { %v204_v25 = vrot.slane %v203_v19, 2  ;;  %v211_v26 = vrot.slane %v210_v20, 2 }
  0x1b   : > { %v246_v27 = vadd.f32 %v245_v23, %v244_v17  ;;  %v253_v28 = vadd.f32 %v252_v24, %v251_v18 }
  0x1c   : > { %v205_v29 = vadd.f32 %v204_v25, %v203_v19  ;;  %v212_v30 = vadd.f32 %v211_v26, %v210_v20 }
  0x1d   : > { %v247_v33 = vrot.slane %v246_v27, 2  ;;  %v254_v34 = vrot.slane %v253_v28, 2 }
  0x1e   : > { %v206_v35 = vrot.slane %v205_v29, 1  ;;  %v213_v36 = vrot.slane %v212_v30, 1 }
  0x1f   : > { %v248_v37 = vadd.f32 %v247_v33, %v246_v27  ;;  %v255_v38 = vadd.f32 %v254_v34, %v253_v28 }
  0x20   : > { %v207_v39 = vadd.f32 %v206_v35, %v205_v29  ;;  %v214_v40 = vadd.f32 %v213_v36, %v212_v30 }
  0x21   : > { %v249_v42 = vrot.slane %v248_v37, 1  ;;  %v256_v43 = vrot.slane %v255_v38, 1 }
  0x22   : > { %v217_v44 = vcombine.low %v207_v39, %v214_v40 }
  0x23   : > { %v250_v45 = vadd.f32 %v249_v42, %v248_v37  ;;  %v257_v46 = vadd.f32 %v256_v43, %v255_v38 }
  0x24   : > { %v224_v47 = vrot.slane %v217_v44, %v223_v41 }
  0x25   : > { %v260_v49 = vcombine.low %v250_v45, %v257_v46 }
  0x26   : > { %v231_v50 = vrot.slane %v224_v47, %v223_v41 }
  0x27   : > { %v267_v51 = vrot.slane %v260_v49, %v223_v41 }
  0x28   : > { %v233_v52 = vadd.f32 %v231_v50, %v200_v48 }
  0x29   : > { %v274_v54 = vrot.slane %v267_v51, %v223_v41 }
  0x2a   : > { %238 = vst.msk [vmem:[%s486_s20] sm:$0x3] %vm476_vm0, %v233_v52 }
  0x2b   : > { %v276_v55 = vadd.f32 %v274_v54, %v239_v53 }
  0x2d   : > { %277 = vst.msk [vmem:[%s494_s23] sm:$0x3] %vm476_vm0, %v276_v55 }
  0x2e PF: > { %s13_s11 = sadd.s32 1, %s439_s11   ;;  %s521_s9 = smov %s435_s10 }
  0x2f   : > { %p10_p5 = scmp.ge.s32.totalorder %s13_s11, 4   ;;  %s522_s10 = smov %s524_s12 }
  0x31   :  { %12 = sbr.rel (!%p10_p5) target bundleno = 2 (0x2), region = 70 }

// kernel: forward.71
= control target key start
LH: loop header
LB: loop body
LE: loop exit
PB: predicated region body
PF: predicated region fallthrough
CT: control target
= control target key end

     0   :  { %s452_s12 = smov 0   ;;  %s454_s13 = smov 0   ;;  %s491_s0 = inlined_call_operand.vmem [shape: bf16[2,16,256], index: 0, kind: input, shape index: {}]   ;;  %s492_s1 = inlined_call_operand.vmem [shape: f32[1,1,256], index: 1, kind: input, shape index: {}]   ;;  %s493_s2 = inlined_call_operand.vmem [shape: f32[1,1,256], index: 2, kind: input, shape index: {}]   ;;  %s494_s3 = inlined_call_operand.vmem [shape: bf16[2,16,256], index: 3, kind: output, shape index: {}]  }
   0x1   :  { %s456_s14 = smov 0  }
   0x2 LB: > { %s25_s15 = sadd.s32 1, %s426_s13  ;;  %p369_p0 = scmp.ge.s32.totalorder %s430_s14, 1  ;;  %s430_s14 = sphi %s456_s14, %s13_s14   ;;  %s426_s13 = sphi %s454_s13, %s496_s13   ;;  %s422_s12 = sphi %s452_s12, %s495_s12  }
   0x3   : > { %p27_p1 = scmp.ge.s32.totalorder %s25_s15, 2  ;;  %p159_p2 = scmp.lt.s32.totalorder %s430_s14, 3 }
   0x5   : > { %s498_s15 = smov (%p27_p1, %s25_s15), 0  ;;  %p160_p3 = pnand %p369_p0, %p159_p2 }
   0x6   : > { %p194_p4 = scmp.lt.s32.totalorder (!%p160_p3), %s422_s12, 1  ;;  %v218_v0 = vld [vmem:[%s493_s2] sm:$0x3] (!%p160_p3)  ;;  %v224_v1 = vlaneseq (!%p160_p3) }
   0x7   : > { %163 = sbr.rel (%p160_p3) target bundleno = 28 (0x1c), region = 32  ;;  %v238_v2 = vadd.f32 (!%p160_p3), 1e-05, %v218_v0  ;;  %v217_v4 = vld [vmem:[%s492_s1] sm:$0x3] (!%p160_p3) }
   0x8   : > { %v225_v3 = vshrl.u32 (!%p160_p3), %v224_v1, 7 }
   0x9   : > { %406 = vrsqrt.f32 (!%p160_p3), %v238_v2 }
   0xa   : > { %v226_v5 = vsub.s32 (!%p160_p3), 0, %v225_v3  ;;  %v230_v6 = vsub.s32 (!%p160_p3), 1, %v225_v3 }
   0xc   : > { %v227_v9 = vrot.slane (!%p160_p3), %v217_v4, %v226_v5  ;;  %v231_v10 = vrot.slane (!%p160_p3), %v217_v4, %v230_v6 }
   0xe   : > { %s500_s12 = smov (!%p194_p4, %s422_s12), 1 }
   0xf   : > { %s378_s18 = sshll.u32 %s500_s12, 4 }
  0x10   : > { %s202_s23 = scalar_lea.vmem %s491_s0, %s378_s18  ;;  %s213_s26 = scalar_lea.vmem %s494_s3, %s378_s18 }
  0x11   : > { %v215_v7 = vld [vmem:[%s202_s23] sm:$0xff]  ;;  %v216_v8 = vld [vmem:[%s202_s23 + $0x8] sm:$0xff] }
  0x12   : > { %v219_v11 = vunpack.c.l.bf16 %v215_v7  ;;  %v220_v12 = vunpack.c.h.bf16 %v215_v7  ;;  %v221_v13 = vunpack.c.l.bf16 %v216_v8  ;;  %v222_v14 = vunpack.c.h.bf16 %v216_v8 }
  0x13   : > { %v407_v19 = vpop.eup %406 }
  0x14   : > { %v234_v15 = vsub.f32 %v219_v11, %v227_v9  ;;  %v235_v16 = vsub.f32 %v220_v12, %v231_v10  ;;  %v236_v17 = vsub.f32 %v221_v13, %v227_v9  ;;  %v237_v18 = vsub.f32 %v222_v14, %v231_v10 }
  0x15   : > { %v244_v20 = vrot.slane %v407_v19, %v226_v5  ;;  %v248_v21 = vrot.slane %v407_v19, %v230_v6 }
  0x17   : > { %v251_v22 = vmul.f32 %v244_v20, %v234_v15  ;;  %v252_v23 = vmul.f32 %v248_v21, %v235_v16  ;;  %v253_v24 = vmul.f32 %v244_v20, %v236_v17  ;;  %v254_v25 = vmul.f32 %v248_v21, %v237_v18 }
  0x19   : > { %v380_v26 = vpack.c.bf16 %v252_v23, %v251_v22  ;;  %v381_v27 = vpack.c.bf16 %v254_v25, %v253_v24 }
  0x1b   : > { %267 = vst [vmem:[%s213_s26] sm:$0xff] %v380_v26  ;;  %268 = vst [vmem:[%s213_s26 + $0x8] sm:$0xff] %v381_v27 }
  0x1c PF: > { %s13_s14 = sadd.s32 1, %s430_s14   ;;  %s495_s12 = smov %s426_s13 }
  0x1d   : > { %p10_p5 = scmp.ge.s32.totalorder %s13_s14, 4   ;;  %s496_s13 = smov %s498_s15 }
  0x1f   :  { %12 = sbr.rel (!%p10_p5) target bundleno = 2 (0x2), region = 62 }

// kernel: forward.67
= control target key start
LH: loop header
LB: loop body
LE: loop exit
PB: predicated region body
PF: predicated region fallthrough
CT: control target
= control target key end

     0   :  { %s456_s12 = smov 0   ;;  %s458_s13 = smov 0   ;;  %s498_s0 = inlined_call_operand.vmem [shape: bf16[2,16,256], index: 0, kind: input, shape index: {}]   ;;  %s499_s1 = inlined_call_operand.vmem [shape: f32[1,1,256], index: 1, kind: input, shape index: {}]   ;;  %s500_s2 = inlined_call_operand.vmem [shape: f32[1,1,256], index: 2, kind: input, shape index: {}]   ;;  %s501_s3 = inlined_call_operand.vmem [shape: bf16[2,16,256], index: 3, kind: output, shape index: {}]  }
   0x1   :  { %s460_s14 = smov 0  }
   0x2 LB: > { %s25_s15 = sadd.s32 1, %s430_s13  ;;  %p373_p0 = scmp.ge.s32.totalorder %s434_s14, 1  ;;  %s434_s14 = sphi %s460_s14, %s13_s14   ;;  %s430_s13 = sphi %s458_s13, %s503_s13   ;;  %s426_s12 = sphi %s456_s12, %s502_s12  }
   0x3   : > { %p27_p1 = scmp.ge.s32.totalorder %s25_s15, 2  ;;  %p159_p2 = scmp.lt.s32.totalorder %s434_s14, 3 }
   0x5   : > { %s505_s15 = smov (%p27_p1, %s25_s15), 0  ;;  %p160_p3 = pnand %p373_p0, %p159_p2 }
   0x6   : > { %p194_p4 = scmp.lt.s32.totalorder (!%p160_p3), %s426_s12, 1  ;;  %v218_v0 = vld [vmem:[%s500_s2] sm:$0x3] (!%p160_p3)  ;;  %v224_v1 = vlaneseq (!%p160_p3) }
   0x7   : > { %163 = sbr.rel (%p160_p3) target bundleno = 30 (0x1e), region = 32  ;;  %v238_v2 = vadd.f32 (!%p160_p3), 1e-05, %v218_v0  ;;  %v217_v4 = vld [vmem:[%s499_s1] sm:$0x3] (!%p160_p3) }
   0x8   : > { %v225_v3 = vshrl.u32 (!%p160_p3), %v224_v1, 7 }
   0x9   : > { %410 = vrsqrt.f32 (!%p160_p3), %v238_v2 }
   0xa   : > { %v226_v5 = vsub.s32 (!%p160_p3), 0, %v225_v3  ;;  %v230_v6 = vsub.s32 (!%p160_p3), 1, %v225_v3 }
   0xc   : > { %v227_v9 = vrot.slane (!%p160_p3), %v217_v4, %v226_v5  ;;  %v231_v10 = vrot.slane (!%p160_p3), %v217_v4, %v230_v6 }
   0xe   : > { %s507_s12 = smov (!%p194_p4, %s426_s12), 1 }
   0xf   : > { %s382_s18 = sshll.u32 %s507_s12, 4 }
  0x10   : > { %s202_s23 = scalar_lea.vmem %s498_s0, %s382_s18  ;;  %s213_s26 = scalar_lea.vmem %s501_s3, %s382_s18 }
  0x11   : > { %v215_v7 = vld [vmem:[%s202_s23] sm:$0xff]  ;;  %v216_v8 = vld [vmem:[%s202_s23 + $0x8] sm:$0xff] }
  0x12   : > { %v219_v11 = vunpack.c.l.bf16 %v215_v7  ;;  %v220_v12 = vunpack.c.h.bf16 %v215_v7  ;;  %v221_v13 = vunpack.c.l.bf16 %v216_v8  ;;  %v222_v14 = vunpack.c.h.bf16 %v216_v8 }
  0x13   : > { %v411_v19 = vpop.eup %410 }
  0x14   : > { %v234_v15 = vsub.f32 %v219_v11, %v227_v9  ;;  %v235_v16 = vsub.f32 %v220_v12, %v231_v10  ;;  %v236_v17 = vsub.f32 %v221_v13, %v227_v9  ;;  %v237_v18 = vsub.f32 %v222_v14, %v231_v10 }
  0x15   : > { %v244_v20 = vrot.slane %v411_v19, %v226_v5  ;;  %v248_v21 = vrot.slane %v411_v19, %v230_v6 }
  0x17   : > { %v251_v22 = vmul.f32 %v244_v20, %v234_v15  ;;  %v252_v23 = vmul.f32 %v248_v21, %v235_v16  ;;  %v253_v24 = vmul.f32 %v244_v20, %v236_v17  ;;  %v254_v25 = vmul.f32 %v248_v21, %v237_v18 }
  0x19   : > { %v255_v26 = vmax.f32 %v251_v22, 0.0  ;;  %v256_v27 = vmax.f32 %v252_v23, 0.0  ;;  %v257_v28 = vmax.f32 %v253_v24, 0.0  ;;  %v258_v29 = vmax.f32 %v254_v25, 0.0 }
  0x1b   : > { %v384_v30 = vpack.c.bf16 %v256_v27, %v255_v26  ;;  %v385_v31 = vpack.c.bf16 %v258_v29, %v257_v28 }
  0x1d   : > { %271 = vst [vmem:[%s213_s26] sm:$0xff] %v384_v30  ;;  %272 = vst [vmem:[%s213_s26 + $0x8] sm:$0xff] %v385_v31 }
  0x1e PF: > { %s13_s14 = sadd.s32 1, %s434_s14   ;;  %s502_s12 = smov %s430_s13 }
  0x1f   : > { %p10_p5 = scmp.ge.s32.totalorder %s13_s14, 4   ;;  %s503_s13 = smov %s505_s15 }
  0x21   :  { %12 = sbr.rel (!%p10_p5) target bundleno = 2 (0x2), region = 62 }

// kernel: forward.65
= control target key start
LH: loop header
LB: loop body
LE: loop exit
PB: predicated region body
PF: predicated region fallthrough
CT: control target
= control target key end

     0   :  { %s1272_s9 = smov 0   ;;  %s1274_s10 = smov 0   ;;  %s1568_s0 = inlined_call_operand.vmem [shape: bf16[16,3456], index: 0, kind: input, shape index: {}]   ;;  %s1569_s1 = inlined_call_operand.vmem [shape: bf16[3456,256], index: 1, kind: input, shape index: {}]   ;;  %s1570_s2 = inlined_call_operand.vmem [shape: bf16[16,256], index: 2, kind: output, shape index: {}]  }
   0x1   :  { %s1276_s11 = smov 0   ;;  %s1278_s12 = smov 0  }
   0x2   :  { %s1280_s13 = smov 0   ;;  %s1282_s14 = smov 0  }
   0x3   :  { %s1284_s15 = smov 0   ;;  %s1286_s16 = smov 0  }
   0x4   :  { %s1288_s17 = smov 0   ;;  %s1290_s18 = smov 0  }
   0x5   :  { %s1292_s19 = smov 0  }
   0x6 LB: > { %s935_s20 = sadd.s32 4294967295, %s1252_s19   ;;  %s24_s21 = sadd.s32 1, %s1244_s17  ;;  %s1252_s19 = sphi %s1292_s19, %s12_s19   ;;  %s1248_s18 = sphi %s1290_s18, %s1583_s18   ;;  %s1244_s17 = sphi %s1288_s17, %s1582_s17   ;;  %s1240_s16 = sphi %s1286_s16, %s1581_s16   ;;  %s1236_s15 = sphi %s1284_s15, %s1580_s15   ;;  %s1232_s14 = sphi %s1282_s14, %s1579_s14   ;;  %s1228_s13 = sphi %s1280_s13, %s1578_s13   ;;  %s1224_s12 = sphi %s1278_s12, %s1577_s12   ;;  %s1220_s11 = sphi %s1276_s11, %s1576_s11   ;;  %s1216_s10 = sphi %s1274_s10, %s1575_s10   ;;  %s1212_s9 = sphi %s1272_s9, %s1574_s9  }
   0x7   : > { %p25_p0 = scmp.ge.s32.totalorder %s24_s21, 9  ;;  %s27_s22 = sadd.s32 1, %s1248_s18 }
   0x8   : > { %s40_s23 = sadd.s32 1, %s1232_s14  ;;  %p47_p1 = scmp.ne.s32.totalorder %s1232_s14, %s1228_s13 }
   0x9   : > { %s1585_s21 = smov (%p25_p0, %s24_s21), 0  ;;  %s1587_s22 = smov (!%p25_p0, %s27_s22), %s1248_s18 }
   0xa   : > { %s36_s24 = ssub.s32 %s1244_s17, %s1585_s21  ;;  %p48_p2 = scmp.eq.s32.totalorder %s1252_s19, 0 }
   0xb   : > { %p29_p3 = scmp.ge.s32.totalorder %s1587_s22, 2  ;;  %p38_p4 = scmp.eq.s32.totalorder %s36_s24, 0 }
   0xc   : > { %p1339_p5 = por %p48_p2, %p47_p1  ;;  %s68_s26 = sadd.s32 1, %s1224_s12 }
   0xd   : > { %s1589_s22 = smov (%p29_p3, %s1587_s22), 0  ;;  %p75_p6 = scmp.ne.s32.totalorder %s1224_s12, %s1220_s11 }
   0xe   : > { %s1347_s27 = scalar_select %p38_p4, %s1232_s14, %s40_s23  }
   0xf   : > { %s64_s28 = ssub.s32 %s1248_s18, %s1589_s22  ;;  %p1353_p9 = por %p75_p6, %p48_p2 }
  0x10   : > { %s65_s29 = sor.u32 %s64_s28, %s36_s24  ;;  %p94_p7 = scmp.eq.s32.totalorder %s64_s28, 0 }
  0x11   : > { %p66_p8 = scmp.eq.s32.totalorder %s65_s29, 0  ;;  %s96_s3 = sadd.s32 1, %s1216_s10 }
  0x12   : > { %p106_p10 = scmp.ne.s32.totalorder %s1216_s10, %s1212_s9  ;;  %p107_p11 = scmp.eq.s32.totalorder %s935_s20, 17 }
  0x13   : > { %s1361_s4 = scalar_select %p66_p8, %s1224_s12, %s68_s26  }
  0x14   : > { %s1364_s5 = scalar_select %p94_p7, %s1216_s10, %s96_s3  }
  0x15   : > { %p1366_p12 = por %p107_p11, %p106_p10  ;;  %p938_p13 = scmp.ge.s32.totalorder %s1252_s19, 18 }
  0x17   : > { %129 = sbr.rel (%p938_p13) target bundleno = 76 (0x4c), region = 16 }
  0x1e   : > { %132 = sbr.rel (!%p1339_p5) target bundleno = 37 (0x25), region = 20  ;;  %s134_s7 = sand.u32 (%p1339_p5), 1, %s1232_s14  }
  0x1f   : > { %s983_s8 = smul.u32 (%p1339_p5), 12, %s1244_s17 }
  0x20   : > { %s1043_s23 = smul.u32 (%p1339_p5), 24, %s134_s7 }
  0x21   : > { %s142_s28 = scalar_lea.vmem (%p1339_p5), %s1568_s0, %s983_s8 }
  0x22   : > { %v157_v0 = vld [vmem:[%s142_s28] sm:$0xff] (%p1339_p5)  ;;  %v159_v1 = vld [vmem:[%s142_s28 + $0x6c] sm:$0xff] (%p1339_p5)  ;;  %v940_v2 = vld [vmem:[%s142_s28 + $0x8] sm:$0xf] (%p1339_p5)  ;;  %s136_s20 = scalar_lea.vmem (%p1339_p5), [#allocation3], %s1043_s23 }
  0x23   : > { %158 = vst [vmem:[%s136_s20] sm:$0xff] (%p1339_p5), %v157_v0  ;;  %160 = vst [vmem:[%s136_s20 + $0xc] sm:$0xff] (%p1339_p5), %v159_v1  ;;  %v942_v3 = vld [vmem:[%s142_s28 + $0x74] sm:$0xf] (%p1339_p5) }
  0x24   : > { %941 = vst [vmem:[%s136_s20 + $0x8] sm:$0xf] (%p1339_p5), %v940_v2  ;;  %943 = vst [vmem:[%s136_s20 + $0x14] sm:$0xf] (%p1339_p5), %v942_v3 }
  0x25 PF: > { %177 = sbr.rel (!%p1353_p9) target bundleno = 76 (0x4c), region = 46  ;;  %s179_s25 = sand.u32 (%p1353_p9), 1, %s1224_s12  }
  0x26   : > { %s984_s29 = smul.u32 (%p1353_p9), 96, %s1244_s17 }
  0x27   : > { %s1044_s3 = smul.u32 (%p1353_p9), 192, %s179_s25 }
  0x28   : > { %s184_s7 = sadd.s32 (%p1353_p9), %s1248_s18, %s984_s29 }
  0x29   : > { %s945_s8 = sshll.u32 (%p1353_p9), %s184_s7, 2  ;;  %s1391_s30 = scalar_lea.vmem (%p1353_p9), [#allocation4], %s1044_s3 }
  0x2a   : > { %s1386_s23 = scalar_lea.vmem (%p1353_p9), %s1569_s1, %s945_s8 }
  0x2b   : > { %v202_v4 = vld [vmem:[%s1386_s23] sm:$0xf] (%p1353_p9)  ;;  %v204_v5 = vld [vmem:[%s1386_s23 + $0x8] sm:$0xf] (%p1353_p9)  ;;  %v206_v6 = vld [vmem:[%s1386_s23 + $0x10] sm:$0xf] (%p1353_p9) }
  0x2c   : > { %203 = vst [vmem:[%s1391_s30] sm:$0xf] %v202_v4  ;;  %205 = vst [vmem:[%s1391_s30 + $0x4] sm:$0xf] %v204_v5  ;;  %v208_v7 = vld [vmem:[%s1386_s23 + $0x18] sm:$0xf] }
  0x2d   : > { %207 = vst [vmem:[%s1391_s30 + $0x8] sm:$0xf] %v206_v6  ;;  %v210_v8 = vld [vmem:[%s1386_s23 + $0x20] sm:$0xf]  ;;  %v212_v9 = vld [vmem:[%s1386_s23 + $0x28] sm:$0xf] }
  0x2e   : > { %209 = vst [vmem:[%s1391_s30 + $0xc] sm:$0xf] %v208_v7  ;;  %211 = vst [vmem:[%s1391_s30 + $0x10] sm:$0xf] %v210_v8  ;;  %v214_v10 = vld [vmem:[%s1386_s23 + $0x30] sm:$0xf] }
  0x2f   : > { %213 = vst [vmem:[%s1391_s30 + $0x14] sm:$0xf] %v212_v9  ;;  %v216_v11 = vld [vmem:[%s1386_s23 + $0x38] sm:$0xf]  ;;  %v218_v12 = vld [vmem:[%s1386_s23 + $0x40] sm:$0xf] }
  0x30   : > { %215 = vst [vmem:[%s1391_s30 + $0x18] sm:$0xf] %v214_v10  ;;  %217 = vst [vmem:[%s1391_s30 + $0x1c] sm:$0xf] %v216_v11  ;;  %v220_v13 = vld [vmem:[%s1386_s23 + $0x48] sm:$0xf] }
  0x31   : > { %219 = vst [vmem:[%s1391_s30 + $0x20] sm:$0xf] %v218_v12  ;;  %v222_v14 = vld [vmem:[%s1386_s23 + $0x50] sm:$0xf]  ;;  %v224_v15 = vld [vmem:[%s1386_s23 + $0x58] sm:$0xf] }
  0x32   : > { %221 = vst [vmem:[%s1391_s30 + $0x24] sm:$0xf] %v220_v13  ;;  %223 = vst [vmem:[%s1391_s30 + $0x28] sm:$0xf] %v222_v14  ;;  %v226_v16 = vld [vmem:[%s1386_s23 + $0x60] sm:$0xf] }
  0x33   : > { %225 = vst [vmem:[%s1391_s30 + $0x2c] sm:$0xf] %v224_v15  ;;  %v228_v17 = vld [vmem:[%s1386_s23 + $0x68] sm:$0xf]  ;;  %v230_v18 = vld [vmem:[%s1386_s23 + $0x70] sm:$0xf] }
  0x34   : > { %227 = vst [vmem:[%s1391_s30 + $0x30] sm:$0xf] %v226_v16  ;;  %229 = vst [vmem:[%s1391_s30 + $0x34] sm:$0xf] %v228_v17  ;;  %v232_v19 = vld [vmem:[%s1386_s23 + $0x78] sm:$0xf] }
  0x35   : > { %231 = vst [vmem:[%s1391_s30 + $0x38] sm:$0xf] %v230_v18  ;;  %v234_v20 = vld [vmem:[%s1386_s23 + $0x80] sm:$0xf]  ;;  %v236_v21 = vld [vmem:[%s1386_s23 + $0x88] sm:$0xf] }
  0x36   : > { %233 = vst [vmem:[%s1391_s30 + $0x3c] sm:$0xf] %v232_v19  ;;  %235 = vst [vmem:[%s1391_s30 + $0x40] sm:$0xf] %v234_v20  ;;  %v238_v22 = vld [vmem:[%s1386_s23 + $0x90] sm:$0xf] }
  0x37   : > { %237 = vst [vmem:[%s1391_s30 + $0x44] sm:$0xf] %v236_v21  ;;  %v240_v23 = vld [vmem:[%s1386_s23 + $0x98] sm:$0xf]  ;;  %v242_v24 = vld [vmem:[%s1386_s23 + $0xa0] sm:$0xf] }
  0x38   : > { %239 = vst [vmem:[%s1391_s30 + $0x48] sm:$0xf] %v238_v22  ;;  %241 = vst [vmem:[%s1391_s30 + $0x4c] sm:$0xf] %v240_v23  ;;  %v244_v25 = vld [vmem:[%s1386_s23 + $0xa8] sm:$0xf] }
  0x39   : > { %243 = vst [vmem:[%s1391_s30 + $0x50] sm:$0xf] %v242_v24  ;;  %v246_v26 = vld [vmem:[%s1386_s23 + $0xb0] sm:$0xf]  ;;  %v248_v27 = vld [vmem:[%s1386_s23 + $0xb8] sm:$0xf] }
  0x3a   : > { %245 = vst [vmem:[%s1391_s30 + $0x54] sm:$0xf] %v244_v25  ;;  %247 = vst [vmem:[%s1391_s30 + $0x58] sm:$0xf] %v246_v26  ;;  %v250_v28 = vld [vmem:[%s1386_s23 + $0xc0] sm:$0xf] }
  0x3b   : > { %249 = vst [vmem:[%s1391_s30 + $0x5c] sm:$0xf] %v248_v27  ;;  %v252_v29 = vld [vmem:[%s1386_s23 + $0xc8] sm:$0xf]  ;;  %v254_v30 = vld [vmem:[%s1386_s23 + $0xd0] sm:$0xf] }
  0x3c   : > { %251 = vst [vmem:[%s1391_s30 + $0x60] sm:$0xf] %v250_v28  ;;  %253 = vst [vmem:[%s1391_s30 + $0x64] sm:$0xf] %v252_v29  ;;  %v256_v31 = vld [vmem:[%s1386_s23 + $0xd8] sm:$0xf] }
  0x3d   : > { %255 = vst [vmem:[%s1391_s30 + $0x68] sm:$0xf] %v254_v30  ;;  %v258_v32 = vld [vmem:[%s1386_s23 + $0xe0] sm:$0xf]  ;;  %v260_v33 = vld [vmem:[%s1386_s23 + $0xe8] sm:$0xf] }
  0x3e   : > { %257 = vst [vmem:[%s1391_s30 + $0x6c] sm:$0xf] %v256_v31  ;;  %259 = vst [vmem:[%s1391_s30 + $0x70] sm:$0xf] %v258_v32  ;;  %v262_v34 = vld [vmem:[%s1386_s23 + $0xf0] sm:$0xf] }
  0x3f   : > { %261 = vst [vmem:[%s1391_s30 + $0x74] sm:$0xf] %v260_v33  ;;  %v264_v35 = vld [vmem:[%s1386_s23 + $0xf8] sm:$0xf]  ;;  %v266_v36 = vld [vmem:[%s1386_s23 + $0x100] sm:$0xf] }
  0x40   : > { %263 = vst [vmem:[%s1391_s30 + $0x78] sm:$0xf] %v262_v34  ;;  %265 = vst [vmem:[%s1391_s30 + $0x7c] sm:$0xf] %v264_v35  ;;  %v268_v37 = vld [vmem:[%s1386_s23 + $0x108] sm:$0xf] }
  0x41   : > { %267 = vst [vmem:[%s1391_s30 + $0x80] sm:$0xf] %v266_v36  ;;  %v270_v38 = vld [vmem:[%s1386_s23 + $0x110] sm:$0xf]  ;;  %v272_v39 = vld [vmem:[%s1386_s23 + $0x118] sm:$0xf] }
  0x42   : > { %269 = vst [vmem:[%s1391_s30 + $0x84] sm:$0xf] %v268_v37  ;;  %271 = vst [vmem:[%s1391_s30 + $0x88] sm:$0xf] %v270_v38  ;;  %v274_v40 = vld [vmem:[%s1386_s23 + $0x120] sm:$0xf] }
  0x43   : > { %273 = vst [vmem:[%s1391_s30 + $0x8c] sm:$0xf] %v272_v39  ;;  %v276_v41 = vld [vmem:[%s1386_s23 + $0x128] sm:$0xf]  ;;  %v278_v42 = vld [vmem:[%s1386_s23 + $0x130] sm:$0xf] }
  0x44   : > { %275 = vst [vmem:[%s1391_s30 + $0x90] sm:$0xf] %v274_v40  ;;  %277 = vst [vmem:[%s1391_s30 + $0x94] sm:$0xf] %v276_v41  ;;  %v280_v43 = vld [vmem:[%s1386_s23 + $0x138] sm:$0xf] }
  0x45   : > { %279 = vst [vmem:[%s1391_s30 + $0x98] sm:$0xf] %v278_v42  ;;  %v282_v44 = vld [vmem:[%s1386_s23 + $0x140] sm:$0xf]  ;;  %v284_v45 = vld [vmem:[%s1386_s23 + $0x148] sm:$0xf] }
  0x46   : > { %281 = vst [vmem:[%s1391_s30 + $0x9c] sm:$0xf] %v280_v43  ;;  %283 = vst [vmem:[%s1391_s30 + $0xa0] sm:$0xf] %v282_v44  ;;  %v286_v46 = vld [vmem:[%s1386_s23 + $0x150] sm:$0xf] }
  0x47   : > { %285 = vst [vmem:[%s1391_s30 + $0xa4] sm:$0xf] %v284_v45  ;;  %v288_v47 = vld [vmem:[%s1386_s23 + $0x158] sm:$0xf]  ;;  %v290_v48 = vld [vmem:[%s1386_s23 + $0x160] sm:$0xf] }
  0x48   : > { %287 = vst [vmem:[%s1391_s30 + $0xa8] sm:$0xf] %v286_v46  ;;  %289 = vst [vmem:[%s1391_s30 + $0xac] sm:$0xf] %v288_v47  ;;  %v292_v49 = vld [vmem:[%s1386_s23 + $0x168] sm:$0xf] }
  0x49   : > { %291 = vst [vmem:[%s1391_s30 + $0xb0] sm:$0xf] %v290_v48  ;;  %v294_v50 = vld [vmem:[%s1386_s23 + $0x170] sm:$0xf]  ;;  %v296_v51 = vld [vmem:[%s1386_s23 + $0x178] sm:$0xf] }
  0x4a   : > { %293 = vst [vmem:[%s1391_s30 + $0xb4] sm:$0xf] %v292_v49  ;;  %295 = vst [vmem:[%s1391_s30 + $0xb8] sm:$0xf] %v294_v50 }
  0x4b   : > { %297 = vst [vmem:[%s1391_s30 + $0xbc] sm:$0xf] %v296_v51 }
  0x4c PF: > { %p946_p0 = scmp.ge.s32.totalorder %s1252_s19, 1  ;;  %p415_p1 = scmp.lt.s32.totalorder %s1252_s19, 19 }
  0x4e   : > { %p416_p2 = pnand %p946_p0, %p415_p1 }
  0x4f   : > { %s422_s28 = sand.u32 (!%p416_p2), 1, %s1228_s13   ;;  %s429_s20 = sand.u32 (!%p416_p2), 1, %s1220_s11  }
  0x50   : > { %419 = sbr.rel (%p416_p2) target bundleno = 367 (0x16f), region = 87  ;;  %s450_s29 = sand.u32 (!%p416_p2), 1, %s1212_s9  }
  0x51   : > { %s1045_s25 = smul.u32 (!%p416_p2), 24, %s422_s28  ;;  %s947_s7 = sshll.u32 (!%p416_p2), %s450_s29, 3 }
  0x52   : > { %s1046_s3 = smul.u32 (!%p416_p2), 192, %s429_s20  ;;  %s1495_s26 = scalar_lea.vmem (!%p416_p2), [#allocation5], %s947_s7 }
  0x53   : > { %s1491_s8 = scalar_lea.vmem (!%p416_p2), [#allocation3], %s1045_s25  ;;  %p948_p3 = scmp.ne.s32.totalorder (!%p416_p2), %s1236_s15, 0 }
  0x54   : > { %s1493_s24 = scalar_lea.vmem (!%p416_p2), [#allocation4], %s1046_s3 }
  0x57   : > { %461 = sbr.rel (%p948_p3) target bundleno = 94 (0x5e), region = 99  ;;  %v1254_v52 = vmov (!%p948_p3), 0.0  }
  0x58   : > { %462 = vst [vmem:[#allocation2] sm:$0xff] (!%p948_p3), %v1254_v52  ;;  %463 = vst [vmem:[#allocation2 + $0x8] sm:$0xff] (!%p948_p3), %v1254_v52 }
  0x5e PF: > { %v1138_v53 = vld [vmem:[%s1493_s24 + $0x40] sm:$0xff]   ;;  %v1255_v54 = vmov 0.0   ;;  %vm1256_vm0 = vmmov 0   ;;  %v1141_v57 = vld [vmem:[%s1493_s24 + $0x48] sm:$0xff]   ;;  %v1144_v60 = vld [vmem:[%s1493_s24 + $0x50] sm:$0xff]   ;;  %p976_p4 = scmp.ne.s32.totalorder %s1236_s15, 8 }
  0x5f   : > { %1023 = vmatprep.subr.bf16.mxu1 %v1255_v54  ;;  %v1139_v55 = vld [vmem:[%s1493_s24] sm:$0xff]   ;;  %992 = vmatprep.subr.bf16.mxu0 %v1138_v53  ;;  %v1142_v58 = vld [vmem:[%s1493_s24 + $0x8] sm:$0xff]   ;;  %v1145_v61 = vld [vmem:[%s1493_s24 + $0x10] sm:$0xff]  }
  0x60   : > { %v1140_v56 = vld [vmem:[%s1493_s24 + $0x80] sm:$0xff]   ;;  %1039 = vmatprep.mubr.msk.bf16.mxu1 %vm1256_vm0, %v1255_v54  ;;  %993 = vmatpush3.bf16.msra.mxu0 %v1139_v55  ;;  %v1143_v59 = vld [vmem:[%s1493_s24 + $0x88] sm:$0xff]   ;;  %v1146_v62 = vld [vmem:[%s1493_s24 + $0x90] sm:$0xff]  }
  0x61   : > { %1024 = vmatpush3.bf16.msra.mxu1 %v1140_v56  ;;  %994 = vmatprep.subr.bf16.mxu0 %v1141_v57  ;;  %v1147_v63 = vld [vmem:[%s1493_s24 + $0x58] sm:$0xff]   ;;  %v1150_v2 = vld [vmem:[%s1493_s24 + $0x60] sm:$0xff]   ;;  %v1153_v5 = vld [vmem:[%s1493_s24 + $0x68] sm:$0xff]  }
  0x62   : > { %1025 = vmatprep.subr.bf16.mxu1 %v1255_v54  ;;  %v1148_v0 = vld [vmem:[%s1493_s24 + $0x18] sm:$0xff]   ;;  %v1151_v3 = vld [vmem:[%s1493_s24 + $0x20] sm:$0xff]   ;;  %v1154_v6 = vld [vmem:[%s1493_s24 + $0x28] sm:$0xff]  }
  0x63   : > { %v1149_v1 = vld [vmem:[%s1493_s24 + $0x98] sm:$0xff]   ;;  %v1152_v4 = vld [vmem:[%s1493_s24 + $0xa0] sm:$0xff]   ;;  %v1155_v7 = vld [vmem:[%s1493_s24 + $0xa8] sm:$0xff]  }
  0x64   : > { %995 = vmatpush3.bf16.msra.mxu0 %v1142_v58  ;;  %v1156_v8 = vld [vmem:[%s1493_s24 + $0x70] sm:$0xff]   ;;  %v1159_v11 = vld [vmem:[%s1493_s24 + $0x78] sm:$0xff]   ;;  %v464_v23 = vld [vmem:[#allocation2] sm:$0xff] }
  0x65   : > { %1026 = vmatpush3.bf16.msra.mxu1 %v1143_v59  ;;  %996 = vmatprep.subr.bf16.mxu0 %v1144_v60  ;;  %v1157_v9 = vld [vmem:[%s1493_s24 + $0x30] sm:$0xff]   ;;  %v1160_v13 = vld [vmem:[%s1493_s24 + $0x38] sm:$0xff]   ;;  %v465_v29 = vld [vmem:[#allocation2 + $0x8] sm:$0xff] }
  0x66   : > { %1027 = vmatprep.subr.bf16.mxu1 %v1255_v54  ;;  %v1158_v10 = vld [vmem:[%s1493_s24 + $0xb0] sm:$0xff]   ;;  %v1161_v14 = vld [vmem:[%s1493_s24 + $0xb8] sm:$0xff]  }
  0x67   : > { %v1164_v12 = vld [vmem:[%s1491_s8 + $0x4] ss:$12 sps:$4 sm:$0xff]   ;;  %v1162_v15 = vld [vmem:[%s1491_s8] ss:$12 sps:$4 sm:$0xff]   ;;  %v1165_v16 = vld [vmem:[%s1491_s8 + $0x8] ss:$12 sps:$4 sm:$0xff]  }
  0x68   : > { %997 = vmatpush3.bf16.msra.mxu0 %v1145_v61  ;;  %710 = vmatprep.mubr.bf16.mxu0 %v1164_v12 }
  0x69   : > { %1028 = vmatpush3.bf16.msra.mxu1 %v1146_v62  ;;  %998 = vmatprep.subr.bf16.mxu0 %v1147_v63 }
  0x6a   : > { %1029 = vmatprep.subr.bf16.mxu1 %v1255_v54 }
  0x6c   : > { %999 = vmatpush3.bf16.msra.mxu0 %v1148_v0 }
  0x6d   : > { %1030 = vmatpush3.bf16.msra.mxu1 %v1149_v1  ;;  %1000 = vmatprep.subr.bf16.mxu0 %v1150_v2 }
  0x6e   : > { %1031 = vmatprep.subr.bf16.mxu1 %v1255_v54 }
  0x70   : > { %1001 = vmatpush3.bf16.msra.mxu0 %v1151_v3 }
  0x71   : > { %1032 = vmatpush3.bf16.msra.mxu1 %v1152_v4  ;;  %1002 = vmatprep.subr.bf16.mxu0 %v1153_v5 }
  0x72   : > { %1033 = vmatprep.subr.bf16.mxu1 %v1255_v54 }
  0x74   : > { %1003 = vmatpush3.bf16.msra.mxu0 %v1154_v6 }
  0x75   : > { %1034 = vmatpush3.bf16.msra.mxu1 %v1155_v7  ;;  %1004 = vmatprep.subr.bf16.mxu0 %v1156_v8 }
  0x76   : > { %1035 = vmatprep.subr.bf16.mxu1 %v1255_v54 }
  0x78   : > { %1005 = vmatpush3.bf16.msra.mxu0 %v1157_v9 }
  0x79   : > { %1036 = vmatpush3.bf16.msra.mxu1 %v1158_v10  ;;  %1006 = vmatprep.subr.bf16.mxu0 %v1159_v11 }
  0x7a   : > { %1037 = vmatprep.subr.bf16.mxu1 %v1255_v54 }
  0x7c   : > { %1007 = vmatpush3.bf16.msra.mxu0 %v1160_v13 }
  0x7d   : > { %1038 = vmatpush3.bf16.msra.mxu1 %v1161_v14 }
  0x7f   : > { %711 = vmatmul.mubr.bf16.vlgmr.msra.gmra.mrb[0].mxu0 %v1162_v15 }
  0x80   : > { %1040 = vmatmul.mubr.bf16.vlgmr.msra.gmra.mrb[0].mxu1 %v1165_v16 }
 0x152   : > { %v1008_v17 = vpop.f32.mrb[0].mxu0 }
 0x153   : > { %v753_v18 = vpop.f32.mrb[0].mxu1  ;;  %v1009_v19 = vpop.f32.mrb[1].mxu0 }
 0x154   : > { %v1010_v20 = vadd.f32 %v1009_v19, %v1008_v17  ;;  %v1041_v21 = vpop.f32.mrb[1].mxu1  ;;  %v1011_v22 = vpop.f32.mrb[2].mxu0 }
 0x155   : > { %v756_v24 = vpop.f32.mrb[2].mxu1  ;;  %v1012_v25 = vpop.f32.mrb[3].mxu0 }
 0x156   : > { %v754_v26 = vadd.f32 %v1010_v20, %v753_v18  ;;  %v1013_v27 = vadd.f32 %v1012_v25, %v1011_v22  ;;  %v1042_v28 = vpop.f32.mrb[3].mxu1  ;;  %767 = sbr.rel (%p976_p4) target bundleno = 359 (0x167), region = 103 }
 0x158   : > { %v760_v30 = vadd.f32 %v754_v26, %v464_v23  ;;  %v757_v31 = vadd.f32 %v1013_v27, %v756_v24 }
 0x15a   : > { %762 = vst [vmem:[#allocation2] sm:$0xff] %v760_v30  ;;  %v761_v32 = vadd.f32 %v757_v31, %v465_v29 }
 0x15c   : > { %763 = vst [vmem:[#allocation2 + $0x8] sm:$0xff] %v761_v32 }
 0x161   : > { %v768_v33 = vld [vmem:[#allocation2] sm:$0xff] }
 0x163   : > { %v769_v34 = vld [vmem:[#allocation2 + $0x8] sm:$0xff] }
 0x164   : > { %v990_v35 = vpack.c.bf16 %v769_v34, %v768_v33 }
 0x166   : > { %991 = vst [vmem:[%s1495_s26] sm:$0xff] %v990_v35  }
 0x167 PF: > { %786 = sbr.rel (!%p1366_p12) target bundleno = 367 (0x16f), region = 107  ;;  %s980_s9 = sshll.u32 (%p1366_p12), %s1240_s16, 2 }
 0x168   : > { %s791_s15 = scalar_lea.vmem (%p1366_p12), %s1570_s2, %s980_s9 }
 0x16d   : > { %v807_v36 = vld [vmem:[%s1495_s26] sm:$0xf] (%p1366_p12)  ;;  %v809_v37 = vld [vmem:[%s1495_s26 + $0x4] sm:$0xf] (%p1366_p12) }
 0x16e   : > { %808 = vst [vmem:[%s791_s15] sm:$0xf] %v807_v36  ;;  %810 = vst [vmem:[%s791_s15 + $0x8] sm:$0xf] %v809_v37 }
 0x16f PF: > { %s12_s19 = sadd.s32 1, %s1252_s19   ;;  %s1574_s9 = smov %s1216_s10 }
 0x170   : > { %p9_p5 = scmp.ge.s32.totalorder %s12_s19, 20   ;;  %s1575_s10 = smov %s1364_s5 }
 0x171   : > { %s1576_s11 = smov %s1224_s12  ;;  %s1577_s12 = smov %s1361_s4 }
 0x172   : > { %s1578_s13 = smov %s1232_s14  ;;  %s1579_s14 = smov %s1347_s27 }
 0x173   : > { %s1580_s15 = smov %s1244_s17  ;;  %s1581_s16 = smov %s1248_s18 }
 0x174   : > { %s1582_s17 = smov %s1585_s21  ;;  %s1583_s18 = smov %s1589_s22 }
 0x175   :  { %11 = sbr.rel (!%p9_p5) target bundleno = 6 (0x6), region = 193 }

// kernel: forward.73
= control target key start
LH: loop header
LB: loop body
LE: loop exit
PB: predicated region body
PF: predicated region fallthrough
CT: control target
= control target key end

     0   :  { %s561_s15 = smov 0   ;;  %s563_s16 = smov 0   ;;  %s608_s0 = inlined_call_operand.vmem [shape: bf16[2,16,256], index: 0, kind: input, shape index: {}]   ;;  %s609_s1 = inlined_call_operand.vmem [shape: f32[1,1,256], index: 1, kind: input, shape index: {}]   ;;  %s610_s2 = inlined_call_operand.vmem [shape: f32[1,1,256], index: 2, kind: input, shape index: {}]   ;;  %s611_s3 = inlined_call_operand.vmem [shape: bf16[2,16,256], index: 3, kind: input, shape index: {}]   ;;  %s612_s4 = inlined_call_operand.vmem [shape: bf16[2,16,256], index: 4, kind: output, shape index: {}]  }
   0x1   :  { %s565_s17 = smov 0  }
   0x2 LB: > { %s26_s18 = sadd.s32 1, %s530_s16  ;;  %p470_p0 = scmp.ge.s32.totalorder %s534_s17, 1  ;;  %s534_s17 = sphi %s565_s17, %s14_s17   ;;  %s530_s16 = sphi %s563_s16, %s614_s16   ;;  %s526_s15 = sphi %s561_s15, %s613_s15  }
   0x3   : > { %p28_p1 = scmp.ge.s32.totalorder %s26_s18, 2  ;;  %p202_p2 = scmp.lt.s32.totalorder %s534_s17, 3 }
   0x5   : > { %s616_s18 = smov (%p28_p1, %s26_s18), 0  ;;  %p203_p3 = pnand %p470_p0, %p202_p2 }
   0x6   : > { %p249_p4 = scmp.lt.s32.totalorder (!%p203_p3), %s526_s15, 1  ;;  %v284_v0 = vld [vmem:[%s610_s2] sm:$0x3] (!%p203_p3)  ;;  %v292_v1 = vlaneseq (!%p203_p3) }
   0x7   : > { %206 = sbr.rel (%p203_p3) target bundleno = 32 (0x20), region = 36  ;;  %v306_v2 = vadd.f32 (!%p203_p3), 1e-05, %v284_v0  ;;  %v283_v4 = vld [vmem:[%s609_s1] sm:$0x3] (!%p203_p3) }
   0x8   : > { %v293_v3 = vshrl.u32 (!%p203_p3), %v292_v1, 7 }
   0x9   : > { %510 = vrsqrt.f32 (!%p203_p3), %v306_v2 }
   0xa   : > { %v294_v5 = vsub.s32 (!%p203_p3), 0, %v293_v3  ;;  %v298_v6 = vsub.s32 (!%p203_p3), 1, %v293_v3 }
   0xc   : > { %v295_v9 = vrot.slane (!%p203_p3), %v283_v4, %v294_v5  ;;  %v299_v10 = vrot.slane (!%p203_p3), %v283_v4, %v298_v6 }
   0xe   : > { %s618_s15 = smov (!%p249_p4, %s526_s15), 1 }
   0xf   : > { %s582_s21 = sshll.u32 %s618_s15, 4 }
  0x10   : > { %s257_s26 = scalar_lea.vmem %s608_s0, %s582_s21  ;;  %s268_s29 = scalar_lea.vmem %s611_s3, %s582_s21 }
  0x11   : > { %v281_v7 = vld [vmem:[%s257_s26] sm:$0xff]  ;;  %v282_v8 = vld [vmem:[%s257_s26 + $0x8] sm:$0xff]  ;;  %s279_s6 = scalar_lea.vmem %s612_s4, %s582_s21 }
  0x12   : > { %v287_v11 = vunpack.c.l.bf16 %v281_v7  ;;  %v288_v12 = vunpack.c.h.bf16 %v281_v7  ;;  %v289_v13 = vunpack.c.l.bf16 %v282_v8  ;;  %v290_v14 = vunpack.c.h.bf16 %v282_v8  ;;  %v285_v15 = vld [vmem:[%s268_s29] sm:$0xff]  ;;  %v286_v16 = vld [vmem:[%s268_s29 + $0x8] sm:$0xff] }
  0x13   : > { %v511_v21 = vpop.eup %510  ;;  %v323_v22 = vunpack.c.l.bf16 %v285_v15  ;;  %v324_v23 = vunpack.c.h.bf16 %v285_v15  ;;  %v325_v26 = vunpack.c.l.bf16 %v286_v16  ;;  %v326_v27 = vunpack.c.h.bf16 %v286_v16 }
  0x14   : > { %v302_v17 = vsub.f32 %v287_v11, %v295_v9  ;;  %v303_v18 = vsub.f32 %v288_v12, %v299_v10  ;;  %v304_v19 = vsub.f32 %v289_v13, %v295_v9  ;;  %v305_v20 = vsub.f32 %v290_v14, %v299_v10 }
  0x15   : > { %v312_v24 = vrot.slane %v511_v21, %v294_v5  ;;  %v316_v25 = vrot.slane %v511_v21, %v298_v6 }
  0x17   : > { %v319_v28 = vmul.f32 %v312_v24, %v302_v17  ;;  %v320_v29 = vmul.f32 %v316_v25, %v303_v18  ;;  %v321_v30 = vmul.f32 %v312_v24, %v304_v19  ;;  %v322_v31 = vmul.f32 %v316_v25, %v305_v20 }
  0x19   : > { %v327_v32 = vadd.f32 %v323_v22, %v319_v28  ;;  %v328_v33 = vadd.f32 %v324_v23, %v320_v29  ;;  %v329_v34 = vadd.f32 %v325_v26, %v321_v30  ;;  %v330_v35 = vadd.f32 %v326_v27, %v322_v31 }
  0x1b   : > { %v331_v36 = vmax.f32 %v327_v32, 0.0  ;;  %v332_v37 = vmax.f32 %v328_v33, 0.0  ;;  %v333_v38 = vmax.f32 %v329_v34, 0.0  ;;  %v334_v39 = vmax.f32 %v330_v35, 0.0 }
  0x1d   : > { %v484_v40 = vpack.c.bf16 %v332_v37, %v331_v36  ;;  %v485_v41 = vpack.c.bf16 %v334_v39, %v333_v38 }
  0x1f   : > { %347 = vst [vmem:[%s279_s6] sm:$0xff] %v484_v40  ;;  %348 = vst [vmem:[%s279_s6 + $0x8] sm:$0xff] %v485_v41 }
  0x20 PF: > { %s14_s17 = sadd.s32 1, %s534_s17   ;;  %s613_s15 = smov %s530_s16 }
  0x21   : > { %p11_p5 = scmp.ge.s32.totalorder %s14_s17, 4   ;;  %s614_s16 = smov %s616_s18 }
  0x23   :  { %13 = sbr.rel (!%p11_p5) target bundleno = 2 (0x2), region = 69 }

// kernel: forward.68
= control target key start
LH: loop header
LB: loop body
LE: loop exit
PB: predicated region body
PF: predicated region fallthrough
CT: control target
= control target key end

     0   :  { %s1272_s9 = smov 0   ;;  %s1274_s10 = smov 0   ;;  %s1568_s0 = inlined_call_operand.vmem [shape: bf16[16,6912], index: 0, kind: input, shape index: {}]   ;;  %s1569_s1 = inlined_call_operand.vmem [shape: bf16[6912,256], index: 1, kind: input, shape index: {}]   ;;  %s1570_s2 = inlined_call_operand.vmem [shape: bf16[16,256], index: 2, kind: output, shape index: {}]  }
   0x1   :  { %s1276_s11 = smov 0   ;;  %s1278_s12 = smov 0  }
   0x2   :  { %s1280_s13 = smov 0   ;;  %s1282_s14 = smov 0  }
   0x3   :  { %s1284_s15 = smov 0   ;;  %s1286_s16 = smov 0  }
   0x4   :  { %s1288_s17 = smov 0   ;;  %s1290_s18 = smov 0  }
   0x5   :  { %s1292_s19 = smov 0  }
   0x6 LB: > { %s935_s20 = sadd.s32 4294967295, %s1252_s19   ;;  %s24_s21 = sadd.s32 1, %s1244_s17  ;;  %s1252_s19 = sphi %s1292_s19, %s12_s19   ;;  %s1248_s18 = sphi %s1290_s18, %s1583_s18   ;;  %s1244_s17 = sphi %s1288_s17, %s1582_s17   ;;  %s1240_s16 = sphi %s1286_s16, %s1581_s16   ;;  %s1236_s15 = sphi %s1284_s15, %s1580_s15   ;;  %s1232_s14 = sphi %s1282_s14, %s1579_s14   ;;  %s1228_s13 = sphi %s1280_s13, %s1578_s13   ;;  %s1224_s12 = sphi %s1278_s12, %s1577_s12   ;;  %s1220_s11 = sphi %s1276_s11, %s1576_s11   ;;  %s1216_s10 = sphi %s1274_s10, %s1575_s10   ;;  %s1212_s9 = sphi %s1272_s9, %s1574_s9  }
   0x7   : > { %p25_p0 = scmp.ge.s32.totalorder %s24_s21, 18  ;;  %s27_s22 = sadd.s32 1, %s1248_s18 }
   0x8   : > { %s40_s23 = sadd.s32 1, %s1232_s14  ;;  %p47_p1 = scmp.ne.s32.totalorder %s1232_s14, %s1228_s13 }
   0x9   : > { %s1585_s21 = smov (%p25_p0, %s24_s21), 0  ;;  %s1587_s22 = smov (!%p25_p0, %s27_s22), %s1248_s18 }
   0xa   : > { %s36_s24 = ssub.s32 %s1244_s17, %s1585_s21  ;;  %p48_p2 = scmp.eq.s32.totalorder %s1252_s19, 0 }
   0xb   : > { %p29_p3 = scmp.ge.s32.totalorder %s1587_s22, 2  ;;  %p38_p4 = scmp.eq.s32.totalorder %s36_s24, 0 }
   0xc   : > { %p1339_p5 = por %p48_p2, %p47_p1  ;;  %s68_s26 = sadd.s32 1, %s1224_s12 }
   0xd   : > { %s1589_s22 = smov (%p29_p3, %s1587_s22), 0  ;;  %p75_p6 = scmp.ne.s32.totalorder %s1224_s12, %s1220_s11 }
   0xe   : > { %s1347_s27 = scalar_select %p38_p4, %s1232_s14, %s40_s23  }
   0xf   : > { %s64_s28 = ssub.s32 %s1248_s18, %s1589_s22  ;;  %p1353_p9 = por %p75_p6, %p48_p2 }
  0x10   : > { %s65_s29 = sor.u32 %s64_s28, %s36_s24  ;;  %p94_p7 = scmp.eq.s32.totalorder %s64_s28, 0 }
  0x11   : > { %p66_p8 = scmp.eq.s32.totalorder %s65_s29, 0  ;;  %s96_s3 = sadd.s32 1, %s1216_s10 }
  0x12   : > { %p106_p10 = scmp.ne.s32.totalorder %s1216_s10, %s1212_s9  ;;  %p107_p11 = scmp.eq.s32.totalorder %s935_s20, 35 }
  0x13   : > { %s1361_s4 = scalar_select %p66_p8, %s1224_s12, %s68_s26  }
  0x14   : > { %s1364_s5 = scalar_select %p94_p7, %s1216_s10, %s96_s3  }
  0x15   : > { %p1366_p12 = por %p107_p11, %p106_p10  ;;  %p938_p13 = scmp.ge.s32.totalorder %s1252_s19, 36 }
  0x17   : > { %129 = sbr.rel (%p938_p13) target bundleno = 76 (0x4c), region = 16 }
  0x1e   : > { %132 = sbr.rel (!%p1339_p5) target bundleno = 37 (0x25), region = 20  ;;  %s134_s7 = sand.u32 (%p1339_p5), 1, %s1232_s14  }
  0x1f   : > { %s983_s8 = smul.u32 (%p1339_p5), 12, %s1244_s17 }
  0x20   : > { %s1043_s23 = smul.u32 (%p1339_p5), 24, %s134_s7 }
  0x21   : > { %s142_s28 = scalar_lea.vmem (%p1339_p5), %s1568_s0, %s983_s8 }
  0x22   : > { %v157_v0 = vld [vmem:[%s142_s28] sm:$0xff] (%p1339_p5)  ;;  %v159_v1 = vld [vmem:[%s142_s28 + $0xd8] sm:$0xff] (%p1339_p5)  ;;  %v940_v2 = vld [vmem:[%s142_s28 + $0x8] sm:$0xf] (%p1339_p5)  ;;  %s136_s20 = scalar_lea.vmem (%p1339_p5), [#allocation3], %s1043_s23 }
  0x23   : > { %158 = vst [vmem:[%s136_s20] sm:$0xff] (%p1339_p5), %v157_v0  ;;  %160 = vst [vmem:[%s136_s20 + $0xc] sm:$0xff] (%p1339_p5), %v159_v1  ;;  %v942_v3 = vld [vmem:[%s142_s28 + $0xe0] sm:$0xf] (%p1339_p5) }
  0x24   : > { %941 = vst [vmem:[%s136_s20 + $0x8] sm:$0xf] (%p1339_p5), %v940_v2  ;;  %943 = vst [vmem:[%s136_s20 + $0x14] sm:$0xf] (%p1339_p5), %v942_v3 }
  0x25 PF: > { %177 = sbr.rel (!%p1353_p9) target bundleno = 76 (0x4c), region = 46  ;;  %s179_s25 = sand.u32 (%p1353_p9), 1, %s1224_s12  }
  0x26   : > { %s984_s29 = smul.u32 (%p1353_p9), 96, %s1244_s17 }
  0x27   : > { %s1044_s3 = smul.u32 (%p1353_p9), 192, %s179_s25 }
  0x28   : > { %s184_s7 = sadd.s32 (%p1353_p9), %s1248_s18, %s984_s29 }
  0x29   : > { %s945_s8 = sshll.u32 (%p1353_p9), %s184_s7, 2  ;;  %s1391_s30 = scalar_lea.vmem (%p1353_p9), [#allocation4], %s1044_s3 }
  0x2a   : > { %s1386_s23 = scalar_lea.vmem (%p1353_p9), %s1569_s1, %s945_s8 }
  0x2b   : > { %v202_v4 = vld [vmem:[%s1386_s23] sm:$0xf] (%p1353_p9)  ;;  %v204_v5 = vld [vmem:[%s1386_s23 + $0x8] sm:$0xf] (%p1353_p9)  ;;  %v206_v6 = vld [vmem:[%s1386_s23 + $0x10] sm:$0xf] (%p1353_p9) }
  0x2c   : > { %203 = vst [vmem:[%s1391_s30] sm:$0xf] %v202_v4  ;;  %205 = vst [vmem:[%s1391_s30 + $0x4] sm:$0xf] %v204_v5  ;;  %v208_v7 = vld [vmem:[%s1386_s23 + $0x18] sm:$0xf] }
  0x2d   : > { %207 = vst [vmem:[%s1391_s30 + $0x8] sm:$0xf] %v206_v6  ;;  %v210_v8 = vld [vmem:[%s1386_s23 + $0x20] sm:$0xf]  ;;  %v212_v9 = vld [vmem:[%s1386_s23 + $0x28] sm:$0xf] }
  0x2e   : > { %209 = vst [vmem:[%s1391_s30 + $0xc] sm:$0xf] %v208_v7  ;;  %211 = vst [vmem:[%s1391_s30 + $0x10] sm:$0xf] %v210_v8  ;;  %v214_v10 = vld [vmem:[%s1386_s23 + $0x30] sm:$0xf] }
  0x2f   : > { %213 = vst [vmem:[%s1391_s30 + $0x14] sm:$0xf] %v212_v9  ;;  %v216_v11 = vld [vmem:[%s1386_s23 + $0x38] sm:$0xf]  ;;  %v218_v12 = vld [vmem:[%s1386_s23 + $0x40] sm:$0xf] }
  0x30   : > { %215 = vst [vmem:[%s1391_s30 + $0x18] sm:$0xf] %v214_v10  ;;  %217 = vst [vmem:[%s1391_s30 + $0x1c] sm:$0xf] %v216_v11  ;;  %v220_v13 = vld [vmem:[%s1386_s23 + $0x48] sm:$0xf] }
  0x31   : > { %219 = vst [vmem:[%s1391_s30 + $0x20] sm:$0xf] %v218_v12  ;;  %v222_v14 = vld [vmem:[%s1386_s23 + $0x50] sm:$0xf]  ;;  %v224_v15 = vld [vmem:[%s1386_s23 + $0x58] sm:$0xf] }
  0x32   : > { %221 = vst [vmem:[%s1391_s30 + $0x24] sm:$0xf] %v220_v13  ;;  %223 = vst [vmem:[%s1391_s30 + $0x28] sm:$0xf] %v222_v14  ;;  %v226_v16 = vld [vmem:[%s1386_s23 + $0x60] sm:$0xf] }
  0x33   : > { %225 = vst [vmem:[%s1391_s30 + $0x2c] sm:$0xf] %v224_v15  ;;  %v228_v17 = vld [vmem:[%s1386_s23 + $0x68] sm:$0xf]  ;;  %v230_v18 = vld [vmem:[%s1386_s23 + $0x70] sm:$0xf] }
  0x34   : > { %227 = vst [vmem:[%s1391_s30 + $0x30] sm:$0xf] %v226_v16  ;;  %229 = vst [vmem:[%s1391_s30 + $0x34] sm:$0xf] %v228_v17  ;;  %v232_v19 = vld [vmem:[%s1386_s23 + $0x78] sm:$0xf] }
  0x35   : > { %231 = vst [vmem:[%s1391_s30 + $0x38] sm:$0xf] %v230_v18  ;;  %v234_v20 = vld [vmem:[%s1386_s23 + $0x80] sm:$0xf]  ;;  %v236_v21 = vld [vmem:[%s1386_s23 + $0x88] sm:$0xf] }
  0x36   : > { %233 = vst [vmem:[%s1391_s30 + $0x3c] sm:$0xf] %v232_v19  ;;  %235 = vst [vmem:[%s1391_s30 + $0x40] sm:$0xf] %v234_v20  ;;  %v238_v22 = vld [vmem:[%s1386_s23 + $0x90] sm:$0xf] }
  0x37   : > { %237 = vst [vmem:[%s1391_s30 + $0x44] sm:$0xf] %v236_v21  ;;  %v240_v23 = vld [vmem:[%s1386_s23 + $0x98] sm:$0xf]  ;;  %v242_v24 = vld [vmem:[%s1386_s23 + $0xa0] sm:$0xf] }
  0x38   : > { %239 = vst [vmem:[%s1391_s30 + $0x48] sm:$0xf] %v238_v22  ;;  %241 = vst [vmem:[%s1391_s30 + $0x4c] sm:$0xf] %v240_v23  ;;  %v244_v25 = vld [vmem:[%s1386_s23 + $0xa8] sm:$0xf] }
  0x39   : > { %243 = vst [vmem:[%s1391_s30 + $0x50] sm:$0xf] %v242_v24  ;;  %v246_v26 = vld [vmem:[%s1386_s23 + $0xb0] sm:$0xf]  ;;  %v248_v27 = vld [vmem:[%s1386_s23 + $0xb8] sm:$0xf] }
  0x3a   : > { %245 = vst [vmem:[%s1391_s30 + $0x54] sm:$0xf] %v244_v25  ;;  %247 = vst [vmem:[%s1391_s30 + $0x58] sm:$0xf] %v246_v26  ;;  %v250_v28 = vld [vmem:[%s1386_s23 + $0xc0] sm:$0xf] }
  0x3b   : > { %249 = vst [vmem:[%s1391_s30 + $0x5c] sm:$0xf] %v248_v27  ;;  %v252_v29 = vld [vmem:[%s1386_s23 + $0xc8] sm:$0xf]  ;;  %v254_v30 = vld [vmem:[%s1386_s23 + $0xd0] sm:$0xf] }
  0x3c   : > { %251 = vst [vmem:[%s1391_s30 + $0x60] sm:$0xf] %v250_v28  ;;  %253 = vst [vmem:[%s1391_s30 + $0x64] sm:$0xf] %v252_v29  ;;  %v256_v31 = vld [vmem:[%s1386_s23 + $0xd8] sm:$0xf] }
  0x3d   : > { %255 = vst [vmem:[%s1391_s30 + $0x68] sm:$0xf] %v254_v30  ;;  %v258_v32 = vld [vmem:[%s1386_s23 + $0xe0] sm:$0xf]  ;;  %v260_v33 = vld [vmem:[%s1386_s23 + $0xe8] sm:$0xf] }
  0x3e   : > { %257 = vst [vmem:[%s1391_s30 + $0x6c] sm:$0xf] %v256_v31  ;;  %259 = vst [vmem:[%s1391_s30 + $0x70] sm:$0xf] %v258_v32  ;;  %v262_v34 = vld [vmem:[%s1386_s23 + $0xf0] sm:$0xf] }
  0x3f   : > { %261 = vst [vmem:[%s1391_s30 + $0x74] sm:$0xf] %v260_v33  ;;  %v264_v35 = vld [vmem:[%s1386_s23 + $0xf8] sm:$0xf]  ;;  %v266_v36 = vld [vmem:[%s1386_s23 + $0x100] sm:$0xf] }
  0x40   : > { %263 = vst [vmem:[%s1391_s30 + $0x78] sm:$0xf] %v262_v34  ;;  %265 = vst [vmem:[%s1391_s30 + $0x7c] sm:$0xf] %v264_v35  ;;  %v268_v37 = vld [vmem:[%s1386_s23 + $0x108] sm:$0xf] }
  0x41   : > { %267 = vst [vmem:[%s1391_s30 + $0x80] sm:$0xf] %v266_v36  ;;  %v270_v38 = vld [vmem:[%s1386_s23 + $0x110] sm:$0xf]  ;;  %v272_v39 = vld [vmem:[%s1386_s23 + $0x118] sm:$0xf] }
  0x42   : > { %269 = vst [vmem:[%s1391_s30 + $0x84] sm:$0xf] %v268_v37  ;;  %271 = vst [vmem:[%s1391_s30 + $0x88] sm:$0xf] %v270_v38  ;;  %v274_v40 = vld [vmem:[%s1386_s23 + $0x120] sm:$0xf] }
  0x43   : > { %273 = vst [vmem:[%s1391_s30 + $0x8c] sm:$0xf] %v272_v39  ;;  %v276_v41 = vld [vmem:[%s1386_s23 + $0x128] sm:$0xf]  ;;  %v278_v42 = vld [vmem:[%s1386_s23 + $0x130] sm:$0xf] }
  0x44   : > { %275 = vst [vmem:[%s1391_s30 + $0x90] sm:$0xf] %v274_v40  ;;  %277 = vst [vmem:[%s1391_s30 + $0x94] sm:$0xf] %v276_v41  ;;  %v280_v43 = vld [vmem:[%s1386_s23 + $0x138] sm:$0xf] }
  0x45   : > { %279 = vst [vmem:[%s1391_s30 + $0x98] sm:$0xf] %v278_v42  ;;  %v282_v44 = vld [vmem:[%s1386_s23 + $0x140] sm:$0xf]  ;;  %v284_v45 = vld [vmem:[%s1386_s23 + $0x148] sm:$0xf] }
  0x46   : > { %281 = vst [vmem:[%s1391_s30 + $0x9c] sm:$0xf] %v280_v43  ;;  %283 = vst [vmem:[%s1391_s30 + $0xa0] sm:$0xf] %v282_v44  ;;  %v286_v46 = vld [vmem:[%s1386_s23 + $0x150] sm:$0xf] }
  0x47   : > { %285 = vst [vmem:[%s1391_s30 + $0xa4] sm:$0xf] %v284_v45  ;;  %v288_v47 = vld [vmem:[%s1386_s23 + $0x158] sm:$0xf]  ;;  %v290_v48 = vld [vmem:[%s1386_s23 + $0x160] sm:$0xf] }
  0x48   : > { %287 = vst [vmem:[%s1391_s30 + $0xa8] sm:$0xf] %v286_v46  ;;  %289 = vst [vmem:[%s1391_s30 + $0xac] sm:$0xf] %v288_v47  ;;  %v292_v49 = vld [vmem:[%s1386_s23 + $0x168] sm:$0xf] }
  0x49   : > { %291 = vst [vmem:[%s1391_s30 + $0xb0] sm:$0xf] %v290_v48  ;;  %v294_v50 = vld [vmem:[%s1386_s23 + $0x170] sm:$0xf]  ;;  %v296_v51 = vld [vmem:[%s1386_s23 + $0x178] sm:$0xf] }
  0x4a   : > { %293 = vst [vmem:[%s1391_s30 + $0xb4] sm:$0xf] %v292_v49  ;;  %295 = vst [vmem:[%s1391_s30 + $0xb8] sm:$0xf] %v294_v50 }
  0x4b   : > { %297 = vst [vmem:[%s1391_s30 + $0xbc] sm:$0xf] %v296_v51 }
  0x4c PF: > { %p946_p0 = scmp.ge.s32.totalorder %s1252_s19, 1  ;;  %p415_p1 = scmp.lt.s32.totalorder %s1252_s19, 37 }
  0x4e   : > { %p416_p2 = pnand %p946_p0, %p415_p1 }
  0x4f   : > { %s422_s28 = sand.u32 (!%p416_p2), 1, %s1228_s13   ;;  %s429_s20 = sand.u32 (!%p416_p2), 1, %s1220_s11  }
  0x50   : > { %419 = sbr.rel (%p416_p2) target bundleno = 367 (0x16f), region = 87  ;;  %s450_s29 = sand.u32 (!%p416_p2), 1, %s1212_s9  }
  0x51   : > { %s1045_s25 = smul.u32 (!%p416_p2), 24, %s422_s28  ;;  %s947_s7 = sshll.u32 (!%p416_p2), %s450_s29, 3 }
  0x52   : > { %s1046_s3 = smul.u32 (!%p416_p2), 192, %s429_s20  ;;  %s1495_s26 = scalar_lea.vmem (!%p416_p2), [#allocation5], %s947_s7 }
  0x53   : > { %s1491_s8 = scalar_lea.vmem (!%p416_p2), [#allocation3], %s1045_s25  ;;  %p948_p3 = scmp.ne.s32.totalorder (!%p416_p2), %s1236_s15, 0 }
  0x54   : > { %s1493_s24 = scalar_lea.vmem (!%p416_p2), [#allocation4], %s1046_s3 }
  0x57   : > { %461 = sbr.rel (%p948_p3) target bundleno = 94 (0x5e), region = 99  ;;  %v1254_v52 = vmov (!%p948_p3), 0.0  }
  0x58   : > { %462 = vst [vmem:[#allocation2] sm:$0xff] (!%p948_p3), %v1254_v52  ;;  %463 = vst [vmem:[#allocation2 + $0x8] sm:$0xff] (!%p948_p3), %v1254_v52 }
  0x5e PF: > { %v1138_v53 = vld [vmem:[%s1493_s24 + $0x40] sm:$0xff]   ;;  %v1255_v54 = vmov 0.0   ;;  %vm1256_vm0 = vmmov 0   ;;  %v1141_v57 = vld [vmem:[%s1493_s24 + $0x48] sm:$0xff]   ;;  %v1144_v60 = vld [vmem:[%s1493_s24 + $0x50] sm:$0xff]   ;;  %p976_p4 = scmp.ne.s32.totalorder %s1236_s15, 17 }
  0x5f   : > { %1023 = vmatprep.subr.bf16.mxu1 %v1255_v54  ;;  %v1139_v55 = vld [vmem:[%s1493_s24] sm:$0xff]   ;;  %992 = vmatprep.subr.bf16.mxu0 %v1138_v53  ;;  %v1142_v58 = vld [vmem:[%s1493_s24 + $0x8] sm:$0xff]   ;;  %v1145_v61 = vld [vmem:[%s1493_s24 + $0x10] sm:$0xff]  }
  0x60   : > { %v1140_v56 = vld [vmem:[%s1493_s24 + $0x80] sm:$0xff]   ;;  %1039 = vmatprep.mubr.msk.bf16.mxu1 %vm1256_vm0, %v1255_v54  ;;  %993 = vmatpush3.bf16.msra.mxu0 %v1139_v55  ;;  %v1143_v59 = vld [vmem:[%s1493_s24 + $0x88] sm:$0xff]   ;;  %v1146_v62 = vld [vmem:[%s1493_s24 + $0x90] sm:$0xff]  }
  0x61   : > { %1024 = vmatpush3.bf16.msra.mxu1 %v1140_v56  ;;  %994 = vmatprep.subr.bf16.mxu0 %v1141_v57  ;;  %v1147_v63 = vld [vmem:[%s1493_s24 + $0x58] sm:$0xff]   ;;  %v1150_v2 = vld [vmem:[%s1493_s24 + $0x60] sm:$0xff]   ;;  %v1153_v5 = vld [vmem:[%s1493_s24 + $0x68] sm:$0xff]  }
  0x62   : > { %1025 = vmatprep.subr.bf16.mxu1 %v1255_v54  ;;  %v1148_v0 = vld [vmem:[%s1493_s24 + $0x18] sm:$0xff]   ;;  %v1151_v3 = vld [vmem:[%s1493_s24 + $0x20] sm:$0xff]   ;;  %v1154_v6 = vld [vmem:[%s1493_s24 + $0x28] sm:$0xff]  }
  0x63   : > { %v1149_v1 = vld [vmem:[%s1493_s24 + $0x98] sm:$0xff]   ;;  %v1152_v4 = vld [vmem:[%s1493_s24 + $0xa0] sm:$0xff]   ;;  %v1155_v7 = vld [vmem:[%s1493_s24 + $0xa8] sm:$0xff]  }
  0x64   : > { %995 = vmatpush3.bf16.msra.mxu0 %v1142_v58  ;;  %v1156_v8 = vld [vmem:[%s1493_s24 + $0x70] sm:$0xff]   ;;  %v1159_v11 = vld [vmem:[%s1493_s24 + $0x78] sm:$0xff]   ;;  %v464_v23 = vld [vmem:[#allocation2] sm:$0xff] }
  0x65   : > { %1026 = vmatpush3.bf16.msra.mxu1 %v1143_v59  ;;  %996 = vmatprep.subr.bf16.mxu0 %v1144_v60  ;;  %v1157_v9 = vld [vmem:[%s1493_s24 + $0x30] sm:$0xff]   ;;  %v1160_v13 = vld [vmem:[%s1493_s24 + $0x38] sm:$0xff]   ;;  %v465_v29 = vld [vmem:[#allocation2 + $0x8] sm:$0xff] }
  0x66   : > { %1027 = vmatprep.subr.bf16.mxu1 %v1255_v54  ;;  %v1158_v10 = vld [vmem:[%s1493_s24 + $0xb0] sm:$0xff]   ;;  %v1161_v14 = vld [vmem:[%s1493_s24 + $0xb8] sm:$0xff]  }
  0x67   : > { %v1164_v12 = vld [vmem:[%s1491_s8 + $0x4] ss:$12 sps:$4 sm:$0xff]   ;;  %v1162_v15 = vld [vmem:[%s1491_s8] ss:$12 sps:$4 sm:$0xff]   ;;  %v1165_v16 = vld [vmem:[%s1491_s8 + $0x8] ss:$12 sps:$4 sm:$0xff]  }
  0x68   : > { %997 = vmatpush3.bf16.msra.mxu0 %v1145_v61  ;;  %710 = vmatprep.mubr.bf16.mxu0 %v1164_v12 }
  0x69   : > { %1028 = vmatpush3.bf16.msra.mxu1 %v1146_v62  ;;  %998 = vmatprep.subr.bf16.mxu0 %v1147_v63 }
  0x6a   : > { %1029 = vmatprep.subr.bf16.mxu1 %v1255_v54 }
  0x6c   : > { %999 = vmatpush3.bf16.msra.mxu0 %v1148_v0 }
  0x6d   : > { %1030 = vmatpush3.bf16.msra.mxu1 %v1149_v1  ;;  %1000 = vmatprep.subr.bf16.mxu0 %v1150_v2 }
  0x6e   : > { %1031 = vmatprep.subr.bf16.mxu1 %v1255_v54 }
  0x70   : > { %1001 = vmatpush3.bf16.msra.mxu0 %v1151_v3 }
  0x71   : > { %1032 = vmatpush3.bf16.msra.mxu1 %v1152_v4  ;;  %1002 = vmatprep.subr.bf16.mxu0 %v1153_v5 }
  0x72   : > { %1033 = vmatprep.subr.bf16.mxu1 %v1255_v54 }
  0x74   : > { %1003 = vmatpush3.bf16.msra.mxu0 %v1154_v6 }
  0x75   : > { %1034 = vmatpush3.bf16.msra.mxu1 %v1155_v7  ;;  %1004 = vmatprep.subr.bf16.mxu0 %v1156_v8 }
  0x76   : > { %1035 = vmatprep.subr.bf16.mxu1 %v1255_v54 }
  0x78   : > { %1005 = vmatpush3.bf16.msra.mxu0 %v1157_v9 }
  0x79   : > { %1036 = vmatpush3.bf16.msra.mxu1 %v1158_v10  ;;  %1006 = vmatprep.subr.bf16.mxu0 %v1159_v11 }
  0x7a   : > { %1037 = vmatprep.subr.bf16.mxu1 %v1255_v54 }
  0x7c   : > { %1007 = vmatpush3.bf16.msra.mxu0 %v1160_v13 }
  0x7d   : > { %1038 = vmatpush3.bf16.msra.mxu1 %v1161_v14 }
  0x7f   : > { %711 = vmatmul.mubr.bf16.vlgmr.msra.gmra.mrb[0].mxu0 %v1162_v15 }
  0x80   : > { %1040 = vmatmul.mubr.bf16.vlgmr.msra.gmra.mrb[0].mxu1 %v1165_v16 }
 0x152   : > { %v1008_v17 = vpop.f32.mrb[0].mxu0 }
 0x153   : > { %v753_v18 = vpop.f32.mrb[0].mxu1  ;;  %v1009_v19 = vpop.f32.mrb[1].mxu0 }
 0x154   : > { %v1010_v20 = vadd.f32 %v1009_v19, %v1008_v17  ;;  %v1041_v21 = vpop.f32.mrb[1].mxu1  ;;  %v1011_v22 = vpop.f32.mrb[2].mxu0 }
 0x155   : > { %v756_v24 = vpop.f32.mrb[2].mxu1  ;;  %v1012_v25 = vpop.f32.mrb[3].mxu0 }
 0x156   : > { %v754_v26 = vadd.f32 %v1010_v20, %v753_v18  ;;  %v1013_v27 = vadd.f32 %v1012_v25, %v1011_v22  ;;  %v1042_v28 = vpop.f32.mrb[3].mxu1  ;;  %767 = sbr.rel (%p976_p4) target bundleno = 359 (0x167), region = 103 }
 0x158   : > { %v760_v30 = vadd.f32 %v754_v26, %v464_v23  ;;  %v757_v31 = vadd.f32 %v1013_v27, %v756_v24 }
 0x15a   : > { %762 = vst [vmem:[#allocation2] sm:$0xff] %v760_v30  ;;  %v761_v32 = vadd.f32 %v757_v31, %v465_v29 }
 0x15c   : > { %763 = vst [vmem:[#allocation2 + $0x8] sm:$0xff] %v761_v32 }
 0x161   : > { %v768_v33 = vld [vmem:[#allocation2] sm:$0xff] }
 0x163   : > { %v769_v34 = vld [vmem:[#allocation2 + $0x8] sm:$0xff] }
 0x164   : > { %v990_v35 = vpack.c.bf16 %v769_v34, %v768_v33 }
 0x166   : > { %991 = vst [vmem:[%s1495_s26] sm:$0xff] %v990_v35  }
 0x167 PF: > { %786 = sbr.rel (!%p1366_p12) target bundleno = 367 (0x16f), region = 107  ;;  %s980_s9 = sshll.u32 (%p1366_p12), %s1240_s16, 2 }
 0x168   : > { %s791_s15 = scalar_lea.vmem (%p1366_p12), %s1570_s2, %s980_s9 }
 0x16d   : > { %v807_v36 = vld [vmem:[%s1495_s26] sm:$0xf] (%p1366_p12)  ;;  %v809_v37 = vld [vmem:[%s1495_s26 + $0x4] sm:$0xf] (%p1366_p12) }
 0x16e   : > { %808 = vst [vmem:[%s791_s15] sm:$0xf] %v807_v36  ;;  %810 = vst [vmem:[%s791_s15 + $0x8] sm:$0xf] %v809_v37 }
 0x16f PF: > { %s12_s19 = sadd.s32 1, %s1252_s19   ;;  %s1574_s9 = smov %s1216_s10 }
 0x170   : > { %p9_p5 = scmp.ge.s32.totalorder %s12_s19, 38   ;;  %s1575_s10 = smov %s1364_s5 }
 0x171   : > { %s1576_s11 = smov %s1224_s12  ;;  %s1577_s12 = smov %s1361_s4 }
 0x172   : > { %s1578_s13 = smov %s1232_s14  ;;  %s1579_s14 = smov %s1347_s27 }
 0x173   : > { %s1580_s15 = smov %s1244_s17  ;;  %s1581_s16 = smov %s1248_s18 }
 0x174   : > { %s1582_s17 = smov %s1585_s21  ;;  %s1583_s18 = smov %s1589_s22 }
 0x175   :  { %11 = sbr.rel (!%p9_p5) target bundleno = 6 (0x6), region = 193 }

// kernel: forward.78
= control target key start
LH: loop header
LB: loop body
LE: loop exit
PB: predicated region body
PF: predicated region fallthrough
CT: control target
= control target key end

     0   :  { %s1002_s9 = smov 0   ;;  %s1004_s10 = smov 0   ;;  %s1186_s0 = inlined_call_operand.vmem [shape: bf16[16,256], index: 0, kind: input, shape index: {}]   ;;  %s1187_s1 = inlined_call_operand.vmem [shape: bf16[256,512], index: 1, kind: input, shape index: {}]   ;;  %s1188_s2 = inlined_call_operand.vmem [shape: bf16[16,512], index: 2, kind: output, shape index: {}]  }
   0x1   :  { %s1006_s11 = smov 0   ;;  %s1008_s12 = smov 0  }
   0x2   :  { %s1010_s13 = smov 0  }
   0x3 LB: > { %s27_s14 = sadd.s32 1, %s981_s12  ;;  %s800_s15 = sadd.s32 4294967295, %s985_s13   ;;  %s985_s13 = sphi %s1010_s13, %s12_s13   ;;  %s981_s12 = sphi %s1008_s12, %s1193_s12   ;;  %s977_s11 = sphi %s1006_s11, %s1192_s11   ;;  %s973_s10 = sphi %s1004_s10, %s1191_s10   ;;  %s969_s9 = sphi %s1002_s9, %s1190_s9  }
   0x4   : > { %p29_p0 = scmp.ge.s32.totalorder %s27_s14, 2  ;;  %p75_p1 = scmp.ne.s32.totalorder %s973_s10, %s969_s9 }
   0x5   : > { %p76_p2 = scmp.eq.s32.totalorder %s985_s13, 0  ;;  %p107_p4 = scmp.eq.s32.totalorder %s800_s15, 1 }
   0x6   : > { %s1195_s14 = smov (%p29_p0, %s27_s14), 0  ;;  %s68_s17 = sadd.s32 1, %s973_s10 }
   0x7   : > { %p77_p3 = por %p76_p2, %p75_p1  ;;  %s64_s16 = ssub.s32 %s981_s12, %s1195_s14 }
   0x8   : > { %p66_p5 = scmp.eq.s32.totalorder %s64_s16, 0  ;;  %p1037_p6 = por %p107_p4, %p75_p1 }
   0x9   : > { %p804_p7 = scmp.ge.s32.totalorder %s985_s13, 2 }
   0xa   : > { %s1042_s19 = scalar_select %p66_p5, %s973_s10, %s68_s17  }
   0xb   : > { %144 = sbr.rel (%p804_p7) target bundleno = 38 (0x26), region = 20 }
  0x12   : > { %147 = sbr.rel (!%p77_p3) target bundleno = 38 (0x26), region = 24  ;;  %s149_s20 = sand.u32 (%p77_p3), 1, %s973_s10  }
  0x13   : > { %s852_s21 = sshll.u32 (%p77_p3), %s981_s12, 3  ;;  %s805_s22 = sshll.u32 (%p77_p3), %s149_s20, 8 }
  0x14   : > { %s1050_s25 = scalar_lea.vmem (%p77_p3), %s1187_s1, %s852_s21  ;;  %s1055_s26 = scalar_lea.vmem (%p77_p3), [#allocation3], %s805_s22 }
  0x15   : > { %v247_v0 = vld [vmem:[%s1050_s25] sm:$0xff] (%p77_p3)  ;;  %v249_v1 = vld [vmem:[%s1050_s25 + $0x10] sm:$0xff] (%p77_p3) }
  0x16   : > { %v251_v2 = vld [vmem:[%s1050_s25 + $0x20] sm:$0xff] (%p77_p3)  ;;  %248 = vst [vmem:[%s1055_s26] sm:$0xff] (%p77_p3), %v247_v0  ;;  %250 = vst [vmem:[%s1055_s26 + $0x8] sm:$0xff] (%p77_p3), %v249_v1  ;;  %v253_v3 = vld [vmem:[%s1050_s25 + $0x30] sm:$0xff] (%p77_p3) }
  0x17   : > { %252 = vst [vmem:[%s1055_s26 + $0x10] sm:$0xff] (%p77_p3), %v251_v2  ;;  %v255_v4 = vld [vmem:[%s1050_s25 + $0x40] sm:$0xff] (%p77_p3)  ;;  %v257_v5 = vld [vmem:[%s1050_s25 + $0x50] sm:$0xff] (%p77_p3)  ;;  %254 = vst [vmem:[%s1055_s26 + $0x18] sm:$0xff] (%p77_p3), %v253_v3 }
  0x18   : > { %256 = vst [vmem:[%s1055_s26 + $0x20] sm:$0xff] (%p77_p3), %v255_v4  ;;  %258 = vst [vmem:[%s1055_s26 + $0x28] sm:$0xff] (%p77_p3), %v257_v5  ;;  %v259_v6 = vld [vmem:[%s1050_s25 + $0x60] sm:$0xff] (%p77_p3)  ;;  %v261_v7 = vld [vmem:[%s1050_s25 + $0x70] sm:$0xff] (%p77_p3) }
  0x19   : > { %v263_v8 = vld [vmem:[%s1050_s25 + $0x80] sm:$0xff]  ;;  %260 = vst [vmem:[%s1055_s26 + $0x30] sm:$0xff] %v259_v6  ;;  %262 = vst [vmem:[%s1055_s26 + $0x38] sm:$0xff] %v261_v7  ;;  %v265_v9 = vld [vmem:[%s1050_s25 + $0x90] sm:$0xff] }
  0x1a   : > { %264 = vst [vmem:[%s1055_s26 + $0x40] sm:$0xff] %v263_v8  ;;  %v267_v10 = vld [vmem:[%s1050_s25 + $0xa0] sm:$0xff]  ;;  %v269_v11 = vld [vmem:[%s1050_s25 + $0xb0] sm:$0xff]  ;;  %266 = vst [vmem:[%s1055_s26 + $0x48] sm:$0xff] %v265_v9 }
  0x1b   : > { %268 = vst [vmem:[%s1055_s26 + $0x50] sm:$0xff] %v267_v10  ;;  %270 = vst [vmem:[%s1055_s26 + $0x58] sm:$0xff] %v269_v11  ;;  %v271_v12 = vld [vmem:[%s1050_s25 + $0xc0] sm:$0xff]  ;;  %v273_v13 = vld [vmem:[%s1050_s25 + $0xd0] sm:$0xff] }
  0x1c   : > { %v275_v14 = vld [vmem:[%s1050_s25 + $0xe0] sm:$0xff]  ;;  %272 = vst [vmem:[%s1055_s26 + $0x60] sm:$0xff] %v271_v12  ;;  %274 = vst [vmem:[%s1055_s26 + $0x68] sm:$0xff] %v273_v13  ;;  %v277_v15 = vld [vmem:[%s1050_s25 + $0xf0] sm:$0xff] }
  0x1d   : > { %276 = vst [vmem:[%s1055_s26 + $0x70] sm:$0xff] %v275_v14  ;;  %v279_v16 = vld [vmem:[%s1050_s25 + $0x100] sm:$0xff]  ;;  %v281_v17 = vld [vmem:[%s1050_s25 + $0x110] sm:$0xff]  ;;  %278 = vst [vmem:[%s1055_s26 + $0x78] sm:$0xff] %v277_v15 }
  0x1e   : > { %280 = vst [vmem:[%s1055_s26 + $0x80] sm:$0xff] %v279_v16  ;;  %282 = vst [vmem:[%s1055_s26 + $0x88] sm:$0xff] %v281_v17  ;;  %v283_v18 = vld [vmem:[%s1050_s25 + $0x120] sm:$0xff]  ;;  %v285_v19 = vld [vmem:[%s1050_s25 + $0x130] sm:$0xff] }
  0x1f   : > { %v287_v20 = vld [vmem:[%s1050_s25 + $0x140] sm:$0xff]  ;;  %284 = vst [vmem:[%s1055_s26 + $0x90] sm:$0xff] %v283_v18  ;;  %286 = vst [vmem:[%s1055_s26 + $0x98] sm:$0xff] %v285_v19  ;;  %v289_v21 = vld [vmem:[%s1050_s25 + $0x150] sm:$0xff] }
  0x20   : > { %288 = vst [vmem:[%s1055_s26 + $0xa0] sm:$0xff] %v287_v20  ;;  %v291_v22 = vld [vmem:[%s1050_s25 + $0x160] sm:$0xff]  ;;  %v293_v23 = vld [vmem:[%s1050_s25 + $0x170] sm:$0xff]  ;;  %290 = vst [vmem:[%s1055_s26 + $0xa8] sm:$0xff] %v289_v21 }
  0x21   : > { %292 = vst [vmem:[%s1055_s26 + $0xb0] sm:$0xff] %v291_v22  ;;  %294 = vst [vmem:[%s1055_s26 + $0xb8] sm:$0xff] %v293_v23  ;;  %v295_v24 = vld [vmem:[%s1050_s25 + $0x180] sm:$0xff]  ;;  %v297_v25 = vld [vmem:[%s1050_s25 + $0x190] sm:$0xff] }
  0x22   : > { %v299_v26 = vld [vmem:[%s1050_s25 + $0x1a0] sm:$0xff]  ;;  %296 = vst [vmem:[%s1055_s26 + $0xc0] sm:$0xff] %v295_v24  ;;  %298 = vst [vmem:[%s1055_s26 + $0xc8] sm:$0xff] %v297_v25  ;;  %v301_v27 = vld [vmem:[%s1050_s25 + $0x1b0] sm:$0xff] }
  0x23   : > { %300 = vst [vmem:[%s1055_s26 + $0xd0] sm:$0xff] %v299_v26  ;;  %v303_v28 = vld [vmem:[%s1050_s25 + $0x1c0] sm:$0xff]  ;;  %v305_v29 = vld [vmem:[%s1050_s25 + $0x1d0] sm:$0xff]  ;;  %302 = vst [vmem:[%s1055_s26 + $0xd8] sm:$0xff] %v301_v27 }
  0x24   : > { %304 = vst [vmem:[%s1055_s26 + $0xe0] sm:$0xff] %v303_v28  ;;  %306 = vst [vmem:[%s1055_s26 + $0xe8] sm:$0xff] %v305_v29  ;;  %v307_v30 = vld [vmem:[%s1050_s25 + $0x1e0] sm:$0xff]  ;;  %v309_v31 = vld [vmem:[%s1050_s25 + $0x1f0] sm:$0xff] }
  0x25   : > { %308 = vst [vmem:[%s1055_s26 + $0xf0] sm:$0xff] %v307_v30  ;;  %310 = vst [vmem:[%s1055_s26 + $0xf8] sm:$0xff] %v309_v31 }
  0x26 PF: > { %p808_p8 = scmp.ge.s32.totalorder %s985_s13, 1  ;;  %p315_p9 = scmp.lt.s32.totalorder %s985_s13, 3 }
  0x28   : > { %p316_p10 = pnand %p808_p8, %p315_p9 }
  0x29   : > { %s322_s27 = sand.u32 (!%p316_p10), 1, %s969_s9   ;;  %v946_v32 = vld [vmem:[%s1186_s0 + $0x4] ss:$8 sps:$4 sm:$0xff] (!%p316_p10)   ;;  %v944_v1 = vld [vmem:[%s1186_s0] ss:$8 sps:$4 sm:$0xff] (!%p316_p10)  }
  0x2a   : > { %319 = sbr.rel (%p316_p10) target bundleno = 335 (0x14f), region = 62  ;;  %s809_s28 = sshll.u32 (!%p316_p10), %s322_s27, 8  ;;  %616 = vmatprep.mubr.bf16.mxu0 (!%p316_p10), %v946_v32 }
  0x2b   : > { %s1126_s3 = scalar_lea.vmem (!%p316_p10), [#allocation3], %s809_s28  ;;  %s810_s6 = sshll.u32 (!%p316_p10), %s322_s27, 4 }
  0x2c   : > { %v896_v33 = vld [vmem:[%s1126_s3 + $0x4] ss:$8 sps:$4 sm:$0xff] (!%p316_p10)   ;;  %v898_v34 = vld [vmem:[%s1126_s3] ss:$8 sps:$4 sm:$0xff] (!%p316_p10)   ;;  %v899_v35 = vld [vmem:[%s1126_s3 + $0x14] ss:$8 sps:$4 sm:$0xff] (!%p316_p10)  }
  0x2d   : > { %584 = vmatprep.subr.bf16.mxu0 (!%p316_p10), %v896_v33  ;;  %v901_v36 = vld [vmem:[%s1126_s3 + $0x10] ss:$8 sps:$4 sm:$0xff] (!%p316_p10)   ;;  %v902_v37 = vld [vmem:[%s1126_s3 + $0x24] ss:$8 sps:$4 sm:$0xff] (!%p316_p10)   ;;  %v904_v38 = vld [vmem:[%s1126_s3 + $0x20] ss:$8 sps:$4 sm:$0xff] (!%p316_p10)  }
  0x2e   : > { %585 = vmatpush1.bf16.msra.mxu0 (!%p316_p10), %v898_v34  ;;  %v905_v39 = vld [vmem:[%s1126_s3 + $0x34] ss:$8 sps:$4 sm:$0xff] (!%p316_p10)   ;;  %v907_v40 = vld [vmem:[%s1126_s3 + $0x30] ss:$8 sps:$4 sm:$0xff] (!%p316_p10)   ;;  %v908_v41 = vld [vmem:[%s1126_s3 + $0x44] ss:$8 sps:$4 sm:$0xff] (!%p316_p10)  }
  0x2f   : > { %586 = vmatprep.subr.bf16.mxu0 (!%p316_p10), %v899_v35  ;;  %v910_v42 = vld [vmem:[%s1126_s3 + $0x40] ss:$8 sps:$4 sm:$0xff] (!%p316_p10)   ;;  %v911_v43 = vld [vmem:[%s1126_s3 + $0x54] ss:$8 sps:$4 sm:$0xff] (!%p316_p10)   ;;  %v913_v44 = vld [vmem:[%s1126_s3 + $0x50] ss:$8 sps:$4 sm:$0xff] (!%p316_p10)  }
  0x30   : > { %v914_v45 = vld [vmem:[%s1126_s3 + $0x64] ss:$8 sps:$4 sm:$0xff] (!%p316_p10)   ;;  %v916_v46 = vld [vmem:[%s1126_s3 + $0x60] ss:$8 sps:$4 sm:$0xff] (!%p316_p10)   ;;  %v917_v47 = vld [vmem:[%s1126_s3 + $0x74] ss:$8 sps:$4 sm:$0xff] (!%p316_p10)  }
  0x31   : > { %v919_v48 = vld [vmem:[%s1126_s3 + $0x70] ss:$8 sps:$4 sm:$0xff]   ;;  %v920_v49 = vld [vmem:[%s1126_s3 + $0x84] ss:$8 sps:$4 sm:$0xff]   ;;  %v922_v50 = vld [vmem:[%s1126_s3 + $0x80] ss:$8 sps:$4 sm:$0xff]  }
  0x32   : > { %587 = vmatpush1.bf16.msra.mxu0 %v901_v36  ;;  %v923_v51 = vld [vmem:[%s1126_s3 + $0x94] ss:$8 sps:$4 sm:$0xff]   ;;  %v925_v52 = vld [vmem:[%s1126_s3 + $0x90] ss:$8 sps:$4 sm:$0xff]   ;;  %v926_v53 = vld [vmem:[%s1126_s3 + $0xa4] ss:$8 sps:$4 sm:$0xff]  }
  0x33   : > { %588 = vmatprep.subr.bf16.mxu0 %v902_v37  ;;  %v928_v54 = vld [vmem:[%s1126_s3 + $0xa0] ss:$8 sps:$4 sm:$0xff]   ;;  %v929_v55 = vld [vmem:[%s1126_s3 + $0xb4] ss:$8 sps:$4 sm:$0xff]   ;;  %v931_v56 = vld [vmem:[%s1126_s3 + $0xb0] ss:$8 sps:$4 sm:$0xff]  }
  0x34   : > { %v932_v57 = vld [vmem:[%s1126_s3 + $0xc4] ss:$8 sps:$4 sm:$0xff]   ;;  %v934_v58 = vld [vmem:[%s1126_s3 + $0xc0] ss:$8 sps:$4 sm:$0xff]   ;;  %v935_v59 = vld [vmem:[%s1126_s3 + $0xd4] ss:$8 sps:$4 sm:$0xff]  }
  0x35   : > { %v937_v60 = vld [vmem:[%s1126_s3 + $0xd0] ss:$8 sps:$4 sm:$0xff]   ;;  %v938_v61 = vld [vmem:[%s1126_s3 + $0xe4] ss:$8 sps:$4 sm:$0xff]   ;;  %v940_v62 = vld [vmem:[%s1126_s3 + $0xe0] ss:$8 sps:$4 sm:$0xff]  }
  0x36   : > { %589 = vmatpush1.bf16.msra.mxu0 %v904_v38  ;;  %v941_v63 = vld [vmem:[%s1126_s3 + $0xf4] ss:$8 sps:$4 sm:$0xff]   ;;  %v943_v0 = vld [vmem:[%s1126_s3 + $0xf0] ss:$8 sps:$4 sm:$0xff]   ;;  %s351_s7 = scalar_lea.vmem [#allocation4], %s810_s6  ;;  %s855_s8 = sshll.u32 (%p1037_p6), %s977_s11, 3 }
  0x37   : > { %590 = vmatprep.subr.bf16.mxu0 %v905_v39  ;;  %s668_s9 = scalar_lea.vmem (%p1037_p6), %s1188_s2, %s855_s8 }
  0x3a   : > { %591 = vmatpush1.bf16.msra.mxu0 %v907_v40 }
  0x3b   : > { %592 = vmatprep.subr.bf16.mxu0 %v908_v41 }
  0x3e   : > { %593 = vmatpush1.bf16.msra.mxu0 %v910_v42 }
  0x3f   : > { %594 = vmatprep.subr.bf16.mxu0 %v911_v43 }
  0x42   : > { %595 = vmatpush1.bf16.msra.mxu0 %v913_v44 }
  0x43   : > { %596 = vmatprep.subr.bf16.mxu0 %v914_v45 }
  0x46   : > { %597 = vmatpush1.bf16.msra.mxu0 %v916_v46 }
  0x47   : > { %598 = vmatprep.subr.bf16.mxu0 %v917_v47 }
  0x4a   : > { %599 = vmatpush1.bf16.msra.mxu0 %v919_v48 }
  0x4b   : > { %600 = vmatprep.subr.bf16.mxu0 %v920_v49 }
  0x4e   : > { %601 = vmatpush1.bf16.msra.mxu0 %v922_v50 }
  0x4f   : > { %602 = vmatprep.subr.bf16.mxu0 %v923_v51 }
  0x52   : > { %603 = vmatpush1.bf16.msra.mxu0 %v925_v52 }
  0x53   : > { %604 = vmatprep.subr.bf16.mxu0 %v926_v53 }
  0x56   : > { %605 = vmatpush1.bf16.msra.mxu0 %v928_v54 }
  0x57   : > { %606 = vmatprep.subr.bf16.mxu0 %v929_v55 }
  0x5a   : > { %607 = vmatpush1.bf16.msra.mxu0 %v931_v56 }
  0x5b   : > { %608 = vmatprep.subr.bf16.mxu0 %v932_v57 }
  0x5e   : > { %609 = vmatpush1.bf16.msra.mxu0 %v934_v58 }
  0x5f   : > { %610 = vmatprep.subr.bf16.mxu0 %v935_v59 }
  0x62   : > { %611 = vmatpush1.bf16.msra.mxu0 %v937_v60 }
  0x63   : > { %612 = vmatprep.subr.bf16.mxu0 %v938_v61 }
  0x66   : > { %613 = vmatpush1.bf16.msra.mxu0 %v940_v62 }
  0x67   : > { %614 = vmatprep.subr.bf16.mxu0 %v941_v63 }
  0x6a   : > { %615 = vmatpush1.bf16.msra.mxu0 %v943_v0 }
  0x6d   : > { %617 = vmatmul.mubr.bf16.vlgmr.msra.gmra.mrb[0].mxu0 %v944_v1 }
 0x140   : > { %v618_v2 = vpop.f32.mrb[0].mxu0  ;;  %662 = sbr.rel (!%p1037_p6) target bundleno = 335 (0x14f), region = 78 }
 0x141   : > { %v620_v3 = vpop.f32.mrb[1].mxu0 }
 0x142   : > { %v853_v4 = vpack.c.bf16 %v620_v3, %v618_v2  ;;  %v622_v5 = vpop.f32.mrb[2].mxu0 }
 0x143   : > { %v624_v6 = vpop.f32.mrb[3].mxu0 }
 0x144   : > { %654 = vst [vmem:[%s351_s7] sm:$0xff] %v853_v4  ;;  %v854_v7 = vpack.c.bf16 %v624_v6, %v622_v5 }
 0x146   : > { %655 = vst [vmem:[%s351_s7 + $0x8] sm:$0xff] %v854_v7 }
 0x14b   : > { %v698_v8 = vld [vmem:[%s351_s7] sm:$0xff] }
 0x14c   : > { %699 = vst [vmem:[%s668_s9] sm:$0xff] %v698_v8 }
 0x14d   : > { %v700_v9 = vld [vmem:[%s351_s7 + $0x8] sm:$0xff] }
 0x14e   : > { %701 = vst [vmem:[%s668_s9 + $0x10] sm:$0xff] %v700_v9 }
 0x14f PF: > { %s12_s13 = sadd.s32 1, %s985_s13   ;;  %s1190_s9 = smov %s973_s10 }
 0x150   : > { %p9_p11 = scmp.ge.s32.totalorder %s12_s13, 4   ;;  %s1191_s10 = smov %s1042_s19 }
 0x151   : > { %s1192_s11 = smov %s981_s12  ;;  %s1193_s12 = smov %s1195_s14 }
 0x152   :  { %11 = sbr.rel (!%p9_p11) target bundleno = 3 (0x3), region = 150 }

// kernel: forward.79
= control target key start
LH: loop header
LB: loop body
LE: loop exit
PB: predicated region body
PF: predicated region fallthrough
CT: control target
= control target key end

     0   :  { %s518_s9 = smov 0   ;;  %s520_s10 = smov 0   ;;  %s584_s0 = inlined_call_operand.vmem [shape: bf16[2,16,512], index: 0, kind: input, shape index: {}]   ;;  %s585_s1 = inlined_call_operand.vmem [shape: f32[2,1,512], index: 1, kind: output, shape index: {0}]   ;;  %s586_s2 = inlined_call_operand.vmem [shape: f32[2,1,512], index: 2, kind: output, shape index: {1}]  }
   0x1   :  { %s522_s11 = smov 0  }
   0x2 LB: > { %s25_s12 = sadd.s32 1, %s495_s10  ;;  %p443_p0 = scmp.ge.s32.totalorder %s499_s11, 1  ;;  %s499_s11 = sphi %s522_s11, %s13_s11   ;;  %s495_s10 = sphi %s520_s10, %s590_s10   ;;  %s491_s9 = sphi %s518_s9, %s589_s9  }
   0x3   : > { %p27_p1 = scmp.ge.s32.totalorder %s25_s12, 2  ;;  %p135_p2 = scmp.lt.s32.totalorder %s499_s11, 3 }
   0x5   : > { %s592_s12 = smov (%p27_p1, %s25_s12), 0  ;;  %p136_p3 = pnand %p443_p0, %p135_p2 }
   0x6   : > { %p166_p4 = scmp.lt.s32.totalorder (!%p136_p3), %s491_s9, 1  ;;  %v188_v0 = vlaneseq (!%p136_p3)  ;;  %v501_v1 = vmov (!%p136_p3), 1966171168   ;;  %v502_v6 = vmov (!%p136_p3), 0.0  }
   0x7   : > { %139 = sbr.rel (%p136_p3) target bundleno = 49 (0x31), region = 24  ;;  %v242_v2 = vunpack.c.l.s4 (!%p136_p3), %v501_v1 }
   0x8   : > { %v245_v3 = vshrl.u32 (!%p136_p3), %v188_v0, 7  ;;  %vm536_vm0 = vcmp.lt.s32.totalorder (!%p136_p3), %v188_v0, 512 }
   0x9   : > { %v243_v5 = vunpack.c.0.s8 (!%p136_p3), %v242_v2 }
   0xb   : > { %v551_v10 = vsub.s32 (!%p136_p3), %v243_v5, %v245_v3 }
   0xe   : > { %s594_s9 = smov (!%p166_p4, %s491_s9), 1 }
   0xf   : > { %s450_s13 = sshll.u32 %s594_s9, 5  ;;  %s446_s14 = sshll.u32 %s594_s9, 2 }
  0x10   : > { %s174_s17 = scalar_lea.vmem %s584_s0, %s450_s13  ;;  %s546_s20 = scalar_lea.vmem %s585_s1, %s446_s14 }
  0x11   : > { %192 = vst.msk [vmem:[%s546_s20] sm:$0xf] %vm536_vm0, %v502_v6  ;;  %v194_v7 = vld [vmem:[%s174_s17] sm:$0xff]  ;;  %v195_v8 = vld [vmem:[%s174_s17 + $0x8] sm:$0xff]  ;;  %v196_v9 = vld [vmem:[%s174_s17 + $0x10] sm:$0xff]  ;;  %s556_s23 = scalar_lea.vmem %s586_s2, %s446_s14 }
  0x12   : > { %v197_v11 = vld [vmem:[%s174_s17 + $0x18] sm:$0xff]  ;;  %v198_v12 = vunpack.c.l.bf16 %v194_v7  ;;  %v199_v13 = vunpack.c.h.bf16 %v194_v7  ;;  %v200_v14 = vunpack.c.l.bf16 %v195_v8  ;;  %v201_v15 = vunpack.c.h.bf16 %v195_v8  ;;  %193 = vst.msk [vmem:[%s556_s23] sm:$0xf] %vm536_vm0, %v502_v6 }
  0x13   : > { %v202_v16 = vunpack.c.l.bf16 %v196_v9  ;;  %v203_v17 = vunpack.c.h.bf16 %v196_v9  ;;  %v204_v18 = vunpack.c.l.bf16 %v197_v11  ;;  %v205_v19 = vunpack.c.h.bf16 %v197_v11 }
  0x14   : > { %v271_v20 = vmul.f32 %v198_v12, %v198_v12  ;;  %v272_v21 = vmul.f32 %v199_v13, %v199_v13  ;;  %v273_v22 = vmul.f32 %v200_v14, %v200_v14  ;;  %v274_v23 = vmul.f32 %v201_v15, %v201_v15 }
  0x15   : > { %v207_v24 = vadd.f32 %v202_v16, %v198_v12  ;;  %v214_v25 = vadd.f32 %v203_v17, %v199_v13  ;;  %v221_v26 = vadd.f32 %v204_v18, %v200_v14  ;;  %v228_v27 = vadd.f32 %v205_v19, %v201_v15 }
  0x16   : > { %v275_v28 = vmul.f32 %v202_v16, %v202_v16  ;;  %v276_v29 = vmul.f32 %v203_v17, %v203_v17  ;;  %v277_v30 = vmul.f32 %v204_v18, %v204_v18  ;;  %v278_v31 = vmul.f32 %v205_v19, %v205_v19 }
  0x17   : > { %v208_v32 = vrot.slane %v207_v24, 4  ;;  %v215_v33 = vrot.slane %v214_v25, 4  ;;  %v222_v34 = vrot.slane %v221_v26, 4  ;;  %v229_v35 = vrot.slane %v228_v27, 4 }
  0x18   : > { %v279_v36 = vadd.f32 %v275_v28, %v271_v20  ;;  %v286_v37 = vadd.f32 %v276_v29, %v272_v21  ;;  %v293_v38 = vadd.f32 %v277_v30, %v273_v22  ;;  %v300_v39 = vadd.f32 %v278_v31, %v274_v23  ;;  %v206_v29 = vld [vmem:[%s546_s20] sm:$0xf] }
  0x19   : > { %v209_v40 = vadd.f32 %v208_v32, %v207_v24  ;;  %v216_v41 = vadd.f32 %v215_v33, %v214_v25  ;;  %v223_v42 = vadd.f32 %v222_v34, %v221_v26  ;;  %v230_v43 = vadd.f32 %v229_v35, %v228_v27  ;;  %v270_v35 = vld [vmem:[%s556_s23] sm:$0xf] }
  0x1a   : > { %v280_v44 = vrot.slane %v279_v36, 4  ;;  %v287_v45 = vrot.slane %v286_v37, 4  ;;  %v294_v46 = vrot.slane %v293_v38, 4  ;;  %v301_v47 = vrot.slane %v300_v39, 4 }
  0x1b   : > { %v210_v48 = vrot.slane %v209_v40, 2  ;;  %v217_v49 = vrot.slane %v216_v41, 2  ;;  %v224_v50 = vrot.slane %v223_v42, 2  ;;  %v231_v51 = vrot.slane %v230_v43, 2 }
  0x1c   : > { %v281_v52 = vadd.f32 %v280_v44, %v279_v36  ;;  %v288_v53 = vadd.f32 %v287_v45, %v286_v37  ;;  %v295_v54 = vadd.f32 %v294_v46, %v293_v38  ;;  %v302_v55 = vadd.f32 %v301_v47, %v300_v39 }
  0x1d   : > { %v211_v56 = vadd.f32 %v210_v48, %v209_v40  ;;  %v218_v57 = vadd.f32 %v217_v49, %v216_v41  ;;  %v225_v58 = vadd.f32 %v224_v50, %v223_v42  ;;  %v232_v59 = vadd.f32 %v231_v51, %v230_v43 }
  0x1e   : > { %v282_v60 = vrot.slane %v281_v52, 2  ;;  %v289_v61 = vrot.slane %v288_v53, 2  ;;  %v296_v62 = vrot.slane %v295_v54, 2  ;;  %v303_v63 = vrot.slane %v302_v55, 2 }
  0x1f   : > { %v212_v0 = vrot.slane %v211_v56, 1  ;;  %v219_v1 = vrot.slane %v218_v57, 1  ;;  %v226_v2 = vrot.slane %v225_v58, 1  ;;  %v233_v3 = vrot.slane %v232_v59, 1 }
  0x20   : > { %v283_v5 = vadd.f32 %v282_v60, %v281_v52  ;;  %v290_v6 = vadd.f32 %v289_v61, %v288_v53  ;;  %v297_v7 = vadd.f32 %v296_v62, %v295_v54  ;;  %v304_v8 = vadd.f32 %v303_v63, %v302_v55 }
  0x21   : > { %v213_v9 = vadd.f32 %v212_v0, %v211_v56  ;;  %v220_v11 = vadd.f32 %v219_v1, %v218_v57  ;;  %v227_v12 = vadd.f32 %v226_v2, %v225_v58  ;;  %v234_v13 = vadd.f32 %v233_v3, %v232_v59 }
  0x22   : > { %v284_v14 = vrot.slane %v283_v5, 1  ;;  %v291_v15 = vrot.slane %v290_v6, 1  ;;  %v298_v16 = vrot.slane %v297_v7, 1  ;;  %v305_v17 = vrot.slane %v304_v8, 1 }
  0x23   : > { %v239_v18 = vcombine.low %v213_v9, %v220_v11  ;;  %v240_v19 = vcombine.low %v227_v12, %v234_v13 }
  0x24   : > { %v285_v20 = vadd.f32 %v284_v14, %v283_v5  ;;  %v292_v21 = vadd.f32 %v291_v15, %v290_v6  ;;  %v299_v22 = vadd.f32 %v298_v16, %v297_v7  ;;  %v306_v23 = vadd.f32 %v305_v17, %v304_v8 }
  0x25   : > { %v247_v24 = vrot.slane %v239_v18, %v551_v10  ;;  %v254_v25 = vrot.slane %v240_v19, %v551_v10 }
  0x26   : > { %v311_v26 = vcombine.low %v285_v20, %v292_v21  ;;  %v312_v27 = vcombine.low %v299_v22, %v306_v23 }
  0x27   : > { %v255_v28 = vcombine.low %v247_v24, %v254_v25 }
  0x28   : > { %v319_v30 = vrot.slane %v311_v26, %v551_v10  ;;  %v326_v31 = vrot.slane %v312_v27, %v551_v10 }
  0x29   : > { %v262_v32 = vrot.slane %v255_v28, %v551_v10 }
  0x2a   : > { %v327_v33 = vcombine.low %v319_v30, %v326_v31 }
  0x2b   : > { %v264_v34 = vadd.f32 %v262_v32, %v206_v29 }
  0x2c   : > { %v334_v36 = vrot.slane %v327_v33, %v551_v10 }
  0x2d   : > { %269 = vst.msk [vmem:[%s546_s20] sm:$0xf] %vm536_vm0, %v264_v34 }
  0x2e   : > { %v336_v37 = vadd.f32 %v334_v36, %v270_v35 }
  0x30   : > { %337 = vst.msk [vmem:[%s556_s23] sm:$0xf] %vm536_vm0, %v336_v37 }
  0x31 PF: > { %s13_s11 = sadd.s32 1, %s499_s11   ;;  %s589_s9 = smov %s495_s10 }
  0x32   : > { %p10_p5 = scmp.ge.s32.totalorder %s13_s11, 4   ;;  %s590_s10 = smov %s592_s12 }
  0x34   :  { %12 = sbr.rel (!%p10_p5) target bundleno = 2 (0x2), region = 70 }

// kernel: forward.80
= control target key start
LH: loop header
LB: loop body
LE: loop exit
PB: predicated region body
PF: predicated region fallthrough
CT: control target
= control target key end

     0   :  { %s504_s12 = smov 0   ;;  %s506_s13 = smov 0   ;;  %s550_s0 = inlined_call_operand.vmem [shape: bf16[2,16,512], index: 0, kind: input, shape index: {}]   ;;  %s551_s1 = inlined_call_operand.vmem [shape: f32[1,1,512], index: 1, kind: input, shape index: {}]   ;;  %s552_s2 = inlined_call_operand.vmem [shape: f32[1,1,512], index: 2, kind: input, shape index: {}]   ;;  %s553_s3 = inlined_call_operand.vmem [shape: bf16[2,16,512], index: 3, kind: output, shape index: {}]  }
   0x1   :  { %s508_s14 = smov 0  }
   0x2 LB: > { %s25_s15 = sadd.s32 1, %s478_s13  ;;  %p417_p0 = scmp.ge.s32.totalorder %s482_s14, 1  ;;  %s482_s14 = sphi %s508_s14, %s13_s14   ;;  %s478_s13 = sphi %s506_s13, %s555_s13   ;;  %s474_s12 = sphi %s504_s12, %s554_s12  }
   0x3   : > { %p27_p1 = scmp.ge.s32.totalorder %s25_s15, 2  ;;  %p159_p2 = scmp.lt.s32.totalorder %s482_s14, 3 }
   0x5   : > { %s557_s15 = smov (%p27_p1, %s25_s15), 0  ;;  %p160_p3 = pnand %p417_p0, %p159_p2 }
   0x6   : > { %p194_p4 = scmp.lt.s32.totalorder (!%p160_p3), %s474_s12, 1  ;;  %v220_v0 = vld [vmem:[%s552_s2] sm:$0xf] (!%p160_p3)  ;;  %v230_v1 = vlaneseq (!%p160_p3) }
   0x7   : > { %163 = sbr.rel (%p160_p3) target bundleno = 30 (0x1e), region = 32  ;;  %v258_v2 = vadd.f32 (!%p160_p3), 1e-05, %v220_v0  ;;  %v219_v4 = vld [vmem:[%s551_s1] sm:$0xf] (!%p160_p3) }
   0x8   : > { %v231_v3 = vshrl.u32 (!%p160_p3), %v230_v1, 7 }
   0x9   : > { %458 = vrsqrt.f32 (!%p160_p3), %v258_v2 }
   0xa   : > { %v232_v5 = vsub.s32 (!%p160_p3), 0, %v231_v3  ;;  %v236_v6 = vsub.s32 (!%p160_p3), 1, %v231_v3  ;;  %v240_v7 = vsub.s32 (!%p160_p3), 2, %v231_v3  ;;  %v244_v8 = vsub.s32 (!%p160_p3), 3, %v231_v3 }
   0xc   : > { %v233_v12 = vrot.slane (!%p160_p3), %v219_v4, %v232_v5  ;;  %v237_v13 = vrot.slane (!%p160_p3), %v219_v4, %v236_v6  ;;  %v241_v14 = vrot.slane (!%p160_p3), %v219_v4, %v240_v7  ;;  %v245_v15 = vrot.slane (!%p160_p3), %v219_v4, %v244_v8 }
   0xe   : > { %s559_s12 = smov (!%p194_p4, %s474_s12), 1 }
   0xf   : > { %s428_s20 = sshll.u32 %s559_s12, 5 }
  0x10   : > { %s202_s23 = scalar_lea.vmem %s550_s0, %s428_s20  ;;  %s213_s26 = scalar_lea.vmem %s553_s3, %s428_s20 }
  0x11   : > { %v215_v9 = vld [vmem:[%s202_s23] sm:$0xff]  ;;  %v216_v10 = vld [vmem:[%s202_s23 + $0x8] sm:$0xff]  ;;  %v217_v11 = vld [vmem:[%s202_s23 + $0x10] sm:$0xff] }
  0x12   : > { %v218_v16 = vld [vmem:[%s202_s23 + $0x18] sm:$0xff]  ;;  %v221_v17 = vunpack.c.l.bf16 %v215_v9  ;;  %v222_v18 = vunpack.c.h.bf16 %v215_v9  ;;  %v223_v19 = vunpack.c.l.bf16 %v216_v10  ;;  %v224_v20 = vunpack.c.h.bf16 %v216_v10 }
  0x13   : > { %v225_v21 = vunpack.c.l.bf16 %v217_v11  ;;  %v226_v22 = vunpack.c.h.bf16 %v217_v11  ;;  %v227_v23 = vunpack.c.l.bf16 %v218_v16  ;;  %v228_v24 = vunpack.c.h.bf16 %v218_v16  ;;  %v459_v29 = vpop.eup %458 }
  0x14   : > { %v250_v25 = vsub.f32 %v221_v17, %v233_v12  ;;  %v251_v26 = vsub.f32 %v222_v18, %v237_v13  ;;  %v252_v27 = vsub.f32 %v223_v19, %v241_v14  ;;  %v253_v28 = vsub.f32 %v224_v20, %v245_v15 }
  0x15   : > { %v254_v30 = vsub.f32 %v225_v21, %v233_v12  ;;  %v255_v31 = vsub.f32 %v226_v22, %v237_v13  ;;  %v256_v32 = vsub.f32 %v227_v23, %v241_v14  ;;  %v257_v33 = vsub.f32 %v228_v24, %v245_v15 }
  0x16   : > { %v264_v34 = vrot.slane %v459_v29, %v232_v5  ;;  %v268_v35 = vrot.slane %v459_v29, %v236_v6  ;;  %v272_v36 = vrot.slane %v459_v29, %v240_v7  ;;  %v276_v37 = vrot.slane %v459_v29, %v244_v8 }
  0x18   : > { %v281_v38 = vmul.f32 %v264_v34, %v250_v25  ;;  %v282_v39 = vmul.f32 %v268_v35, %v251_v26  ;;  %v283_v40 = vmul.f32 %v272_v36, %v252_v27  ;;  %v284_v41 = vmul.f32 %v276_v37, %v253_v28 }
  0x19   : > { %v285_v42 = vmul.f32 %v264_v34, %v254_v30  ;;  %v286_v43 = vmul.f32 %v268_v35, %v255_v31  ;;  %v287_v44 = vmul.f32 %v272_v36, %v256_v32  ;;  %v288_v45 = vmul.f32 %v276_v37, %v257_v33 }
  0x1a   : > { %v430_v46 = vpack.c.bf16 %v282_v39, %v281_v38  ;;  %v431_v47 = vpack.c.bf16 %v284_v41, %v283_v40 }
  0x1b   : > { %v432_v48 = vpack.c.bf16 %v286_v43, %v285_v42  ;;  %v433_v49 = vpack.c.bf16 %v288_v45, %v287_v44 }
  0x1c   : > { %313 = vst [vmem:[%s213_s26] sm:$0xff] %v430_v46  ;;  %314 = vst [vmem:[%s213_s26 + $0x8] sm:$0xff] %v431_v47 }
  0x1d   : > { %315 = vst [vmem:[%s213_s26 + $0x10] sm:$0xff] %v432_v48  ;;  %316 = vst [vmem:[%s213_s26 + $0x18] sm:$0xff] %v433_v49 }
  0x1e PF: > { %s13_s14 = sadd.s32 1, %s482_s14   ;;  %s554_s12 = smov %s478_s13 }
  0x1f   : > { %p10_p5 = scmp.ge.s32.totalorder %s13_s14, 4   ;;  %s555_s13 = smov %s557_s15 }
  0x21   :  { %12 = sbr.rel (!%p10_p5) target bundleno = 2 (0x2), region = 62 }

// kernel: forward.76
= control target key start
LH: loop header
LB: loop body
LE: loop exit
PB: predicated region body
PF: predicated region fallthrough
CT: control target
= control target key end

     0   :  { %s512_s12 = smov 0   ;;  %s514_s13 = smov 0   ;;  %s558_s0 = inlined_call_operand.vmem [shape: bf16[2,16,512], index: 0, kind: input, shape index: {}]   ;;  %s559_s1 = inlined_call_operand.vmem [shape: f32[1,1,512], index: 1, kind: input, shape index: {}]   ;;  %s560_s2 = inlined_call_operand.vmem [shape: f32[1,1,512], index: 2, kind: input, shape index: {}]   ;;  %s561_s3 = inlined_call_operand.vmem [shape: bf16[2,16,512], index: 3, kind: output, shape index: {}]  }
   0x1   :  { %s516_s14 = smov 0  }
   0x2 LB: > { %s25_s15 = sadd.s32 1, %s486_s13  ;;  %p425_p0 = scmp.ge.s32.totalorder %s490_s14, 1  ;;  %s490_s14 = sphi %s516_s14, %s13_s14   ;;  %s486_s13 = sphi %s514_s13, %s563_s13   ;;  %s482_s12 = sphi %s512_s12, %s562_s12  }
   0x3   : > { %p27_p1 = scmp.ge.s32.totalorder %s25_s15, 2  ;;  %p159_p2 = scmp.lt.s32.totalorder %s490_s14, 3 }
   0x5   : > { %s565_s15 = smov (%p27_p1, %s25_s15), 0  ;;  %p160_p3 = pnand %p425_p0, %p159_p2 }
   0x6   : > { %p194_p4 = scmp.lt.s32.totalorder (!%p160_p3), %s482_s12, 1  ;;  %v220_v0 = vld [vmem:[%s560_s2] sm:$0xf] (!%p160_p3)  ;;  %v230_v1 = vlaneseq (!%p160_p3) }
   0x7   : > { %163 = sbr.rel (%p160_p3) target bundleno = 32 (0x20), region = 32  ;;  %v258_v2 = vadd.f32 (!%p160_p3), 1e-05, %v220_v0  ;;  %v219_v4 = vld [vmem:[%s559_s1] sm:$0xf] (!%p160_p3) }
   0x8   : > { %v231_v3 = vshrl.u32 (!%p160_p3), %v230_v1, 7 }
   0x9   : > { %466 = vrsqrt.f32 (!%p160_p3), %v258_v2 }
   0xa   : > { %v232_v5 = vsub.s32 (!%p160_p3), 0, %v231_v3  ;;  %v236_v6 = vsub.s32 (!%p160_p3), 1, %v231_v3  ;;  %v240_v7 = vsub.s32 (!%p160_p3), 2, %v231_v3  ;;  %v244_v8 = vsub.s32 (!%p160_p3), 3, %v231_v3 }
   0xc   : > { %v233_v12 = vrot.slane (!%p160_p3), %v219_v4, %v232_v5  ;;  %v237_v13 = vrot.slane (!%p160_p3), %v219_v4, %v236_v6  ;;  %v241_v14 = vrot.slane (!%p160_p3), %v219_v4, %v240_v7  ;;  %v245_v15 = vrot.slane (!%p160_p3), %v219_v4, %v244_v8 }
   0xe   : > { %s567_s12 = smov (!%p194_p4, %s482_s12), 1 }
   0xf   : > { %s436_s20 = sshll.u32 %s567_s12, 5 }
  0x10   : > { %s202_s23 = scalar_lea.vmem %s558_s0, %s436_s20  ;;  %s213_s26 = scalar_lea.vmem %s561_s3, %s436_s20 }
  0x11   : > { %v215_v9 = vld [vmem:[%s202_s23] sm:$0xff]  ;;  %v216_v10 = vld [vmem:[%s202_s23 + $0x8] sm:$0xff]  ;;  %v217_v11 = vld [vmem:[%s202_s23 + $0x10] sm:$0xff] }
  0x12   : > { %v218_v16 = vld [vmem:[%s202_s23 + $0x18] sm:$0xff]  ;;  %v221_v17 = vunpack.c.l.bf16 %v215_v9  ;;  %v222_v18 = vunpack.c.h.bf16 %v215_v9  ;;  %v223_v19 = vunpack.c.l.bf16 %v216_v10  ;;  %v224_v20 = vunpack.c.h.bf16 %v216_v10 }
  0x13   : > { %v225_v21 = vunpack.c.l.bf16 %v217_v11  ;;  %v226_v22 = vunpack.c.h.bf16 %v217_v11  ;;  %v227_v23 = vunpack.c.l.bf16 %v218_v16  ;;  %v228_v24 = vunpack.c.h.bf16 %v218_v16  ;;  %v467_v29 = vpop.eup %466 }
  0x14   : > { %v250_v25 = vsub.f32 %v221_v17, %v233_v12  ;;  %v251_v26 = vsub.f32 %v222_v18, %v237_v13  ;;  %v252_v27 = vsub.f32 %v223_v19, %v241_v14  ;;  %v253_v28 = vsub.f32 %v224_v20, %v245_v15 }
  0x15   : > { %v254_v30 = vsub.f32 %v225_v21, %v233_v12  ;;  %v255_v31 = vsub.f32 %v226_v22, %v237_v13  ;;  %v256_v32 = vsub.f32 %v227_v23, %v241_v14  ;;  %v257_v33 = vsub.f32 %v228_v24, %v245_v15 }
  0x16   : > { %v264_v34 = vrot.slane %v467_v29, %v232_v5  ;;  %v268_v35 = vrot.slane %v467_v29, %v236_v6  ;;  %v272_v36 = vrot.slane %v467_v29, %v240_v7  ;;  %v276_v37 = vrot.slane %v467_v29, %v244_v8 }
  0x18   : > { %v281_v38 = vmul.f32 %v264_v34, %v250_v25  ;;  %v282_v39 = vmul.f32 %v268_v35, %v251_v26  ;;  %v283_v40 = vmul.f32 %v272_v36, %v252_v27  ;;  %v284_v41 = vmul.f32 %v276_v37, %v253_v28 }
  0x19   : > { %v285_v42 = vmul.f32 %v264_v34, %v254_v30  ;;  %v286_v43 = vmul.f32 %v268_v35, %v255_v31  ;;  %v287_v44 = vmul.f32 %v272_v36, %v256_v32  ;;  %v288_v45 = vmul.f32 %v276_v37, %v257_v33 }
  0x1a   : > { %v289_v46 = vmax.f32 %v281_v38, 0.0  ;;  %v290_v47 = vmax.f32 %v282_v39, 0.0  ;;  %v291_v48 = vmax.f32 %v283_v40, 0.0  ;;  %v292_v49 = vmax.f32 %v284_v41, 0.0 }
  0x1b   : > { %v293_v50 = vmax.f32 %v285_v42, 0.0  ;;  %v294_v51 = vmax.f32 %v286_v43, 0.0  ;;  %v295_v52 = vmax.f32 %v287_v44, 0.0  ;;  %v296_v53 = vmax.f32 %v288_v45, 0.0 }
  0x1c   : > { %v438_v54 = vpack.c.bf16 %v290_v47, %v289_v46  ;;  %v439_v55 = vpack.c.bf16 %v292_v49, %v291_v48 }
  0x1d   : > { %v440_v56 = vpack.c.bf16 %v294_v51, %v293_v50  ;;  %v441_v57 = vpack.c.bf16 %v296_v53, %v295_v52 }
  0x1e   : > { %321 = vst [vmem:[%s213_s26] sm:$0xff] %v438_v54  ;;  %322 = vst [vmem:[%s213_s26 + $0x8] sm:$0xff] %v439_v55 }
  0x1f   : > { %323 = vst [vmem:[%s213_s26 + $0x10] sm:$0xff] %v440_v56  ;;  %324 = vst [vmem:[%s213_s26 + $0x18] sm:$0xff] %v441_v57 }
  0x20 PF: > { %s13_s14 = sadd.s32 1, %s490_s14   ;;  %s562_s12 = smov %s486_s13 }
  0x21   : > { %p10_p5 = scmp.ge.s32.totalorder %s13_s14, 4   ;;  %s563_s13 = smov %s565_s15 }
  0x23   :  { %12 = sbr.rel (!%p10_p5) target bundleno = 2 (0x2), region = 62 }

// kernel: forward.74
= control target key start
LH: loop header
LB: loop body
LE: loop exit
PB: predicated region body
PF: predicated region fallthrough
CT: control target
= control target key end

     0   :  { %s1527_s0 = inlined_call_operand.vmem [shape: bf16[16,6912], index: 0, kind: input, shape index: {}]   ;;  %s1528_s1 = inlined_call_operand.hbm [shape: bf16[6912,512], index: 1, kind: input, shape index: {}]   ;;  %s1529_s2 = inlined_call_operand.vmem [shape: bf16[16,512], index: 2, kind: output, shape index: {}]  }
   0x1   :  { %1533 = sst [smem:[#allocation11_spill]] %s1527_s0 }
   0x2   :  { %7 = vsyncpa [#allocation5], 0 }
   0x3   :  { %9 = vsyncpa [#allocation5 + $0x1], 0  ;;  %s1258_s9 = smov 0   ;;  %s1260_s10 = smov 0  }
   0x4   :  { %s1262_s11 = smov 0   ;;  %s1264_s12 = smov 0  }
   0x5   :  { %s1266_s13 = smov 0   ;;  %s1268_s14 = smov 0  }
   0x6   :  { %s1270_s15 = smov 0   ;;  %s1272_s16 = smov 0  }
   0x7   :  { %s1274_s17 = smov 0   ;;  %s1276_s18 = smov 0  }
   0x8   :  { %s1278_s19 = smov 0   ;;  %s1280_s20 = smov 0  }
   0x9 LB: > { %1534 = sst [smem:[#allocation8_spill]] %s1231_s19  ;;  %s843_s21 = sadd.s32 4294967295, %s1235_s20   ;;  %s1235_s20 = sphi %s1280_s20, %s15_s20   ;;  %s1231_s19 = sphi %s1278_s19, %s1545_s19   ;;  %s1227_s18 = sphi %s1276_s18, %s1554_s18   ;;  %s1223_s17 = sphi %s1274_s17, %s1543_s17   ;;  %s1219_s16 = sphi %s1272_s16, %s1553_s16   ;;  %s1215_s15 = sphi %s1270_s15, %s1552_s15   ;;  %s1211_s14 = sphi %s1268_s14, %s1551_s14   ;;  %s1207_s13 = sphi %s1266_s13, %s1550_s13   ;;  %s1203_s12 = sphi %s1264_s12, %s1549_s12   ;;  %s1199_s11 = sphi %s1262_s11, %s1548_s11   ;;  %s1195_s10 = sphi %s1260_s10, %s1547_s10   ;;  %s1191_s9 = sphi %s1258_s9, %s1546_s9  }
   0xa   : > { %s27_s22 = sadd.s32 1, %s1227_s18  ;;  %s30_s23 = sadd.s32 1, %s1231_s19 }
   0xb   : > { %p28_p0 = scmp.ge.s32.totalorder %s27_s22, 18  ;;  %s43_s24 = sadd.s32 1, %s1215_s15 }
   0xc   : > { %p50_p1 = scmp.ne.s32.totalorder %s1215_s15, %s1211_s14  ;;  %p51_p2 = scmp.eq.s32.totalorder %s1235_s20, 0 }
   0xd   : > { %s1556_s22 = smov (%p28_p0, %s27_s22), 0  ;;  %s1558_s23 = smov (!%p28_p0, %s30_s23), %s1231_s19 }
   0xe   : > { %1535 = sst [smem:[#allocation9_spill]] %s1556_s22  ;;  %s39_s25 = ssub.s32 %s1227_s18, %s1556_s22 }
   0xf   : > { %p32_p3 = scmp.ge.s32.totalorder %s1558_s23, 2  ;;  %p41_p4 = scmp.eq.s32.totalorder %s39_s25, 0 }
  0x10   : > { %p1330_p5 = por %p51_p2, %p50_p1  ;;  %s71_s27 = sadd.s32 1, %s1207_s13 }
  0x11   : > { %s1560_s23 = smov (%p32_p3, %s1558_s23), 0  ;;  %p78_p6 = scmp.ne.s32.totalorder %s1207_s13, %s1203_s12 }
  0x12   : > { %1537 = sst [smem:[#allocation10_spill]] %s1560_s23  ;;  %s67_s29 = ssub.s32 %s1231_s19, %s1560_s23 }
  0x13   : > { %s1338_s28 = scalar_select %p41_p4, %s1215_s15, %s43_s24  }
  0x14   : > { %s68_s30 = sor.u32 %s67_s29, %s39_s25  ;;  %p84_p7 = scmp.ne.s32.totalorder %s1203_s12, %s1199_s11 }
  0x15   : > { %p69_p8 = scmp.eq.s32.totalorder %s68_s30, 0  ;;  %p1346_p9 = por %p78_p6, %p51_p2 }
  0x16   : > { %p85_p10 = scmp.eq.s32.totalorder %s843_s21, 0  ;;  %p97_p11 = scmp.eq.s32.totalorder %s67_s29, 0 }
  0x17   : > { %s1353_s4 = scalar_select %p69_p8, %s1207_s13, %s71_s27  }
  0x18   : > { %p1355_p12 = por %p85_p10, %p84_p7  ;;  %s99_s6 = sadd.s32 1, %s1195_s10 }
  0x19   : > { %s1361_s7 = scalar_select %p97_p11, %s1195_s10, %s99_s6  }
  0x1a   : > { %p109_p13 = scmp.ne.s32.totalorder %s1195_s10, %s1191_s9  ;;  %p110_p0 = scmp.eq.s32.totalorder %s843_s21, 35 }
  0x1b   : > { %p846_p2 = scmp.ge.s32.totalorder %s1235_s20, 36 }
  0x1c   : > { %p1367_p1 = por %p110_p0, %p109_p13 }
  0x1d   : > { %132 = sbr.rel (%p846_p2) target bundleno = 77 (0x4d), region = 16 }
  0x1e   : > { %s1540_s8 = scalar_select %p1367_p1, 1, 0 }
  0x24   : > { %135 = sbr.rel (!%p1330_p5) target bundleno = 47 (0x2f), region = 20  ;;  %s137_s11 = sand.u32 (%p1330_p5), 1, %s1215_s15  }
  0x25   : > { %s917_s24 = smul.u32 (%p1330_p5), 12, %s1227_s18  ;;  %s1541_s0 = sld [smem:[#allocation11_spill]] (%p1330_p5) }
  0x26   : > { %s926_s25 = smul.u32 (%p1330_p5), 24, %s137_s11 }
  0x28   : > { %s139_s21 = scalar_lea.vmem (%p1330_p5), [#allocation3], %s926_s25 }
  0x2b   : > { %s145_s30 = scalar_lea.vmem %s1541_s0, %s917_s24 }
  0x2c   : > { %v160_v0 = vld [vmem:[%s145_s30] sm:$0xff]  ;;  %v162_v1 = vld [vmem:[%s145_s30 + $0xd8] sm:$0xff]  ;;  %v848_v2 = vld [vmem:[%s145_s30 + $0x8] sm:$0xf] }
  0x2d   : > { %161 = vst [vmem:[%s139_s21] sm:$0xff] %v160_v0  ;;  %163 = vst [vmem:[%s139_s21 + $0xc] sm:$0xff] %v162_v1  ;;  %v850_v3 = vld [vmem:[%s145_s30 + $0xe0] sm:$0xf] }
  0x2e   : > { %849 = vst [vmem:[%s139_s21 + $0x8] sm:$0xf] %v848_v2  ;;  %851 = vst [vmem:[%s139_s21 + $0x14] sm:$0xf] %v850_v3 }
  0x2f PF: > { %s181_s26 = sand.u32 1, %s1207_s13   ;;  %s852_s6 = sshll.u32 %s1231_s19, 1 }
  0x30   : > { %s927_s11 = smul.u32 384, %s181_s26  ;;  %s1389_s21 = scalar_lea.sflag [#allocation5], %s181_s26 }
  0x31   : > { %s918_s23 = smul.u32 192, %s1227_s18 }
  0x32   : > { %s185_s24 = scalar_lea.vmem [#allocation4], %s927_s11  ;;  %s1113_s11 = scalar_lea.hbm %s1528_s1, 221184 }
  0x33   : > { %s192_s27 = sadd.s32 %s918_s23, %s852_s6  ;;  %s195_s29 = sshll.u32 %s185_s24, 4  ;;  %s1382_s29 = int_to_ptr.vmem [resolvable:$true] %s195_s29 }
  0x34   : > { %s854_s0 = sshll.u32 %s192_s27, 6 }
  0x35   : > { %s1387_s30 = scalar_lea.hbm %s1528_s1, %s854_s0 }
  0x36   : > { %s1109_s19 = scalar_lea.hbm %s1387_s30, 6144  ;;  %p1114_p6 = scmp.lt.u32.totalorder %s1387_s30, %s1528_s1 }
  0x37   : > { %p1110_p3 = scmp.ne.s32.totalorder %s1387_s30, %s1109_s19  ;;  %p1115_p7 = scmp.lt.u32.totalorder %s1113_s11, %s1109_s19 }
  0x38   : > { %p1117_p10 = scmp.lt.u32.totalorder %s1109_s19, %s1387_s30 }
  0x39   : > { %p1111_p4 = pnand %p1110_p3, %p1346_p9  ;;  %p1116_p8 = por %p1115_p7, %p1114_p6 }
  0x3b   : > { %p1112_p5 = pneg %p1111_p4  ;;  %p1118_p11 = por %p1117_p10, %p1116_p8 }
  0x3d   : > { %p1119_p13 = pnand %p1118_p11, %p1112_p5 }
  0x3f   : > { %1122 = shalt.err (!%p1119_p13)
}
  0x40   : > { %s1123_s0 = scalar_lea.vmem %s1382_s29, 6144  ;;  %s1237_s22 = smov [#allocation4]  }
  0x41   : > { %p1124_p0 = scmp.ne.s32.totalorder %s1382_s29, %s1123_s0  ;;  %s1127_s26 = sshll.u32 %s1237_s22, 4  ;;  %s1128_s26 = int_to_ptr.vmem [resolvable:$false] %s1127_s26 }
  0x42   : > { %s1129_s25 = scalar_lea.vmem %s1128_s26, 12288  ;;  %p1130_p4 = scmp.lt.s32.totalorder %s1382_s29, %s1128_s26 }
  0x43   : > { %p1125_p2 = pnand %p1124_p0, %p1346_p9  ;;  %p1131_p1 = scmp.lt.s32.totalorder %s1129_s25, %s1123_s0 }
  0x45   : > { %p1126_p3 = pneg %p1125_p2  ;;  %p1132_p6 = por %p1131_p1, %p1130_p4 }
  0x47   : > { %p1133_p7 = pnand %p1132_p6, %p1126_p3 }
  0x49   : > { %1136 = shalt.err (!%p1133_p7)
}
  0x4a   : > { %s1238_s19 = smov 256   ;;  %s1239_s23 = smov 128  }
  0x4b   : > { %s1240_s6 = smov 8  }
  0x4c   : > { %930 = dma.hbm_to_vmem [thread:$0]  (%p1346_p9), %s1387_s30, 6144, %s1382_s29, %s1389_s21, %s1238_s19, %s1239_s23, %s1240_s6  }
  0x4d PF: > { %p855_p5 = scmp.ge.s32.totalorder %s1235_s20, 1  ;;  %p203_p8 = scmp.lt.s32.totalorder %s1235_s20, 37 }
  0x4f   : > { %p204_p10 = pnand %p855_p5, %p203_p8 }
  0x50   : > { %s210_s11 = sand.u32 (!%p204_p10), 1, %s1211_s14   ;;  %s216_s27 = sand.u32 (!%p204_p10), 1, %s1203_s12  }
  0x51   : > { %207 = sbr.rel (%p204_p10) target bundleno = 402 (0x192), region = 50  ;;  %s217_s26 = scalar_lea.sflag (!%p204_p10), [#allocation5], %s216_s27 }
  0x52   : > { %s928_s24 = smul.u32 (!%p204_p10), 24, %s210_s11 }
  0x53   : > { %s929_s0 = smul.u32 (!%p204_p10), 384, %s216_s27 }
  0x54   : > { %s1417_s22 = scalar_lea.vmem (!%p204_p10), [#allocation3], %s928_s24 }
  0x55   : > { %s1419_s25 = scalar_lea.vmem (!%p204_p10), [#allocation4], %s929_s0 }
  0x58   : > { %1186 = dma.done.wait (%p1355_p12), %s217_s26, 6144  }
  0x59   : > { %1188 = vsyncadd (%p1355_p12), %s217_s26, 4294961152  ;;  %s241_s3 = sand.u32 1, %s1191_s9   ;;  %p857_p9 = scmp.ne.s32.totalorder %s1219_s16, 0 }
  0x5a   : > { %s856_s29 = sshll.u32 %s241_s3, 4  ;;  %v1241_v4 = vmov (!%p857_p9), 0.0  }
  0x5b   : > { %s1426_s30 = scalar_lea.vmem [#allocation6], %s856_s29  ;;  %254 = sbr.rel (%p857_p9) target bundleno = 98 (0x62), region = 62  ;;  %255 = vst [vmem:[#allocation2] sm:$0xff] (!%p857_p9), %v1241_v4  ;;  %256 = vst [vmem:[#allocation2 + $0x8] sm:$0xff] (!%p857_p9), %v1241_v4 }
  0x5c   : > { %257 = vst [vmem:[#allocation2 + $0x10] sm:$0xff] (!%p857_p9), %v1241_v4  ;;  %258 = vst [vmem:[#allocation2 + $0x18] sm:$0xff] (!%p857_p9), %v1241_v4 }
  0x62 PF: > { %v1033_v5 = vld [vmem:[%s1419_s25 + $0x4] ss:$8 sps:$4 sm:$0xff]   ;;  %v1035_v6 = vld [vmem:[%s1419_s25] ss:$8 sps:$4 sm:$0xff]   ;;  %v1242_v7 = vmov 0   ;;  %v259_v61 = vld [vmem:[#allocation2] sm:$0xff] }
  0x63   : > { %646 = vmatprep.mubr.bf16.mxu0 %v1242_v7  ;;  %571 = vmatprep.subr.bf16.mxu1 %v1033_v5  ;;  %v1036_v8 = vld [vmem:[%s1419_s25 + $0x14] ss:$8 sps:$4 sm:$0xff]   ;;  %v1038_v9 = vld [vmem:[%s1419_s25 + $0x10] ss:$8 sps:$4 sm:$0xff]   ;;  %v1039_v10 = vld [vmem:[%s1419_s25 + $0x24] ss:$8 sps:$4 sm:$0xff]  }
  0x64   : > { %572 = vmatpush1.bf16.msra.mxu1 %v1035_v6  ;;  %v1041_v11 = vld [vmem:[%s1419_s25 + $0x20] ss:$8 sps:$4 sm:$0xff]   ;;  %v1042_v12 = vld [vmem:[%s1419_s25 + $0x34] ss:$8 sps:$4 sm:$0xff]   ;;  %v1044_v13 = vld [vmem:[%s1419_s25 + $0x30] ss:$8 sps:$4 sm:$0xff]  }
  0x65   : > { %573 = vmatprep.subr.bf16.mxu1 %v1036_v8  ;;  %v1057_v14 = vld [vmem:[%s1419_s25 + $0x104] ss:$8 sps:$4 sm:$0xff]   ;;  %v1059_v15 = vld [vmem:[%s1419_s25 + $0x100] ss:$8 sps:$4 sm:$0xff]   ;;  %v1063_v17 = vld [vmem:[%s1419_s25 + $0x114] ss:$8 sps:$4 sm:$0xff]  }
  0x66   : > { %v1045_v16 = vld [vmem:[%s1419_s25 + $0x44] ss:$8 sps:$4 sm:$0xff]   ;;  %614 = vmatprep.subr.bf16.mxu0 %v1057_v14  ;;  %v1065_v18 = vld [vmem:[%s1419_s25 + $0x110] ss:$8 sps:$4 sm:$0xff]   ;;  %v1047_v19 = vld [vmem:[%s1419_s25 + $0x40] ss:$8 sps:$4 sm:$0xff]  }
  0x67   : > { %615 = vmatpush1.bf16.msra.mxu0 %v1059_v15  ;;  %v1048_v20 = vld [vmem:[%s1419_s25 + $0x54] ss:$8 sps:$4 sm:$0xff]   ;;  %v1069_v21 = vld [vmem:[%s1419_s25 + $0x124] ss:$8 sps:$4 sm:$0xff]   ;;  %v1071_v22 = vld [vmem:[%s1419_s25 + $0x120] ss:$8 sps:$4 sm:$0xff]  }
  0x68   : > { %574 = vmatpush1.bf16.msra.mxu1 %v1038_v9  ;;  %616 = vmatprep.subr.bf16.mxu0 %v1063_v17  ;;  %v1050_v23 = vld [vmem:[%s1419_s25 + $0x50] ss:$8 sps:$4 sm:$0xff]   ;;  %v1075_v24 = vld [vmem:[%s1419_s25 + $0x134] ss:$8 sps:$4 sm:$0xff]   ;;  %v1051_v25 = vld [vmem:[%s1419_s25 + $0x64] ss:$8 sps:$4 sm:$0xff]  }
  0x69   : > { %575 = vmatprep.subr.bf16.mxu1 %v1039_v10  ;;  %v1077_v26 = vld [vmem:[%s1419_s25 + $0x130] ss:$8 sps:$4 sm:$0xff]   ;;  %v1053_v27 = vld [vmem:[%s1419_s25 + $0x60] ss:$8 sps:$4 sm:$0xff]   ;;  %v1081_v28 = vld [vmem:[%s1419_s25 + $0x144] ss:$8 sps:$4 sm:$0xff]  }
  0x6a   : > { %v1054_v29 = vld [vmem:[%s1419_s25 + $0x74] ss:$8 sps:$4 sm:$0xff]   ;;  %v1083_v30 = vld [vmem:[%s1419_s25 + $0x140] ss:$8 sps:$4 sm:$0xff]   ;;  %v1056_v31 = vld [vmem:[%s1419_s25 + $0x70] ss:$8 sps:$4 sm:$0xff]  }
  0x6b   : > { %617 = vmatpush1.bf16.msra.mxu0 %v1065_v18  ;;  %v1087_v32 = vld [vmem:[%s1419_s25 + $0x154] ss:$8 sps:$4 sm:$0xff]   ;;  %v1060_v33 = vld [vmem:[%s1419_s25 + $0x84] ss:$8 sps:$4 sm:$0xff]   ;;  %v1089_v34 = vld [vmem:[%s1419_s25 + $0x150] ss:$8 sps:$4 sm:$0xff]  }
  0x6c   : > { %576 = vmatpush1.bf16.msra.mxu1 %v1041_v11  ;;  %618 = vmatprep.subr.bf16.mxu0 %v1069_v21  ;;  %v1062_v35 = vld [vmem:[%s1419_s25 + $0x80] ss:$8 sps:$4 sm:$0xff]   ;;  %v1093_v36 = vld [vmem:[%s1419_s25 + $0x164] ss:$8 sps:$4 sm:$0xff]   ;;  %v1066_v37 = vld [vmem:[%s1419_s25 + $0x94] ss:$8 sps:$4 sm:$0xff]  }
  0x6d   : > { %577 = vmatprep.subr.bf16.mxu1 %v1042_v12  ;;  %v1095_v38 = vld [vmem:[%s1419_s25 + $0x160] ss:$8 sps:$4 sm:$0xff]   ;;  %v1068_v40 = vld [vmem:[%s1419_s25 + $0x90] ss:$8 sps:$4 sm:$0xff]   ;;  %v1099_v41 = vld [vmem:[%s1419_s25 + $0x174] ss:$8 sps:$4 sm:$0xff]  }
  0x6e   : > { %v1108_v39 = vld [vmem:[%s1417_s22 + $0x4] ss:$12 sps:$4 sm:$0xff]   ;;  %v1105_v46 = vld [vmem:[%s1417_s22 + $0x8] ss:$12 sps:$4 sm:$0xff]   ;;  %v1106_v56 = vld [vmem:[%s1417_s22] ss:$12 sps:$4 sm:$0xff]  }
  0x6f   : > { %619 = vmatpush1.bf16.msra.mxu0 %v1071_v22  ;;  %v1072_v42 = vld [vmem:[%s1419_s25 + $0xa4] ss:$8 sps:$4 sm:$0xff]   ;;  %603 = vmatprep.mubr.bf16.mxu1 %v1108_v39  ;;  %v1101_v43 = vld [vmem:[%s1419_s25 + $0x170] ss:$8 sps:$4 sm:$0xff]   ;;  %v1074_v44 = vld [vmem:[%s1419_s25 + $0xa0] ss:$8 sps:$4 sm:$0xff]  }
  0x70   : > { %578 = vmatpush1.bf16.msra.mxu1 %v1044_v13  ;;  %620 = vmatprep.subr.bf16.mxu0 %v1075_v24  ;;  %v1078_v45 = vld [vmem:[%s1419_s25 + $0xb4] ss:$8 sps:$4 sm:$0xff]   ;;  %v1080_v47 = vld [vmem:[%s1419_s25 + $0xb0] ss:$8 sps:$4 sm:$0xff]   ;;  %v1084_v48 = vld [vmem:[%s1419_s25 + $0xc4] ss:$8 sps:$4 sm:$0xff]  }
  0x71   : > { %579 = vmatprep.subr.bf16.mxu1 %v1045_v16  ;;  %v1086_v49 = vld [vmem:[%s1419_s25 + $0xc0] ss:$8 sps:$4 sm:$0xff]   ;;  %v1090_v50 = vld [vmem:[%s1419_s25 + $0xd4] ss:$8 sps:$4 sm:$0xff]   ;;  %v1092_v51 = vld [vmem:[%s1419_s25 + $0xd0] ss:$8 sps:$4 sm:$0xff]  }
  0x72   : > { %v1096_v52 = vld [vmem:[%s1419_s25 + $0xe4] ss:$8 sps:$4 sm:$0xff]   ;;  %v1098_v53 = vld [vmem:[%s1419_s25 + $0xe0] ss:$8 sps:$4 sm:$0xff]   ;;  %v1102_v54 = vld [vmem:[%s1419_s25 + $0xf4] ss:$8 sps:$4 sm:$0xff]  }
  0x73   : > { %621 = vmatpush1.bf16.msra.mxu0 %v1077_v26  ;;  %v1104_v55 = vld [vmem:[%s1419_s25 + $0xf0] ss:$8 sps:$4 sm:$0xff]   ;;  %v261_v3 = vld [vmem:[#allocation2 + $0x10] sm:$0xff]  ;;  %v262_v7 = vld [vmem:[#allocation2 + $0x18] sm:$0xff]  ;;  %p909_p12 = scmp.ne.s32.totalorder %s1219_s16, 17 }
  0x74   : > { %580 = vmatpush1.bf16.msra.mxu1 %v1047_v19  ;;  %622 = vmatprep.subr.bf16.mxu0 %v1081_v28  ;;  %v260_v0 = vld [vmem:[#allocation2 + $0x8] sm:$0xff] }
  0x75   : > { %581 = vmatprep.subr.bf16.mxu1 %v1048_v20 }
  0x77   : > { %623 = vmatpush1.bf16.msra.mxu0 %v1083_v30 }
  0x78   : > { %582 = vmatpush1.bf16.msra.mxu1 %v1050_v23  ;;  %624 = vmatprep.subr.bf16.mxu0 %v1087_v32 }
  0x79   : > { %583 = vmatprep.subr.bf16.mxu1 %v1051_v25 }
  0x7b   : > { %625 = vmatpush1.bf16.msra.mxu0 %v1089_v34 }
  0x7c   : > { %584 = vmatpush1.bf16.msra.mxu1 %v1053_v27  ;;  %626 = vmatprep.subr.bf16.mxu0 %v1093_v36 }
  0x7d   : > { %585 = vmatprep.subr.bf16.mxu1 %v1054_v29 }
  0x7f   : > { %627 = vmatpush1.bf16.msra.mxu0 %v1095_v38 }
  0x80   : > { %586 = vmatpush1.bf16.msra.mxu1 %v1056_v31  ;;  %628 = vmatprep.subr.bf16.mxu0 %v1099_v41 }
  0x81   : > { %587 = vmatprep.subr.bf16.mxu1 %v1060_v33 }
  0x83   : > { %629 = vmatpush1.bf16.msra.mxu0 %v1101_v43 }
  0x84   : > { %588 = vmatpush1.bf16.msra.mxu1 %v1062_v35 }
  0x85   : > { %589 = vmatprep.subr.bf16.mxu1 %v1066_v37 }
  0x86   : > { %647 = vmatmul.mubr.bf16.vlgmr.msra.gmra.mrb[0].mxu0 %v1105_v46 }
  0x88   : > { %590 = vmatpush1.bf16.msra.mxu1 %v1068_v40 }
  0x89   : > { %591 = vmatprep.subr.bf16.mxu1 %v1072_v42 }
  0x8c   : > { %592 = vmatpush1.bf16.msra.mxu1 %v1074_v44 }
  0x8d   : > { %593 = vmatprep.subr.bf16.mxu1 %v1078_v45 }
  0x90   : > { %594 = vmatpush1.bf16.msra.mxu1 %v1080_v47 }
  0x91   : > { %595 = vmatprep.subr.bf16.mxu1 %v1084_v48 }
  0x94   : > { %596 = vmatpush1.bf16.msra.mxu1 %v1086_v49 }
  0x95   : > { %597 = vmatprep.subr.bf16.mxu1 %v1090_v50 }
  0x98   : > { %598 = vmatpush1.bf16.msra.mxu1 %v1092_v51 }
  0x99   : > { %599 = vmatprep.subr.bf16.mxu1 %v1096_v52 }
  0x9c   : > { %600 = vmatpush1.bf16.msra.mxu1 %v1098_v53 }
  0x9d   : > { %601 = vmatprep.subr.bf16.mxu1 %v1102_v54 }
  0xa0   : > { %602 = vmatpush1.bf16.msra.mxu1 %v1104_v55 }
  0xa3   : > { %604 = vmatmul.mubr.bf16.vlgmr.msra.gmra.mrb[0].mxu1 %v1106_v56 }
 0x159   : > { %v648_v57 = vpop.f32.mrb[0].mxu0 }
 0x15a   : > { %v650_v58 = vpop.f32.mrb[1].mxu0 }
 0x15b   : > { %v652_v59 = vpop.f32.mrb[2].mxu0 }
 0x15c   : > { %v654_v60 = vpop.f32.mrb[3].mxu0 }
 0x176   : > { %v605_v62 = vpop.f32.mrb[0].mxu1 }
 0x177   : > { %v649_v63 = vadd.f32 %v648_v57, %v605_v62  ;;  %v607_v1 = vpop.f32.mrb[1].mxu1 }
 0x178   : > { %v651_v2 = vadd.f32 %v650_v58, %v607_v1  ;;  %v609_v4 = vpop.f32.mrb[2].mxu1  ;;  %668 = sbr.rel (%p909_p12) target bundleno = 393 (0x189), region = 66 }
 0x179   : > { %v657_v5 = vadd.f32 %v649_v63, %v259_v61  ;;  %v653_v6 = vadd.f32 %v652_v59, %v609_v4  ;;  %v611_v8 = vpop.f32.mrb[3].mxu1 }
 0x17a   : > { %v658_v9 = vadd.f32 %v651_v2, %v260_v0  ;;  %v655_v10 = vadd.f32 %v654_v60, %v611_v8 }
 0x17b   : > { %661 = vst [vmem:[#allocation2] sm:$0xff] %v657_v5  ;;  %v659_v11 = vadd.f32 %v653_v6, %v261_v3 }
 0x17c   : > { %662 = vst [vmem:[#allocation2 + $0x8] sm:$0xff] %v658_v9  ;;  %v660_v12 = vadd.f32 %v655_v10, %v262_v7 }
 0x17d   : > { %663 = vst [vmem:[#allocation2 + $0x10] sm:$0xff] %v659_v11 }
 0x17e   : > { %664 = vst [vmem:[#allocation2 + $0x18] sm:$0xff] %v660_v12 }
 0x182   : > { %v669_v13 = vld [vmem:[#allocation2] sm:$0xff] }
 0x183   : > { %v670_v14 = vld [vmem:[#allocation2 + $0x8] sm:$0xff] }
 0x184   : > { %v671_v15 = vld [vmem:[#allocation2 + $0x10] sm:$0xff]  ;;  %v919_v16 = vpack.c.bf16 %v670_v14, %v669_v13 }
 0x185   : > { %v672_v17 = vld [vmem:[#allocation2 + $0x18] sm:$0xff] }
 0x186   : > { %v920_v18 = vpack.c.bf16 %v672_v17, %v671_v15  ;;  %685 = vst [vmem:[%s1426_s30] sm:$0xff] %v919_v16 }
 0x188   : > { %686 = vst [vmem:[%s1426_s30 + $0x8] sm:$0xff] %v920_v18 }
 0x189 PF: > { %p1542_p1 = scmp.ne.s32.totalorder %s1540_s8, 0 }
 0x18a   : > { %s921_s9 = sshll.u32 (%p1542_p1), %s1223_s17, 3 }
 0x18b   : > { %693 = sbr.rel (!%p1542_p1) target bundleno = 402 (0x192), region = 70  ;;  %s699_s5 = scalar_lea.vmem (%p1542_p1), %s1529_s2, %s921_s9 }
 0x18d   : > { %v729_v19 = vld [vmem:[%s1426_s30] sm:$0xff] (%p1542_p1) }
 0x18e   : > { %730 = vst [vmem:[%s699_s5] sm:$0xff] (%p1542_p1), %v729_v19 }
 0x18f   : > { %v731_v20 = vld [vmem:[%s1426_s30 + $0x8] sm:$0xff] (%p1542_p1) }
 0x190   : > { %732 = vst [vmem:[%s699_s5 + $0x10] sm:$0xff] (%p1542_p1), %v731_v20 }
 0x192 PF: > { %s15_s20 = sadd.s32 1, %s1235_s20   ;;  %s1543_s17 = sld [smem:[#allocation8_spill]] }
 0x193   : > { %p12_p11 = scmp.ge.s32.totalorder %s15_s20, 38   ;;  %s1544_s8 = sld [smem:[#allocation9_spill]] }
 0x194   : > { %s1545_s19 = sld [smem:[#allocation10_spill]]  ;;  %s1546_s9 = smov %s1195_s10 }
 0x195   : > { %s1547_s10 = smov %s1361_s7  ;;  %s1548_s11 = smov %s1203_s12 }
 0x196   : > { %s1549_s12 = smov %s1207_s13  ;;  %s1550_s13 = smov %s1353_s4 }
 0x197   : > { %s1551_s14 = smov %s1215_s15  ;;  %s1552_s15 = smov %s1338_s28 }
 0x198   : > { %s1553_s16 = smov %s1227_s18  ;;  %14 = sbr.rel (!%p12_p11) target bundleno = 9 (0x9), region = 154 }
 0x199   : > { %s1554_s18 = smov %s1544_s8 }
 0x19f   :  { %748 = vsyncpa [#allocation5], 1 }
 0x1a0   :  { %750 = vsyncpa [#allocation5 + $0x1], 1 }

// kernel: forward.82
= control target key start
LH: loop header
LB: loop body
LE: loop exit
PB: predicated region body
PF: predicated region fallthrough
CT: control target
= control target key end

     0   :  { %s627_s15 = smov 0   ;;  %s629_s16 = smov 0   ;;  %s674_s0 = inlined_call_operand.vmem [shape: bf16[2,16,512], index: 0, kind: input, shape index: {}]   ;;  %s675_s1 = inlined_call_operand.vmem [shape: f32[1,1,512], index: 1, kind: input, shape index: {}]   ;;  %s676_s2 = inlined_call_operand.vmem [shape: f32[1,1,512], index: 2, kind: input, shape index: {}]   ;;  %s677_s3 = inlined_call_operand.vmem [shape: bf16[2,16,512], index: 3, kind: input, shape index: {}]   ;;  %s678_s4 = inlined_call_operand.vmem [shape: bf16[2,16,512], index: 4, kind: output, shape index: {}]  }
   0x1   :  { %s631_s17 = smov 0  }
   0x2 LB: > { %s26_s18 = sadd.s32 1, %s596_s16  ;;  %p532_p0 = scmp.ge.s32.totalorder %s600_s17, 1  ;;  %s600_s17 = sphi %s631_s17, %s14_s17   ;;  %s596_s16 = sphi %s629_s16, %s680_s16   ;;  %s592_s15 = sphi %s627_s15, %s679_s15  }
   0x3   : > { %p28_p1 = scmp.ge.s32.totalorder %s26_s18, 2  ;;  %p202_p2 = scmp.lt.s32.totalorder %s600_s17, 3 }
   0x5   : > { %s682_s18 = smov (%p28_p1, %s26_s18), 0  ;;  %p203_p3 = pnand %p532_p0, %p202_p2 }
   0x6   : > { %p249_p4 = scmp.lt.s32.totalorder (!%p203_p3), %s592_s15, 1  ;;  %v286_v0 = vld [vmem:[%s676_s2] sm:$0xf] (!%p203_p3)  ;;  %v300_v1 = vlaneseq (!%p203_p3) }
   0x7   : > { %206 = sbr.rel (%p203_p3) target bundleno = 35 (0x23), region = 36  ;;  %v328_v2 = vadd.f32 (!%p203_p3), 1e-05, %v286_v0  ;;  %v285_v4 = vld [vmem:[%s675_s1] sm:$0xf] (!%p203_p3) }
   0x8   : > { %v301_v3 = vshrl.u32 (!%p203_p3), %v300_v1, 7 }
   0x9   : > { %576 = vrsqrt.f32 (!%p203_p3), %v328_v2 }
   0xa   : > { %v302_v5 = vsub.s32 (!%p203_p3), 0, %v301_v3  ;;  %v306_v6 = vsub.s32 (!%p203_p3), 1, %v301_v3  ;;  %v310_v7 = vsub.s32 (!%p203_p3), 2, %v301_v3  ;;  %v314_v8 = vsub.s32 (!%p203_p3), 3, %v301_v3 }
   0xc   : > { %v303_v12 = vrot.slane (!%p203_p3), %v285_v4, %v302_v5  ;;  %v307_v13 = vrot.slane (!%p203_p3), %v285_v4, %v306_v6  ;;  %v311_v14 = vrot.slane (!%p203_p3), %v285_v4, %v310_v7  ;;  %v315_v15 = vrot.slane (!%p203_p3), %v285_v4, %v314_v8 }
   0xe   : > { %s684_s15 = smov (!%p249_p4, %s592_s15), 1 }
   0xf   : > { %s651_s23 = sshll.u32 %s684_s15, 5 }
  0x10   : > { %s257_s26 = scalar_lea.vmem %s674_s0, %s651_s23  ;;  %s268_s29 = scalar_lea.vmem %s677_s3, %s651_s23 }
  0x11   : > { %v281_v9 = vld [vmem:[%s257_s26] sm:$0xff]  ;;  %v282_v10 = vld [vmem:[%s257_s26 + $0x8] sm:$0xff]  ;;  %v283_v16 = vld [vmem:[%s257_s26 + $0x10] sm:$0xff]  ;;  %s279_s6 = scalar_lea.vmem %s678_s4, %s651_s23 }
  0x12   : > { %v287_v11 = vld [vmem:[%s268_s29] sm:$0xff]  ;;  %v291_v17 = vunpack.c.l.bf16 %v281_v9  ;;  %v292_v18 = vunpack.c.h.bf16 %v281_v9  ;;  %v288_v19 = vld [vmem:[%s268_s29 + $0x8] sm:$0xff]  ;;  %v293_v20 = vunpack.c.l.bf16 %v282_v10  ;;  %v294_v21 = vunpack.c.h.bf16 %v282_v10  ;;  %v284_v22 = vld [vmem:[%s257_s26 + $0x18] sm:$0xff] }
  0x13   : > { %v295_v23 = vunpack.c.l.bf16 %v283_v16  ;;  %v296_v24 = vunpack.c.h.bf16 %v283_v16  ;;  %v359_v25 = vunpack.c.l.bf16 %v287_v11  ;;  %v360_v26 = vunpack.c.h.bf16 %v287_v11  ;;  %v289_v35 = vld [vmem:[%s268_s29 + $0x10] sm:$0xff]  ;;  %v290_v36 = vld [vmem:[%s268_s29 + $0x18] sm:$0xff]  ;;  %v577_v37 = vpop.eup %576 }
  0x14   : > { %v361_v27 = vunpack.c.l.bf16 %v288_v19  ;;  %v362_v28 = vunpack.c.h.bf16 %v288_v19  ;;  %v297_v29 = vunpack.c.l.bf16 %v284_v22  ;;  %v298_v30 = vunpack.c.h.bf16 %v284_v22 }
  0x15   : > { %v320_v31 = vsub.f32 %v291_v17, %v303_v12  ;;  %v321_v32 = vsub.f32 %v292_v18, %v307_v13  ;;  %v322_v33 = vsub.f32 %v293_v20, %v311_v14  ;;  %v323_v34 = vsub.f32 %v294_v21, %v315_v15 }
  0x16   : > { %v324_v38 = vsub.f32 %v295_v23, %v303_v12  ;;  %v325_v39 = vsub.f32 %v296_v24, %v307_v13  ;;  %v326_v40 = vsub.f32 %v297_v29, %v311_v14  ;;  %v327_v41 = vsub.f32 %v298_v30, %v315_v15 }
  0x17   : > { %v334_v42 = vrot.slane %v577_v37, %v302_v5  ;;  %v338_v43 = vrot.slane %v577_v37, %v306_v6  ;;  %v342_v44 = vrot.slane %v577_v37, %v310_v7  ;;  %v346_v45 = vrot.slane %v577_v37, %v314_v8 }
  0x18   : > { %v363_v46 = vunpack.c.l.bf16 %v289_v35  ;;  %v364_v47 = vunpack.c.h.bf16 %v289_v35  ;;  %v365_v48 = vunpack.c.l.bf16 %v290_v36  ;;  %v366_v49 = vunpack.c.h.bf16 %v290_v36 }
  0x19   : > { %v351_v50 = vmul.f32 %v334_v42, %v320_v31  ;;  %v352_v51 = vmul.f32 %v338_v43, %v321_v32  ;;  %v353_v52 = vmul.f32 %v342_v44, %v322_v33  ;;  %v354_v53 = vmul.f32 %v346_v45, %v323_v34 }
  0x1a   : > { %v355_v54 = vmul.f32 %v334_v42, %v324_v38  ;;  %v356_v55 = vmul.f32 %v338_v43, %v325_v39  ;;  %v357_v56 = vmul.f32 %v342_v44, %v326_v40  ;;  %v358_v57 = vmul.f32 %v346_v45, %v327_v41 }
  0x1b   : > { %v367_v58 = vadd.f32 %v359_v25, %v351_v50  ;;  %v368_v59 = vadd.f32 %v360_v26, %v352_v51  ;;  %v369_v60 = vadd.f32 %v361_v27, %v353_v52  ;;  %v370_v61 = vadd.f32 %v362_v28, %v354_v53 }
  0x1c   : > { %v371_v62 = vadd.f32 %v363_v46, %v355_v54  ;;  %v372_v63 = vadd.f32 %v364_v47, %v356_v55  ;;  %v373_v0 = vadd.f32 %v365_v48, %v357_v56  ;;  %v374_v1 = vadd.f32 %v366_v49, %v358_v57 }
  0x1d   : > { %v375_v2 = vmax.f32 %v367_v58, 0.0  ;;  %v376_v3 = vmax.f32 %v368_v59, 0.0  ;;  %v377_v4 = vmax.f32 %v369_v60, 0.0  ;;  %v378_v5 = vmax.f32 %v370_v61, 0.0 }
  0x1e   : > { %v379_v6 = vmax.f32 %v371_v62, 0.0  ;;  %v380_v7 = vmax.f32 %v372_v63, 0.0  ;;  %v381_v8 = vmax.f32 %v373_v0, 0.0  ;;  %v382_v9 = vmax.f32 %v374_v1, 0.0 }
  0x1f   : > { %v548_v10 = vpack.c.bf16 %v376_v3, %v375_v2  ;;  %v549_v11 = vpack.c.bf16 %v378_v5, %v377_v4 }
  0x20   : > { %v550_v12 = vpack.c.bf16 %v380_v7, %v379_v6  ;;  %v551_v13 = vpack.c.bf16 %v382_v9, %v381_v8 }
  0x21   : > { %407 = vst [vmem:[%s279_s6] sm:$0xff] %v548_v10  ;;  %408 = vst [vmem:[%s279_s6 + $0x8] sm:$0xff] %v549_v11 }
  0x22   : > { %409 = vst [vmem:[%s279_s6 + $0x10] sm:$0xff] %v550_v12  ;;  %410 = vst [vmem:[%s279_s6 + $0x18] sm:$0xff] %v551_v13 }
  0x23 PF: > { %s14_s17 = sadd.s32 1, %s600_s17   ;;  %s679_s15 = smov %s596_s16 }
  0x24   : > { %p11_p5 = scmp.ge.s32.totalorder %s14_s17, 4   ;;  %s680_s16 = smov %s682_s18 }
  0x26   :  { %13 = sbr.rel (!%p11_p5) target bundleno = 2 (0x2), region = 69 }

// kernel: forward.85
= control target key start
LH: loop header
LB: loop body
LE: loop exit
PB: predicated region body
PF: predicated region fallthrough
CT: control target
= control target key end

     0   :  { %s620_s12 = smov 0   ;;  %s622_s13 = smov 0   ;;  %s667_s0 = inlined_call_operand.vmem [shape: bf16[2,16,512], index: 0, kind: input, shape index: {}]   ;;  %s668_s1 = inlined_call_operand.vmem [shape: f32[2,1,512], index: 1, kind: input, shape index: {}]   ;;  %s669_s2 = inlined_call_operand.vmem [shape: f32[2,1,512], index: 2, kind: input, shape index: {}]   ;;  %s670_s3 = inlined_call_operand.vmem [shape: bf16[2,16,512], index: 3, kind: output, shape index: {}]  }
   0x1   :  { %s624_s14 = smov 0  }
   0x2 LB: > { %s25_s15 = sadd.s32 1, %s594_s13  ;;  %p515_p0 = scmp.ge.s32.totalorder %s598_s14, 1  ;;  %s598_s14 = sphi %s624_s14, %s13_s14   ;;  %s594_s13 = sphi %s622_s13, %s672_s13   ;;  %s590_s12 = sphi %s620_s12, %s671_s12  }
   0x3   : > { %p27_p1 = scmp.ge.s32.totalorder %s25_s15, 2  ;;  %p177_p2 = scmp.lt.s32.totalorder %s598_s14, 3 }
   0x5   : > { %s674_s15 = smov (%p27_p1, %s25_s15), 0  ;;  %p178_p3 = pnand %p515_p0, %p177_p2 }
   0x6   : > { %p220_p4 = scmp.lt.s32.totalorder (!%p178_p3), %s590_s12, 1  ;;  %v264_v0 = vlaneseq (!%p178_p3) }
   0x7   : > { %181 = sbr.rel (%p178_p3) target bundleno = 62 (0x3e), region = 32 }
   0x8   : > { %v265_v2 = vshrl.u32 (!%p178_p3), %v264_v0, 7 }
   0xa   : > { %v266_v6 = vsub.s32 (!%p178_p3), 0, %v265_v2  ;;  %v270_v7 = vsub.s32 (!%p178_p3), 1, %v265_v2  ;;  %v274_v8 = vsub.s32 (!%p178_p3), 2, %v265_v2  ;;  %v278_v9 = vsub.s32 (!%p178_p3), 3, %v265_v2 }
   0xe   : > { %s676_s12 = smov (!%p220_p4, %s590_s12), 1 }
   0xf   : > { %s518_s16 = sshll.u32 %s676_s12, 2  ;;  %s528_s17 = sshll.u32 %s676_s12, 5 }
  0x10   : > { %s237_s20 = scalar_lea.vmem %s669_s2, %s518_s16  ;;  %s228_s23 = scalar_lea.vmem %s667_s0, %s528_s17 }
  0x11   : > { %v254_v1 = vld [vmem:[%s237_s20] sm:$0xf]  ;;  %s233_s26 = scalar_lea.vmem %s668_s1, %s518_s16  ;;  %v250_v5 = vld [vmem:[%s228_s23 + $0x8] sm:$0xff]  ;;  %v251_v11 = vld [vmem:[%s228_s23 + $0x10] sm:$0xff]  ;;  %s247_s29 = scalar_lea.vmem %s670_s3, %s528_s17 }
  0x12   : > { %v292_v3 = vadd.f32 1e-05, %v254_v1  ;;  %v249_v4 = vld [vmem:[%s228_s23] sm:$0xff]  ;;  %v252_v12 = vld [vmem:[%s228_s23 + $0x18] sm:$0xff]  ;;  %v257_v15 = vunpack.c.l.bf16 %v250_v5  ;;  %v258_v16 = vunpack.c.h.bf16 %v250_v5  ;;  %v259_v21 = vunpack.c.l.bf16 %v251_v11 }
  0x13   : > { %v253_v10 = vld [vmem:[%s233_s26] sm:$0xf]  ;;  %v255_v13 = vunpack.c.l.bf16 %v249_v4  ;;  %v256_v14 = vunpack.c.h.bf16 %v249_v4  ;;  %v260_v22 = vunpack.c.h.bf16 %v251_v11  ;;  %v261_v23 = vunpack.c.l.bf16 %v252_v12 }
  0x14   : > { %558 = vrsqrt.f32 %v292_v3  ;;  %v267_v17 = vrot.slane %v253_v10, %v266_v6  ;;  %v271_v18 = vrot.slane %v253_v10, %v270_v7  ;;  %v275_v19 = vrot.slane %v253_v10, %v274_v8 }
  0x15   : > { %v279_v20 = vrot.slane %v253_v10, %v278_v9  ;;  %v262_v24 = vunpack.c.h.bf16 %v252_v12 }
  0x16   : > { %v284_v25 = vsub.f32 %v255_v13, %v267_v17  ;;  %v285_v26 = vsub.f32 %v256_v14, %v271_v18  ;;  %v286_v27 = vsub.f32 %v257_v15, %v275_v19  ;;  %v288_v30 = vsub.f32 %v259_v21, %v267_v17 }
  0x17   : > { %v287_v28 = vsub.f32 %v258_v16, %v279_v20  ;;  %v289_v31 = vsub.f32 %v260_v22, %v271_v18  ;;  %v290_v32 = vsub.f32 %v261_v23, %v275_v19  ;;  %v291_v37 = vsub.f32 %v262_v24, %v279_v20 }
  0x1e   : > { %v559_v29 = vpop.eup %558 }
  0x1f   : > { %v298_v33 = vrot.slane %v559_v29, %v266_v6  ;;  %v302_v34 = vrot.slane %v559_v29, %v270_v7  ;;  %v306_v35 = vrot.slane %v559_v29, %v274_v8  ;;  %v310_v36 = vrot.slane %v559_v29, %v278_v9 }
  0x21   : > { %v315_v38 = vmul.f32 %v298_v33, %v284_v25  ;;  %v316_v39 = vmul.f32 %v302_v34, %v285_v26  ;;  %v317_v40 = vmul.f32 %v306_v35, %v286_v27  ;;  %v318_v41 = vmul.f32 %v310_v36, %v287_v28 }
  0x22   : > { %v319_v42 = vmul.f32 %v298_v33, %v288_v30  ;;  %v320_v43 = vmul.f32 %v302_v34, %v289_v31  ;;  %v321_v46 = vmul.f32 %v306_v35, %v290_v32  ;;  %v322_v49 = vmul.f32 %v310_v36, %v291_v37 }
  0x23   : > { %v331_v44 = vmul.f32 0.70710677, %v315_v38  ;;  %v332_v45 = vmul.f32 0.70710677, %v316_v39  ;;  %v333_v47 = vmul.f32 0.70710677, %v317_v40 }
  0x24   : > { %v334_v48 = vmul.f32 0.70710677, %v318_v41  ;;  %v335_v50 = vmul.f32 0.70710677, %v319_v42  ;;  %v336_v51 = vmul.f32 0.70710677, %v320_v43 }
  0x25   : > { %560 = verf.f32 %v331_v44  ;;  %v337_v52 = vmul.f32 0.70710677, %v321_v46  ;;  %v338_v53 = vmul.f32 0.70710677, %v322_v49  ;;  %v323_v54 = vmul.f32 0.5, %v315_v38 }
  0x26   : > { %562 = verf.f32 %v332_v45  ;;  %v324_v56 = vmul.f32 0.5, %v316_v39  ;;  %v325_v59 = vmul.f32 0.5, %v317_v40  ;;  %v326_v62 = vmul.f32 0.5, %v318_v41 }
  0x27   : > { %564 = verf.f32 %v333_v47  ;;  %v327_v2 = vmul.f32 0.5, %v319_v42  ;;  %v328_v6 = vmul.f32 0.5, %v320_v43  ;;  %v329_v10 = vmul.f32 0.5, %v321_v46 }
  0x28   : > { %566 = verf.f32 %v334_v48  ;;  %v330_v15 = vmul.f32 0.5, %v322_v49 }
  0x29   : > { %568 = verf.f32 %v335_v50 }
  0x2a   : > { %570 = verf.f32 %v336_v51 }
  0x2b   : > { %572 = verf.f32 %v337_v52 }
  0x2c   : > { %574 = verf.f32 %v338_v53 }
  0x2f   : > { %v561_v55 = vpop.eup %560 }
  0x30   : > { %v563_v57 = vpop.eup %562  ;;  %v347_v58 = vadd.f32 1.0, %v561_v55 }
  0x31   : > { %v565_v60 = vpop.eup %564  ;;  %v348_v61 = vadd.f32 1.0, %v563_v57 }
  0x32   : > { %v567_v63 = vpop.eup %566  ;;  %v355_v0 = vmul.f32 %v347_v58, %v323_v54  ;;  %v349_v1 = vadd.f32 1.0, %v565_v60 }
  0x33   : > { %v569_v3 = vpop.eup %568  ;;  %v356_v4 = vmul.f32 %v348_v61, %v324_v56  ;;  %v350_v5 = vadd.f32 1.0, %v567_v63 }
  0x34   : > { %v571_v7 = vpop.eup %570  ;;  %v357_v8 = vmul.f32 %v349_v1, %v325_v59  ;;  %v351_v9 = vadd.f32 1.0, %v569_v3 }
  0x35   : > { %v573_v11 = vpop.eup %572  ;;  %v530_v12 = vpack.c.bf16 %v356_v4, %v355_v0  ;;  %v358_v13 = vmul.f32 %v350_v5, %v326_v62  ;;  %v352_v14 = vadd.f32 1.0, %v571_v7 }
  0x36   : > { %v575_v16 = vpop.eup %574  ;;  %v359_v17 = vmul.f32 %v351_v9, %v327_v2  ;;  %v353_v18 = vadd.f32 1.0, %v573_v11 }
  0x37   : > { %387 = vst [vmem:[%s247_s29] sm:$0xff] %v530_v12  ;;  %v531_v19 = vpack.c.bf16 %v358_v13, %v357_v8  ;;  %v360_v20 = vmul.f32 %v352_v14, %v328_v6  ;;  %v354_v21 = vadd.f32 1.0, %v575_v16 }
  0x38   : > { %v361_v22 = vmul.f32 %v353_v18, %v329_v10 }
  0x39   : > { %388 = vst [vmem:[%s247_s29 + $0x8] sm:$0xff] %v531_v19  ;;  %v532_v23 = vpack.c.bf16 %v360_v20, %v359_v17  ;;  %v362_v24 = vmul.f32 %v354_v21, %v330_v15 }
  0x3b   : > { %389 = vst [vmem:[%s247_s29 + $0x10] sm:$0xff] %v532_v23  ;;  %v533_v25 = vpack.c.bf16 %v362_v24, %v361_v22 }
  0x3d   : > { %390 = vst [vmem:[%s247_s29 + $0x18] sm:$0xff] %v533_v25 }
  0x3e PF: > { %s13_s14 = sadd.s32 1, %s598_s14   ;;  %s671_s12 = smov %s594_s13 }
  0x3f   : > { %p10_p5 = scmp.ge.s32.totalorder %s13_s14, 4   ;;  %s672_s13 = smov %s674_s15 }
  0x41   :  { %12 = sbr.rel (!%p10_p5) target bundleno = 2 (0x2), region = 68 }

// kernel: forward.77
= control target key start
LH: loop header
LB: loop body
LE: loop exit
PB: predicated region body
PF: predicated region fallthrough
CT: control target
= control target key end

     0   :  { %s1958_s0 = inlined_call_operand.vmem [shape: bf16[16,13824], index: 0, kind: input, shape index: {}]   ;;  %s1959_s1 = inlined_call_operand.vmem [shape: bf16[13824,512], index: 1, kind: input, shape index: {}]   ;;  %s1960_s2 = inlined_call_operand.vmem [shape: bf16[16,512], index: 2, kind: output, shape index: {}]  }
   0x1   :  { %1961 = sst [smem:[#allocation6_spill]] %s1958_s0 }
   0x2   :  { %s1588_s9 = smov 0   ;;  %s1590_s10 = smov 0  }
   0x3   :  { %s1592_s11 = smov 0   ;;  %s1594_s12 = smov 0  }
   0x4   :  { %s1596_s13 = smov 0   ;;  %s1598_s14 = smov 0  }
   0x5   :  { %s1600_s15 = smov 0   ;;  %s1602_s16 = smov 0  }
   0x6   :  { %s1604_s17 = smov 0   ;;  %s1606_s18 = smov 0  }
   0x7   :  { %s1608_s19 = smov 0  }
   0x8 LB: > { %s1191_s20 = sadd.s32 4294967295, %s1570_s19   ;;  %s24_s21 = sadd.s32 1, %s1562_s17  ;;  %s1570_s19 = sphi %s1608_s19, %s12_s19   ;;  %s1566_s18 = sphi %s1606_s18, %s1975_s18   ;;  %s1562_s17 = sphi %s1604_s17, %s1974_s17   ;;  %s1558_s16 = sphi %s1602_s16, %s1973_s16   ;;  %s1554_s15 = sphi %s1600_s15, %s1972_s15   ;;  %s1550_s14 = sphi %s1598_s14, %s1971_s14   ;;  %s1546_s13 = sphi %s1596_s13, %s1970_s13   ;;  %s1542_s12 = sphi %s1594_s12, %s1969_s12   ;;  %s1538_s11 = sphi %s1592_s11, %s1968_s11   ;;  %s1534_s10 = sphi %s1590_s10, %s1967_s10   ;;  %s1530_s9 = sphi %s1588_s9, %s1966_s9  }
   0x9   : > { %p25_p0 = scmp.ge.s32.totalorder %s24_s21, 27  ;;  %s27_s22 = sadd.s32 1, %s1566_s18 }
   0xa   : > { %s40_s23 = sadd.s32 1, %s1550_s14  ;;  %p47_p1 = scmp.ne.s32.totalorder %s1550_s14, %s1546_s13 }
   0xb   : > { %s1977_s21 = smov (%p25_p0, %s24_s21), 0  ;;  %s1979_s22 = smov (!%p25_p0, %s27_s22), %s1566_s18 }
   0xc   : > { %s36_s24 = ssub.s32 %s1562_s17, %s1977_s21  ;;  %p48_p2 = scmp.eq.s32.totalorder %s1570_s19, 0 }
   0xd   : > { %p29_p3 = scmp.ge.s32.totalorder %s1979_s22, 2  ;;  %p38_p4 = scmp.eq.s32.totalorder %s36_s24, 0 }
   0xe   : > { %p1655_p5 = por %p48_p2, %p47_p1  ;;  %s68_s26 = sadd.s32 1, %s1542_s12 }
   0xf   : > { %s1981_s22 = smov (%p29_p3, %s1979_s22), 0  ;;  %p75_p6 = scmp.ne.s32.totalorder %s1542_s12, %s1538_s11 }
  0x10   : > { %s1663_s27 = scalar_select %p38_p4, %s1550_s14, %s40_s23  }
  0x11   : > { %s64_s28 = ssub.s32 %s1566_s18, %s1981_s22  ;;  %p1669_p9 = por %p75_p6, %p48_p2 }
  0x12   : > { %s65_s29 = sor.u32 %s64_s28, %s36_s24  ;;  %p94_p7 = scmp.eq.s32.totalorder %s64_s28, 0 }
  0x13   : > { %p66_p8 = scmp.eq.s32.totalorder %s65_s29, 0  ;;  %s96_s3 = sadd.s32 1, %s1534_s10 }
  0x14   : > { %p106_p10 = scmp.ne.s32.totalorder %s1534_s10, %s1530_s9  ;;  %p107_p11 = scmp.eq.s32.totalorder %s1191_s20, 53 }
  0x15   : > { %s1677_s4 = scalar_select %p66_p8, %s1542_s12, %s68_s26  }
  0x16   : > { %s1680_s5 = scalar_select %p94_p7, %s1534_s10, %s96_s3  }
  0x17   : > { %p1682_p12 = por %p107_p11, %p106_p10  ;;  %p1194_p13 = scmp.ge.s32.totalorder %s1570_s19, 54 }
  0x19   : > { %129 = sbr.rel (%p1194_p13) target bundleno = 83 (0x53), region = 16 }
  0x20   : > { %132 = sbr.rel (!%p1655_p5) target bundleno = 44 (0x2c), region = 20  ;;  %s134_s7 = sand.u32 (%p1655_p5), 1, %s1550_s14  }
  0x21   : > { %s1284_s8 = sshll.u32 (%p1655_p5), %s1562_s17, 4  ;;  %s1195_s23 = sshll.u32 (%p1655_p5), %s134_s7, 5 }
  0x22   : > { %s1965_s0 = sld [smem:[#allocation6_spill]] (%p1655_p5)  ;;  %s136_s20 = scalar_lea.vmem (%p1655_p5), [#allocation3], %s1195_s23 }
  0x28   : > { %s142_s28 = scalar_lea.vmem %s1965_s0, %s1284_s8 }
  0x29   : > { %v155_v0 = vld [vmem:[%s142_s28] sm:$0xff]  ;;  %v157_v1 = vld [vmem:[%s142_s28 + $0x8] sm:$0xff]  ;;  %v159_v2 = vld [vmem:[%s142_s28 + $0x1b0] sm:$0xff] }
  0x2a   : > { %156 = vst [vmem:[%s136_s20] sm:$0xff] %v155_v0  ;;  %158 = vst [vmem:[%s136_s20 + $0x8] sm:$0xff] %v157_v1  ;;  %v161_v3 = vld [vmem:[%s142_s28 + $0x1b8] sm:$0xff] }
  0x2b   : > { %160 = vst [vmem:[%s136_s20 + $0x10] sm:$0xff] %v159_v2  ;;  %162 = vst [vmem:[%s136_s20 + $0x18] sm:$0xff] %v161_v3 }
  0x2c PF: > { %168 = sbr.rel (!%p1669_p9) target bundleno = 83 (0x53), region = 43  ;;  %s170_s25 = sand.u32 (%p1669_p9), 1, %s1542_s12  }
  0x2d   : > { %s1200_s29 = sshll.u32 (%p1669_p9), %s1566_s18, 1  ;;  %s1198_s3 = sshll.u32 (%p1669_p9), %s170_s25, 9 }
  0x2e   : > { %s1285_s7 = sshll.u32 (%p1669_p9), %s1562_s17, 8  ;;  %s1707_s30 = scalar_lea.vmem (%p1669_p9), [#allocation4], %s1198_s3 }
  0x2f   : > { %s176_s8 = sadd.s32 (%p1669_p9), %s1285_s7, %s1200_s29 }
  0x30   : > { %s1202_s24 = sshll.u32 (%p1669_p9), %s176_s8, 2 }
  0x31   : > { %s1702_s0 = scalar_lea.vmem (%p1669_p9), %s1959_s1, %s1202_s24 }
  0x32   : > { %v332_v4 = vld [vmem:[%s1702_s0] sm:$0xff] (%p1669_p9)  ;;  %v334_v5 = vld [vmem:[%s1702_s0 + $0x10] sm:$0xff] (%p1669_p9) }
  0x33   : > { %v336_v6 = vld [vmem:[%s1702_s0 + $0x20] sm:$0xff]  ;;  %333 = vst [vmem:[%s1707_s30] sm:$0xff] %v332_v4  ;;  %335 = vst [vmem:[%s1707_s30 + $0x8] sm:$0xff] %v334_v5  ;;  %v338_v7 = vld [vmem:[%s1702_s0 + $0x30] sm:$0xff] }
  0x34   : > { %337 = vst [vmem:[%s1707_s30 + $0x10] sm:$0xff] %v336_v6  ;;  %v340_v8 = vld [vmem:[%s1702_s0 + $0x40] sm:$0xff]  ;;  %v342_v9 = vld [vmem:[%s1702_s0 + $0x50] sm:$0xff]  ;;  %339 = vst [vmem:[%s1707_s30 + $0x18] sm:$0xff] %v338_v7 }
  0x35   : > { %341 = vst [vmem:[%s1707_s30 + $0x20] sm:$0xff] %v340_v8  ;;  %343 = vst [vmem:[%s1707_s30 + $0x28] sm:$0xff] %v342_v9  ;;  %v344_v10 = vld [vmem:[%s1702_s0 + $0x60] sm:$0xff]  ;;  %v346_v11 = vld [vmem:[%s1702_s0 + $0x70] sm:$0xff] }
  0x36   : > { %v348_v12 = vld [vmem:[%s1702_s0 + $0x80] sm:$0xff]  ;;  %345 = vst [vmem:[%s1707_s30 + $0x30] sm:$0xff] %v344_v10  ;;  %347 = vst [vmem:[%s1707_s30 + $0x38] sm:$0xff] %v346_v11  ;;  %v350_v13 = vld [vmem:[%s1702_s0 + $0x90] sm:$0xff] }
  0x37   : > { %349 = vst [vmem:[%s1707_s30 + $0x40] sm:$0xff] %v348_v12  ;;  %v352_v14 = vld [vmem:[%s1702_s0 + $0xa0] sm:$0xff]  ;;  %v354_v15 = vld [vmem:[%s1702_s0 + $0xb0] sm:$0xff]  ;;  %351 = vst [vmem:[%s1707_s30 + $0x48] sm:$0xff] %v350_v13 }
  0x38   : > { %353 = vst [vmem:[%s1707_s30 + $0x50] sm:$0xff] %v352_v14  ;;  %355 = vst [vmem:[%s1707_s30 + $0x58] sm:$0xff] %v354_v15  ;;  %v356_v16 = vld [vmem:[%s1702_s0 + $0xc0] sm:$0xff]  ;;  %v358_v17 = vld [vmem:[%s1702_s0 + $0xd0] sm:$0xff] }
  0x39   : > { %v360_v18 = vld [vmem:[%s1702_s0 + $0xe0] sm:$0xff]  ;;  %357 = vst [vmem:[%s1707_s30 + $0x60] sm:$0xff] %v356_v16  ;;  %359 = vst [vmem:[%s1707_s30 + $0x68] sm:$0xff] %v358_v17  ;;  %v362_v19 = vld [vmem:[%s1702_s0 + $0xf0] sm:$0xff] }
  0x3a   : > { %361 = vst [vmem:[%s1707_s30 + $0x70] sm:$0xff] %v360_v18  ;;  %v364_v20 = vld [vmem:[%s1702_s0 + $0x100] sm:$0xff]  ;;  %v366_v21 = vld [vmem:[%s1702_s0 + $0x110] sm:$0xff]  ;;  %363 = vst [vmem:[%s1707_s30 + $0x78] sm:$0xff] %v362_v19 }
  0x3b   : > { %365 = vst [vmem:[%s1707_s30 + $0x80] sm:$0xff] %v364_v20  ;;  %367 = vst [vmem:[%s1707_s30 + $0x88] sm:$0xff] %v366_v21  ;;  %v368_v22 = vld [vmem:[%s1702_s0 + $0x120] sm:$0xff]  ;;  %v370_v23 = vld [vmem:[%s1702_s0 + $0x130] sm:$0xff] }
  0x3c   : > { %v372_v24 = vld [vmem:[%s1702_s0 + $0x140] sm:$0xff]  ;;  %369 = vst [vmem:[%s1707_s30 + $0x90] sm:$0xff] %v368_v22  ;;  %371 = vst [vmem:[%s1707_s30 + $0x98] sm:$0xff] %v370_v23  ;;  %v374_v25 = vld [vmem:[%s1702_s0 + $0x150] sm:$0xff] }
  0x3d   : > { %373 = vst [vmem:[%s1707_s30 + $0xa0] sm:$0xff] %v372_v24  ;;  %v376_v26 = vld [vmem:[%s1702_s0 + $0x160] sm:$0xff]  ;;  %v378_v27 = vld [vmem:[%s1702_s0 + $0x170] sm:$0xff]  ;;  %375 = vst [vmem:[%s1707_s30 + $0xa8] sm:$0xff] %v374_v25 }
  0x3e   : > { %377 = vst [vmem:[%s1707_s30 + $0xb0] sm:$0xff] %v376_v26  ;;  %379 = vst [vmem:[%s1707_s30 + $0xb8] sm:$0xff] %v378_v27  ;;  %v380_v28 = vld [vmem:[%s1702_s0 + $0x180] sm:$0xff]  ;;  %v382_v29 = vld [vmem:[%s1702_s0 + $0x190] sm:$0xff] }
  0x3f   : > { %v384_v30 = vld [vmem:[%s1702_s0 + $0x1a0] sm:$0xff]  ;;  %381 = vst [vmem:[%s1707_s30 + $0xc0] sm:$0xff] %v380_v28  ;;  %383 = vst [vmem:[%s1707_s30 + $0xc8] sm:$0xff] %v382_v29  ;;  %v386_v31 = vld [vmem:[%s1702_s0 + $0x1b0] sm:$0xff] }
  0x40   : > { %385 = vst [vmem:[%s1707_s30 + $0xd0] sm:$0xff] %v384_v30  ;;  %v388_v32 = vld [vmem:[%s1702_s0 + $0x1c0] sm:$0xff]  ;;  %v390_v33 = vld [vmem:[%s1702_s0 + $0x1d0] sm:$0xff]  ;;  %387 = vst [vmem:[%s1707_s30 + $0xd8] sm:$0xff] %v386_v31 }
  0x41   : > { %389 = vst [vmem:[%s1707_s30 + $0xe0] sm:$0xff] %v388_v32  ;;  %391 = vst [vmem:[%s1707_s30 + $0xe8] sm:$0xff] %v390_v33  ;;  %v392_v34 = vld [vmem:[%s1702_s0 + $0x1e0] sm:$0xff]  ;;  %v394_v35 = vld [vmem:[%s1702_s0 + $0x1f0] sm:$0xff] }
  0x42   : > { %v396_v36 = vld [vmem:[%s1702_s0 + $0x200] sm:$0xff]  ;;  %393 = vst [vmem:[%s1707_s30 + $0xf0] sm:$0xff] %v392_v34  ;;  %395 = vst [vmem:[%s1707_s30 + $0xf8] sm:$0xff] %v394_v35  ;;  %v398_v37 = vld [vmem:[%s1702_s0 + $0x210] sm:$0xff] }
  0x43   : > { %397 = vst [vmem:[%s1707_s30 + $0x100] sm:$0xff] %v396_v36  ;;  %v400_v38 = vld [vmem:[%s1702_s0 + $0x220] sm:$0xff]  ;;  %v402_v39 = vld [vmem:[%s1702_s0 + $0x230] sm:$0xff]  ;;  %399 = vst [vmem:[%s1707_s30 + $0x108] sm:$0xff] %v398_v37 }
  0x44   : > { %401 = vst [vmem:[%s1707_s30 + $0x110] sm:$0xff] %v400_v38  ;;  %403 = vst [vmem:[%s1707_s30 + $0x118] sm:$0xff] %v402_v39  ;;  %v404_v40 = vld [vmem:[%s1702_s0 + $0x240] sm:$0xff]  ;;  %v406_v41 = vld [vmem:[%s1702_s0 + $0x250] sm:$0xff] }
  0x45   : > { %v408_v42 = vld [vmem:[%s1702_s0 + $0x260] sm:$0xff]  ;;  %405 = vst [vmem:[%s1707_s30 + $0x120] sm:$0xff] %v404_v40  ;;  %407 = vst [vmem:[%s1707_s30 + $0x128] sm:$0xff] %v406_v41  ;;  %v410_v43 = vld [vmem:[%s1702_s0 + $0x270] sm:$0xff] }
  0x46   : > { %409 = vst [vmem:[%s1707_s30 + $0x130] sm:$0xff] %v408_v42  ;;  %v412_v44 = vld [vmem:[%s1702_s0 + $0x280] sm:$0xff]  ;;  %v414_v45 = vld [vmem:[%s1702_s0 + $0x290] sm:$0xff]  ;;  %411 = vst [vmem:[%s1707_s30 + $0x138] sm:$0xff] %v410_v43 }
  0x47   : > { %413 = vst [vmem:[%s1707_s30 + $0x140] sm:$0xff] %v412_v44  ;;  %415 = vst [vmem:[%s1707_s30 + $0x148] sm:$0xff] %v414_v45  ;;  %v416_v46 = vld [vmem:[%s1702_s0 + $0x2a0] sm:$0xff]  ;;  %v418_v47 = vld [vmem:[%s1702_s0 + $0x2b0] sm:$0xff] }
  0x48   : > { %v420_v48 = vld [vmem:[%s1702_s0 + $0x2c0] sm:$0xff]  ;;  %417 = vst [vmem:[%s1707_s30 + $0x150] sm:$0xff] %v416_v46  ;;  %419 = vst [vmem:[%s1707_s30 + $0x158] sm:$0xff] %v418_v47  ;;  %v422_v49 = vld [vmem:[%s1702_s0 + $0x2d0] sm:$0xff] }
  0x49   : > { %421 = vst [vmem:[%s1707_s30 + $0x160] sm:$0xff] %v420_v48  ;;  %v424_v50 = vld [vmem:[%s1702_s0 + $0x2e0] sm:$0xff]  ;;  %v426_v51 = vld [vmem:[%s1702_s0 + $0x2f0] sm:$0xff]  ;;  %423 = vst [vmem:[%s1707_s30 + $0x168] sm:$0xff] %v422_v49 }
  0x4a   : > { %425 = vst [vmem:[%s1707_s30 + $0x170] sm:$0xff] %v424_v50  ;;  %427 = vst [vmem:[%s1707_s30 + $0x178] sm:$0xff] %v426_v51  ;;  %v428_v52 = vld [vmem:[%s1702_s0 + $0x300] sm:$0xff]  ;;  %v430_v53 = vld [vmem:[%s1702_s0 + $0x310] sm:$0xff] }
  0x4b   : > { %v432_v54 = vld [vmem:[%s1702_s0 + $0x320] sm:$0xff]  ;;  %429 = vst [vmem:[%s1707_s30 + $0x180] sm:$0xff] %v428_v52  ;;  %431 = vst [vmem:[%s1707_s30 + $0x188] sm:$0xff] %v430_v53  ;;  %v434_v55 = vld [vmem:[%s1702_s0 + $0x330] sm:$0xff] }
  0x4c   : > { %433 = vst [vmem:[%s1707_s30 + $0x190] sm:$0xff] %v432_v54  ;;  %v436_v56 = vld [vmem:[%s1702_s0 + $0x340] sm:$0xff]  ;;  %v438_v57 = vld [vmem:[%s1702_s0 + $0x350] sm:$0xff]  ;;  %435 = vst [vmem:[%s1707_s30 + $0x198] sm:$0xff] %v434_v55 }
  0x4d   : > { %437 = vst [vmem:[%s1707_s30 + $0x1a0] sm:$0xff] %v436_v56  ;;  %439 = vst [vmem:[%s1707_s30 + $0x1a8] sm:$0xff] %v438_v57  ;;  %v440_v58 = vld [vmem:[%s1702_s0 + $0x360] sm:$0xff]  ;;  %v442_v59 = vld [vmem:[%s1702_s0 + $0x370] sm:$0xff] }
  0x4e   : > { %v444_v60 = vld [vmem:[%s1702_s0 + $0x380] sm:$0xff]  ;;  %441 = vst [vmem:[%s1707_s30 + $0x1b0] sm:$0xff] %v440_v58  ;;  %443 = vst [vmem:[%s1707_s30 + $0x1b8] sm:$0xff] %v442_v59  ;;  %v446_v61 = vld [vmem:[%s1702_s0 + $0x390] sm:$0xff] }
  0x4f   : > { %445 = vst [vmem:[%s1707_s30 + $0x1c0] sm:$0xff] %v444_v60  ;;  %v448_v62 = vld [vmem:[%s1702_s0 + $0x3a0] sm:$0xff]  ;;  %v450_v63 = vld [vmem:[%s1702_s0 + $0x3b0] sm:$0xff]  ;;  %447 = vst [vmem:[%s1707_s30 + $0x1c8] sm:$0xff] %v446_v61 }
  0x50   : > { %449 = vst [vmem:[%s1707_s30 + $0x1d0] sm:$0xff] %v448_v62  ;;  %451 = vst [vmem:[%s1707_s30 + $0x1d8] sm:$0xff] %v450_v63  ;;  %v452_v0 = vld [vmem:[%s1702_s0 + $0x3c0] sm:$0xff]  ;;  %v454_v1 = vld [vmem:[%s1702_s0 + $0x3d0] sm:$0xff] }
  0x51   : > { %v456_v2 = vld [vmem:[%s1702_s0 + $0x3e0] sm:$0xff]  ;;  %453 = vst [vmem:[%s1707_s30 + $0x1e0] sm:$0xff] %v452_v0  ;;  %455 = vst [vmem:[%s1707_s30 + $0x1e8] sm:$0xff] %v454_v1  ;;  %v458_v3 = vld [vmem:[%s1702_s0 + $0x3f0] sm:$0xff] }
  0x52   : > { %457 = vst [vmem:[%s1707_s30 + $0x1f0] sm:$0xff] %v456_v2  ;;  %459 = vst [vmem:[%s1707_s30 + $0x1f8] sm:$0xff] %v458_v3 }
  0x53 PF: > { %p1203_p0 = scmp.ge.s32.totalorder %s1570_s19, 1  ;;  %p464_p1 = scmp.lt.s32.totalorder %s1570_s19, 55 }
  0x55   : > { %p465_p2 = pnand %p1203_p0, %p464_p1 }
  0x56   : > { %s471_s28 = sand.u32 (!%p465_p2), 1, %s1546_s13   ;;  %s478_s20 = sand.u32 (!%p465_p2), 1, %s1538_s11  }
  0x57   : > { %468 = sbr.rel (%p465_p2) target bundleno = 405 (0x195), region = 81  ;;  %s1204_s25 = sshll.u32 (!%p465_p2), %s471_s28, 5 }
  0x58   : > { %s1205_s29 = sshll.u32 (!%p465_p2), %s478_s20, 9  ;;  %s499_s3 = sand.u32 (!%p465_p2), 1, %s1530_s9  }
  0x59   : > { %s1206_s7 = sshll.u32 (!%p465_p2), %s499_s3, 4  ;;  %s1839_s8 = scalar_lea.vmem (!%p465_p2), [#allocation3], %s1204_s25 }
  0x5a   : > { %s1841_s0 = scalar_lea.vmem (!%p465_p2), [#allocation4], %s1205_s29  ;;  %s1843_s24 = scalar_lea.vmem (!%p465_p2), [#allocation5], %s1206_s7 }
  0x5b   : > { %p1207_p3 = scmp.ne.s32.totalorder (!%p465_p2), %s1554_s15, 0 }
  0x5e   : > { %511 = sbr.rel (%p1207_p3) target bundleno = 101 (0x65), region = 93  ;;  %v1572_v4 = vmov (!%p1207_p3), 0.0  }
  0x5f   : > { %512 = vst [vmem:[#allocation2] sm:$0xff] (!%p1207_p3), %v1572_v4  ;;  %513 = vst [vmem:[#allocation2 + $0x8] sm:$0xff] (!%p1207_p3), %v1572_v4 }
  0x60   : > { %514 = vst [vmem:[#allocation2 + $0x10] sm:$0xff] (!%p1207_p3), %v1572_v4  ;;  %515 = vst [vmem:[#allocation2 + $0x18] sm:$0xff] (!%p1207_p3), %v1572_v4 }
  0x65 PF: > { %v1382_v5 = vld [vmem:[%s1841_s0 + $0x4] ss:$8 sps:$4 sm:$0xff]   ;;  %v1386_v7 = vld [vmem:[%s1841_s0] ss:$8 sps:$4 sm:$0xff]   ;;  %v1388_v9 = vld [vmem:[%s1841_s0 + $0x14] ss:$8 sps:$4 sm:$0xff]  }
  0x66   : > { %v1384_v6 = vld [vmem:[%s1841_s0 + $0x104] ss:$8 sps:$4 sm:$0xff]   ;;  %928 = vmatprep.subr.bf16.mxu1 %v1382_v5  ;;  %v1387_v8 = vld [vmem:[%s1841_s0 + $0x100] ss:$8 sps:$4 sm:$0xff]   ;;  %v1390_v10 = vld [vmem:[%s1841_s0 + $0x114] ss:$8 sps:$4 sm:$0xff]  }
  0x67   : > { %971 = vmatprep.subr.bf16.mxu0 %v1384_v6  ;;  %929 = vmatpush1.bf16.msra.mxu1 %v1386_v7  ;;  %v1392_v11 = vld [vmem:[%s1841_s0 + $0x10] ss:$8 sps:$4 sm:$0xff]   ;;  %v1394_v13 = vld [vmem:[%s1841_s0 + $0x24] ss:$8 sps:$4 sm:$0xff]   ;;  %v1398_v15 = vld [vmem:[%s1841_s0 + $0x20] ss:$8 sps:$4 sm:$0xff]  }
  0x68   : > { %972 = vmatpush1.bf16.msra.mxu0 %v1387_v8  ;;  %930 = vmatprep.subr.bf16.mxu1 %v1388_v9  ;;  %v1393_v12 = vld [vmem:[%s1841_s0 + $0x110] ss:$8 sps:$4 sm:$0xff]   ;;  %v1396_v14 = vld [vmem:[%s1841_s0 + $0x124] ss:$8 sps:$4 sm:$0xff]   ;;  %v1399_v16 = vld [vmem:[%s1841_s0 + $0x120] ss:$8 sps:$4 sm:$0xff]  }
  0x69   : > { %973 = vmatprep.subr.bf16.mxu0 %v1390_v10  ;;  %v1400_v17 = vld [vmem:[%s1841_s0 + $0x34] ss:$8 sps:$4 sm:$0xff]   ;;  %v1404_v19 = vld [vmem:[%s1841_s0 + $0x30] ss:$8 sps:$4 sm:$0xff]   ;;  %v1406_v21 = vld [vmem:[%s1841_s0 + $0x44] ss:$8 sps:$4 sm:$0xff]  }
  0x6a   : > { %v1402_v18 = vld [vmem:[%s1841_s0 + $0x134] ss:$8 sps:$4 sm:$0xff]   ;;  %v1405_v20 = vld [vmem:[%s1841_s0 + $0x130] ss:$8 sps:$4 sm:$0xff]   ;;  %v1408_v22 = vld [vmem:[%s1841_s0 + $0x144] ss:$8 sps:$4 sm:$0xff]  }
  0x6b   : > { %931 = vmatpush1.bf16.msra.mxu1 %v1392_v11  ;;  %v1410_v23 = vld [vmem:[%s1841_s0 + $0x40] ss:$8 sps:$4 sm:$0xff]   ;;  %v1412_v25 = vld [vmem:[%s1841_s0 + $0x54] ss:$8 sps:$4 sm:$0xff]   ;;  %v1416_v27 = vld [vmem:[%s1841_s0 + $0x50] ss:$8 sps:$4 sm:$0xff]  }
  0x6c   : > { %974 = vmatpush1.bf16.msra.mxu0 %v1393_v12  ;;  %932 = vmatprep.subr.bf16.mxu1 %v1394_v13  ;;  %v1411_v24 = vld [vmem:[%s1841_s0 + $0x140] ss:$8 sps:$4 sm:$0xff]   ;;  %v1414_v26 = vld [vmem:[%s1841_s0 + $0x154] ss:$8 sps:$4 sm:$0xff]   ;;  %v1417_v28 = vld [vmem:[%s1841_s0 + $0x150] ss:$8 sps:$4 sm:$0xff]  }
  0x6d   : > { %975 = vmatprep.subr.bf16.mxu0 %v1396_v14  ;;  %v1418_v29 = vld [vmem:[%s1841_s0 + $0x64] ss:$8 sps:$4 sm:$0xff]   ;;  %v1422_v31 = vld [vmem:[%s1841_s0 + $0x60] ss:$8 sps:$4 sm:$0xff]   ;;  %v1424_v33 = vld [vmem:[%s1841_s0 + $0x74] ss:$8 sps:$4 sm:$0xff]  }
  0x6e   : > { %v1420_v30 = vld [vmem:[%s1841_s0 + $0x164] ss:$8 sps:$4 sm:$0xff]   ;;  %v1423_v32 = vld [vmem:[%s1841_s0 + $0x160] ss:$8 sps:$4 sm:$0xff]   ;;  %v1426_v34 = vld [vmem:[%s1841_s0 + $0x174] ss:$8 sps:$4 sm:$0xff]  }
  0x6f   : > { %933 = vmatpush1.bf16.msra.mxu1 %v1398_v15  ;;  %v1428_v35 = vld [vmem:[%s1841_s0 + $0x70] ss:$8 sps:$4 sm:$0xff]   ;;  %v1430_v37 = vld [vmem:[%s1841_s0 + $0x84] ss:$8 sps:$4 sm:$0xff]   ;;  %v1434_v39 = vld [vmem:[%s1841_s0 + $0x80] ss:$8 sps:$4 sm:$0xff]  }
  0x70   : > { %976 = vmatpush1.bf16.msra.mxu0 %v1399_v16  ;;  %934 = vmatprep.subr.bf16.mxu1 %v1400_v17  ;;  %v1429_v36 = vld [vmem:[%s1841_s0 + $0x170] ss:$8 sps:$4 sm:$0xff]   ;;  %v1432_v38 = vld [vmem:[%s1841_s0 + $0x184] ss:$8 sps:$4 sm:$0xff]   ;;  %v1435_v40 = vld [vmem:[%s1841_s0 + $0x180] ss:$8 sps:$4 sm:$0xff]  }
  0x71   : > { %977 = vmatprep.subr.bf16.mxu0 %v1402_v18  ;;  %v1436_v41 = vld [vmem:[%s1841_s0 + $0x94] ss:$8 sps:$4 sm:$0xff]   ;;  %v1440_v43 = vld [vmem:[%s1841_s0 + $0x90] ss:$8 sps:$4 sm:$0xff]   ;;  %v1442_v45 = vld [vmem:[%s1841_s0 + $0xa4] ss:$8 sps:$4 sm:$0xff]  }
  0x72   : > { %v1438_v42 = vld [vmem:[%s1841_s0 + $0x194] ss:$8 sps:$4 sm:$0xff]   ;;  %v1441_v44 = vld [vmem:[%s1841_s0 + $0x190] ss:$8 sps:$4 sm:$0xff]   ;;  %v1444_v46 = vld [vmem:[%s1841_s0 + $0x1a4] ss:$8 sps:$4 sm:$0xff]  }
  0x73   : > { %935 = vmatpush1.bf16.msra.mxu1 %v1404_v19  ;;  %v1446_v47 = vld [vmem:[%s1841_s0 + $0xa0] ss:$8 sps:$4 sm:$0xff]   ;;  %v1448_v49 = vld [vmem:[%s1841_s0 + $0xb4] ss:$8 sps:$4 sm:$0xff]   ;;  %v1452_v51 = vld [vmem:[%s1841_s0 + $0xb0] ss:$8 sps:$4 sm:$0xff]  }
  0x74   : > { %978 = vmatpush1.bf16.msra.mxu0 %v1405_v20  ;;  %936 = vmatprep.subr.bf16.mxu1 %v1406_v21  ;;  %v1447_v48 = vld [vmem:[%s1841_s0 + $0x1a0] ss:$8 sps:$4 sm:$0xff]   ;;  %v1450_v50 = vld [vmem:[%s1841_s0 + $0x1b4] ss:$8 sps:$4 sm:$0xff]   ;;  %v1453_v53 = vld [vmem:[%s1841_s0 + $0x1b0] ss:$8 sps:$4 sm:$0xff]  }
  0x75   : > { %979 = vmatprep.subr.bf16.mxu0 %v1408_v22  ;;  %v1480_v52 = vld [vmem:[%s1839_s8 + $0x4] ss:$16 sps:$4 sm:$0xff]   ;;  %v1483_v56 = vld [vmem:[%s1839_s8 + $0xc] ss:$16 sps:$4 sm:$0xff]   ;;  %v1458_v57 = vld [vmem:[%s1841_s0 + $0xc0] ss:$8 sps:$4 sm:$0xff]  }
  0x76   : > { %v1454_v54 = vld [vmem:[%s1841_s0 + $0xc4] ss:$8 sps:$4 sm:$0xff]   ;;  %960 = vmatprep.mubr.bf16.mxu1 %v1480_v52  ;;  %1003 = vmatprep.mubr.bf16.mxu0 %v1483_v56  ;;  %v1459_v58 = vld [vmem:[%s1841_s0 + $0x1c0] ss:$8 sps:$4 sm:$0xff]   ;;  %v1460_v59 = vld [vmem:[%s1841_s0 + $0xd4] ss:$8 sps:$4 sm:$0xff]  }
  0x77   : > { %937 = vmatpush1.bf16.msra.mxu1 %v1410_v23  ;;  %v1456_v55 = vld [vmem:[%s1841_s0 + $0x1c4] ss:$8 sps:$4 sm:$0xff]   ;;  %v1462_v60 = vld [vmem:[%s1841_s0 + $0x1d4] ss:$8 sps:$4 sm:$0xff]   ;;  %v1464_v61 = vld [vmem:[%s1841_s0 + $0xd0] ss:$8 sps:$4 sm:$0xff]  }
  0x78   : > { %980 = vmatpush1.bf16.msra.mxu0 %v1411_v24  ;;  %938 = vmatprep.subr.bf16.mxu1 %v1412_v25  ;;  %v1465_v62 = vld [vmem:[%s1841_s0 + $0x1d0] ss:$8 sps:$4 sm:$0xff]   ;;  %v1466_v63 = vld [vmem:[%s1841_s0 + $0xe4] ss:$8 sps:$4 sm:$0xff]   ;;  %v1470_v1 = vld [vmem:[%s1841_s0 + $0xe0] ss:$8 sps:$4 sm:$0xff]  }
  0x79   : > { %981 = vmatprep.subr.bf16.mxu0 %v1414_v26  ;;  %v1468_v0 = vld [vmem:[%s1841_s0 + $0x1e4] ss:$8 sps:$4 sm:$0xff]   ;;  %v1471_v2 = vld [vmem:[%s1841_s0 + $0x1e0] ss:$8 sps:$4 sm:$0xff]   ;;  %v1472_v3 = vld [vmem:[%s1841_s0 + $0xf4] ss:$8 sps:$4 sm:$0xff]  }
  0x7a   : > { %v1474_v4 = vld [vmem:[%s1841_s0 + $0x1f4] ss:$8 sps:$4 sm:$0xff]   ;;  %v1476_v5 = vld [vmem:[%s1841_s0 + $0xf0] ss:$8 sps:$4 sm:$0xff]   ;;  %v516_v10 = vld [vmem:[#allocation2] sm:$0xff]  ;;  %p1276_p4 = scmp.ne.s32.totalorder %s1554_s15, 26 }
  0x7b   : > { %939 = vmatpush1.bf16.msra.mxu1 %v1416_v27  ;;  %v1477_v6 = vld [vmem:[%s1841_s0 + $0x1f0] ss:$8 sps:$4 sm:$0xff]   ;;  %v517_v14 = vld [vmem:[#allocation2 + $0x8] sm:$0xff] }
  0x7c   : > { %982 = vmatpush1.bf16.msra.mxu0 %v1417_v28  ;;  %940 = vmatprep.subr.bf16.mxu1 %v1418_v29  ;;  %v1478_v7 = vld [vmem:[%s1839_s8] ss:$16 sps:$4 sm:$0xff]   ;;  %v1481_v8 = vld [vmem:[%s1839_s8 + $0x8] ss:$16 sps:$4 sm:$0xff]  }
  0x7d   : > { %983 = vmatprep.subr.bf16.mxu0 %v1420_v30  ;;  %v518_v18 = vld [vmem:[#allocation2 + $0x10] sm:$0xff]  ;;  %v519_v23 = vld [vmem:[#allocation2 + $0x18] sm:$0xff] }
  0x7f   : > { %941 = vmatpush1.bf16.msra.mxu1 %v1422_v31 }
  0x80   : > { %984 = vmatpush1.bf16.msra.mxu0 %v1423_v32  ;;  %942 = vmatprep.subr.bf16.mxu1 %v1424_v33 }
  0x81   : > { %985 = vmatprep.subr.bf16.mxu0 %v1426_v34 }
  0x83   : > { %943 = vmatpush1.bf16.msra.mxu1 %v1428_v35 }
  0x84   : > { %986 = vmatpush1.bf16.msra.mxu0 %v1429_v36  ;;  %944 = vmatprep.subr.bf16.mxu1 %v1430_v37 }
  0x85   : > { %987 = vmatprep.subr.bf16.mxu0 %v1432_v38 }
  0x87   : > { %945 = vmatpush1.bf16.msra.mxu1 %v1434_v39 }
  0x88   : > { %988 = vmatpush1.bf16.msra.mxu0 %v1435_v40  ;;  %946 = vmatprep.subr.bf16.mxu1 %v1436_v41 }
  0x89   : > { %989 = vmatprep.subr.bf16.mxu0 %v1438_v42 }
  0x8b   : > { %947 = vmatpush1.bf16.msra.mxu1 %v1440_v43 }
  0x8c   : > { %990 = vmatpush1.bf16.msra.mxu0 %v1441_v44  ;;  %948 = vmatprep.subr.bf16.mxu1 %v1442_v45 }
  0x8d   : > { %991 = vmatprep.subr.bf16.mxu0 %v1444_v46 }
  0x8f   : > { %949 = vmatpush1.bf16.msra.mxu1 %v1446_v47 }
  0x90   : > { %992 = vmatpush1.bf16.msra.mxu0 %v1447_v48  ;;  %950 = vmatprep.subr.bf16.mxu1 %v1448_v49 }
  0x91   : > { %993 = vmatprep.subr.bf16.mxu0 %v1450_v50 }
  0x93   : > { %951 = vmatpush1.bf16.msra.mxu1 %v1452_v51 }
  0x94   : > { %994 = vmatpush1.bf16.msra.mxu0 %v1453_v53  ;;  %952 = vmatprep.subr.bf16.mxu1 %v1454_v54 }
  0x95   : > { %995 = vmatprep.subr.bf16.mxu0 %v1456_v55 }
  0x97   : > { %953 = vmatpush1.bf16.msra.mxu1 %v1458_v57 }
  0x98   : > { %996 = vmatpush1.bf16.msra.mxu0 %v1459_v58  ;;  %954 = vmatprep.subr.bf16.mxu1 %v1460_v59 }
  0x99   : > { %997 = vmatprep.subr.bf16.mxu0 %v1462_v60 }
  0x9b   : > { %955 = vmatpush1.bf16.msra.mxu1 %v1464_v61 }
  0x9c   : > { %998 = vmatpush1.bf16.msra.mxu0 %v1465_v62  ;;  %956 = vmatprep.subr.bf16.mxu1 %v1466_v63 }
  0x9d   : > { %999 = vmatprep.subr.bf16.mxu0 %v1468_v0 }
  0x9f   : > { %957 = vmatpush1.bf16.msra.mxu1 %v1470_v1 }
  0xa0   : > { %1000 = vmatpush1.bf16.msra.mxu0 %v1471_v2  ;;  %958 = vmatprep.subr.bf16.mxu1 %v1472_v3 }
  0xa1   : > { %1001 = vmatprep.subr.bf16.mxu0 %v1474_v4 }
  0xa3   : > { %959 = vmatpush1.bf16.msra.mxu1 %v1476_v5 }
  0xa4   : > { %1002 = vmatpush1.bf16.msra.mxu0 %v1477_v6 }
  0xa6   : > { %961 = vmatmul.mubr.bf16.vlgmr.msra.gmra.mrb[0].mxu1 %v1478_v7 }
  0xa7   : > { %1004 = vmatmul.mubr.bf16.vlgmr.msra.gmra.mrb[0].mxu0 %v1481_v8 }
 0x179   : > { %v962_v9 = vpop.f32.mrb[0].mxu1 }
 0x17a   : > { %v1005_v11 = vpop.f32.mrb[0].mxu0  ;;  %v964_v13 = vpop.f32.mrb[1].mxu1 }
 0x17b   : > { %v1006_v12 = vadd.f32 %v1005_v11, %v962_v9  ;;  %v1007_v15 = vpop.f32.mrb[1].mxu0  ;;  %v966_v17 = vpop.f32.mrb[2].mxu1 }
 0x17c   : > { %v1008_v16 = vadd.f32 %v1007_v15, %v964_v13  ;;  %v1009_v19 = vpop.f32.mrb[2].mxu0  ;;  %v968_v22 = vpop.f32.mrb[3].mxu1  ;;  %1025 = sbr.rel (%p1276_p4) target bundleno = 397 (0x18d), region = 97 }
 0x17d   : > { %v1014_v20 = vadd.f32 %v1006_v12, %v516_v10  ;;  %v1010_v21 = vadd.f32 %v1009_v19, %v966_v17  ;;  %v1011_v24 = vpop.f32.mrb[3].mxu0 }
 0x17e   : > { %v1015_v25 = vadd.f32 %v1008_v16, %v517_v14  ;;  %v1012_v26 = vadd.f32 %v1011_v24, %v968_v22 }
 0x17f   : > { %1018 = vst [vmem:[#allocation2] sm:$0xff] %v1014_v20  ;;  %v1016_v27 = vadd.f32 %v1010_v21, %v518_v18 }
 0x180   : > { %1019 = vst [vmem:[#allocation2 + $0x8] sm:$0xff] %v1015_v25  ;;  %v1017_v28 = vadd.f32 %v1012_v26, %v519_v23 }
 0x181   : > { %1020 = vst [vmem:[#allocation2 + $0x10] sm:$0xff] %v1016_v27 }
 0x182   : > { %1021 = vst [vmem:[#allocation2 + $0x18] sm:$0xff] %v1017_v28 }
 0x186   : > { %v1026_v29 = vld [vmem:[#allocation2] sm:$0xff] }
 0x187   : > { %v1027_v30 = vld [vmem:[#allocation2 + $0x8] sm:$0xff] }
 0x188   : > { %v1028_v31 = vld [vmem:[#allocation2 + $0x10] sm:$0xff]  ;;  %v1286_v32 = vpack.c.bf16 %v1027_v30, %v1026_v29 }
 0x189   : > { %v1029_v33 = vld [vmem:[#allocation2 + $0x18] sm:$0xff] }
 0x18a   : > { %v1287_v34 = vpack.c.bf16 %v1029_v33, %v1028_v31  ;;  %1042 = vst [vmem:[%s1843_s24] sm:$0xff] %v1286_v32 }
 0x18c   : > { %1043 = vst [vmem:[%s1843_s24 + $0x8] sm:$0xff] %v1287_v34 }
 0x18d PF: > { %1050 = sbr.rel (!%p1682_p12) target bundleno = 405 (0x195), region = 101  ;;  %s1288_s9 = sshll.u32 (%p1682_p12), %s1558_s16, 3 }
 0x18e   : > { %s1056_s15 = scalar_lea.vmem (%p1682_p12), %s1960_s2, %s1288_s9 }
 0x191   : > { %v1086_v35 = vld [vmem:[%s1843_s24] sm:$0xff] (%p1682_p12) }
 0x192   : > { %1087 = vst [vmem:[%s1056_s15] sm:$0xff] (%p1682_p12), %v1086_v35 }
 0x193   : > { %v1088_v36 = vld [vmem:[%s1843_s24 + $0x8] sm:$0xff] (%p1682_p12) }
 0x194   : > { %1089 = vst [vmem:[%s1056_s15 + $0x10] sm:$0xff] %v1088_v36 }
 0x195 PF: > { %s12_s19 = sadd.s32 1, %s1570_s19   ;;  %s1966_s9 = smov %s1534_s10 }
 0x196   : > { %p9_p5 = scmp.ge.s32.totalorder %s12_s19, 56   ;;  %s1967_s10 = smov %s1680_s5 }
 0x197   : > { %s1968_s11 = smov %s1542_s12  ;;  %s1969_s12 = smov %s1677_s4 }
 0x198   : > { %s1970_s13 = smov %s1550_s14  ;;  %s1971_s14 = smov %s1663_s27 }
 0x199   : > { %s1972_s15 = smov %s1562_s17  ;;  %s1973_s16 = smov %s1566_s18 }
 0x19a   : > { %s1974_s17 = smov %s1977_s21  ;;  %s1975_s18 = smov %s1981_s22 }
 0x19b   :  { %11 = sbr.rel (!%p9_p5) target bundleno = 8 (0x8), region = 178 }

// kernel: forward.86
= control target key start
LH: loop header
LB: loop body
LE: loop exit
PB: predicated region body
PF: predicated region fallthrough
CT: control target
= control target key end

     0   :  { %s374_s6 = smov 0   ;;  %s376_s7 = smov 0   ;;  %s420_s0 = inlined_call_operand.vmem [shape: bf16[2,16,512], index: 0, kind: input, shape index: {}]   ;;  %s421_s1 = inlined_call_operand.vmem [shape: f32[2,1,512], index: 1, kind: output, shape index: {}]  }
   0x1   :  { %s378_s8 = smov 0  }
   0x2 LB: > { %s23_s9 = sadd.s32 1, %s356_s7  ;;  %p305_p0 = scmp.ge.s32.totalorder %s360_s8, 1  ;;  %s360_s8 = sphi %s378_s8, %s11_s8   ;;  %s356_s7 = sphi %s376_s7, %s425_s7   ;;  %s352_s6 = sphi %s374_s6, %s424_s6  }
   0x3   : > { %p25_p1 = scmp.ge.s32.totalorder %s23_s9, 2  ;;  %p107_p2 = scmp.lt.s32.totalorder %s360_s8, 3 }
   0x5   : > { %s427_s9 = smov (%p25_p1, %s23_s9), 0  ;;  %p108_p3 = pnand %p305_p0, %p107_p2 }
   0x6   : > { %p132_p4 = scmp.lt.s32.totalorder (!%p108_p3), %s352_s6, 1  ;;  %v150_v0 = vlaneseq (!%p108_p3)  ;;  %v362_v2 = vmov (!%p108_p3), -inf   ;;  %v363_v23 = vmov (!%p108_p3), 1966171168  }
   0x7   : > { %111 = sbr.rel (%p108_p3) target bundleno = 46 (0x2e), region = 24  ;;  %v203_v24 = vunpack.c.l.s4 (!%p108_p3), %v363_v23 }
   0x8   : > { %vm392_vm0 = vcmp.lt.s32.totalorder (!%p108_p3), %v150_v0, 512  ;;  %v206_v34 = vshrl.u32 (!%p108_p3), %v150_v0, 7 }
   0x9   : > { %v204_v33 = vunpack.c.0.s8 (!%p108_p3), %v203_v24 }
   0xb   : > { %v207_v43 = vsub.s32 (!%p108_p3), %v204_v33, %v206_v34 }
   0xe   : > { %s429_s6 = smov (!%p132_p4, %s352_s6), 1 }
   0xf   : > { %s311_s10 = sshll.u32 %s429_s6, 5  ;;  %s308_s11 = sshll.u32 %s429_s6, 2 }
  0x10   : > { %s140_s14 = scalar_lea.vmem %s420_s0, %s311_s10  ;;  %s402_s17 = scalar_lea.vmem %s421_s1, %s308_s11 }
  0x11   : > { %154 = vst.msk [vmem:[%s402_s17] sm:$0xf] %vm392_vm0, %v362_v2  ;;  %v156_v3 = vld [vmem:[%s140_s14] sm:$0xff]  ;;  %v157_v4 = vld [vmem:[%s140_s14 + $0x8] sm:$0xff]  ;;  %v158_v5 = vld [vmem:[%s140_s14 + $0x10] sm:$0xff] }
  0x12   : > { %v159_v6 = vld [vmem:[%s140_s14 + $0x18] sm:$0xff]  ;;  %v160_v7 = vunpack.c.l.bf16 %v156_v3  ;;  %v161_v8 = vunpack.c.h.bf16 %v156_v3  ;;  %v162_v9 = vunpack.c.l.bf16 %v157_v4  ;;  %v163_v10 = vunpack.c.h.bf16 %v157_v4 }
  0x13   : > { %v164_v11 = vunpack.c.l.bf16 %v158_v5  ;;  %v165_v12 = vunpack.c.h.bf16 %v158_v5  ;;  %v166_v13 = vunpack.c.l.bf16 %v159_v6  ;;  %v167_v14 = vunpack.c.h.bf16 %v159_v6 }
  0x15   : > { %v168_v15 = vmax.f32 %v160_v7, %v164_v11  ;;  %v175_v16 = vmax.f32 %v161_v8, %v165_v12  ;;  %v182_v17 = vmax.f32 %v162_v9, %v166_v13  ;;  %v189_v18 = vmax.f32 %v163_v10, %v167_v14 }
  0x17   : > { %v169_v19 = vrot.slane %v168_v15, 4  ;;  %v176_v20 = vrot.slane %v175_v16, 4  ;;  %v183_v21 = vrot.slane %v182_v17, 4  ;;  %v190_v22 = vrot.slane %v189_v18, 4 }
  0x18   : > { %v155_v53 = vld [vmem:[%s402_s17] sm:$0xf] }
  0x19   : > { %v170_v25 = vmax.f32 %v168_v15, %v169_v19  ;;  %v177_v26 = vmax.f32 %v175_v16, %v176_v20  ;;  %v184_v27 = vmax.f32 %v182_v17, %v183_v21  ;;  %v191_v28 = vmax.f32 %v189_v18, %v190_v22 }
  0x1b   : > { %v171_v29 = vrot.slane %v170_v25, 2  ;;  %v178_v30 = vrot.slane %v177_v26, 2  ;;  %v185_v31 = vrot.slane %v184_v27, 2  ;;  %v192_v32 = vrot.slane %v191_v28, 2 }
  0x1d   : > { %v172_v35 = vmax.f32 %v170_v25, %v171_v29  ;;  %v179_v36 = vmax.f32 %v177_v26, %v178_v30  ;;  %v186_v37 = vmax.f32 %v184_v27, %v185_v31  ;;  %v193_v38 = vmax.f32 %v191_v28, %v192_v32 }
  0x1f   : > { %v173_v39 = vrot.slane %v172_v35, 1  ;;  %v180_v40 = vrot.slane %v179_v36, 1  ;;  %v187_v41 = vrot.slane %v186_v37, 1  ;;  %v194_v42 = vrot.slane %v193_v38, 1 }
  0x21   : > { %v174_v44 = vmax.f32 %v172_v35, %v173_v39  ;;  %v181_v45 = vmax.f32 %v179_v36, %v180_v40  ;;  %v188_v46 = vmax.f32 %v186_v37, %v187_v41  ;;  %v195_v47 = vmax.f32 %v193_v38, %v194_v42 }
  0x23   : > { %v200_v48 = vcombine.low %v174_v44, %v181_v45  ;;  %v201_v49 = vcombine.low %v188_v46, %v195_v47 }
  0x25   : > { %v208_v50 = vrot.slane %v200_v48, %v207_v43  ;;  %v215_v51 = vrot.slane %v201_v49, %v207_v43 }
  0x27   : > { %v216_v52 = vcombine.low %v208_v50, %v215_v51 }
  0x29   : > { %v223_v54 = vrot.slane %v216_v52, %v207_v43 }
  0x2b   : > { %v225_v55 = vmax.f32 %v155_v53, %v223_v54 }
  0x2d   : > { %230 = vst.msk [vmem:[%s402_s17] sm:$0xf] %vm392_vm0, %v225_v55 }
  0x2e PF: > { %s11_s8 = sadd.s32 1, %s360_s8   ;;  %s424_s6 = smov %s356_s7 }
  0x2f   : > { %p8_p5 = scmp.ge.s32.totalorder %s11_s8, 4   ;;  %s425_s7 = smov %s427_s9 }
  0x31   :  { %10 = sbr.rel (!%p8_p5) target bundleno = 2 (0x2), region = 58 }

// kernel: forward.87
= control target key start
LH: loop header
LB: loop body
LE: loop exit
PB: predicated region body
PF: predicated region fallthrough
CT: control target
= control target key end

     0   :  { %s665_s1 = inlined_call_operand.vmem [shape: bf16[512,128], index: 1, kind: input, shape index: {}]   ;;  %s666_s0 = inlined_call_operand.vmem [shape: bf16[16,512], index: 0, kind: input, shape index: {}]   ;;  %s667_s2 = inlined_call_operand.vmem [shape: f32[1,128], index: 2, kind: input, shape index: {}]   ;;  %s668_s3 = inlined_call_operand.vmem [shape: f32[16,128], index: 3, kind: output, shape index: {}]  }
   0x1   :  { %v490_v0 = vld [vmem:[%s665_s1 + $0x40] sm:$0xff]   ;;  %v494_v4 = vld [vmem:[%s665_s1 + $0x48] sm:$0xff]   ;;  %v498_v8 = vld [vmem:[%s665_s1 + $0x50] sm:$0xff]  }
   0x2   :  { %v491_v1 = vld [vmem:[%s665_s1 + $0xc0] sm:$0xff]   ;;  %446 = vmatprep.subr.bf16.mxu0 %v490_v0  ;;  %v495_v5 = vld [vmem:[%s665_s1 + $0xc8] sm:$0xff]   ;;  %v499_v9 = vld [vmem:[%s665_s1 + $0xd0] sm:$0xff]  }
   0x3   :  { %v492_v2 = vld [vmem:[%s665_s1] sm:$0xff]   ;;  %468 = vmatprep.subr.bf16.mxu1 %v491_v1  ;;  %v496_v6 = vld [vmem:[%s665_s1 + $0x8] sm:$0xff]   ;;  %v500_v10 = vld [vmem:[%s665_s1 + $0x10] sm:$0xff]  }
   0x4   :  { %v493_v3 = vld [vmem:[%s665_s1 + $0x80] sm:$0xff]   ;;  %447 = vmatpush3.bf16.msra.mxu0 %v492_v2  ;;  %v497_v7 = vld [vmem:[%s665_s1 + $0x88] sm:$0xff]   ;;  %v501_v11 = vld [vmem:[%s665_s1 + $0x90] sm:$0xff]  }
   0x5   :  { %469 = vmatpush3.bf16.msra.mxu1 %v493_v3  ;;  %448 = vmatprep.subr.bf16.mxu0 %v494_v4  ;;  %v502_v12 = vld [vmem:[%s665_s1 + $0x58] sm:$0xff]   ;;  %v506_v16 = vld [vmem:[%s665_s1 + $0x60] sm:$0xff]   ;;  %v510_v20 = vld [vmem:[%s665_s1 + $0x68] sm:$0xff]  }
   0x6   :  { %470 = vmatprep.subr.bf16.mxu1 %v495_v5  ;;  %v503_v13 = vld [vmem:[%s665_s1 + $0xd8] sm:$0xff]   ;;  %v507_v17 = vld [vmem:[%s665_s1 + $0xe0] sm:$0xff]   ;;  %v511_v21 = vld [vmem:[%s665_s1 + $0xe8] sm:$0xff]  }
   0x7   :  { %v504_v14 = vld [vmem:[%s665_s1 + $0x18] sm:$0xff]   ;;  %v508_v18 = vld [vmem:[%s665_s1 + $0x20] sm:$0xff]   ;;  %v512_v22 = vld [vmem:[%s665_s1 + $0x28] sm:$0xff]  }
   0x8   :  { %449 = vmatpush3.bf16.msra.mxu0 %v496_v6  ;;  %v505_v15 = vld [vmem:[%s665_s1 + $0x98] sm:$0xff]   ;;  %v509_v19 = vld [vmem:[%s665_s1 + $0xa0] sm:$0xff]   ;;  %v513_v23 = vld [vmem:[%s665_s1 + $0xa8] sm:$0xff]  }
   0x9   :  { %471 = vmatpush3.bf16.msra.mxu1 %v497_v7  ;;  %450 = vmatprep.subr.bf16.mxu0 %v498_v8  ;;  %v514_v24 = vld [vmem:[%s665_s1 + $0x70] sm:$0xff]   ;;  %v518_v28 = vld [vmem:[%s665_s1 + $0x78] sm:$0xff]   ;;  %v445_v45 = vld [vmem:[%s667_s2] ss:$0 sm:$0xff] }
   0xa   :  { %472 = vmatprep.subr.bf16.mxu1 %v499_v9  ;;  %v515_v25 = vld [vmem:[%s665_s1 + $0xf0] sm:$0xff]   ;;  %v519_v29 = vld [vmem:[%s665_s1 + $0xf8] sm:$0xff]  }
   0xb   :  { %v516_v26 = vld [vmem:[%s665_s1 + $0x30] sm:$0xff]   ;;  %v520_v30 = vld [vmem:[%s665_s1 + $0x38] sm:$0xff]  }
   0xc   :  { %451 = vmatpush3.bf16.msra.mxu0 %v500_v10  ;;  %v517_v27 = vld [vmem:[%s665_s1 + $0xb0] sm:$0xff]   ;;  %v521_v31 = vld [vmem:[%s665_s1 + $0xb8] sm:$0xff]  }
   0xd   :  { %473 = vmatpush3.bf16.msra.mxu1 %v501_v11  ;;  %452 = vmatprep.subr.bf16.mxu0 %v502_v12  ;;  %v522_v32 = vld [vmem:[%s666_s0] ss:$16 sps:$4 sm:$0xff]   ;;  %v524_v33 = vld [vmem:[%s666_s0 + $0x4] ss:$16 sps:$4 sm:$0xff]   ;;  %v525_v34 = vld [vmem:[%s666_s0 + $0x8] ss:$16 sps:$4 sm:$0xff]  }
   0xe   :  { %474 = vmatprep.subr.bf16.mxu1 %v503_v13  ;;  %v527_v35 = vld [vmem:[%s666_s0 + $0xc] ss:$16 sps:$4 sm:$0xff]   ;;  %335 = vmatprep.mubr.bf16.mxu0 %v524_v33 }
   0xf   :  { %376 = vmatprep.mubr.bf16.mxu1 %v527_v35 }
  0x10   :  { %453 = vmatpush3.bf16.msra.mxu0 %v504_v14 }
  0x11   :  { %475 = vmatpush3.bf16.msra.mxu1 %v505_v15  ;;  %454 = vmatprep.subr.bf16.mxu0 %v506_v16 }
  0x12   :  { %476 = vmatprep.subr.bf16.mxu1 %v507_v17 }
  0x14   :  { %455 = vmatpush3.bf16.msra.mxu0 %v508_v18 }
  0x15   :  { %477 = vmatpush3.bf16.msra.mxu1 %v509_v19  ;;  %456 = vmatprep.subr.bf16.mxu0 %v510_v20 }
  0x16   :  { %478 = vmatprep.subr.bf16.mxu1 %v511_v21 }
  0x18   :  { %457 = vmatpush3.bf16.msra.mxu0 %v512_v22 }
  0x19   :  { %479 = vmatpush3.bf16.msra.mxu1 %v513_v23  ;;  %458 = vmatprep.subr.bf16.mxu0 %v514_v24 }
  0x1a   :  { %480 = vmatprep.subr.bf16.mxu1 %v515_v25 }
  0x1c   :  { %459 = vmatpush3.bf16.msra.mxu0 %v516_v26 }
  0x1d   :  { %481 = vmatpush3.bf16.msra.mxu1 %v517_v27  ;;  %460 = vmatprep.subr.bf16.mxu0 %v518_v28 }
  0x1e   :  { %482 = vmatprep.subr.bf16.mxu1 %v519_v29 }
  0x20   :  { %461 = vmatpush3.bf16.msra.mxu0 %v520_v30 }
  0x21   :  { %483 = vmatpush3.bf16.msra.mxu1 %v521_v31 }
  0x23   :  { %336 = vmatmul.mubr.bf16.vlgmr.msra.gmra.mrb[0].mxu0 %v522_v32 }
  0x24   :  { %377 = vmatmul.mubr.bf16.vlgmr.msra.gmra.mrb[0].mxu1 %v525_v34 }
  0xf6   :  { %v462_v36 = vpop.f32.mrb[0].mxu0 }
  0xf7   :  { %v484_v37 = vpop.f32.mrb[0].mxu1  ;;  %v463_v38 = vpop.f32.mrb[1].mxu0 }
  0xf8   :  { %v464_v39 = vadd.f32 %v463_v38, %v462_v36  ;;  %v485_v40 = vpop.f32.mrb[1].mxu1  ;;  %v465_v41 = vpop.f32.mrb[2].mxu0 }
  0xf9   :  { %v486_v42 = vadd.f32 %v485_v40, %v484_v37  ;;  %v487_v43 = vpop.f32.mrb[2].mxu1  ;;  %v466_v44 = vpop.f32.mrb[3].mxu0 }
  0xfa   :  { %v467_v46 = vadd.f32 %v466_v44, %v465_v41  ;;  %v488_v47 = vpop.f32.mrb[3].mxu1 }
  0xfb   :  { %v379_v48 = vadd.f32 %v486_v42, %v464_v39  ;;  %v489_v49 = vadd.f32 %v488_v47, %v487_v43 }
  0xfd   :  { %v401_v50 = vadd.f32 %v445_v45, %v379_v48  ;;  %v382_v51 = vadd.f32 %v489_v49, %v467_v46 }
  0xff   :  { %403 = vst [vmem:[%s668_s3] sm:$0xff] %v401_v50  ;;  %v402_v52 = vadd.f32 %v445_v45, %v382_v51 }
 0x101   :  { %404 = vst [vmem:[%s668_s3 + $0x8] sm:$0xff] %v402_v52 }

</bundles_post_ra>
